<compile_context>
chip_gen: v7x
topology: tpu7x:2x2x1
jax: 0.10.0
libtpu: 0.0.40
codegen_flags: <defaults>
</compile_context>

<pallas_src>
import math
import functools

import jax
import jax.numpy as jnp
from jax.experimental import pallas as pl
from jax.experimental.pallas import tpu as pltpu


def _mha_kernel(q_ref, k_ref, v_ref,
                wq_ref, bq_ref, wk_ref, bk_ref, wv_ref, bv_ref,
                wo_ref, bo_ref,
                o_ref,
                kproj_ref, vproj_ref, qproj_ref,
                *, heads, d_k, tile_k):
    bf16 = jnp.bfloat16
    f32 = jnp.float32
    tile_q = q_ref.shape[1]
    d_model = q_ref.shape[2]
    num_kv = kproj_ref.shape[0]
    qi = pl.program_id(1)

    # ---- K / V projections: once per batch element (qi == 0); reused across
    #      all query blocks via persistent VMEM scratch.  Head-major bf16
    #      layout (num_kv, H, TILE_K, d_k) so the attention matmuls below are
    #      head-batched and KV blocks are fetched with a dynamic leading index.
    @pl.when(qi == 0)
    def _project_kv():
        kb = k_ref[0].astype(bf16)            # (S, D), cast in-kernel
        vb = v_ref[0].astype(bf16)
        for h in range(heads):                # full-depth (S,D)@(D,d_k) dots
            kph = (jnp.dot(kb, wk_ref[h], preferred_element_type=f32)
                   + bk_ref[h]).astype(bf16)  # (S, d_k)
            vph = (jnp.dot(vb, wv_ref[h], preferred_element_type=f32)
                   + bv_ref[h]).astype(bf16)
            for ki in range(num_kv):
                sl = slice(ki * tile_k, (ki + 1) * tile_k)
                kproj_ref[ki, h] = kph[sl, :]
                vproj_ref[ki, h] = vph[sl, :]

    # ---- Q projection for this query block.  1/sqrt(d_k) is pre-folded into
    #      wq / bq in the wrapper, so the scores need no extra scaling.
    qb = q_ref[0].astype(bf16)                # (TILE_Q, D)
    for h in range(heads):
        qph = (jnp.dot(qb, wq_ref[h], preferred_element_type=f32)
               + bq_ref[h]).astype(bf16)
        qproj_ref[h] = qph
    qh = qproj_ref[...]                       # (H, TILE_Q, d_k) bf16

    # ---- Flash-style online softmax over KV blocks: live state is
    #      O(H * TILE_Q * TILE_K), never the full (S, S) score matrix.
    def kv_step(kv, carry):
        m_prev, l_prev, acc_prev = carry
        kblk = kproj_ref[kv]                  # (H, TILE_K, d_k) bf16
        vblk = vproj_ref[kv]
        s = jnp.einsum('hqd,hkd->hqk', qh, kblk,
                       preferred_element_type=f32)           # (H, TQ, TK) f32
        m_new = jnp.maximum(m_prev, s.max(axis=-1, keepdims=True))
        alpha = jnp.exp(m_prev - m_new)
        # NOTE: on v6e/v7x exp on bf16 operands (~2x EUP throughput) is a
        # further option; kept f32 here for v5e parity / precision.
        p = jnp.exp(s - m_new)
        l_new = alpha * l_prev + p.sum(axis=-1, keepdims=True)
        acc_new = alpha * acc_prev + jnp.einsum(
            'hqk,hkd->hqd', p.astype(bf16), vblk, preferred_element_type=f32)
        return m_new, l_new, acc_new

    m0 = jnp.full((heads, tile_q, 1), -jnp.inf, f32)
    l0 = jnp.zeros((heads, tile_q, 1), f32)
    acc0 = jnp.zeros((heads, tile_q, d_k), f32)
    _, l_fin, acc = jax.lax.fori_loop(0, num_kv, kv_step, (m0, l0, acc0))

    # Deferred softmax normalization (EUP reciprocal, approx).
    attn = acc * pl.reciprocal(l_fin, approx=True)           # (H, TQ, d_k)
    # nn.Dropout(0.1) on the attention weights is identity in eval mode.

    # ---- Output projection accumulated per head into a lane-dense (TQ, D)
    #      f32 slab; the output tile is written exactly once, full width.
    out = jnp.broadcast_to(bo_ref[...], (tile_q, d_model))   # (TQ, D) f32
    for h in range(heads):
        out = out + jnp.dot(attn[h].astype(bf16), wo_ref[h],
                            preferred_element_type=f32)
    o_ref[0] = out.astype(o_ref.dtype)


def multi_head_attention(q, k, v, params, heads, *, tile_q=128, tile_k=128,
                         out_dtype=jnp.float32):
    """Fused MHA forward (eval mode, mask=None)."""
    B, S, D = q.shape
    assert k.shape == (B, S, D) and v.shape == (B, S, D)
    assert D % heads == 0, "d_model must be divisible by heads"
    d_k = D // heads

    tile_q = min(tile_q, S)
    tile_k = min(tile_k, S)
    assert S % tile_q == 0 and S % tile_k == 0
    assert tile_q % 8 == 0 or tile_q == S
    assert tile_k % 8 == 0 or tile_k == S
    num_q = S // tile_q
    num_kv = S // tile_k

    wq, bq, wk, bk, wv, bv, wo, bo = params
    bf16 = jnp.bfloat16
    scale = 1.0 / math.sqrt(d_k)

    # nn.Linear: y = x @ W.T + b with W: (out, in).  Split the projection
    # output features per head -> (H, D, d_k); fold 1/sqrt(d_k) into Q.
    def head_w(w):
        return jnp.asarray(w).T.reshape(D, heads, d_k).transpose(1, 0, 2)

    def head_b(b):
        return jnp.asarray(b).reshape(heads, 1, d_k)

    wq_h = (head_w(wq) * scale).astype(bf16)
    bq_h = (head_b(bq) * scale).astype(jnp.float32)
    wk_h = head_w(wk).astype(bf16)
    bk_h = head_b(bk).astype(jnp.float32)
    wv_h = head_w(wv).astype(bf16)
    bv_h = head_b(bv).astype(jnp.float32)
    # Output projection: concat @ Wo.T with Wo.T's input rows split per head,
    # so the projection can be accumulated head-by-head (lane-dense result).
    wo_h = jnp.asarray(wo).T.reshape(heads, d_k, D).astype(bf16)
    bo_r = jnp.asarray(bo).reshape(1, D).astype(jnp.float32)

    q_spec = pl.BlockSpec((1, tile_q, D), lambda b, qi: (b, qi, 0))
    kv_spec = pl.BlockSpec((1, S, D), lambda b, qi: (b, 0, 0))  # resident per b
    w_spec = pl.BlockSpec((heads, D, d_k), lambda b, qi: (0, 0, 0))
    b_spec = pl.BlockSpec((heads, 1, d_k), lambda b, qi: (0, 0, 0))
    wo_spec = pl.BlockSpec((heads, d_k, D), lambda b, qi: (0, 0, 0))
    bo_spec = pl.BlockSpec((1, D), lambda b, qi: (0, 0))
    out_spec = pl.BlockSpec((1, tile_q, D), lambda b, qi: (b, qi, 0))

    # Explicit VMEM budget from the actual tile sizes (per perf review).
    out_bytes = jnp.dtype(out_dtype).itemsize
    est = (
        2 * tile_q * D * 4                    # q block (double-buffered, f32)
        + 2 * 2 * S * D * 4                   # k, v slabs (double-buffered)
        + 2 * tile_q * D * out_bytes          # output block
        + 2 * 4 * D * D * 2                   # wq/wk/wv/wo bf16 (x2 buffers)
        + (2 * heads * S * d_k + heads * tile_q * d_k) * 2   # proj scratch
        + 4 * heads * tile_q * tile_k * 4     # scores / p temporaries
        + 4 * heads * tile_q * d_k * 4        # m/l/acc carries + attn
    )
    vmem_limit = int(max(32 * 1024 * 1024, min(2 * est, 64 * 1024 * 1024)))

    kernel = functools.partial(_mha_kernel, heads=heads, d_k=d_k, tile_k=tile_k)

    grid_spec = pltpu.PrefetchScalarGridSpec(
        num_scalar_prefetch=0,
        grid=(B, num_q),
        in_specs=[q_spec, kv_spec, kv_spec,
                  w_spec, b_spec, w_spec, b_spec, w_spec, b_spec,
                  wo_spec, bo_spec],
        out_specs=out_spec,
        scratch_shapes=[
            pltpu.VMEM((num_kv, heads, tile_k, d_k), bf16),   # projected K
            pltpu.VMEM((num_kv, heads, tile_k, d_k), bf16),   # projected V
            pltpu.VMEM((heads, tile_q, d_k), bf16),           # projected Q
        ],
    )

    return pl.pallas_call(
        kernel,
        out_shape=jax.ShapeDtypeStruct((B, S, D), out_dtype),
        grid_spec=grid_spec,
        compiler_params=pltpu.CompilerParams(
            # Batch axis feeds megacore; the q-block axis is sequential because
            # the K/V projection scratch is reused across a batch's q blocks.
            dimension_semantics=("parallel", "arbitrary"),
            vmem_limit_bytes=vmem_limit),
    )(q, k, v, wq_h, bq_h, wk_h, bk_h, wv_h, bv_h, wo_h, bo_r)


def multi_head_attention_ref(q, k, v, params, heads):
    B, S, D = q.shape
    d_k = D // heads
    wq, bq, wk, bk, wv, bv, wo, bo = params

    def lin(x, w, b):
        return x @ w.T + b

    qp = lin(q, wq, bq).reshape(B, S, heads, d_k).transpose(0, 2, 1, 3)
    kp = lin(k, wk, bk).reshape(B, S, heads, d_k).transpose(0, 2, 1, 3)
    vp = lin(v, wv, bv).reshape(B, S, heads, d_k).transpose(0, 2, 1, 3)
    scores = jnp.einsum('bhqd,bhkd->bhqk', qp, kp) / math.sqrt(d_k)
    p = jax.nn.softmax(scores, axis=-1)
    o = jnp.einsum('bhqk,bhkd->bhqd', p, vp)
    concat = o.transpose(0, 2, 1, 3).reshape(B, S, D)
    return concat @ wo.T + bo


if __name__ == "__main__":
    # Small shapes consistent with the module (bs, seq_len, d_model), h heads.
    # seq=256 with the default 128-wide tiles exercises both the query-block
    # grid axis and the in-kernel flash KV loop.
    B, S, D, H = 2, 256, 256, 4

    key = jax.random.PRNGKey(0)
    keys = jax.random.split(key, 11)
    q = jax.random.normal(keys[0], (B, S, D), jnp.float32)
    k = jax.random.normal(keys[1], (B, S, D), jnp.float32)
    v = jax.random.normal(keys[2], (B, S, D), jnp.float32)

    w_scale = 1.0 / math.sqrt(D)
    params = (
        jax.random.normal(keys[3], (D, D), jnp.float32) * w_scale,   # Wq
        jax.random.normal(keys[4], (D,), jnp.float32) * w_scale,     # bq
        jax.random.normal(keys[5], (D, D), jnp.float32) * w_scale,   # Wk
        jax.random.normal(keys[6], (D,), jnp.float32) * w_scale,     # bk
        jax.random.normal(keys[7], (D, D), jnp.float32) * w_scale,   # Wv
        jax.random.normal(keys[8], (D,), jnp.float32) * w_scale,     # bv
        jax.random.normal(keys[9], (D, D), jnp.float32) * w_scale,   # Wo
        jax.random.normal(keys[10], (D,), jnp.float32) * w_scale,    # bo
    )

    out = multi_head_attention(q, k, v, params, H)
    out = jax.block_until_ready(out)

    ref = multi_head_attention_ref(q, k, v, params, H)
    assert out.shape == (B, S, D)
    # bf16 MXU operands + approx softmax reciprocal vs. full-f32 reference.
    err = jnp.max(jnp.abs(out - ref))
    assert jnp.allclose(out, ref, atol=1e-1, rtol=1e-1), f"max abs err {err}"
    print("KERNEL_OK")
</pallas_src>

<mosaic_0001>
module attributes {stable_mosaic.version = 11 : i64} {
  func.func @_mha_kernel(%arg0: i32, %arg1: i32, %arg2: memref<1x128x256xf32, #tpu.memory_space<vmem>>, %arg3: memref<1x256x256xf32, #tpu.memory_space<vmem>>, %arg4: memref<1x256x256xf32, #tpu.memory_space<vmem>>, %arg5: memref<4x256x64xbf16, #tpu.memory_space<vmem>>, %arg6: memref<4x1x64xf32, #tpu.memory_space<vmem>>, %arg7: memref<4x256x64xbf16, #tpu.memory_space<vmem>>, %arg8: memref<4x1x64xf32, #tpu.memory_space<vmem>>, %arg9: memref<4x256x64xbf16, #tpu.memory_space<vmem>>, %arg10: memref<4x1x64xf32, #tpu.memory_space<vmem>>, %arg11: memref<4x64x256xbf16, #tpu.memory_space<vmem>>, %arg12: memref<1x256xf32, #tpu.memory_space<vmem>>, %arg13: memref<1x128x256xf32, #tpu.memory_space<vmem>>, %arg14: memref<2x4x128x64xbf16, #tpu.memory_space<vmem>>, %arg15: memref<2x4x128x64xbf16, #tpu.memory_space<vmem>>, %arg16: memref<4x128x64xbf16, #tpu.memory_space<vmem>>) attributes {dimension_semantics = [#tpu.dimension_semantics<parallel>, #tpu.dimension_semantics<arbitrary>], iteration_bounds = array<i64: 2, 2>, scalar_prefetch = 0 : i64, scratch_operands = 3 : i64, tpu.core_type = #tpu.core_type<tc>, window_params = [{transform_indices = @transform_0, window_bounds = array<i64: 1, 128, 256>}, {transform_indices = @transform_1, window_bounds = array<i64: 1, 256, 256>}, {transform_indices = @transform_2, window_bounds = array<i64: 1, 256, 256>}, {pipeline_mode = #tpu.pipeline_mode<synchronous>, transform_indices = @transform_3, window_bounds = array<i64: 4, 256, 64>}, {pipeline_mode = #tpu.pipeline_mode<synchronous>, transform_indices = @transform_4, window_bounds = array<i64: 4, 1, 64>}, {pipeline_mode = #tpu.pipeline_mode<synchronous>, transform_indices = @transform_5, window_bounds = array<i64: 4, 256, 64>}, {pipeline_mode = #tpu.pipeline_mode<synchronous>, transform_indices = @transform_6, window_bounds = array<i64: 4, 1, 64>}, {pipeline_mode = #tpu.pipeline_mode<synchronous>, transform_indices = @transform_7, window_bounds = array<i64: 4, 256, 64>}, {pipeline_mode = #tpu.pipeline_mode<synchronous>, transform_indices = @transform_8, window_bounds = array<i64: 4, 1, 64>}, {pipeline_mode = #tpu.pipeline_mode<synchronous>, transform_indices = @transform_9, window_bounds = array<i64: 4, 64, 256>}, {pipeline_mode = #tpu.pipeline_mode<synchronous>, transform_indices = @transform_10, window_bounds = array<i64: 1, 256>}, {transform_indices = @transform_11, window_bounds = array<i64: 1, 128, 256>}]} {
    %c0_i32 = arith.constant 0 : i32
    %0 = arith.cmpi eq, %arg1, %c0_i32 : i32
    %1 = arith.extui %0 : i1 to i32
    %c0_i32_0 = arith.constant 0 : i32
    %2 = arith.cmpi ne, %1, %c0_i32_0 : i32
    scf.if %2 {
      %c0_68 = arith.constant 0 : index
      %c0_69 = arith.constant 0 : index
      %c0_70 = arith.constant 0 : index
      %93 = vector.load %arg3[%c0_68, %c0_69, %c0_70] : memref<1x256x256xf32, #tpu.memory_space<vmem>>, vector<1x256x256xf32>
      %94 = vector.shape_cast %93 : vector<1x256x256xf32> to vector<256x256xf32>
      %95 = arith.truncf %94 : vector<256x256xf32> to vector<256x256xbf16>
      %c0_71 = arith.constant 0 : index
      %c0_72 = arith.constant 0 : index
      %c0_73 = arith.constant 0 : index
      %96 = vector.load %arg4[%c0_71, %c0_72, %c0_73] : memref<1x256x256xf32, #tpu.memory_space<vmem>>, vector<1x256x256xf32>
      %97 = vector.shape_cast %96 : vector<1x256x256xf32> to vector<256x256xf32>
      %98 = arith.truncf %97 : vector<256x256xf32> to vector<256x256xbf16>
      %c0_74 = arith.constant 0 : index
      %c0_75 = arith.constant 0 : index
      %c0_76 = arith.constant 0 : index
      %99 = vector.load %arg7[%c0_74, %c0_75, %c0_76] : memref<4x256x64xbf16, #tpu.memory_space<vmem>>, vector<1x256x64xbf16>
      %100 = vector.shape_cast %99 : vector<1x256x64xbf16> to vector<256x64xbf16>
      %cst_77 = arith.constant dense<0.000000e+00> : vector<256x64xf32>
      %101 = tpu.matmul %95, %100, %cst_77 {dimension_numbers = #tpu.dot_dimension_numbers<[1], [0], [0], [1], [0, 0, 1, 1], [], []>} : vector<256x256xbf16>, vector<256x64xbf16>, vector<256x64xf32> -> vector<256x64xf32>
      %c0_78 = arith.constant 0 : index
      %c0_79 = arith.constant 0 : index
      %c0_80 = arith.constant 0 : index
      %102 = vector.load %arg8[%c0_78, %c0_79, %c0_80] : memref<4x1x64xf32, #tpu.memory_space<vmem>>, vector<1x1x64xf32>
      %103 = vector.shape_cast %102 : vector<1x1x64xf32> to vector<1x64xf32>
      %104 = vector.broadcast %103 : vector<1x64xf32> to vector<256x64xf32>
      %105 = arith.addf %101, %104 : vector<256x64xf32>
      %106 = arith.truncf %105 : vector<256x64xf32> to vector<256x64xbf16>
      %c0_81 = arith.constant 0 : index
      %c0_82 = arith.constant 0 : index
      %c0_83 = arith.constant 0 : index
      %107 = vector.load %arg9[%c0_81, %c0_82, %c0_83] : memref<4x256x64xbf16, #tpu.memory_space<vmem>>, vector<1x256x64xbf16>
      %108 = vector.shape_cast %107 : vector<1x256x64xbf16> to vector<256x64xbf16>
      %cst_84 = arith.constant dense<0.000000e+00> : vector<256x64xf32>
      %109 = tpu.matmul %98, %108, %cst_84 {dimension_numbers = #tpu.dot_dimension_numbers<[1], [0], [0], [1], [0, 0, 1, 1], [], []>} : vector<256x256xbf16>, vector<256x64xbf16>, vector<256x64xf32> -> vector<256x64xf32>
      %c0_85 = arith.constant 0 : index
      %c0_86 = arith.constant 0 : index
      %c0_87 = arith.constant 0 : index
      %110 = vector.load %arg10[%c0_85, %c0_86, %c0_87] : memref<4x1x64xf32, #tpu.memory_space<vmem>>, vector<1x1x64xf32>
      %111 = vector.shape_cast %110 : vector<1x1x64xf32> to vector<1x64xf32>
      %112 = vector.broadcast %111 : vector<1x64xf32> to vector<256x64xf32>
      %113 = arith.addf %109, %112 : vector<256x64xf32>
      %114 = arith.truncf %113 : vector<256x64xf32> to vector<256x64xbf16>
      %115 = vector.extract_strided_slice %106 {offsets = [0, 0], sizes = [128, 64], strides = [1, 1]} : vector<256x64xbf16> to vector<128x64xbf16>
      %c0_88 = arith.constant 0 : index
      %c0_89 = arith.constant 0 : index
      %c0_90 = arith.constant 0 : index
      %c0_91 = arith.constant 0 : index
      %116 = vector.load %arg14[%c0_88, %c0_89, %c0_90, %c0_91] : memref<2x4x128x64xbf16, #tpu.memory_space<vmem>>, vector<1x1x128x64xbf16>
      %117 = vector.shape_cast %116 : vector<1x1x128x64xbf16> to vector<128x64xbf16>
      %118 = vector.shape_cast %115 : vector<128x64xbf16> to vector<1x1x128x64xbf16>
      tpu.vector_store %arg14[%c0_88, %c0_89, %c0_90, %c0_91], %118 {strides = array<i32>} : memref<2x4x128x64xbf16, #tpu.memory_space<vmem>>, vector<1x1x128x64xbf16>,
      %119 = vector.extract_strided_slice %114 {offsets = [0, 0], sizes = [128, 64], strides = [1, 1]} : vector<256x64xbf16> to vector<128x64xbf16>
      %c0_92 = arith.constant 0 : index
      %c0_93 = arith.constant 0 : index
      %c0_94 = arith.constant 0 : index
      %c0_95 = arith.constant 0 : index
      %120 = vector.load %arg15[%c0_92, %c0_93, %c0_94, %c0_95] : memref<2x4x128x64xbf16, #tpu.memory_space<vmem>>, vector<1x1x128x64xbf16>
      %121 = vector.shape_cast %120 : vector<1x1x128x64xbf16> to vector<128x64xbf16>
      %122 = vector.shape_cast %119 : vector<128x64xbf16> to vector<1x1x128x64xbf16>
      tpu.vector_store %arg15[%c0_92, %c0_93, %c0_94, %c0_95], %122 {strides = array<i32>} : memref<2x4x128x64xbf16, #tpu.memory_space<vmem>>, vector<1x1x128x64xbf16>,
      %123 = vector.extract_strided_slice %106 {offsets = [128, 0], sizes = [128, 64], strides = [1, 1]} : vector<256x64xbf16> to vector<128x64xbf16>
      %c1_96 = arith.constant 1 : index
      %c0_97 = arith.constant 0 : index
      %c0_98 = arith.constant 0 : index
      %c0_99 = arith.constant 0 : index
      %124 = vector.load %arg14[%c1_96, %c0_97, %c0_98, %c0_99] : memref<2x4x128x64xbf16, #tpu.memory_space<vmem>>, vector<1x1x128x64xbf16>
      %125 = vector.shape_cast %124 : vector<1x1x128x64xbf16> to vector<128x64xbf16>
      %126 = vector.shape_cast %123 : vector<128x64xbf16> to vector<1x1x128x64xbf16>
      tpu.vector_store %arg14[%c1_96, %c0_97, %c0_98, %c0_99], %126 {strides = array<i32>} : memref<2x4x128x64xbf16, #tpu.memory_space<vmem>>, vector<1x1x128x64xbf16>,
      %127 = vector.extract_strided_slice %114 {offsets = [128, 0], sizes = [128, 64], strides = [1, 1]} : vector<256x64xbf16> to vector<128x64xbf16>
      %c1_100 = arith.constant 1 : index
      %c0_101 = arith.constant 0 : index
      %c0_102 = arith.constant 0 : index
      %c0_103 = arith.constant 0 : index
      %128 = vector.load %arg15[%c1_100, %c0_101, %c0_102, %c0_103] : memref<2x4x128x64xbf16, #tpu.memory_space<vmem>>, vector<1x1x128x64xbf16>
      %129 = vector.shape_cast %128 : vector<1x1x128x64xbf16> to vector<128x64xbf16>
      %130 = vector.shape_cast %127 : vector<128x64xbf16> to vector<1x1x128x64xbf16>
      tpu.vector_store %arg15[%c1_100, %c0_101, %c0_102, %c0_103], %130 {strides = array<i32>} : memref<2x4x128x64xbf16, #tpu.memory_space<vmem>>, vector<1x1x128x64xbf16>,
      %c1_104 = arith.constant 1 : index
      %c0_105 = arith.constant 0 : index
      %c0_106 = arith.constant 0 : index
      %131 = vector.load %arg7[%c1_104, %c0_105, %c0_106] : memref<4x256x64xbf16, #tpu.memory_space<vmem>>, vector<1x256x64xbf16>
      %132 = vector.shape_cast %131 : vector<1x256x64xbf16> to vector<256x64xbf16>
      %cst_107 = arith.constant dense<0.000000e+00> : vector<256x64xf32>
      %133 = tpu.matmul %95, %132, %cst_107 {dimension_numbers = #tpu.dot_dimension_numbers<[1], [0], [0], [1], [0, 0, 1, 1], [], []>} : vector<256x256xbf16>, vector<256x64xbf16>, vector<256x64xf32> -> vector<256x64xf32>
      %c1_108 = arith.constant 1 : index
      %c0_109 = arith.constant 0 : index
      %c0_110 = arith.constant 0 : index
      %134 = vector.load %arg8[%c1_108, %c0_109, %c0_110] : memref<4x1x64xf32, #tpu.memory_space<vmem>>, vector<1x1x64xf32>
      %135 = vector.shape_cast %134 : vector<1x1x64xf32> to vector<1x64xf32>
      %136 = vector.broadcast %135 : vector<1x64xf32> to vector<256x64xf32>
      %137 = arith.addf %133, %136 : vector<256x64xf32>
      %138 = arith.truncf %137 : vector<256x64xf32> to vector<256x64xbf16>
      %c1_111 = arith.constant 1 : index
      %c0_112 = arith.constant 0 : index
      %c0_113 = arith.constant 0 : index
      %139 = vector.load %arg9[%c1_111, %c0_112, %c0_113] : memref<4x256x64xbf16, #tpu.memory_space<vmem>>, vector<1x256x64xbf16>
      %140 = vector.shape_cast %139 : vector<1x256x64xbf16> to vector<256x64xbf16>
      %cst_114 = arith.constant dense<0.000000e+00> : vector<256x64xf32>
      %141 = tpu.matmul %98, %140, %cst_114 {dimension_numbers = #tpu.dot_dimension_numbers<[1], [0], [0], [1], [0, 0, 1, 1], [], []>} : vector<256x256xbf16>, vector<256x64xbf16>, vector<256x64xf32> -> vector<256x64xf32>
      %c1_115 = arith.constant 1 : index
      %c0_116 = arith.constant 0 : index
      %c0_117 = arith.constant 0 : index
      %142 = vector.load %arg10[%c1_115, %c0_116, %c0_117] : memref<4x1x64xf32, #tpu.memory_space<vmem>>, vector<1x1x64xf32>
      %143 = vector.shape_cast %142 : vector<1x1x64xf32> to vector<1x64xf32>
      %144 = vector.broadcast %143 : vector<1x64xf32> to vector<256x64xf32>
      %145 = arith.addf %141, %144 : vector<256x64xf32>
      %146 = arith.truncf %145 : vector<256x64xf32> to vector<256x64xbf16>
      %147 = vector.extract_strided_slice %138 {offsets = [0, 0], sizes = [128, 64], strides = [1, 1]} : vector<256x64xbf16> to vector<128x64xbf16>
      %c0_118 = arith.constant 0 : index
      %c1_119 = arith.constant 1 : index
      %c0_120 = arith.constant 0 : index
      %c0_121 = arith.constant 0 : index
      %148 = vector.load %arg14[%c0_118, %c1_119, %c0_120, %c0_121] : memref<2x4x128x64xbf16, #tpu.memory_space<vmem>>, vector<1x1x128x64xbf16>
      %149 = vector.shape_cast %148 : vector<1x1x128x64xbf16> to vector<128x64xbf16>
      %150 = vector.shape_cast %147 : vector<128x64xbf16> to vector<1x1x128x64xbf16>
      tpu.vector_store %arg14[%c0_118, %c1_119, %c0_120, %c0_121], %150 {strides = array<i32>} : memref<2x4x128x64xbf16, #tpu.memory_space<vmem>>, vector<1x1x128x64xbf16>,
      %151 = vector.extract_strided_slice %146 {offsets = [0, 0], sizes = [128, 64], strides = [1, 1]} : vector<256x64xbf16> to vector<128x64xbf16>
      %c0_122 = arith.constant 0 : index
      %c1_123 = arith.constant 1 : index
      %c0_124 = arith.constant 0 : index
      %c0_125 = arith.constant 0 : index
      %152 = vector.load %arg15[%c0_122, %c1_123, %c0_124, %c0_125] : memref<2x4x128x64xbf16, #tpu.memory_space<vmem>>, vector<1x1x128x64xbf16>
      %153 = vector.shape_cast %152 : vector<1x1x128x64xbf16> to vector<128x64xbf16>
      %154 = vector.shape_cast %151 : vector<128x64xbf16> to vector<1x1x128x64xbf16>
      tpu.vector_store %arg15[%c0_122, %c1_123, %c0_124, %c0_125], %154 {strides = array<i32>} : memref<2x4x128x64xbf16, #tpu.memory_space<vmem>>, vector<1x1x128x64xbf16>,
      %155 = vector.extract_strided_slice %138 {offsets = [128, 0], sizes = [128, 64], strides = [1, 1]} : vector<256x64xbf16> to vector<128x64xbf16>
      %c1_126 = arith.constant 1 : index
      %c1_127 = arith.constant 1 : index
      %c0_128 = arith.constant 0 : index
      %c0_129 = arith.constant 0 : index
      %156 = vector.load %arg14[%c1_126, %c1_127, %c0_128, %c0_129] : memref<2x4x128x64xbf16, #tpu.memory_space<vmem>>, vector<1x1x128x64xbf16>
      %157 = vector.shape_cast %156 : vector<1x1x128x64xbf16> to vector<128x64xbf16>
      %158 = vector.shape_cast %155 : vector<128x64xbf16> to vector<1x1x128x64xbf16>
      tpu.vector_store %arg14[%c1_126, %c1_127, %c0_128, %c0_129], %158 {strides = array<i32>} : memref<2x4x128x64xbf16, #tpu.memory_space<vmem>>, vector<1x1x128x64xbf16>,
      %159 = vector.extract_strided_slice %146 {offsets = [128, 0], sizes = [128, 64], strides = [1, 1]} : vector<256x64xbf16> to vector<128x64xbf16>
      %c1_130 = arith.constant 1 : index
      %c1_131 = arith.constant 1 : index
      %c0_132 = arith.constant 0 : index
      %c0_133 = arith.constant 0 : index
      %160 = vector.load %arg15[%c1_130, %c1_131, %c0_132, %c0_133] : memref<2x4x128x64xbf16, #tpu.memory_space<vmem>>, vector<1x1x128x64xbf16>
      %161 = vector.shape_cast %160 : vector<1x1x128x64xbf16> to vector<128x64xbf16>
      %162 = vector.shape_cast %159 : vector<128x64xbf16> to vector<1x1x128x64xbf16>
      tpu.vector_store %arg15[%c1_130, %c1_131, %c0_132, %c0_133], %162 {strides = array<i32>} : memref<2x4x128x64xbf16, #tpu.memory_space<vmem>>, vector<1x1x128x64xbf16>,
      %c2_134 = arith.constant 2 : index
      %c0_135 = arith.constant 0 : index
      %c0_136 = arith.constant 0 : index
      %163 = vector.load %arg7[%c2_134, %c0_135, %c0_136] : memref<4x256x64xbf16, #tpu.memory_space<vmem>>, vector<1x256x64xbf16>
      %164 = vector.shape_cast %163 : vector<1x256x64xbf16> to vector<256x64xbf16>
      %cst_137 = arith.constant dense<0.000000e+00> : vector<256x64xf32>
      %165 = tpu.matmul %95, %164, %cst_137 {dimension_numbers = #tpu.dot_dimension_numbers<[1], [0], [0], [1], [0, 0, 1, 1], [], []>} : vector<256x256xbf16>, vector<256x64xbf16>, vector<256x64xf32> -> vector<256x64xf32>
      %c2_138 = arith.constant 2 : index
      %c0_139 = arith.constant 0 : index
      %c0_140 = arith.constant 0 : index
      %166 = vector.load %arg8[%c2_138, %c0_139, %c0_140] : memref<4x1x64xf32, #tpu.memory_space<vmem>>, vector<1x1x64xf32>
      %167 = vector.shape_cast %166 : vector<1x1x64xf32> to vector<1x64xf32>
      %168 = vector.broadcast %167 : vector<1x64xf32> to vector<256x64xf32>
      %169 = arith.addf %165, %168 : vector<256x64xf32>
      %170 = arith.truncf %169 : vector<256x64xf32> to vector<256x64xbf16>
      %c2_141 = arith.constant 2 : index
      %c0_142 = arith.constant 0 : index
      %c0_143 = arith.constant 0 : index
      %171 = vector.load %arg9[%c2_141, %c0_142, %c0_143] : memref<4x256x64xbf16, #tpu.memory_space<vmem>>, vector<1x256x64xbf16>
      %172 = vector.shape_cast %171 : vector<1x256x64xbf16> to vector<256x64xbf16>
      %cst_144 = arith.constant dense<0.000000e+00> : vector<256x64xf32>
      %173 = tpu.matmul %98, %172, %cst_144 {dimension_numbers = #tpu.dot_dimension_numbers<[1], [0], [0], [1], [0, 0, 1, 1], [], []>} : vector<256x256xbf16>, vector<256x64xbf16>, vector<256x64xf32> -> vector<256x64xf32>
      %c2_145 = arith.constant 2 : index
      %c0_146 = arith.constant 0 : index
      %c0_147 = arith.constant 0 : index
      %174 = vector.load %arg10[%c2_145, %c0_146, %c0_147] : memref<4x1x64xf32, #tpu.memory_space<vmem>>, vector<1x1x64xf32>
      %175 = vector.shape_cast %174 : vector<1x1x64xf32> to vector<1x64xf32>
      %176 = vector.broadcast %175 : vector<1x64xf32> to vector<256x64xf32>
      %177 = arith.addf %173, %176 : vector<256x64xf32>
      %178 = arith.truncf %177 : vector<256x64xf32> to vector<256x64xbf16>
      %179 = vector.extract_strided_slice %170 {offsets = [0, 0], sizes = [128, 64], strides = [1, 1]} : vector<256x64xbf16> to vector<128x64xbf16>
      %c0_148 = arith.constant 0 : index
      %c2_149 = arith.constant 2 : index
      %c0_150 = arith.constant 0 : index
      %c0_151 = arith.constant 0 : index
      %180 = vector.load %arg14[%c0_148, %c2_149, %c0_150, %c0_151] : memref<2x4x128x64xbf16, #tpu.memory_space<vmem>>, vector<1x1x128x64xbf16>
      %181 = vector.shape_cast %180 : vector<1x1x128x64xbf16> to vector<128x64xbf16>
      %182 = vector.shape_cast %179 : vector<128x64xbf16> to vector<1x1x128x64xbf16>
      tpu.vector_store %arg14[%c0_148, %c2_149, %c0_150, %c0_151], %182 {strides = array<i32>} : memref<2x4x128x64xbf16, #tpu.memory_space<vmem>>, vector<1x1x128x64xbf16>,
      %183 = vector.extract_strided_slice %178 {offsets = [0, 0], sizes = [128, 64], strides = [1, 1]} : vector<256x64xbf16> to vector<128x64xbf16>
      %c0_152 = arith.constant 0 : index
      %c2_153 = arith.constant 2 : index
      %c0_154 = arith.constant 0 : index
      %c0_155 = arith.constant 0 : index
      %184 = vector.load %arg15[%c0_152, %c2_153, %c0_154, %c0_155] : memref<2x4x128x64xbf16, #tpu.memory_space<vmem>>, vector<1x1x128x64xbf16>
      %185 = vector.shape_cast %184 : vector<1x1x128x64xbf16> to vector<128x64xbf16>
      %186 = vector.shape_cast %183 : vector<128x64xbf16> to vector<1x1x128x64xbf16>
      tpu.vector_store %arg15[%c0_152, %c2_153, %c0_154, %c0_155], %186 {strides = array<i32>} : memref<2x4x128x64xbf16, #tpu.memory_space<vmem>>, vector<1x1x128x64xbf16>,
      %187 = vector.extract_strided_slice %170 {offsets = [128, 0], sizes = [128, 64], strides = [1, 1]} : vector<256x64xbf16> to vector<128x64xbf16>
      %c1_156 = arith.constant 1 : index
      %c2_157 = arith.constant 2 : index
      %c0_158 = arith.constant 0 : index
      %c0_159 = arith.constant 0 : index
      %188 = vector.load %arg14[%c1_156, %c2_157, %c0_158, %c0_159] : memref<2x4x128x64xbf16, #tpu.memory_space<vmem>>, vector<1x1x128x64xbf16>
      %189 = vector.shape_cast %188 : vector<1x1x128x64xbf16> to vector<128x64xbf16>
      %190 = vector.shape_cast %187 : vector<128x64xbf16> to vector<1x1x128x64xbf16>
      tpu.vector_store %arg14[%c1_156, %c2_157, %c0_158, %c0_159], %190 {strides = array<i32>} : memref<2x4x128x64xbf16, #tpu.memory_space<vmem>>, vector<1x1x128x64xbf16>,
      %191 = vector.extract_strided_slice %178 {offsets = [128, 0], sizes = [128, 64], strides = [1, 1]} : vector<256x64xbf16> to vector<128x64xbf16>
      %c1_160 = arith.constant 1 : index
      %c2_161 = arith.constant 2 : index
      %c0_162 = arith.constant 0 : index
      %c0_163 = arith.constant 0 : index
      %192 = vector.load %arg15[%c1_160, %c2_161, %c0_162, %c0_163] : memref<2x4x128x64xbf16, #tpu.memory_space<vmem>>, vector<1x1x128x64xbf16>
      %193 = vector.shape_cast %192 : vector<1x1x128x64xbf16> to vector<128x64xbf16>
      %194 = vector.shape_cast %191 : vector<128x64xbf16> to vector<1x1x128x64xbf16>
      tpu.vector_store %arg15[%c1_160, %c2_161, %c0_162, %c0_163], %194 {strides = array<i32>} : memref<2x4x128x64xbf16, #tpu.memory_space<vmem>>, vector<1x1x128x64xbf16>,
      %c3_164 = arith.constant 3 : index
      %c0_165 = arith.constant 0 : index
      %c0_166 = arith.constant 0 : index
      %195 = vector.load %arg7[%c3_164, %c0_165, %c0_166] : memref<4x256x64xbf16, #tpu.memory_space<vmem>>, vector<1x256x64xbf16>
      %196 = vector.shape_cast %195 : vector<1x256x64xbf16> to vector<256x64xbf16>
      %cst_167 = arith.constant dense<0.000000e+00> : vector<256x64xf32>
      %197 = tpu.matmul %95, %196, %cst_167 {dimension_numbers = #tpu.dot_dimension_numbers<[1], [0], [0], [1], [0, 0, 1, 1], [], []>} : vector<256x256xbf16>, vector<256x64xbf16>, vector<256x64xf32> -> vector<256x64xf32>
      %c3_168 = arith.constant 3 : index
      %c0_169 = arith.constant 0 : index
      %c0_170 = arith.constant 0 : index
      %198 = vector.load %arg8[%c3_168, %c0_169, %c0_170] : memref<4x1x64xf32, #tpu.memory_space<vmem>>, vector<1x1x64xf32>
      %199 = vector.shape_cast %198 : vector<1x1x64xf32> to vector<1x64xf32>
      %200 = vector.broadcast %199 : vector<1x64xf32> to vector<256x64xf32>
      %201 = arith.addf %197, %200 : vector<256x64xf32>
      %202 = arith.truncf %201 : vector<256x64xf32> to vector<256x64xbf16>
      %c3_171 = arith.constant 3 : index
      %c0_172 = arith.constant 0 : index
      %c0_173 = arith.constant 0 : index
      %203 = vector.load %arg9[%c3_171, %c0_172, %c0_173] : memref<4x256x64xbf16, #tpu.memory_space<vmem>>, vector<1x256x64xbf16>
      %204 = vector.shape_cast %203 : vector<1x256x64xbf16> to vector<256x64xbf16>
      %cst_174 = arith.constant dense<0.000000e+00> : vector<256x64xf32>
      %205 = tpu.matmul %98, %204, %cst_174 {dimension_numbers = #tpu.dot_dimension_numbers<[1], [0], [0], [1], [0, 0, 1, 1], [], []>} : vector<256x256xbf16>, vector<256x64xbf16>, vector<256x64xf32> -> vector<256x64xf32>
      %c3_175 = arith.constant 3 : index
      %c0_176 = arith.constant 0 : index
      %c0_177 = arith.constant 0 : index
      %206 = vector.load %arg10[%c3_175, %c0_176, %c0_177] : memref<4x1x64xf32, #tpu.memory_space<vmem>>, vector<1x1x64xf32>
      %207 = vector.shape_cast %206 : vector<1x1x64xf32> to vector<1x64xf32>
      %208 = vector.broadcast %207 : vector<1x64xf32> to vector<256x64xf32>
      %209 = arith.addf %205, %208 : vector<256x64xf32>
      %210 = arith.truncf %209 : vector<256x64xf32> to vector<256x64xbf16>
      %211 = vector.extract_strided_slice %202 {offsets = [0, 0], sizes = [128, 64], strides = [1, 1]} : vector<256x64xbf16> to vector<128x64xbf16>
      %c0_178 = arith.constant 0 : index
      %c3_179 = arith.constant 3 : index
      %c0_180 = arith.constant 0 : index
      %c0_181 = arith.constant 0 : index
      %212 = vector.load %arg14[%c0_178, %c3_179, %c0_180, %c0_181] : memref<2x4x128x64xbf16, #tpu.memory_space<vmem>>, vector<1x1x128x64xbf16>
      %213 = vector.shape_cast %212 : vector<1x1x128x64xbf16> to vector<128x64xbf16>
      %214 = vector.shape_cast %211 : vector<128x64xbf16> to vector<1x1x128x64xbf16>
      tpu.vector_store %arg14[%c0_178, %c3_179, %c0_180, %c0_181], %214 {strides = array<i32>} : memref<2x4x128x64xbf16, #tpu.memory_space<vmem>>, vector<1x1x128x64xbf16>,
      %215 = vector.extract_strided_slice %210 {offsets = [0, 0], sizes = [128, 64], strides = [1, 1]} : vector<256x64xbf16> to vector<128x64xbf16>
      %c0_182 = arith.constant 0 : index
      %c3_183 = arith.constant 3 : index
      %c0_184 = arith.constant 0 : index
      %c0_185 = arith.constant 0 : index
      %216 = vector.load %arg15[%c0_182, %c3_183, %c0_184, %c0_185] : memref<2x4x128x64xbf16, #tpu.memory_space<vmem>>, vector<1x1x128x64xbf16>
      %217 = vector.shape_cast %216 : vector<1x1x128x64xbf16> to vector<128x64xbf16>
      %218 = vector.shape_cast %215 : vector<128x64xbf16> to vector<1x1x128x64xbf16>
      tpu.vector_store %arg15[%c0_182, %c3_183, %c0_184, %c0_185], %218 {strides = array<i32>} : memref<2x4x128x64xbf16, #tpu.memory_space<vmem>>, vector<1x1x128x64xbf16>,
      %219 = vector.extract_strided_slice %202 {offsets = [128, 0], sizes = [128, 64], strides = [1, 1]} : vector<256x64xbf16> to vector<128x64xbf16>
      %c1_186 = arith.constant 1 : index
      %c3_187 = arith.constant 3 : index
      %c0_188 = arith.constant 0 : index
      %c0_189 = arith.constant 0 : index
      %220 = vector.load %arg14[%c1_186, %c3_187, %c0_188, %c0_189] : memref<2x4x128x64xbf16, #tpu.memory_space<vmem>>, vector<1x1x128x64xbf16>
      %221 = vector.shape_cast %220 : vector<1x1x128x64xbf16> to vector<128x64xbf16>
      %222 = vector.shape_cast %219 : vector<128x64xbf16> to vector<1x1x128x64xbf16>
      tpu.vector_store %arg14[%c1_186, %c3_187, %c0_188, %c0_189], %222 {strides = array<i32>} : memref<2x4x128x64xbf16, #tpu.memory_space<vmem>>, vector<1x1x128x64xbf16>,
      %223 = vector.extract_strided_slice %210 {offsets = [128, 0], sizes = [128, 64], strides = [1, 1]} : vector<256x64xbf16> to vector<128x64xbf16>
      %c1_190 = arith.constant 1 : index
      %c3_191 = arith.constant 3 : index
      %c0_192 = arith.constant 0 : index
      %c0_193 = arith.constant 0 : index
      %224 = vector.load %arg15[%c1_190, %c3_191, %c0_192, %c0_193] : memref<2x4x128x64xbf16, #tpu.memory_space<vmem>>, vector<1x1x128x64xbf16>
      %225 = vector.shape_cast %224 : vector<1x1x128x64xbf16> to vector<128x64xbf16>
      %226 = vector.shape_cast %223 : vector<128x64xbf16> to vector<1x1x128x64xbf16>
      tpu.vector_store %arg15[%c1_190, %c3_191, %c0_192, %c0_193], %226 {strides = array<i32>} : memref<2x4x128x64xbf16, #tpu.memory_space<vmem>>, vector<1x1x128x64xbf16>,
    } else {
    }
    %c0 = arith.constant 0 : index
    %c0_1 = arith.constant 0 : index
    %c0_2 = arith.constant 0 : index
    %3 = vector.load %arg2[%c0, %c0_1, %c0_2] : memref<1x128x256xf32, #tpu.memory_space<vmem>>, vector<1x128x256xf32>
    %4 = vector.shape_cast %3 : vector<1x128x256xf32> to vector<128x256xf32>
    %5 = arith.truncf %4 : vector<128x256xf32> to vector<128x256xbf16>
    %c0_3 = arith.constant 0 : index
    %c0_4 = arith.constant 0 : index
    %c0_5 = arith.constant 0 : index
    %6 = vector.load %arg5[%c0_3, %c0_4, %c0_5] : memref<4x256x64xbf16, #tpu.memory_space<vmem>>, vector<1x256x64xbf16>
    %7 = vector.shape_cast %6 : vector<1x256x64xbf16> to vector<256x64xbf16>
    %cst = arith.constant dense<0.000000e+00> : vector<128x64xf32>
    %8 = tpu.matmul %5, %7, %cst {dimension_numbers = #tpu.dot_dimension_numbers<[1], [0], [0], [1], [0, 0, 1, 1], [], []>} : vector<128x256xbf16>, vector<256x64xbf16>, vector<128x64xf32> -> vector<128x64xf32>
    %c0_6 = arith.constant 0 : index
    %c0_7 = arith.constant 0 : index
    %c0_8 = arith.constant 0 : index
    %9 = vector.load %arg6[%c0_6, %c0_7, %c0_8] : memref<4x1x64xf32, #tpu.memory_space<vmem>>, vector<1x1x64xf32>
    %10 = vector.shape_cast %9 : vector<1x1x64xf32> to vector<1x64xf32>
    %11 = vector.broadcast %10 : vector<1x64xf32> to vector<128x64xf32>
    %12 = arith.addf %8, %11 : vector<128x64xf32>
    %13 = arith.truncf %12 : vector<128x64xf32> to vector<128x64xbf16>
    %c0_9 = arith.constant 0 : index
    %c0_10 = arith.constant 0 : index
    %c0_11 = arith.constant 0 : index
    %14 = vector.load %arg16[%c0_9, %c0_10, %c0_11] : memref<4x128x64xbf16, #tpu.memory_space<vmem>>, vector<1x128x64xbf16>
    %15 = vector.shape_cast %14 : vector<1x128x64xbf16> to vector<128x64xbf16>
    %16 = vector.shape_cast %13 : vector<128x64xbf16> to vector<1x128x64xbf16>
    tpu.vector_store %arg16[%c0_9, %c0_10, %c0_11], %16 {strides = array<i32>} : memref<4x128x64xbf16, #tpu.memory_space<vmem>>, vector<1x128x64xbf16>,
    %c1 = arith.constant 1 : index
    %c0_12 = arith.constant 0 : index
    %c0_13 = arith.constant 0 : index
    %17 = vector.load %arg5[%c1, %c0_12, %c0_13] : memref<4x256x64xbf16, #tpu.memory_space<vmem>>, vector<1x256x64xbf16>
    %18 = vector.shape_cast %17 : vector<1x256x64xbf16> to vector<256x64xbf16>
    %cst_14 = arith.constant dense<0.000000e+00> : vector<128x64xf32>
    %19 = tpu.matmul %5, %18, %cst_14 {dimension_numbers = #tpu.dot_dimension_numbers<[1], [0], [0], [1], [0, 0, 1, 1], [], []>} : vector<128x256xbf16>, vector<256x64xbf16>, vector<128x64xf32> -> vector<128x64xf32>
    %c1_15 = arith.constant 1 : index
    %c0_16 = arith.constant 0 : index
    %c0_17 = arith.constant 0 : index
    %20 = vector.load %arg6[%c1_15, %c0_16, %c0_17] : memref<4x1x64xf32, #tpu.memory_space<vmem>>, vector<1x1x64xf32>
    %21 = vector.shape_cast %20 : vector<1x1x64xf32> to vector<1x64xf32>
    %22 = vector.broadcast %21 : vector<1x64xf32> to vector<128x64xf32>
    %23 = arith.addf %19, %22 : vector<128x64xf32>
    %24 = arith.truncf %23 : vector<128x64xf32> to vector<128x64xbf16>
    %c1_18 = arith.constant 1 : index
    %c0_19 = arith.constant 0 : index
    %c0_20 = arith.constant 0 : index
    %25 = vector.load %arg16[%c1_18, %c0_19, %c0_20] : memref<4x128x64xbf16, #tpu.memory_space<vmem>>, vector<1x128x64xbf16>
    %26 = vector.shape_cast %25 : vector<1x128x64xbf16> to vector<128x64xbf16>
    %27 = vector.shape_cast %24 : vector<128x64xbf16> to vector<1x128x64xbf16>
    tpu.vector_store %arg16[%c1_18, %c0_19, %c0_20], %27 {strides = array<i32>} : memref<4x128x64xbf16, #tpu.memory_space<vmem>>, vector<1x128x64xbf16>,
    %c2 = arith.constant 2 : index
    %c0_21 = arith.constant 0 : index
    %c0_22 = arith.constant 0 : index
    %28 = vector.load %arg5[%c2, %c0_21, %c0_22] : memref<4x256x64xbf16, #tpu.memory_space<vmem>>, vector<1x256x64xbf16>
    %29 = vector.shape_cast %28 : vector<1x256x64xbf16> to vector<256x64xbf16>
    %cst_23 = arith.constant dense<0.000000e+00> : vector<128x64xf32>
    %30 = tpu.matmul %5, %29, %cst_23 {dimension_numbers = #tpu.dot_dimension_numbers<[1], [0], [0], [1], [0, 0, 1, 1], [], []>} : vector<128x256xbf16>, vector<256x64xbf16>, vector<128x64xf32> -> vector<128x64xf32>
    %c2_24 = arith.constant 2 : index
    %c0_25 = arith.constant 0 : index
    %c0_26 = arith.constant 0 : index
    %31 = vector.load %arg6[%c2_24, %c0_25, %c0_26] : memref<4x1x64xf32, #tpu.memory_space<vmem>>, vector<1x1x64xf32>
    %32 = vector.shape_cast %31 : vector<1x1x64xf32> to vector<1x64xf32>
    %33 = vector.broadcast %32 : vector<1x64xf32> to vector<128x64xf32>
    %34 = arith.addf %30, %33 : vector<128x64xf32>
    %35 = arith.truncf %34 : vector<128x64xf32> to vector<128x64xbf16>
    %c2_27 = arith.constant 2 : index
    %c0_28 = arith.constant 0 : index
    %c0_29 = arith.constant 0 : index
    %36 = vector.load %arg16[%c2_27, %c0_28, %c0_29] : memref<4x128x64xbf16, #tpu.memory_space<vmem>>, vector<1x128x64xbf16>
    %37 = vector.shape_cast %36 : vector<1x128x64xbf16> to vector<128x64xbf16>
    %38 = vector.shape_cast %35 : vector<128x64xbf16> to vector<1x128x64xbf16>
    tpu.vector_store %arg16[%c2_27, %c0_28, %c0_29], %38 {strides = array<i32>} : memref<4x128x64xbf16, #tpu.memory_space<vmem>>, vector<1x128x64xbf16>,
    %c3 = arith.constant 3 : index
    %c0_30 = arith.constant 0 : index
    %c0_31 = arith.constant 0 : index
    %39 = vector.load %arg5[%c3, %c0_30, %c0_31] : memref<4x256x64xbf16, #tpu.memory_space<vmem>>, vector<1x256x64xbf16>
    %40 = vector.shape_cast %39 : vector<1x256x64xbf16> to vector<256x64xbf16>
    %cst_32 = arith.constant dense<0.000000e+00> : vector<128x64xf32>
    %41 = tpu.matmul %5, %40, %cst_32 {dimension_numbers = #tpu.dot_dimension_numbers<[1], [0], [0], [1], [0, 0, 1, 1], [], []>} : vector<128x256xbf16>, vector<256x64xbf16>, vector<128x64xf32> -> vector<128x64xf32>
    %c3_33 = arith.constant 3 : index
    %c0_34 = arith.constant 0 : index
    %c0_35 = arith.constant 0 : index
    %42 = vector.load %arg6[%c3_33, %c0_34, %c0_35] : memref<4x1x64xf32, #tpu.memory_space<vmem>>, vector<1x1x64xf32>
    %43 = vector.shape_cast %42 : vector<1x1x64xf32> to vector<1x64xf32>
    %44 = vector.broadcast %43 : vector<1x64xf32> to vector<128x64xf32>
    %45 = arith.addf %41, %44 : vector<128x64xf32>
    %46 = arith.truncf %45 : vector<128x64xf32> to vector<128x64xbf16>
    %c3_36 = arith.constant 3 : index
    %c0_37 = arith.constant 0 : index
    %c0_38 = arith.constant 0 : index
    %47 = vector.load %arg16[%c3_36, %c0_37, %c0_38] : memref<4x128x64xbf16, #tpu.memory_space<vmem>>, vector<1x128x64xbf16>
    %48 = vector.shape_cast %47 : vector<1x128x64xbf16> to vector<128x64xbf16>
    %49 = vector.shape_cast %46 : vector<128x64xbf16> to vector<1x128x64xbf16>
    tpu.vector_store %arg16[%c3_36, %c0_37, %c0_38], %49 {strides = array<i32>} : memref<4x128x64xbf16, #tpu.memory_space<vmem>>, vector<1x128x64xbf16>,
    %c0_39 = arith.constant 0 : index
    %c0_40 = arith.constant 0 : index
    %c0_41 = arith.constant 0 : index
    %50 = vector.load %arg16[%c0_39, %c0_40, %c0_41] : memref<4x128x64xbf16, #tpu.memory_space<vmem>>, vector<4x128x64xbf16>
    %cst_42 = arith.constant 0xFF800000 : f32
    %51 = vector.broadcast %cst_42 : f32 to vector<4x128x1xf32>
    %cst_43 = arith.constant 0.000000e+00 : f32
    %52 = vector.broadcast %cst_43 : f32 to vector<4x128x1xf32>
    %cst_44 = arith.constant 0.000000e+00 : f32
    %53 = vector.broadcast %cst_44 : f32 to vector<4x128x64xf32>
    %c0_i32_45 = arith.constant 0 : i32
    %c2_i32 = arith.constant 2 : i32
    %54 = arith.addi %c0_i32_45, %c2_i32 : i32
    %c1_i32 = arith.constant 1 : i32
    %55:3 = scf.for %arg17 = %c0_i32_45 to %54 step %c1_i32 iter_args(%arg18 = %51, %arg19 = %52, %arg20 = %53) -> (vector<4x128x1xf32>, vector<4x128x1xf32>, vector<4x128x64xf32>)  : i32 {
      %93 = arith.index_cast %arg17 : i32 to index
      %c0_68 = arith.constant 0 : index
      %c0_69 = arith.constant 0 : index
      %c0_70 = arith.constant 0 : index
      %94 = vector.load %arg14[%93, %c0_68, %c0_69, %c0_70] : memref<2x4x128x64xbf16, #tpu.memory_space<vmem>>, vector<1x4x128x64xbf16>
      %95 = vector.shape_cast %94 : vector<1x4x128x64xbf16> to vector<4x128x64xbf16>
      %96 = arith.index_cast %arg17 : i32 to index
      %c0_71 = arith.constant 0 : index
      %c0_72 = arith.constant 0 : index
      %c0_73 = arith.constant 0 : index
      %97 = vector.load %arg15[%96, %c0_71, %c0_72, %c0_73] : memref<2x4x128x64xbf16, #tpu.memory_space<vmem>>, vector<1x4x128x64xbf16>
      %98 = vector.shape_cast %97 : vector<1x4x128x64xbf16> to vector<4x128x64xbf16>
      "tpu.trace_start"() <{level = 10 : i32, message = "hqd,hkd->hqk"}> : () -> ()
      %cst_74 = arith.constant dense<0.000000e+00> : vector<4x128x128xf32>
      %99 = tpu.matmul %50, %95, %cst_74 {dimension_numbers = #tpu.dot_dimension_numbers<[2], [2], [1], [1], [0, 0, 0, 1, 1, 1], [0], [0]>} : vector<4x128x64xbf16>, vector<4x128x64xbf16>, vector<4x128x128xf32> -> vector<4x128x128xf32>
      "tpu.trace_stop"() : () -> ()
      %cst_75 = arith.constant dense<0xFF800000> : vector<4x128xf32>
      %100 = vector.multi_reduction <maximumf>, %99, %cst_75 [2] : vector<4x128x128xf32> to vector<4x128xf32>
      %101 = vector.shape_cast %100 : vector<4x128xf32> to vector<4x128x1xf32>
      %102 = arith.maximumf %arg18, %101 : vector<4x128x1xf32>
      %103 = arith.subf %arg18, %102 : vector<4x128x1xf32>
      %104 = math.exp %103 : vector<4x128x1xf32>
      %105 = vector.broadcast %102 : vector<4x128x1xf32> to vector<4x128x128xf32>
      %106 = arith.subf %99, %105 : vector<4x128x128xf32>
      %107 = math.exp %106 : vector<4x128x128xf32>
      %108 = arith.mulf %104, %arg19 : vector<4x128x1xf32>
      %cst_76 = arith.constant dense<0.000000e+00> : vector<4x128xf32>
      %109 = vector.multi_reduction <add>, %107, %cst_76 [2] : vector<4x128x128xf32> to vector<4x128xf32>
      %110 = vector.shape_cast %109 : vector<4x128xf32> to vector<4x128x1xf32>
      %111 = arith.addf %108, %110 : vector<4x128x1xf32>
      %112 = vector.broadcast %104 : vector<4x128x1xf32> to vector<4x128x64xf32>
      %113 = arith.mulf %112, %arg20 : vector<4x128x64xf32>
      %114 = arith.truncf %107 : vector<4x128x128xf32> to vector<4x128x128xbf16>
      "tpu.trace_start"() <{level = 10 : i32, message = "hqk,hkd->hqd"}> : () -> ()
      %cst_77 = arith.constant dense<0.000000e+00> : vector<4x128x64xf32>
      %115 = tpu.matmul %114, %98, %cst_77 {dimension_numbers = #tpu.dot_dimension_numbers<[2], [1], [1], [2], [0, 0, 0, 1, 1, 2], [0], [0]>} : vector<4x128x128xbf16>, vector<4x128x64xbf16>, vector<4x128x64xf32> -> vector<4x128x64xf32>
      "tpu.trace_stop"() : () -> ()
      %116 = arith.addf %113, %115 : vector<4x128x64xf32>
      scf.yield %102, %111, %116 : vector<4x128x1xf32>, vector<4x128x1xf32>, vector<4x128x64xf32>
    }
    %c2_i32_46 = arith.constant 2 : i32
    %56 = tpu.reciprocal %55#1 {approx = true} : vector<4x128x1xf32> -> vector<4x128x1xf32>
    %57 = vector.broadcast %56 : vector<4x128x1xf32> to vector<4x128x64xf32>
    %58 = arith.mulf %55#2, %57 : vector<4x128x64xf32>
    %c0_47 = arith.constant 0 : index
    %c0_48 = arith.constant 0 : index
    %59 = vector.load %arg12[%c0_47, %c0_48] : memref<1x256xf32, #tpu.memory_space<vmem>>, vector<1x256xf32>
    %60 = vector.shape_cast %59 : vector<1x256xf32> to vector<1x256xf32>
    %61 = vector.broadcast %60 : vector<1x256xf32> to vector<128x256xf32>
    %62 = vector.extract_strided_slice %58 {offsets = [0, 0, 0], sizes = [1, 128, 64], strides = [1, 1, 1]} : vector<4x128x64xf32> to vector<1x128x64xf32>
    %63 = vector.shape_cast %62 : vector<1x128x64xf32> to vector<128x64xf32>
    %64 = arith.truncf %63 : vector<128x64xf32> to vector<128x64xbf16>
    %c0_49 = arith.constant 0 : index
    %c0_50 = arith.constant 0 : index
    %c0_51 = arith.constant 0 : index
    %65 = vector.load %arg11[%c0_49, %c0_50, %c0_51] : memref<4x64x256xbf16, #tpu.memory_space<vmem>>, vector<1x64x256xbf16>
    %66 = vector.shape_cast %65 : vector<1x64x256xbf16> to vector<64x256xbf16>
    %cst_52 = arith.constant dense<0.000000e+00> : vector<128x256xf32>
    %67 = tpu.matmul %64, %66, %cst_52 {dimension_numbers = #tpu.dot_dimension_numbers<[1], [0], [0], [1], [0, 0, 1, 1], [], []>} : vector<128x64xbf16>, vector<64x256xbf16>, vector<128x256xf32> -> vector<128x256xf32>
    %68 = arith.addf %61, %67 : vector<128x256xf32>
    %69 = vector.extract_strided_slice %58 {offsets = [1, 0, 0], sizes = [1, 128, 64], strides = [1, 1, 1]} : vector<4x128x64xf32> to vector<1x128x64xf32>
    %70 = vector.shape_cast %69 : vector<1x128x64xf32> to vector<128x64xf32>
    %71 = arith.truncf %70 : vector<128x64xf32> to vector<128x64xbf16>
    %c1_53 = arith.constant 1 : index
    %c0_54 = arith.constant 0 : index
    %c0_55 = arith.constant 0 : index
    %72 = vector.load %arg11[%c1_53, %c0_54, %c0_55] : memref<4x64x256xbf16, #tpu.memory_space<vmem>>, vector<1x64x256xbf16>
    %73 = vector.shape_cast %72 : vector<1x64x256xbf16> to vector<64x256xbf16>
    %cst_56 = arith.constant dense<0.000000e+00> : vector<128x256xf32>
    %74 = tpu.matmul %71, %73, %cst_56 {dimension_numbers = #tpu.dot_dimension_numbers<[1], [0], [0], [1], [0, 0, 1, 1], [], []>} : vector<128x64xbf16>, vector<64x256xbf16>, vector<128x256xf32> -> vector<128x256xf32>
    %75 = arith.addf %68, %74 : vector<128x256xf32>
    %76 = vector.extract_strided_slice %58 {offsets = [2, 0, 0], sizes = [1, 128, 64], strides = [1, 1, 1]} : vector<4x128x64xf32> to vector<1x128x64xf32>
    %77 = vector.shape_cast %76 : vector<1x128x64xf32> to vector<128x64xf32>
    %78 = arith.truncf %77 : vector<128x64xf32> to vector<128x64xbf16>
    %c2_57 = arith.constant 2 : index
    %c0_58 = arith.constant 0 : index
    %c0_59 = arith.constant 0 : index
    %79 = vector.load %arg11[%c2_57, %c0_58, %c0_59] : memref<4x64x256xbf16, #tpu.memory_space<vmem>>, vector<1x64x256xbf16>
    %80 = vector.shape_cast %79 : vector<1x64x256xbf16> to vector<64x256xbf16>
    %cst_60 = arith.constant dense<0.000000e+00> : vector<128x256xf32>
    %81 = tpu.matmul %78, %80, %cst_60 {dimension_numbers = #tpu.dot_dimension_numbers<[1], [0], [0], [1], [0, 0, 1, 1], [], []>} : vector<128x64xbf16>, vector<64x256xbf16>, vector<128x256xf32> -> vector<128x256xf32>
    %82 = arith.addf %75, %81 : vector<128x256xf32>
    %83 = vector.extract_strided_slice %58 {offsets = [3, 0, 0], sizes = [1, 128, 64], strides = [1, 1, 1]} : vector<4x128x64xf32> to vector<1x128x64xf32>
    %84 = vector.shape_cast %83 : vector<1x128x64xf32> to vector<128x64xf32>
    %85 = arith.truncf %84 : vector<128x64xf32> to vector<128x64xbf16>
    %c3_61 = arith.constant 3 : index
    %c0_62 = arith.constant 0 : index
    %c0_63 = arith.constant 0 : index
    %86 = vector.load %arg11[%c3_61, %c0_62, %c0_63] : memref<4x64x256xbf16, #tpu.memory_space<vmem>>, vector<1x64x256xbf16>
    %87 = vector.shape_cast %86 : vector<1x64x256xbf16> to vector<64x256xbf16>
    %cst_64 = arith.constant dense<0.000000e+00> : vector<128x256xf32>
    %88 = tpu.matmul %85, %87, %cst_64 {dimension_numbers = #tpu.dot_dimension_numbers<[1], [0], [0], [1], [0, 0, 1, 1], [], []>} : vector<128x64xbf16>, vector<64x256xbf16>, vector<128x256xf32> -> vector<128x256xf32>
    %89 = arith.addf %82, %88 : vector<128x256xf32>
    %c0_65 = arith.constant 0 : index
    %c0_66 = arith.constant 0 : index
    %c0_67 = arith.constant 0 : index
    %90 = vector.load %arg13[%c0_65, %c0_66, %c0_67] : memref<1x128x256xf32, #tpu.memory_space<vmem>>, vector<1x128x256xf32>
    %91 = vector.shape_cast %90 : vector<1x128x256xf32> to vector<128x256xf32>
    %92 = vector.shape_cast %89 : vector<128x256xf32> to vector<1x128x256xf32>
    tpu.vector_store %arg13[%c0_65, %c0_66, %c0_67], %92 {strides = array<i32>} : memref<1x128x256xf32, #tpu.memory_space<vmem>>, vector<1x128x256xf32>,
    return
  }
  func.func @transform_0(%arg0: i32, %arg1: i32) -> (i32, i32, i32) {
    %c0_i32 = arith.constant 0 : i32
    %c0_i32_0 = arith.constant 0 : i32
    return %arg0, %arg1, %c0_i32 : i32, i32, i32
  }
  func.func @transform_1(%arg0: i32, %arg1: i32) -> (i32, i32, i32) {
    %c0_i32 = arith.constant 0 : i32
    %c0_i32_0 = arith.constant 0 : i32
    %c0_i32_1 = arith.constant 0 : i32
    return %arg0, %c0_i32, %c0_i32_0 : i32, i32, i32
  }
  func.func @transform_2(%arg0: i32, %arg1: i32) -> (i32, i32, i32) {
    %c0_i32 = arith.constant 0 : i32
    %c0_i32_0 = arith.constant 0 : i32
    %c0_i32_1 = arith.constant 0 : i32
    return %arg0, %c0_i32, %c0_i32_0 : i32, i32, i32
  }
  func.func @transform_3(%arg0: i32, %arg1: i32) -> (i32, i32, i32) {
    %c0_i32 = arith.constant 0 : i32
    %c0_i32_0 = arith.constant 0 : i32
    %c0_i32_1 = arith.constant 0 : i32
    %c0_i32_2 = arith.constant 0 : i32
    return %c0_i32, %c0_i32_0, %c0_i32_1 : i32, i32, i32
  }
  func.func @transform_4(%arg0: i32, %arg1: i32) -> (i32, i32, i32) {
    %c0_i32 = arith.constant 0 : i32
    %c0_i32_0 = arith.constant 0 : i32
    %c0_i32_1 = arith.constant 0 : i32
    %c0_i32_2 = arith.constant 0 : i32
    return %c0_i32, %c0_i32_0, %c0_i32_1 : i32, i32, i32
  }
  func.func @transform_5(%arg0: i32, %arg1: i32) -> (i32, i32, i32) {
    %c0_i32 = arith.constant 0 : i32
    %c0_i32_0 = arith.constant 0 : i32
    %c0_i32_1 = arith.constant 0 : i32
    %c0_i32_2 = arith.constant 0 : i32
    return %c0_i32, %c0_i32_0, %c0_i32_1 : i32, i32, i32
  }
  func.func @transform_6(%arg0: i32, %arg1: i32) -> (i32, i32, i32) {
    %c0_i32 = arith.constant 0 : i32
    %c0_i32_0 = arith.constant 0 : i32
    %c0_i32_1 = arith.constant 0 : i32
    %c0_i32_2 = arith.constant 0 : i32
    return %c0_i32, %c0_i32_0, %c0_i32_1 : i32, i32, i32
  }
  func.func @transform_7(%arg0: i32, %arg1: i32) -> (i32, i32, i32) {
    %c0_i32 = arith.constant 0 : i32
    %c0_i32_0 = arith.constant 0 : i32
    %c0_i32_1 = arith.constant 0 : i32
    %c0_i32_2 = arith.constant 0 : i32
    return %c0_i32, %c0_i32_0, %c0_i32_1 : i32, i32, i32
  }
  func.func @transform_8(%arg0: i32, %arg1: i32) -> (i32, i32, i32) {
    %c0_i32 = arith.constant 0 : i32
    %c0_i32_0 = arith.constant 0 : i32
    %c0_i32_1 = arith.constant 0 : i32
    %c0_i32_2 = arith.constant 0 : i32
    return %c0_i32, %c0_i32_0, %c0_i32_1 : i32, i32, i32
  }
  func.func @transform_9(%arg0: i32, %arg1: i32) -> (i32, i32, i32) {
    %c0_i32 = arith.constant 0 : i32
    %c0_i32_0 = arith.constant 0 : i32
    %c0_i32_1 = arith.constant 0 : i32
    %c0_i32_2 = arith.constant 0 : i32
    return %c0_i32, %c0_i32_0, %c0_i32_1 : i32, i32, i32
  }
  func.func @transform_10(%arg0: i32, %arg1: i32) -> (i32, i32) {
    %c0_i32 = arith.constant 0 : i32
    %c0_i32_0 = arith.constant 0 : i32
    %c0_i32_1 = arith.constant 0 : i32
    return %c0_i32, %c0_i32_0 : i32, i32
  }
  func.func @transform_11(%arg0: i32, %arg1: i32) -> (i32, i32, i32) {
    %c0_i32 = arith.constant 0 : i32
    %c0_i32_0 = arith.constant 0 : i32
    return %arg0, %arg1, %c0_i32 : i32, i32, i32
  }
}

</mosaic_0001>

<bundles_post_ra>
// kernel: tpu_custom_call.1
= control target key start
LH: loop header
LB: loop body
LE: loop exit
PB: predicated region body
PF: predicated region fallthrough
CT: control target
= control target key end

     0   :  { %s20529_s0 = inlined_call_operand.vmem [shape: f32[2,256,256], index: 0, kind: input, shape index: {}]   ;;  %s20530_s1 = inlined_call_operand.vmem [shape: f32[2,256,256], index: 1, kind: input, shape index: {}]   ;;  %s20531_s2 = inlined_call_operand.hbm [shape: f32[2,256,256], index: 2, kind: input, shape index: {}]   ;;  %s20532_s3 = inlined_call_operand.vmem [shape: bf16[4,256,64], index: 3, kind: input, shape index: {}]   ;;  %s20533_s4 = inlined_call_operand.vmem [shape: f32[4,1,64], index: 4, kind: input, shape index: {}]   ;;  %s20534_s5 = inlined_call_operand.vmem [shape: bf16[4,256,64], index: 5, kind: input, shape index: {}]   ;;  %s20535_s6 = inlined_call_operand.vmem [shape: f32[4,1,64], index: 6, kind: input, shape index: {}]   ;;  %s20536_s7 = inlined_call_operand.vmem [shape: bf16[4,256,64], index: 7, kind: input, shape index: {}]   ;;  %s20537_s8 = inlined_call_operand.vmem [shape: f32[4,1,64], index: 8, kind: input, shape index: {}]   ;;  %s20538_s9 = inlined_call_operand.hbm [shape: bf16[4,64,256], index: 9, kind: input, shape index: {}]   ;;  %s20539_s10 = inlined_call_operand.vmem [shape: f32[1,256], index: 10, kind: input, shape index: {}]   ;;  %s20540_s11 = inlined_call_operand.hbm [shape: f32[2,256,256], index: 11, kind: output, shape index: {}]  }
   0x1   :  { %20862 = sst [smem:[#allocation454_spill]] %s20532_s3 }
   0x2   :  { %20863 = sst [smem:[#allocation455_spill]] %s20533_s4 }
   0x3   :  { %20864 = sst [smem:[#allocation456_spill]] %s20535_s6 }
   0x4   :  { %20865 = sst [smem:[#allocation457_spill]] %s20536_s7 }
   0x5   :  { %20866 = sst [smem:[#allocation458_spill]] %s20537_s8 }
   0x6   :  { %20867 = sst [smem:[#allocation459_spill]] %s20538_s9 }
   0x7   :  { %20868 = sst [smem:[#allocation460_spill]] %s20539_s10 }
   0x8   :  { %20869 = sst [smem:[#allocation461_spill]] %s20540_s11 }
   0x9   :  { %16 = vsyncpa [#allocation6], 0 }
   0xa   :  { %18 = vsyncpa [#allocation6 + $0x1], 0 }
   0xb   :  { %19 = vsyncpa [#allocation9], 0 }
   0xc   :  { %20 = vsyncpa [#allocation7], 0 }
   0xd   :  { %22 = vsyncpa [#allocation7 + $0x1], 0  ;;  %s14873_s17 = smov 0   ;;  %s14875_s18 = smov 0  }
   0xe   :  { %s14877_s19 = smov 0   ;;  %s14879_s20 = smov 0  }
   0xf   :  { %s14881_s21 = smov 0   ;;  %s14883_s22 = smov 0  }
  0x10   :  { %s14885_s23 = smov 0   ;;  %s14887_s24 = smov 0  }
  0x11   :  { %s14889_s25 = smov 0   ;;  %s14891_s26 = smov 0  }
  0x12   :  { %s14893_s27 = smov 0  }
  0x13 LB: > { %20870 = sst [smem:[#allocation14_spill]] %s13989_s17  ;;  %s8458_s28 = sadd.s32 4294967295, %s14029_s27   ;;  %s14029_s27 = sphi %s14893_s27, %s28_s27   ;;  %s14025_s26 = sphi %s14891_s26, %s22799_s26   ;;  %s14021_s25 = sphi %s14889_s25, %s22798_s25   ;;  %s14017_s24 = sphi %s14887_s24, %s22797_s24   ;;  %s14013_s23 = sphi %s14885_s23, %s22788_s23   ;;  %s14009_s22 = sphi %s14883_s22, %s22796_s22   ;;  %s14005_s21 = sphi %s14881_s21, %s22795_s21   ;;  %s14001_s20 = sphi %s14879_s20, %s22794_s20   ;;  %s13997_s19 = sphi %s14877_s19, %s22793_s19   ;;  %s13993_s18 = sphi %s14875_s18, %s22792_s18   ;;  %s13989_s17 = sphi %s14873_s17, %s22791_s17  }
  0x14   : > { %20871 = sst [smem:[#allocation15_spill]] %s14021_s25  ;;  %s8459_s29 = sadd.s32 4294967294, %s14029_s27  }
  0x15   : > { %p114_p0 = scmp.ne.s32.totalorder %s14005_s21, %s14001_s20  ;;  %p14929_p1 = scmp.eq.s32.totalorder %s8458_s28, 0 }
  0x16   : > { %p307_p2 = scmp.ne.s32.totalorder %s13997_s19, %s13993_s18  ;;  %p308_p4 = scmp.eq.s32.totalorder %s8458_s28, 3 }
  0x17   : > { %s20872_s30 = scalar_select %p14929_p1, 1, 0 }
  0x18   : > { %p14938_p3 = por %p14929_p1, %p114_p0  ;;  %p313_p5 = scmp.ne.s32.totalorder %s13993_s18, %s13989_s17 }
  0x19   : > { %p314_p6 = scmp.eq.s32.totalorder %s8459_s29, 3  ;;  %p14944_p7 = por %p308_p4, %p307_p2 }
  0x1a   : > { %s20873_s13 = scalar_select %p14938_p3, 1, 0 }
  0x1b   : > { %s20874_s14 = scalar_select %p14944_p7, 1, 0 }
  0x1c   : > { %p8460_p8 = scmp.ge.s32.totalorder %s14029_s27, 1  ;;  %p14949_p9 = por %p314_p6, %p313_p5 }
  0x1d   : > { %20875 = sst [smem:[#allocation16_spill]] %s20874_s14  ;;  %p321_p10 = scmp.lt.s32.totalorder %s14029_s27, 5 }
  0x1e   : > { %s20876_s15 = scalar_select %p14949_p9, 1, 0 }
  0x1f   : > { %p14954_p11 = pnand %p8460_p8, %p321_p10  ;;  %s14803_s20 = smov [#allocation8]  }
  0x20   : > { %20877 = sst [smem:[#allocation17_spill]] %s20876_s15  ;;  %s351_s12 = sshll.u32 %s14803_s20, 4  ;;  %s352_s12 = int_to_ptr.vmem [resolvable:$true] %s351_s12 }
  0x21   : > { %s20878_s16 = scalar_select %p14954_p11, 1, 0 }
  0x22   : > { %p10793_p12 = pneg %p14954_p11  ;;  %s20880_s9 = sld [smem:[#allocation459_spill]] }
  0x24   : > { %p14962_p13 = pnand %p10793_p12, %p14929_p1 }
  0x26   : > { %p13075_p2 = pneg %p14962_p13 }
  0x28   : > { %s13073_s15 = scalar_lea.hbm %s20880_s9, 4096 }
  0x29   : > { %p13074_p0 = scmp.ne.s32.totalorder %s20880_s9, %s13073_s15  ;;  %p13080_p6 = scmp.lt.u32.totalorder %s13073_s15, %s20880_s9 }
  0x2b   : > { %p13076_p4 = pnand %p13075_p2, %p13074_p0 }
  0x2d   : > { %p13077_p5 = pneg %p13076_p4 }
  0x2f   : > { %p13082_p8 = pnand %p13080_p6, %p13077_p5 }
  0x31   : > { %13085 = shalt.err (!%p13082_p8)
}
  0x32   : > { %s13086_s4 = scalar_lea.vmem %s352_s12, 4096  ;;  %p13094_p7 = scmp.lt.s32.totalorder %s352_s12, %s352_s12 }
  0x33   : > { %p13087_p10 = scmp.ne.s32.totalorder %s352_s12, %s13086_s4  ;;  %p13095_p1 = scmp.lt.s32.totalorder %s13086_s4, %s13086_s4 }
  0x35   : > { %p13089_p12 = pnand %p13087_p10, %p13075_p2  ;;  %p13096_p3 = por %p13095_p1, %p13094_p7 }
  0x37   : > { %p13090_p9 = pneg %p13089_p12 }
  0x39   : > { %p13097_p11 = pnand %p13096_p3, %p13090_p9 }
  0x3b   : > { %13100 = shalt.err (!%p13097_p11)
}
  0x3c   : > { %s14804_s11 = smov 128   ;;  %s14805_s10 = smov 8  }
  0x3d   : > { %10796 = dma.hbm_to_vmem [thread:$0]  (!%p14962_p13), %s20880_s9, 4096, %s352_s12, [#allocation9], %s14804_s11, %s14804_s11, %s14805_s10  }
  0x3e   : > { %s37_s4 = sadd.s32 1, %s14021_s25  ;;  %s40_s15 = sadd.s32 1, %s14025_s26 }
  0x3f   : > { %p38_p1 = scmp.ge.s32.totalorder %s37_s4, 2  ;;  %s101_s29 = sadd.s32 1, %s14009_s22 }
  0x40   : > { %p108_p3 = scmp.ne.s32.totalorder %s14009_s22, %s14005_s21  ;;  %p109_p7 = scmp.eq.s32.totalorder %s14029_s27, 0 }
  0x41   : > { %s22801_s4 = smov (%p38_p1, %s37_s4), 0  ;;  %s22803_s15 = smov (!%p38_p1, %s40_s15), %s14025_s26 }
  0x42   : > { %20881 = sst [smem:[#allocation18_spill]] %s22801_s4  ;;  %s293_s28 = ssub.s32 %s14021_s25, %s22801_s4 }
  0x43   : > { %p42_p9 = scmp.ge.s32.totalorder %s22803_s15, 2  ;;  %p10806_p11 = scmp.lt.s32.totalorder %s14029_s27, 4 }
  0x44   : > { %p14994_p13 = por %p109_p7, %p108_p3  ;;  %s390_s20 = sand.u32 1, %s14009_s22  }
  0x45   : > { %s22805_s15 = smov (%p42_p9, %s22803_s15), 0  ;;  %s8463_s11 = sshll.u32 %s390_s20, 9 }
  0x46   : > { %20883 = sst [smem:[#allocation19_spill]] %s22805_s15  ;;  %s98_s10 = ssub.s32 %s14025_s26, %s22805_s15 }
  0x47   : > { %p99_p0 = scmp.eq.s32.totalorder %s98_s10, 0  ;;  %s294_s17 = sor.u32 %s293_s28, %s98_s10 }
  0x48   : > { %p295_p2 = scmp.eq.s32.totalorder %s294_s17, 0  ;;  %s9084_s14 = sshll.u32 %s14025_s26, 13 }
  0x49   : > { %s15005_s9 = scalar_select %p99_p0, %s14009_s22, %s101_s29  }
  0x4a   : > { %s20884_s4 = sadd.s32 1, %s13997_s19  ;;  %s15015_s6 = scalar_lea.hbm %s20531_s2, %s9084_s14 }
  0x4b   : > { %s15010_s25 = scalar_select %p295_p2, %s13997_s19, %s20884_s4  }
  0x4c   : > { %s394_s7 = scalar_lea.vmem [#allocation5], %s8463_s11  ;;  %p15023_p4 = pnand %p10806_p11, %p14994_p13 }
  0x4d   : > { %s401_s15 = sshll.u32 %s394_s7, 4  ;;  %s15027_s4 = scalar_lea.sflag [#allocation6], %s390_s20  ;;  %s15017_s15 = int_to_ptr.vmem [resolvable:$true] %s401_s15 }
  0x4e   : > { %s13101_s3 = scalar_lea.hbm %s15015_s6, 8192  ;;  %p13103_p6 = pneg %p15023_p4 }
  0x4f   : > { %p13102_p5 = scmp.ne.s32.totalorder %s15015_s6, %s13101_s3  ;;  %s13106_s28 = scalar_lea.hbm %s20531_s2, 16384 }
  0x50   : > { %p13107_p12 = scmp.lt.u32.totalorder %s15015_s6, %s20531_s2  ;;  %p13108_p1 = scmp.lt.u32.totalorder %s13106_s28, %s13101_s3 }
  0x51   : > { %p13104_p8 = pnand %p13103_p6, %p13102_p5  ;;  %p13110_p7 = scmp.lt.u32.totalorder %s13101_s3, %s15015_s6 }
  0x52   : > { %p13109_p3 = por %p13108_p1, %p13107_p12 }
  0x53   : > { %p13105_p10 = pneg %p13104_p8 }
  0x54   : > { %p13111_p9 = por %p13110_p7, %p13109_p3 }
  0x56   : > { %p13112_p11 = pnand %p13111_p9, %p13105_p10 }
  0x58   : > { %13115 = shalt.err (!%p13112_p11)
}
  0x59   : > { %s13116_s20 = scalar_lea.vmem %s15017_s15, 8192  ;;  %s14806_s10 = smov [#allocation5]  }
  0x5a   : > { %p13117_p13 = scmp.ne.s32.totalorder %s15017_s15, %s13116_s20  ;;  %s13121_s17 = sshll.u32 %s14806_s10, 4  ;;  %s13122_s17 = int_to_ptr.vmem [resolvable:$false] %s13121_s17 }
  0x5b   : > { %s13123_s14 = scalar_lea.vmem %s13122_s17, 16384  ;;  %p13124_p5 = scmp.lt.s32.totalorder %s15017_s15, %s13122_s17 }
  0x5c   : > { %p13119_p0 = pnand %p13117_p13, %p13103_p6  ;;  %p13125_p8 = scmp.lt.s32.totalorder %s13123_s14, %s13116_s20 }
  0x5e   : > { %p13120_p2 = pneg %p13119_p0  ;;  %p13126_p12 = por %p13125_p8, %p13124_p5 }
  0x60   : > { %p13127_p1 = pnand %p13126_p12, %p13120_p2 }
  0x62   : > { %13130 = shalt.err (!%p13127_p1)
}
  0x63   : > { %s14807_s3 = smov 256   ;;  %s14808_s7 = smov 16  }
  0x64   : > { %10800 = dma.hbm_to_vmem [thread:$0]  (!%p15023_p4), %s15015_s6, 8192, %s15017_s15, %s15027_s4, %s14807_s3, %s14807_s3, %s14808_s7  }
  0x65   : > { %p20886_p6 = scmp.ne.s32.totalorder %s20878_s16, 0 }
  0x67   : > { %413 = sbr.rel (%p20886_p6) target bundleno = 2573 (0xa0d), region = 64 }
  0x6e   : > { %s415_s8 = sand.u32 1, %s14005_s21   ;;  %p20887_p10 = scmp.ne.s32.totalorder %s20873_s13, 0 }
  0x6f   : > { %s8467_s28 = sshll.u32 %s415_s8, 9  ;;  %s416_s12 = scalar_lea.sflag [#allocation6], %s415_s8 }
  0x70   : > { %s15058_s11 = scalar_lea.vmem [#allocation5], %s8467_s28 }
  0x71   : > { %13976 = dma.done.wait (%p20887_p10), %s416_s12, 8192  }
  0x72   : > { %13978 = vsyncadd (%p20887_p10), %s416_s12, 4294959104  ;;  %p20888_p3 = scmp.ne.s32.totalorder %s20872_s30, 0 }
  0x74   : > { %13980 = dma.done.wait (%p20888_p3), [#allocation9], 4096  }
  0x75   : > { %13982 = vsyncadd (%p20888_p3), [#allocation9], 4294963200  ;;  %s20559_s6 = sand.u32 1, %s13993_s18   ;;  %s8470_s16 = sshll.u32 %s14013_s23, 4 }
  0x76   : > { %s8469_s15 = sshll.u32 %s20559_s6, 8  ;;  %p478_p4 = scmp.lt.s32.totalorder %s14017_s24, 1 }
  0x77   : > { %p480_p7 = scmp.lt.s32.totalorder %s8470_s16, 31  ;;  %s15084_s12 = scalar_lea.vmem [#allocation10], %s8469_s15 }
  0x78   : > { %s479_s29 = scalar_select %p478_p4, %s14017_s24, 1 }
  0x79   : > { %s22807_s16 = smov (!%p480_p7, %s8470_s16), 31  ;;  %p8476_p9 = scmp.ne.s32.totalorder %s14013_s23, 0 }
  0x7a   : > { %s8472_s13 = sshll.u32 %s479_s29, 6  ;;  %s9085_s4 = sshll.u32 %s479_s29, 9 }
  0x7b   : > { %s8471_s20 = sshll.u32 %s22807_s16, 1  ;;  %s15077_s30 = scalar_lea.vmem %s20530_s1, %s9085_s4 }
  0x7c   : > { %s484_s14 = sadd.s32 %s8472_s13, %s8471_s20  ;;  %498 = sbr.rel (%p8476_p9) target bundleno = 896 (0x380), region = 76 }
  0x7d   : > { %s8473_s3 = sshll.u32 %s484_s14, 3 }
  0x7e   : > { %s15082_s28 = scalar_lea.vmem %s20529_s0, %s8473_s3 }
  0x83   : > { %v12449_v0 = vld [vmem:[%s20534_s5 + $0x40] sm:$0xff]   ;;  %s20889_s4 = sld [smem:[#allocation457_spill]]  ;;  %v12453_v4 = vld [vmem:[%s20534_s5 + $0x48] sm:$0xff]   ;;  %v12457_v8 = vld [vmem:[%s20534_s5 + $0x50] sm:$0xff]   ;;  %s20915_s14 = sld [smem:[#allocation456_spill]]  ;;  %vm1315_vm0 = vcmask 523264  }
  0x84   : > { %9089 = vmatprep.subr.bf16.mxu0 %v12449_v0  ;;  %v12451_v2 = vld [vmem:[%s20534_s5] sm:$0xff]   ;;  %v12455_v6 = vld [vmem:[%s20534_s5 + $0x8] sm:$0xff]   ;;  %v12459_v10 = vld [vmem:[%s20534_s5 + $0x10] sm:$0xff]   ;;  %s20916_s7 = sld [smem:[#allocation458_spill]] }
  0x85   : > { %9090 = vmatpush3.bf16.msra.mxu0 %v12451_v2  ;;  %v12461_v12 = vld [vmem:[%s20534_s5 + $0x58] sm:$0xff]   ;;  %v12465_v16 = vld [vmem:[%s20534_s5 + $0x60] sm:$0xff]   ;;  %v12469_v20 = vld [vmem:[%s20534_s5 + $0x68] sm:$0xff]  }
  0x86   : > { %9091 = vmatprep.subr.bf16.mxu0 %v12453_v4  ;;  %v12463_v14 = vld [vmem:[%s20534_s5 + $0x18] sm:$0xff]   ;;  %v12467_v18 = vld [vmem:[%s20534_s5 + $0x20] sm:$0xff]   ;;  %v12471_v22 = vld [vmem:[%s20534_s5 + $0x28] sm:$0xff]  }
  0x87   : > { %v12473_v24 = vld [vmem:[%s20534_s5 + $0x70] sm:$0xff]   ;;  %v12477_v28 = vld [vmem:[%s20534_s5 + $0x78] sm:$0xff]   ;;  %v500_v32 = vld [vmem:[%s15077_s30 + $0x8] sm:$0xff] }
  0x88   : > { %v12475_v26 = vld [vmem:[%s20534_s5 + $0x30] sm:$0xff]   ;;  %v12479_v30 = vld [vmem:[%s20534_s5 + $0x38] sm:$0xff]   ;;  %v596_v34 = vld [vmem:[%s15058_s11 + $0x8] sm:$0xff] }
  0x89   : > { %v12450_v1 = vld [vmem:[%s20889_s4 + $0x40] sm:$0xff]   ;;  %v12454_v5 = vld [vmem:[%s20889_s4 + $0x48] sm:$0xff]   ;;  %9092 = vmatpush3.bf16.msra.mxu0 %v12455_v6  ;;  %v12458_v9 = vld [vmem:[%s20889_s4 + $0x50] sm:$0xff]  }
  0x8a   : > { %9201 = vmatprep.subr.bf16.mxu1 %v12450_v1  ;;  %v12452_v3 = vld [vmem:[%s20889_s4] sm:$0xff]   ;;  %v12456_v7 = vld [vmem:[%s20889_s4 + $0x8] sm:$0xff]   ;;  %9093 = vmatprep.subr.bf16.mxu0 %v12457_v8  ;;  %v12460_v11 = vld [vmem:[%s20889_s4 + $0x10] sm:$0xff]  }
  0x8b   : > { %9202 = vmatpush3.bf16.msra.mxu1 %v12452_v3  ;;  %v12462_v13 = vld [vmem:[%s20889_s4 + $0x58] sm:$0xff]   ;;  %v12466_v17 = vld [vmem:[%s20889_s4 + $0x60] sm:$0xff]   ;;  %v12470_v21 = vld [vmem:[%s20889_s4 + $0x68] sm:$0xff]  }
  0x8c   : > { %9203 = vmatprep.subr.bf16.mxu1 %v12454_v5  ;;  %v12464_v15 = vld [vmem:[%s20889_s4 + $0x18] sm:$0xff]   ;;  %v12468_v19 = vld [vmem:[%s20889_s4 + $0x20] sm:$0xff]   ;;  %v12472_v23 = vld [vmem:[%s20889_s4 + $0x28] sm:$0xff]  }
  0x8d   : > { %9094 = vmatpush3.bf16.msra.mxu0 %v12459_v10  ;;  %v12474_v25 = vld [vmem:[%s20889_s4 + $0x70] sm:$0xff]   ;;  %v12478_v29 = vld [vmem:[%s20889_s4 + $0x78] sm:$0xff]   ;;  %v499_v37 = vld [vmem:[%s15077_s30] sm:$0xff] }
  0x8e   : > { %9095 = vmatprep.subr.bf16.mxu0 %v12461_v12  ;;  %v12476_v27 = vld [vmem:[%s20889_s4 + $0x30] sm:$0xff]   ;;  %v12480_v31 = vld [vmem:[%s20889_s4 + $0x38] sm:$0xff]   ;;  %v595_v41 = vld [vmem:[%s15058_s11] sm:$0xff] }
  0x8f   : > { %9204 = vmatpush3.bf16.msra.mxu1 %v12456_v7  ;;  %v502_v33 = vld [vmem:[%s15077_s30 + $0x18] sm:$0xff]  ;;  %v501_v38 = vld [vmem:[%s15077_s30 + $0x10] sm:$0xff]  ;;  %v12481_v44 = vld [vmem:[%s20534_s5 + $0xc0] sm:$0xff]  }
  0x90   : > { %9205 = vmatprep.subr.bf16.mxu1 %v12458_v9  ;;  %v15186_v35 = vpack.c.bf16 %v502_v33, %v500_v32  ;;  %v598_v36 = vld [vmem:[%s15058_s11 + $0x18] sm:$0xff]  ;;  %v15193_v40 = vpack.c.bf16 %v501_v38, %v499_v37  ;;  %v597_v42 = vld [vmem:[%s15058_s11 + $0x10] sm:$0xff]  ;;  %v12482_v45 = vld [vmem:[%s20889_s4 + $0xc0] sm:$0xff]  }
  0x91   : > { %9096 = vmatpush3.bf16.msra.mxu0 %v12463_v14  ;;  %v15191_v39 = vpack.c.bf16 %v598_v36, %v596_v34  ;;  %v15198_v43 = vpack.c.bf16 %v597_v42, %v595_v41  ;;  %v12483_v46 = vld [vmem:[%s20534_s5 + $0x80] sm:$0xff]   ;;  %v504_v48 = vld [vmem:[%s15077_s30 + $0x28] sm:$0xff]  ;;  %v506_v49 = vld [vmem:[%s15077_s30 + $0x38] sm:$0xff] }
  0x92   : > { %9097 = vmatprep.subr.bf16.mxu0 %v12465_v16  ;;  %858 = vmatprep.mubr.bf16.mxu0 %v15186_v35  ;;  %v12484_v47 = vld [vmem:[%s20889_s4 + $0x80] sm:$0xff]   ;;  %v600_v50 = vld [vmem:[%s15058_s11 + $0x28] sm:$0xff]  ;;  %v602_v51 = vld [vmem:[%s15058_s11 + $0x38] sm:$0xff]  ;;  %v15219_v52 = vpack.c.bf16 %v506_v49, %v504_v48 }
  0x93   : > { %9206 = vmatpush3.bf16.msra.mxu1 %v12460_v11  ;;  %1170 = vmatprep.mubr.bf16.mxu1 %v15191_v39  ;;  %v15221_v53 = vpack.c.bf16 %v602_v51, %v600_v50  ;;  %v503_v54 = vld [vmem:[%s15077_s30 + $0x20] sm:$0xff]  ;;  %v505_v55 = vld [vmem:[%s15077_s30 + $0x30] sm:$0xff]  ;;  %v508_v59 = vld [vmem:[%s15077_s30 + $0x48] sm:$0xff] }
  0x94   : > { %9207 = vmatprep.subr.bf16.mxu1 %v12462_v13  ;;  %v599_v56 = vld [vmem:[%s15058_s11 + $0x20] sm:$0xff]  ;;  %v15226_v57 = vpack.c.bf16 %v505_v55, %v503_v54  ;;  %v601_v58 = vld [vmem:[%s15058_s11 + $0x30] sm:$0xff]  ;;  %v510_v60 = vld [vmem:[%s15077_s30 + $0x58] sm:$0xff] }
  0x95   : > { %9098 = vmatpush3.bf16.msra.mxu0 %v12467_v18  ;;  %20890 = vst [vmem:[#allocation20_spill] sm:$0xff] %v15221_v53  ;;  %v15233_v61 = vpack.c.bf16 %v601_v58, %v599_v56  ;;  %v15235_v62 = vpack.c.bf16 %v510_v60, %v508_v59  ;;  %v604_v63 = vld [vmem:[%s15058_s11 + $0x48] sm:$0xff]  ;;  %v606_v0 = vld [vmem:[%s15058_s11 + $0x58] sm:$0xff]  ;;  %v507_v2 = vld [vmem:[%s15077_s30 + $0x40] sm:$0xff] }
  0x96   : > { %9099 = vmatprep.subr.bf16.mxu0 %v12469_v20  ;;  %v15239_v1 = vpack.c.bf16 %v606_v0, %v604_v63  ;;  %v509_v3 = vld [vmem:[%s15077_s30 + $0x50] sm:$0xff]  ;;  %v603_v4 = vld [vmem:[%s15058_s11 + $0x40] sm:$0xff]  ;;  %v12485_v6 = vld [vmem:[%s20534_s5 + $0xc8] sm:$0xff]  }
  0x97   : > { %9208 = vmatpush3.bf16.msra.mxu1 %v12464_v15  ;;  %v605_v5 = vld [vmem:[%s15058_s11 + $0x50] sm:$0xff]  ;;  %v12486_v7 = vld [vmem:[%s20889_s4 + $0xc8] sm:$0xff]   ;;  %v15261_v10 = vpack.c.bf16 %v509_v3, %v507_v2  ;;  %v514_v12 = vld [vmem:[%s15077_s30 + $0x78] sm:$0xff] }
  0x98   : > { %9209 = vmatprep.subr.bf16.mxu1 %v12466_v17  ;;  %v12487_v8 = vld [vmem:[%s20534_s5 + $0x88] sm:$0xff]   ;;  %v15266_v14 = vpack.c.bf16 %v605_v5, %v603_v4  ;;  %v610_v16 = vld [vmem:[%s15058_s11 + $0x78] sm:$0xff]  ;;  %v511_v18 = vld [vmem:[%s15077_s30 + $0x60] sm:$0xff] }
  0x99   : > { %9100 = vmatpush3.bf16.msra.mxu0 %v12471_v22  ;;  %v12488_v9 = vld [vmem:[%s20889_s4 + $0x88] sm:$0xff]   ;;  %v607_v20 = vld [vmem:[%s15058_s11 + $0x60] sm:$0xff]  ;;  %v12492_v32 = vld [vmem:[%s20889_s4 + $0x90] sm:$0xff]  }
  0x9a   : > { %9101 = vmatprep.subr.bf16.mxu0 %v12473_v24  ;;  %v512_v11 = vld [vmem:[%s15077_s30 + $0x68] sm:$0xff]  ;;  %v515_v34 = vld [vmem:[%s15077_s30 + $0x80] sm:$0xff]  ;;  %v517_v36 = vld [vmem:[%s15077_s30 + $0x90] sm:$0xff] }
  0x9b   : > { %9210 = vmatpush3.bf16.msra.mxu1 %v12468_v19  ;;  %v608_v13 = vld [vmem:[%s15058_s11 + $0x68] sm:$0xff]  ;;  %v15268_v15 = vpack.c.bf16 %v514_v12, %v512_v11  ;;  %v513_v19 = vld [vmem:[%s15077_s30 + $0x70] sm:$0xff]  ;;  %v611_v37 = vld [vmem:[%s15058_s11 + $0x80] sm:$0xff] }
  0x9c   : > { %9211 = vmatprep.subr.bf16.mxu1 %v12470_v21  ;;  %v15271_v17 = vpack.c.bf16 %v610_v16, %v608_v13  ;;  %v609_v21 = vld [vmem:[%s15058_s11 + $0x70] sm:$0xff]  ;;  %v516_v22 = vld [vmem:[%s15077_s30 + $0x88] sm:$0xff]  ;;  %v522_v42 = vld [vmem:[%s15077_s30 + $0xb8] sm:$0xff] }
  0x9d   : > { %9102 = vmatpush3.bf16.msra.mxu0 %v12475_v26  ;;  %v612_v24 = vld [vmem:[%s15058_s11 + $0x88] sm:$0xff]  ;;  %v12489_v26 = vld [vmem:[%s20534_s5 + $0xd0] sm:$0xff]   ;;  %v12494_v48 = vld [vmem:[%s20889_s4 + $0xd8] sm:$0xff]  }
  0x9e   : > { %9103 = vmatprep.subr.bf16.mxu0 %v12477_v28  ;;  %v15291_v28 = vpack.c.bf16 %v513_v19, %v511_v18  ;;  %v613_v38 = vld [vmem:[%s15058_s11 + $0x90] sm:$0xff]  ;;  %v520_v41 = vld [vmem:[%s15077_s30 + $0xa8] sm:$0xff]  ;;  %v12495_v51 = vld [vmem:[%s20534_s5 + $0x98] sm:$0xff]  }
  0x9f   : > { %9212 = vmatpush3.bf16.msra.mxu1 %v12472_v23  ;;  %v518_v23 = vld [vmem:[%s15077_s30 + $0x98] sm:$0xff]  ;;  %v15325_v49 = vpack.c.bf16 %v613_v38, %v611_v37  ;;  %v15327_v50 = vpack.c.bf16 %v522_v42, %v520_v41  ;;  %v519_v56 = vld [vmem:[%s15077_s30 + $0xa0] sm:$0xff]  ;;  %v521_v58 = vld [vmem:[%s15077_s30 + $0xb0] sm:$0xff] }
  0xa0   : > { %9213 = vmatprep.subr.bf16.mxu1 %v12474_v25  ;;  %v614_v25 = vld [vmem:[%s15058_s11 + $0x98] sm:$0xff]  ;;  %v615_v59 = vld [vmem:[%s15058_s11 + $0xa0] sm:$0xff]  ;;  %v617_v60 = vld [vmem:[%s15058_s11 + $0xb0] sm:$0xff]  ;;  %v15349_v4 = vpack.c.bf16 %v521_v58, %v519_v56 }
  0xa1   : > { %9104 = vmatpush3.bf16.msra.mxu0 %v12479_v30  ;;  %v15296_v30 = vpack.c.bf16 %v609_v21, %v607_v20  ;;  %v15303_v33 = vpack.c.bf16 %v614_v25, %v612_v24  ;;  %v12496_v55 = vld [vmem:[%s20889_s4 + $0x98] sm:$0xff]   ;;  %v524_v63 = vld [vmem:[%s15077_s30 + $0xc8] sm:$0xff]  ;;  %v12497_v5 = vld [vmem:[%s20534_s5 + $0xe0] sm:$0xff]  }
  0xa2   : > { %9313 = vmatprep.subr.bf16.mxu0 %v12481_v44  ;;  %v616_v44 = vld [vmem:[%s15058_s11 + $0xa8] sm:$0xff]  ;;  %v526_v0 = vld [vmem:[%s15077_s30 + $0xd8] sm:$0xff]  ;;  %v12499_v11 = vld [vmem:[%s20534_s5 + $0xa0] sm:$0xff]  }
  0xa3   : > { %9214 = vmatpush3.bf16.msra.mxu1 %v12476_v27  ;;  %v12490_v27 = vld [vmem:[%s20889_s4 + $0xd0] sm:$0xff]   ;;  %v620_v2 = vld [vmem:[%s15058_s11 + $0xc8] sm:$0xff]  ;;  %v622_v3 = vld [vmem:[%s15058_s11 + $0xd8] sm:$0xff] }
  0xa4   : > { %9215 = vmatprep.subr.bf16.mxu1 %v12478_v29  ;;  %859 = vmatmul.mubr.bf16.vlgmr.msra.gmra.mrb[0].mxu0 %v15193_v40  ;;  %v12491_v29 = vld [vmem:[%s20534_s5 + $0x90] sm:$0xff]   ;;  %v12500_v12 = vld [vmem:[%s20889_s4 + $0xa0] sm:$0xff]   ;;  %v528_v20 = vld [vmem:[%s15077_s30 + $0xe8] sm:$0xff] }
  0xa5   : > { %9314 = vmatpush3.bf16.msra.mxu0 %v12483_v46  ;;  %866 = vmatprep.mubr.bf16.mxu0 %v15219_v52  ;;  %v12493_v46 = vld [vmem:[%s20534_s5 + $0xd8] sm:$0xff]   ;;  %v523_v13 = vld [vmem:[%s15077_s30 + $0xc0] sm:$0xff]  ;;  %v525_v16 = vld [vmem:[%s15077_s30 + $0xd0] sm:$0xff] }
  0xa6   : > { %9315 = vmatprep.subr.bf16.mxu0 %v12485_v6  ;;  %v15354_v6 = vpack.c.bf16 %v617_v60, %v615_v59  ;;  %v619_v18 = vld [vmem:[%s15058_s11 + $0xc0] sm:$0xff]  ;;  %v621_v19 = vld [vmem:[%s15058_s11 + $0xd0] sm:$0xff]  ;;  %v530_v21 = vld [vmem:[%s15077_s30 + $0xf8] sm:$0xff]  ;;  %v15381_v24 = vpack.c.bf16 %v525_v16, %v523_v13 }
  0xa7   : > { %9216 = vmatpush3.bf16.msra.mxu1 %v12480_v31  ;;  %v15298_v31 = vpack.c.bf16 %v518_v23, %v516_v22  ;;  %v624_v22 = vld [vmem:[%s15058_s11 + $0xe8] sm:$0xff]  ;;  %v626_v23 = vld [vmem:[%s15058_s11 + $0xf8] sm:$0xff]  ;;  %v15383_v25 = vpack.c.bf16 %v621_v19, %v619_v18  ;;  %v529_v37 = vld [vmem:[%s15077_s30 + $0xf0] sm:$0xff] }
  0xa8   : > { %9425 = vmatprep.subr.bf16.mxu1 %v12482_v45  ;;  %v618_v45 = vld [vmem:[%s15058_s11 + $0xb8] sm:$0xff]  ;;  %v623_v38 = vld [vmem:[%s15058_s11 + $0xe0] sm:$0xff]  ;;  %v12504_v41 = vld [vmem:[%s20889_s4 + $0xa8] sm:$0xff]  }
  0xa9   : > { %9316 = vmatpush3.bf16.msra.mxu0 %v12487_v8  ;;  %v15332_v54 = vpack.c.bf16 %v618_v45, %v616_v44  ;;  %v12498_v8 = vld [vmem:[%s20889_s4 + $0xe0] sm:$0xff]   ;;  %v625_v42 = vld [vmem:[%s15058_s11 + $0xf0] sm:$0xff]  ;;  %v532_v44 = vld [vmem:[%s15077_s30 + $0x108] sm:$0xff] }
  0xaa   : > { %1171 = vmatmul.mubr.bf16.vlgmr.msra.gmra.mrb[0].mxu1 %v15198_v43  ;;  %9317 = vmatprep.subr.bf16.mxu0 %v12489_v26  ;;  %v15385_v26 = vpack.c.bf16 %v530_v21, %v528_v20  ;;  %v534_v45 = vld [vmem:[%s15077_s30 + $0x118] sm:$0xff]  ;;  %v531_v59 = vld [vmem:[%s15077_s30 + $0x100] sm:$0xff]  ;;  %v533_v60 = vld [vmem:[%s15077_s30 + $0x110] sm:$0xff] }
  0xab   : > { %9426 = vmatpush3.bf16.msra.mxu1 %v12484_v47  ;;  %1178 = vmatprep.mubr.bf16.mxu1 %v15221_v53  ;;  %v15320_v47 = vpack.c.bf16 %v517_v36, %v515_v34  ;;  %v12502_v34 = vld [vmem:[%s20889_s4 + $0xe8] sm:$0xff]   ;;  %v15417_v56 = vpack.c.bf16 %v534_v45, %v532_v44  ;;  %v634_v16 = vld [vmem:[%s15058_s11 + $0x138] sm:$0xff]  ;;  %v15445_v18 = vpack.c.bf16 %v533_v60, %v531_v59 }
  0xac   : > { %867 = vmatmul.mubr.bf16.gmra.mrb[4].mxu0 %v15226_v57  ;;  %9427 = vmatprep.subr.bf16.mxu1 %v12486_v7  ;;  %v15356_v7 = vpack.c.bf16 %v526_v0, %v524_v63  ;;  %v12503_v36 = vld [vmem:[%s20534_s5 + $0xa8] sm:$0xff]   ;;  %v12505_v63 = vld [vmem:[%s20534_s5 + $0xf0] sm:$0xff]   ;;  %v627_v0 = vld [vmem:[%s15058_s11 + $0x100] sm:$0xff] }
  0xad   : > { %874 = vmatprep.mubr.bf16.mxu0 %v15235_v62  ;;  %9318 = vmatpush3.bf16.msra.mxu0 %v12491_v29  ;;  %v12501_v29 = vld [vmem:[%s20534_s5 + $0xe8] sm:$0xff]   ;;  %20892 = vst [vmem:[#allocation22_spill] sm:$0xff] %v15445_v18  ;;  %v12511_v44 = vld [vmem:[%s20534_s5 + $0xb8] sm:$0xff]  }
  0xae   : > { %9319 = vmatprep.subr.bf16.mxu0 %v12493_v46  ;;  %v628_v46 = vld [vmem:[%s15058_s11 + $0x108] sm:$0xff]  ;;  %v12512_v45 = vld [vmem:[%s20889_s4 + $0xb8] sm:$0xff]  }
  0xaf   : > { %9428 = vmatpush3.bf16.msra.mxu1 %v12488_v9  ;;  %v15361_v9 = vpack.c.bf16 %v622_v3, %v620_v2  ;;  %v629_v2 = vld [vmem:[%s15058_s11 + $0x110] sm:$0xff]  ;;  %v536_v3 = vld [vmem:[%s15077_s30 + $0x128] sm:$0xff] }
  0xb0   : > { %9429 = vmatprep.subr.bf16.mxu1 %v12490_v27  ;;  %v15387_v27 = vpack.c.bf16 %v626_v23, %v624_v22  ;;  %v632_v13 = vld [vmem:[%s15058_s11 + $0x128] sm:$0xff]  ;;  %v15447_v19 = vpack.c.bf16 %v629_v2, %v627_v0  ;;  %v535_v22 = vld [vmem:[%s15077_s30 + $0x120] sm:$0xff]  ;;  %v537_v23 = vld [vmem:[%s15077_s30 + $0x130] sm:$0xff] }
  0xb1   : > { %9320 = vmatpush3.bf16.msra.mxu0 %v12495_v51  ;;  %v15451_v21 = vpack.c.bf16 %v634_v16, %v632_v13  ;;  %v541_v0 = vld [vmem:[%s15077_s30 + $0x150] sm:$0xff]  ;;  %v12513_v2 = vld [vmem:[%s20534_s5 + $0x140] sm:$0xff]   ;;  %v640_v13 = vld [vmem:[%s15058_s11 + $0x168] sm:$0xff] }
  0xb2   : > { %1179 = vmatmul.mubr.bf16.gmra.mrb[4].mxu1 %v15233_v61  ;;  %9321 = vmatprep.subr.bf16.mxu0 %v12497_v5  ;;  %v12506_v5 = vld [vmem:[%s20889_s4 + $0xf0] sm:$0xff]   ;;  %20893 = vst [vmem:[#allocation23_spill] sm:$0xff] %v15447_v19  ;;  %v642_v16 = vld [vmem:[%s15058_s11 + $0x178] sm:$0xff] }
  0xb3   : > { %1186 = vmatprep.mubr.bf16.mxu1 %v15239_v1  ;;  %9430 = vmatpush3.bf16.msra.mxu1 %v12492_v32  ;;  %v527_v32 = vld [vmem:[%s15077_s30 + $0xe0] sm:$0xff]  ;;  %20895 = vst [vmem:[#allocation25_spill] sm:$0xff] %v15451_v21 }
  0xb4   : > { %875 = vmatmul.mubr.bf16.gmra.mrb[8].mxu0 %v15261_v10  ;;  %9431 = vmatprep.subr.bf16.mxu1 %v12494_v48  ;;  %v630_v48 = vld [vmem:[%s15058_s11 + $0x118] sm:$0xff]  ;;  %v15413_v51 = vpack.c.bf16 %v529_v37, %v527_v32  ;;  %v633_v32 = vld [vmem:[%s15058_s11 + $0x130] sm:$0xff] }
  0xb5   : > { %882 = vmatprep.mubr.bf16.mxu0 %v15268_v15  ;;  %9322 = vmatpush3.bf16.msra.mxu0 %v12499_v11  ;;  %v15419_v58 = vpack.c.bf16 %v630_v48, %v628_v46  ;;  %v538_v11 = vld [vmem:[%s15077_s30 + $0x138] sm:$0xff]  ;;  %v15477_v46 = vpack.c.bf16 %v537_v23, %v535_v22 }
  0xb6   : > { %9323 = vmatprep.subr.bf16.mxu0 %v12501_v29  ;;  %v15449_v20 = vpack.c.bf16 %v538_v11, %v536_v3  ;;  %v631_v29 = vld [vmem:[%s15058_s11 + $0x120] sm:$0xff]  ;;  %v12509_v37 = vld [vmem:[%s20534_s5 + $0xf8] sm:$0xff]  }
  0xb7   : > { %9432 = vmatpush3.bf16.msra.mxu1 %v12496_v55  ;;  %v15415_v55 = vpack.c.bf16 %v625_v42, %v623_v38  ;;  %20891 = vst [vmem:[#allocation21_spill] sm:$0xff] %v15419_v58  ;;  %v636_v38 = vld [vmem:[%s15058_s11 + $0x148] sm:$0xff]  ;;  %v12510_v42 = vld [vmem:[%s20889_s4 + $0xf8] sm:$0xff]   ;;  %20896 = vst [vmem:[#allocation26_spill] sm:$0xff] %v15477_v46  ;;  %v15479_v48 = vpack.c.bf16 %v633_v32, %v631_v29  ;;  %v15509_v32 = vpack.c.bf16 %v642_v16, %v640_v13 }
  0xb8   : > { %9433 = vmatprep.subr.bf16.mxu1 %v12498_v8  ;;  %v12507_v8 = vld [vmem:[%s20534_s5 + $0xb0] sm:$0xff]   ;;  %20894 = vst [vmem:[#allocation24_spill] sm:$0xff] %v15449_v20  ;;  %v635_v3 = vld [vmem:[%s15058_s11 + $0x140] sm:$0xff]  ;;  %v552_v13 = vld [vmem:[%s15077_s30 + $0x1a8] sm:$0xff] }
  0xb9   : > { %9324 = vmatpush3.bf16.msra.mxu0 %v12503_v36  ;;  %v542_v36 = vld [vmem:[%s15077_s30 + $0x158] sm:$0xff]  ;;  %20897 = vst [vmem:[#allocation27_spill] sm:$0xff] %v15479_v48  ;;  %v12514_v11 = vld [vmem:[%s20889_s4 + $0x140] sm:$0xff]   ;;  %20903 = vst [vmem:[#allocation33_spill] sm:$0xff] %v15509_v32 }
  0xba   : > { %1187 = vmatmul.mubr.bf16.gmra.mrb[8].mxu1 %v15266_v14  ;;  %9325 = vmatprep.subr.bf16.mxu0 %v12505_v63  ;;  %v539_v63 = vld [vmem:[%s15077_s30 + $0x140] sm:$0xff]  ;;  %v554_v16 = vld [vmem:[%s15077_s30 + $0x1b8] sm:$0xff] }
  0xbb   : > { %1194 = vmatprep.mubr.bf16.mxu1 %v15271_v17  ;;  %9434 = vmatpush3.bf16.msra.mxu1 %v12500_v12  ;;  %v12508_v12 = vld [vmem:[%s20889_s4 + $0xb0] sm:$0xff]   ;;  %v15503_v22 = vpack.c.bf16 %v541_v0, %v539_v63 }
  0xbc   : > { %883 = vmatmul.mubr.bf16.gmra.mrb[12].mxu0 %v15291_v28  ;;  %9435 = vmatprep.subr.bf16.mxu1 %v12502_v34  ;;  %v540_v34 = vld [vmem:[%s15077_s30 + $0x148] sm:$0xff] }
  0xbd   : > { %890 = vmatprep.mubr.bf16.mxu0 %v15298_v31  ;;  %9326 = vmatpush3.bf16.msra.mxu0 %v12507_v8  ;;  %v15481_v59 = vpack.c.bf16 %v542_v36, %v540_v34  ;;  %v544_v8 = vld [vmem:[%s15077_s30 + $0x168] sm:$0xff]  ;;  %20900 = vst [vmem:[#allocation30_spill] sm:$0xff] %v15503_v22  ;;  %v543_v34 = vld [vmem:[%s15077_s30 + $0x160] sm:$0xff]  ;;  %v545_v36 = vld [vmem:[%s15077_s30 + $0x170] sm:$0xff] }
  0xbe   : > { %9327 = vmatprep.subr.bf16.mxu0 %v12509_v37  ;;  %v639_v37 = vld [vmem:[%s15058_s11 + $0x160] sm:$0xff]  ;;  %v15523_v63 = vpack.c.bf16 %v545_v36, %v543_v34  ;;  %v648_v34 = vld [vmem:[%s15058_s11 + $0x1a8] sm:$0xff]  ;;  %v650_v36 = vld [vmem:[%s15058_s11 + $0x1b8] sm:$0xff] }
  0xbf   : > { %9436 = vmatpush3.bf16.msra.mxu1 %v12504_v41  ;;  %v638_v41 = vld [vmem:[%s15058_s11 + $0x158] sm:$0xff]  ;;  %20898 = vst [vmem:[#allocation28_spill] sm:$0xff] %v15481_v59 }
  0xc0   : > { %9437 = vmatprep.subr.bf16.mxu1 %v12506_v5  ;;  %v15483_v60 = vpack.c.bf16 %v638_v41, %v636_v38  ;;  %v637_v5 = vld [vmem:[%s15058_s11 + $0x150] sm:$0xff]  ;;  %v548_v41 = vld [vmem:[%s15077_s30 + $0x188] sm:$0xff]  ;;  %20904 = vst [vmem:[#allocation34_spill] sm:$0xff] %v15523_v63 }
  0xc1   : > { %9328 = vmatpush3.bf16.msra.mxu0 %v12511_v44  ;;  %v15505_v23 = vpack.c.bf16 %v637_v5, %v635_v3  ;;  %v641_v38 = vld [vmem:[%s15058_s11 + $0x170] sm:$0xff]  ;;  %v644_v44 = vld [vmem:[%s15058_s11 + $0x188] sm:$0xff]  ;;  %v547_v5 = vld [vmem:[%s15077_s30 + $0x180] sm:$0xff] }
  0xc2   : > { %1195 = vmatmul.mubr.bf16.gmra.mrb[12].mxu1 %v15296_v30  ;;  %20899 = vst [vmem:[#allocation29_spill] sm:$0xff] %v15483_v60  ;;  %9537 = vmatprep.subr.bf16.mxu0 %v12513_v2  ;;  %v15525_v0 = vpack.c.bf16 %v641_v38, %v639_v37 }
  0xc3   : > { %1202 = vmatprep.mubr.bf16.mxu1 %v15303_v33  ;;  %9438 = vmatpush3.bf16.msra.mxu1 %v12508_v12  ;;  %v546_v12 = vld [vmem:[%s15077_s30 + $0x178] sm:$0xff]  ;;  %20901 = vst [vmem:[#allocation31_spill] sm:$0xff] %v15505_v23 }
  0xc4   : > { %891 = vmatmul.mubr.bf16.gmra.mrb[16].mxu0 %v15320_v47  ;;  %9439 = vmatprep.subr.bf16.mxu1 %v12510_v42  ;;  %v15507_v29 = vpack.c.bf16 %v546_v12, %v544_v8  ;;  %v550_v42 = vld [vmem:[%s15077_s30 + $0x198] sm:$0xff]  ;;  %20905 = vst [vmem:[#allocation35_spill] sm:$0xff] %v15525_v0  ;;  %v549_v8 = vld [vmem:[%s15077_s30 + $0x190] sm:$0xff] }
  0xc5   : > { %898 = vmatprep.mubr.bf16.mxu0 %v15327_v50  ;;  %v15527_v2 = vpack.c.bf16 %v550_v42, %v548_v41  ;;  %v645_v12 = vld [vmem:[%s15058_s11 + $0x190] sm:$0xff]  ;;  %v15543_v37 = vpack.c.bf16 %v549_v8, %v547_v5  ;;  %v15547_v41 = vpack.c.bf16 %v554_v16, %v552_v13  ;;  %v15549_v42 = vpack.c.bf16 %v650_v36, %v648_v34  ;;  %v558_v5 = vld [vmem:[%s15077_s30 + $0x1d8] sm:$0xff]  ;;  %v652_v8 = vld [vmem:[%s15058_s11 + $0x1c8] sm:$0xff] }
  0xc6   : > { %20902 = vst [vmem:[#allocation32_spill] sm:$0xff] %v15507_v29  ;;  %v555_v36 = vld [vmem:[%s15077_s30 + $0x1c0] sm:$0xff] }
  0xc7   : > { %9440 = vmatpush3.bf16.msra.mxu1 %v12512_v45  ;;  %v646_v45 = vld [vmem:[%s15058_s11 + $0x198] sm:$0xff]  ;;  %20906 = vst [vmem:[#allocation36_spill] sm:$0xff] %v15527_v2  ;;  %20908 = vst [vmem:[#allocation38_spill] sm:$0xff] %v15543_v37 }
  0xc8   : > { %9649 = vmatprep.subr.bf16.mxu1 %v12514_v11  ;;  %v15529_v3 = vpack.c.bf16 %v646_v45, %v644_v44  ;;  %v643_v11 = vld [vmem:[%s15058_s11 + $0x180] sm:$0xff]  ;;  %20910 = vst [vmem:[#allocation40_spill] sm:$0xff] %v15547_v41  ;;  %20911 = vst [vmem:[#allocation41_spill] sm:$0xff] %v15549_v42  ;;  %v553_v45 = vld [vmem:[%s15077_s30 + $0x1b0] sm:$0xff] }
  0xc9   : > { %v15545_v38 = vpack.c.bf16 %v645_v12, %v643_v11  ;;  %v551_v44 = vld [vmem:[%s15077_s30 + $0x1a0] sm:$0xff]  ;;  %v654_v11 = vld [vmem:[%s15058_s11 + $0x1d8] sm:$0xff] }
  0xca   : > { %1203 = vmatmul.mubr.bf16.gmra.mrb[16].mxu1 %v15325_v49  ;;  %20907 = vst [vmem:[#allocation37_spill] sm:$0xff] %v15529_v3  ;;  %v15563_v12 = vpack.c.bf16 %v553_v45, %v551_v44  ;;  %v15569_v34 = vpack.c.bf16 %v654_v11, %v652_v8  ;;  %v559_v8 = vld [vmem:[%s15077_s30 + $0x1e0] sm:$0xff]  ;;  %v561_v11 = vld [vmem:[%s15077_s30 + $0x1f0] sm:$0xff] }
  0xcb   : > { %1210 = vmatprep.mubr.bf16.mxu1 %v15332_v54  ;;  %20909 = vst [vmem:[#allocation39_spill] sm:$0xff] %v15545_v38 }
  0xcc   : > { %899 = vmatmul.mubr.bf16.gmra.mrb[20].mxu0 %v15349_v4  ;;  %20912 = vst [vmem:[#allocation42_spill] sm:$0xff] %v15563_v12 }
  0xcd   : > { %906 = vmatprep.mubr.bf16.mxu0 %v15356_v7 }
  0xd2   : > { %1211 = vmatmul.mubr.bf16.gmra.mrb[20].mxu1 %v15354_v6 }
  0xd3   : > { %1218 = vmatprep.mubr.bf16.mxu1 %v15361_v9 }
  0xd4   : > { %907 = vmatmul.mubr.bf16.gmra.mrb[24].mxu0 %v15381_v24 }
  0xd5   : > { %914 = vmatprep.mubr.bf16.mxu0 %v15385_v26 }
  0xda   : > { %1219 = vmatmul.mubr.bf16.gmra.mrb[24].mxu1 %v15383_v25 }
  0xdb   : > { %1226 = vmatprep.mubr.bf16.mxu1 %v15387_v27 }
  0xdc   : > { %915 = vmatmul.mubr.bf16.gmra.mrb[28].mxu0 %v15413_v51 }
  0xdd   : > { %922 = vmatprep.mubr.bf16.mxu0 %v15417_v56 }
  0xe2   : > { %1227 = vmatmul.mubr.bf16.gmra.mrb[28].mxu1 %v15415_v55 }
  0xe3   : > { %1234 = vmatprep.mubr.bf16.mxu1 %v15419_v58 }
  0xe4   : > { %923 = vmatmul.mubr.bf16.gmra.mrb[32].mxu0 %v15445_v18 }
  0xe5   : > { %930 = vmatprep.mubr.bf16.mxu0 %v15449_v20 }
  0xea   : > { %1235 = vmatmul.mubr.bf16.gmra.mrb[32].mxu1 %v15447_v19 }
  0xeb   : > { %1242 = vmatprep.mubr.bf16.mxu1 %v15451_v21 }
  0xec   : > { %931 = vmatmul.mubr.bf16.gmra.mrb[36].mxu0 %v15477_v46 }
  0xed   : > { %938 = vmatprep.mubr.bf16.mxu0 %v15481_v59 }
  0xf2   : > { %1243 = vmatmul.mubr.bf16.gmra.mrb[36].mxu1 %v15479_v48 }
  0xf3   : > { %1250 = vmatprep.mubr.bf16.mxu1 %v15483_v60 }
  0xf4   : > { %939 = vmatmul.mubr.bf16.gmra.mrb[40].mxu0 %v15503_v22 }
  0xf5   : > { %946 = vmatprep.mubr.bf16.mxu0 %v15507_v29 }
  0xfa   : > { %1251 = vmatmul.mubr.bf16.gmra.mrb[40].mxu1 %v15505_v23 }
  0xfb   : > { %1258 = vmatprep.mubr.bf16.mxu1 %v15509_v32 }
  0xfc   : > { %947 = vmatmul.mubr.bf16.gmra.mrb[44].mxu0 %v15523_v63  ;;  %v560_v63 = vld [vmem:[%s15077_s30 + $0x1e8] sm:$0xff] }
  0xfd   : > { %954 = vmatprep.mubr.bf16.mxu0 %v15527_v2  ;;  %v647_v2 = vld [vmem:[%s15058_s11 + $0x1a0] sm:$0xff] }
 0x102   : > { %1259 = vmatmul.mubr.bf16.gmra.mrb[44].mxu1 %v15525_v0  ;;  %v556_v0 = vld [vmem:[%s15077_s30 + $0x1c8] sm:$0xff] }
 0x103   : > { %1266 = vmatprep.mubr.bf16.mxu1 %v15529_v3  ;;  %v649_v3 = vld [vmem:[%s15058_s11 + $0x1b0] sm:$0xff]  ;;  %v15567_v16 = vpack.c.bf16 %v558_v5, %v556_v0  ;;  %v656_v0 = vld [vmem:[%s15058_s11 + $0x1e8] sm:$0xff] }
 0x104   : > { %955 = vmatmul.mubr.bf16.gmra.mrb[48].mxu0 %v15543_v37  ;;  %v15565_v13 = vpack.c.bf16 %v649_v3, %v647_v2  ;;  %v557_v37 = vld [vmem:[%s15077_s30 + $0x1d0] sm:$0xff]  ;;  %v658_v2 = vld [vmem:[%s15058_s11 + $0x1f8] sm:$0xff] }
 0x105   : > { %962 = vmatprep.mubr.bf16.mxu0 %v15547_v41  ;;  %20914 = vst [vmem:[#allocation44_spill] sm:$0xff] %v15567_v16  ;;  %v651_v41 = vld [vmem:[%s15058_s11 + $0x1c0] sm:$0xff]  ;;  %v15583_v3 = vpack.c.bf16 %v557_v37, %v555_v36  ;;  %v15589_v5 = vpack.c.bf16 %v658_v2, %v656_v0  ;;  %v15599_v37 = vpack.c.bf16 %v561_v11, %v559_v8  ;;  %v12520_v36 = vld [vmem:[%s20889_s4 + $0x108] sm:$0xff]   ;;  %v12521_v0 = vld [vmem:[%s20534_s5 + $0x150] sm:$0xff]  }
 0x106   : > { %20913 = vst [vmem:[#allocation43_spill] sm:$0xff] %v15565_v13  ;;  %v12522_v2 = vld [vmem:[%s20889_s4 + $0x150] sm:$0xff]  }
 0x107   : > { %v12523_v8 = vld [vmem:[%s20534_s5 + $0x110] sm:$0xff]  }
 0x108   : > { %v12524_v11 = vld [vmem:[%s20889_s4 + $0x110] sm:$0xff]  }
 0x10a   : > { %1267 = vmatmul.mubr.bf16.gmra.mrb[48].mxu1 %v15545_v38  ;;  %v653_v38 = vld [vmem:[%s15058_s11 + $0x1d0] sm:$0xff] }
 0x10b   : > { %1274 = vmatprep.mubr.bf16.mxu1 %v15549_v42  ;;  %v562_v42 = vld [vmem:[%s15077_s30 + $0x1f8] sm:$0xff]  ;;  %v15585_v44 = vpack.c.bf16 %v653_v38, %v651_v41  ;;  %v12516_v41 = vld [vmem:[%s20889_s4 + $0x100] sm:$0xff]  }
 0x10c   : > { %963 = vmatmul.mubr.bf16.gmra.mrb[52].mxu0 %v15563_v12  ;;  %v15587_v45 = vpack.c.bf16 %v562_v42, %v560_v63  ;;  %v655_v12 = vld [vmem:[%s15058_s11 + $0x1e0] sm:$0xff]  ;;  %v12517_v42 = vld [vmem:[%s20534_s5 + $0x148] sm:$0xff]  }
 0x10d   : > { %970 = vmatprep.mubr.bf16.mxu0 %v15567_v16  ;;  %v12515_v63 = vld [vmem:[%s20534_s5 + $0x100] sm:$0xff]  }
 0x112   : > { %1275 = vmatmul.mubr.bf16.gmra.mrb[52].mxu1 %v15565_v13  ;;  %v657_v13 = vld [vmem:[%s15058_s11 + $0x1f0] sm:$0xff] }
 0x113   : > { %1282 = vmatprep.mubr.bf16.mxu1 %v15569_v34  ;;  %v15601_v38 = vpack.c.bf16 %v657_v13, %v655_v12  ;;  %v12518_v12 = vld [vmem:[%s20889_s4 + $0x148] sm:$0xff]  }
 0x114   : > { %971 = vmatmul.mubr.bf16.gmra.mrb[56].mxu0 %v15583_v3  ;;  %v12519_v13 = vld [vmem:[%s20534_s5 + $0x108] sm:$0xff]  }
 0x115   : > { %978 = vmatprep.mubr.bf16.mxu0 %v15587_v45 }
 0x11a   : > { %1283 = vmatmul.mubr.bf16.gmra.mrb[56].mxu1 %v15585_v44 }
 0x11b   : > { %1290 = vmatprep.mubr.bf16.mxu1 %v15589_v5 }
 0x11c   : > { %979 = vmatmul.mubr.bf16.gmra.mrb[60].mxu0 %v15599_v37 }
 0x11d   : > { %1519 = vmatprep.mubr.bf16.mxu0 %v15186_v35 }
 0x122   : > { %1291 = vmatmul.mubr.bf16.gmra.mrb[60].mxu1 %v15601_v38 }
 0x123   : > { %1833 = vmatprep.mubr.bf16.mxu1 %v15191_v39 }
 0x124   : > { %1520 = vmatmul.mubr.bf16.vlgmr.msra.gmra.mrb[64].mxu0 %v15193_v40 }
 0x125   : > { %9538 = vmatpush3.bf16.msra.mxu0 %v12515_v63  ;;  %1527 = vmatprep.mubr.bf16.mxu0 %v15219_v52  ;;  %v12525_v63 = vld [vmem:[%s20534_s5 + $0x158] sm:$0xff]  }
 0x126   : > { %9539 = vmatprep.subr.bf16.mxu0 %v12517_v42  ;;  %v12527_v42 = vld [vmem:[%s20534_s5 + $0x118] sm:$0xff]  }
 0x129   : > { %9540 = vmatpush3.bf16.msra.mxu0 %v12519_v13  ;;  %v12529_v13 = vld [vmem:[%s20534_s5 + $0x160] sm:$0xff]  }
 0x12a   : > { %1834 = vmatmul.mubr.bf16.vlgmr.msra.gmra.mrb[64].mxu1 %v15198_v43  ;;  %9541 = vmatprep.subr.bf16.mxu0 %v12521_v0  ;;  %v12531_v0 = vld [vmem:[%s20534_s5 + $0x120] sm:$0xff]  }
 0x12b   : > { %9650 = vmatpush3.bf16.msra.mxu1 %v12516_v41  ;;  %1841 = vmatprep.mubr.bf16.mxu1 %v15221_v53  ;;  %v12526_v41 = vld [vmem:[%s20889_s4 + $0x158] sm:$0xff]  }
 0x12c   : > { %9651 = vmatprep.subr.bf16.mxu1 %v12518_v12  ;;  %1528 = vmatmul.mubr.bf16.gmra.mrb[68].mxu0 %v15226_v57  ;;  %v12528_v12 = vld [vmem:[%s20889_s4 + $0x118] sm:$0xff]  }
 0x12d   : > { %1535 = vmatprep.mubr.bf16.mxu0 %v15235_v62  ;;  %9542 = vmatpush3.bf16.msra.mxu0 %v12523_v8  ;;  %v12533_v8 = vld [vmem:[%s20534_s5 + $0x168] sm:$0xff]  }
 0x12e   : > { %9543 = vmatprep.subr.bf16.mxu0 %v12525_v63  ;;  %v12535_v63 = vld [vmem:[%s20534_s5 + $0x128] sm:$0xff]  }
 0x12f   : > { %9652 = vmatpush3.bf16.msra.mxu1 %v12520_v36  ;;  %v12530_v36 = vld [vmem:[%s20889_s4 + $0x160] sm:$0xff]  }
 0x130   : > { %9653 = vmatprep.subr.bf16.mxu1 %v12522_v2  ;;  %v12532_v2 = vld [vmem:[%s20889_s4 + $0x120] sm:$0xff]  }
 0x131   : > { %9544 = vmatpush3.bf16.msra.mxu0 %v12527_v42  ;;  %v12537_v42 = vld [vmem:[%s20534_s5 + $0x170] sm:$0xff]  }
 0x132   : > { %1842 = vmatmul.mubr.bf16.gmra.mrb[68].mxu1 %v15233_v61  ;;  %9545 = vmatprep.subr.bf16.mxu0 %v12529_v13  ;;  %v12539_v13 = vld [vmem:[%s20534_s5 + $0x130] sm:$0xff]  }
 0x133   : > { %1849 = vmatprep.mubr.bf16.mxu1 %v15239_v1  ;;  %9654 = vmatpush3.bf16.msra.mxu1 %v12524_v11  ;;  %v12534_v11 = vld [vmem:[%s20889_s4 + $0x168] sm:$0xff]  }
 0x134   : > { %9655 = vmatprep.subr.bf16.mxu1 %v12526_v41  ;;  %1536 = vmatmul.mubr.bf16.gmra.mrb[72].mxu0 %v15261_v10  ;;  %v12536_v41 = vld [vmem:[%s20889_s4 + $0x128] sm:$0xff]  }
 0x135   : > { %1543 = vmatprep.mubr.bf16.mxu0 %v15268_v15  ;;  %9546 = vmatpush3.bf16.msra.mxu0 %v12531_v0  ;;  %v12541_v0 = vld [vmem:[%s20534_s5 + $0x178] sm:$0xff]  }
 0x136   : > { %9547 = vmatprep.subr.bf16.mxu0 %v12533_v8  ;;  %v12543_v8 = vld [vmem:[%s20534_s5 + $0x138] sm:$0xff]  }
 0x137   : > { %9656 = vmatpush3.bf16.msra.mxu1 %v12528_v12  ;;  %v12538_v12 = vld [vmem:[%s20889_s4 + $0x170] sm:$0xff]  }
 0x138   : > { %9657 = vmatprep.subr.bf16.mxu1 %v12530_v36  ;;  %v12540_v36 = vld [vmem:[%s20889_s4 + $0x130] sm:$0xff]  }
 0x139   : > { %9548 = vmatpush3.bf16.msra.mxu0 %v12535_v63  ;;  %v12545_v63 = vld [vmem:[%s20534_s5 + $0x1c0] sm:$0xff]  }
 0x13a   : > { %1850 = vmatmul.mubr.bf16.gmra.mrb[72].mxu1 %v15266_v14  ;;  %9549 = vmatprep.subr.bf16.mxu0 %v12537_v42 }
 0x13b   : > { %1857 = vmatprep.mubr.bf16.mxu1 %v15271_v17  ;;  %9658 = vmatpush3.bf16.msra.mxu1 %v12532_v2  ;;  %v12542_v2 = vld [vmem:[%s20889_s4 + $0x178] sm:$0xff]  }
 0x13c   : > { %9659 = vmatprep.subr.bf16.mxu1 %v12534_v11  ;;  %1544 = vmatmul.mubr.bf16.gmra.mrb[76].mxu0 %v15291_v28  ;;  %v12544_v11 = vld [vmem:[%s20889_s4 + $0x138] sm:$0xff]  }
 0x13d   : > { %1551 = vmatprep.mubr.bf16.mxu0 %v15298_v31  ;;  %9550 = vmatpush3.bf16.msra.mxu0 %v12539_v13 }
 0x13e   : > { %9551 = vmatprep.subr.bf16.mxu0 %v12541_v0 }
 0x13f   : > { %9660 = vmatpush3.bf16.msra.mxu1 %v12536_v41  ;;  %v12546_v41 = vld [vmem:[%s20889_s4 + $0x1c0] sm:$0xff]  }
 0x140   : > { %9661 = vmatprep.subr.bf16.mxu1 %v12538_v12 }
 0x141   : > { %9552 = vmatpush3.bf16.msra.mxu0 %v12543_v8  ;;  %v15750_v8 = vld [vmem:[%s20915_s14] ss:$0 sm:$0xff] }
 0x142   : > { %1858 = vmatmul.mubr.bf16.gmra.mrb[76].mxu1 %v15296_v30  ;;  %9761 = vmatprep.subr.bf16.mxu0 %v12545_v63 }
 0x143   : > { %1865 = vmatprep.mubr.bf16.mxu1 %v15303_v33  ;;  %9662 = vmatpush3.bf16.msra.mxu1 %v12540_v36 }
 0x144   : > { %9663 = vmatprep.subr.bf16.mxu1 %v12542_v2  ;;  %1552 = vmatmul.mubr.bf16.gmra.mrb[80].mxu0 %v15320_v47 }
 0x145   : > { %1559 = vmatprep.mubr.bf16.mxu0 %v15327_v50 }
 0x147   : > { %9664 = vmatpush3.bf16.msra.mxu1 %v12544_v11 }
 0x148   : > { %9873 = vmatprep.subr.bf16.mxu1 %v12546_v41 }
 0x14a   : > { %1866 = vmatmul.mubr.bf16.gmra.mrb[80].mxu1 %v15325_v49 }
 0x14b   : > { %1873 = vmatprep.mubr.bf16.mxu1 %v15332_v54 }
 0x14c   : > { %1560 = vmatmul.mubr.bf16.gmra.mrb[84].mxu0 %v15349_v4 }
 0x14d   : > { %1567 = vmatprep.mubr.bf16.mxu0 %v15356_v7 }
 0x152   : > { %1874 = vmatmul.mubr.bf16.gmra.mrb[84].mxu1 %v15354_v6 }
 0x153   : > { %1881 = vmatprep.mubr.bf16.mxu1 %v15361_v9 }
 0x154   : > { %1568 = vmatmul.mubr.bf16.gmra.mrb[88].mxu0 %v15381_v24 }
 0x155   : > { %1575 = vmatprep.mubr.bf16.mxu0 %v15385_v26 }
 0x15a   : > { %1882 = vmatmul.mubr.bf16.gmra.mrb[88].mxu1 %v15383_v25 }
 0x15b   : > { %1889 = vmatprep.mubr.bf16.mxu1 %v15387_v27 }
 0x15c   : > { %1576 = vmatmul.mubr.bf16.gmra.mrb[92].mxu0 %v15413_v51 }
 0x15d   : > { %1583 = vmatprep.mubr.bf16.mxu0 %v15417_v56 }
 0x162   : > { %1890 = vmatmul.mubr.bf16.gmra.mrb[92].mxu1 %v15415_v55 }
 0x163   : > { %1897 = vmatprep.mubr.bf16.mxu1 %v15419_v58 }
 0x164   : > { %1584 = vmatmul.mubr.bf16.gmra.mrb[96].mxu0 %v15445_v18  ;;  %v20921_v18 = vld [vmem:[#allocation38_spill] sm:$0xff] }
 0x165   : > { %1591 = vmatprep.mubr.bf16.mxu0 %v15449_v20 }
 0x16a   : > { %1898 = vmatmul.mubr.bf16.gmra.mrb[96].mxu1 %v15447_v19 }
 0x16b   : > { %1905 = vmatprep.mubr.bf16.mxu1 %v15451_v21 }
 0x16c   : > { %1592 = vmatmul.mubr.bf16.gmra.mrb[100].mxu0 %v15477_v46  ;;  %v20920_v46 = vld [vmem:[#allocation37_spill] sm:$0xff] }
 0x16d   : > { %1599 = vmatprep.mubr.bf16.mxu0 %v15481_v59  ;;  %v20918_v59 = vld [vmem:[#allocation35_spill] sm:$0xff] }
 0x172   : > { %1906 = vmatmul.mubr.bf16.gmra.mrb[100].mxu1 %v15479_v48  ;;  %v20919_v48 = vld [vmem:[#allocation36_spill] sm:$0xff] }
 0x173   : > { %1913 = vmatprep.mubr.bf16.mxu1 %v15483_v60  ;;  %v20917_v60 = vld [vmem:[#allocation34_spill] sm:$0xff] }
 0x174   : > { %1600 = vmatmul.mubr.bf16.gmra.mrb[104].mxu0 %v15503_v22 }
 0x175   : > { %1607 = vmatprep.mubr.bf16.mxu0 %v15507_v29  ;;  %v15755_v29 = vld [vmem:[%s20916_s7] ss:$0 sm:$0xff] }
 0x177   : > { %v9105_v42 = vpop.f32.mrb[0].mxu0 }
 0x178   : > { %v9106_v13 = vpop.f32.mrb[1].mxu0 }
 0x179   : > { %v9107_v36 = vadd.f32 %v9106_v13, %v9105_v42  ;;  %v9108_v2 = vpop.f32.mrb[2].mxu0 }
 0x17a   : > { %1914 = vmatmul.mubr.bf16.gmra.mrb[104].mxu1 %v15505_v23  ;;  %v9109_v41 = vpop.f32.mrb[3].mxu0 }
 0x17b   : > { %1921 = vmatprep.mubr.bf16.mxu1 %v15509_v32  ;;  %v9110_v32 = vadd.f32 %v9109_v41, %v9108_v2  ;;  %v861_v42 = vadd.f32 %v9107_v36, %v15750_v8 }
 0x17c   : > { %1608 = vmatmul.mubr.bf16.gmra.mrb[108].mxu0 %v20917_v60 }
 0x17d   : > { %v9217_v12 = vpop.f32.mrb[0].mxu1  ;;  %v864_v13 = vadd.f32 %v9110_v32, %v15750_v8  ;;  %1615 = vmatprep.mubr.bf16.mxu0 %v20919_v48 }
 0x17e   : > { %v9218_v0 = vpop.f32.mrb[1].mxu1 }
 0x17f   : > { %v9219_v11 = vadd.f32 %v9218_v0, %v9217_v12  ;;  %v9220_v63 = vpop.f32.mrb[2].mxu1  ;;  %v987_v2 = vpack.c.bf16 %v864_v13, %v861_v42  ;;  %v9111_v41 = vpop.f32.mrb[4].mxu0 }
 0x180   : > { %v9221_v23 = vpop.f32.mrb[3].mxu1  ;;  %v9112_v60 = vpop.f32.mrb[5].mxu0 }
 0x181   : > { %v9222_v22 = vadd.f32 %v9221_v23, %v9220_v63  ;;  %v1173_v12 = vadd.f32 %v9219_v11, %v15755_v29  ;;  %1316 = vst.msk [vmem:[#allocation2] sm:$0xff] %vm1315_vm0, %v987_v2  ;;  %v9113_v36 = vadd.f32 %v9112_v60, %v9111_v41  ;;  %v9114_v21 = vpop.f32.mrb[6].mxu0  ;;  %v20924_v41 = vld [vmem:[#allocation41_spill] sm:$0xff] }
 0x182   : > { %1922 = vmatmul.mubr.bf16.gmra.mrb[108].mxu1 %v20918_v59  ;;  %v9115_v11 = vpop.f32.mrb[7].mxu0 }
 0x183   : > { %v1176_v0 = vadd.f32 %v9222_v22, %v15755_v29  ;;  %1929 = vmatprep.mubr.bf16.mxu1 %v20920_v46  ;;  %v9116_v20 = vadd.f32 %v9115_v11, %v9114_v21  ;;  %v869_v42 = vadd.f32 %v9113_v36, %v15750_v8  ;;  %v20925_v46 = vld [vmem:[#allocation42_spill] sm:$0xff] }
 0x184   : > { %1616 = vmatmul.mubr.bf16.gmra.mrb[112].mxu0 %v20921_v18 }
 0x185   : > { %v1299_v23 = vpack.c.bf16 %v1176_v0, %v1173_v12  ;;  %v9223_v63 = vpop.f32.mrb[4].mxu1  ;;  %v872_v13 = vadd.f32 %v9116_v20, %v15750_v8  ;;  %v20922_v12 = vld [vmem:[#allocation39_spill] sm:$0xff]  ;;  %v20923_v0 = vld [vmem:[#allocation40_spill] sm:$0xff] }
 0x186   : > { %v9224_v32 = vpop.f32.mrb[5].mxu1  ;;  %1623 = vmatprep.mubr.bf16.mxu0 %v20923_v0 }
 0x187   : > { %1324 = vst.msk [vmem:[#allocation3] sm:$0xff] %vm1315_vm0, %v1299_v23  ;;  %v9225_v48 = vadd.f32 %v9224_v32, %v9223_v63  ;;  %v9226_v59 = vpop.f32.mrb[6].mxu1  ;;  %v988_v23 = vpack.c.bf16 %v872_v13, %v869_v42  ;;  %v9117_v21 = vpop.f32.mrb[8].mxu0 }
 0x188   : > { %v9227_v19 = vpop.f32.mrb[7].mxu1 }
 0x189   : > { %v9228_v22 = vadd.f32 %v9227_v19, %v9226_v59  ;;  %v1181_v60 = vadd.f32 %v9225_v48, %v15755_v29  ;;  %v9118_v59 = vpop.f32.mrb[9].mxu0  ;;  %1317 = vst.msk [vmem:[#allocation2 + $0x8] sm:$0xff] %vm1315_vm0, %v988_v23 }
 0x18a   : > { %1930 = vmatmul.mubr.bf16.gmra.mrb[112].mxu1 %v20922_v12  ;;  %v9119_v36 = vadd.f32 %v9118_v59, %v9117_v21  ;;  %v9120_v20 = vpop.f32.mrb[10].mxu0 }
 0x18b   : > { %v1184_v2 = vadd.f32 %v9228_v22, %v15755_v29  ;;  %1937 = vmatprep.mubr.bf16.mxu1 %v20924_v41  ;;  %v9121_v12 = vpop.f32.mrb[11].mxu0 }
 0x18c   : > { %v9122_v48 = vadd.f32 %v9121_v12, %v9120_v20  ;;  %1624 = vmatmul.mubr.bf16.gmra.mrb[116].mxu0 %v20925_v46  ;;  %v877_v42 = vadd.f32 %v9119_v36, %v15750_v8 }
 0x18d   : > { %v1300_v63 = vpack.c.bf16 %v1184_v2, %v1181_v60  ;;  %v9229_v19 = vpop.f32.mrb[8].mxu1  ;;  %v20926_v60 = vld [vmem:[#allocation43_spill] sm:$0xff]  ;;  %1631 = vmatprep.mubr.bf16.mxu0 %v15567_v16 }
 0x18e   : > { %v9230_v32 = vpop.f32.mrb[9].mxu1  ;;  %v880_v13 = vadd.f32 %v9122_v48, %v15750_v8 }
 0x18f   : > { %1325 = vst.msk [vmem:[#allocation3 + $0x8] sm:$0xff] %vm1315_vm0, %v1300_v63  ;;  %v9231_v11 = vadd.f32 %v9230_v32, %v9229_v19  ;;  %v9232_v0 = vpop.f32.mrb[10].mxu1  ;;  %v9123_v12 = vpop.f32.mrb[12].mxu0 }
 0x190   : > { %v9233_v18 = vpop.f32.mrb[11].mxu1  ;;  %v989_v21 = vpack.c.bf16 %v880_v13, %v877_v42 }
 0x191   : > { %v9234_v22 = vadd.f32 %v9233_v18, %v9232_v0  ;;  %v1189_v2 = vadd.f32 %v9231_v11, %v15755_v29  ;;  %v9124_v0 = vpop.f32.mrb[13].mxu0 }
 0x192   : > { %1938 = vmatmul.mubr.bf16.gmra.mrb[116].mxu1 %v20926_v60  ;;  %1318 = vst.msk [vmem:[#allocation2 + $0x10] sm:$0xff] %vm1315_vm0, %v989_v21  ;;  %v9125_v19 = vadd.f32 %v9124_v0, %v9123_v12  ;;  %v9126_v36 = vpop.f32.mrb[14].mxu0 }
 0x193   : > { %v1192_v23 = vadd.f32 %v9234_v22, %v15755_v29  ;;  %1945 = vmatprep.mubr.bf16.mxu1 %v15569_v34  ;;  %v9127_v48 = vpop.f32.mrb[15].mxu0 }
 0x194   : > { %v9128_v11 = vadd.f32 %v9127_v48, %v9126_v36  ;;  %1632 = vmatmul.mubr.bf16.gmra.mrb[120].mxu0 %v15583_v3  ;;  %v885_v42 = vadd.f32 %v9125_v19, %v15750_v8 }
 0x195   : > { %v1301_v63 = vpack.c.bf16 %v1192_v23, %v1189_v2  ;;  %v9235_v18 = vpop.f32.mrb[12].mxu1  ;;  %1639 = vmatprep.mubr.bf16.mxu0 %v15587_v45 }
 0x196   : > { %v9236_v59 = vpop.f32.mrb[13].mxu1  ;;  %v888_v13 = vadd.f32 %v9128_v11, %v15750_v8 }
 0x197   : > { %1326 = vst.msk [vmem:[#allocation3 + $0x10] sm:$0xff] %vm1315_vm0, %v1301_v63  ;;  %v9237_v32 = vadd.f32 %v9236_v59, %v9235_v18  ;;  %v9238_v20 = vpop.f32.mrb[14].mxu1  ;;  %v9129_v12 = vpop.f32.mrb[16].mxu0 }
 0x198   : > { %v9239_v16 = vpop.f32.mrb[15].mxu1  ;;  %v990_v21 = vpack.c.bf16 %v888_v13, %v885_v42  ;;  %v9130_v18 = vpop.f32.mrb[17].mxu0 }
 0x199   : > { %v9240_v22 = vadd.f32 %v9239_v16, %v9238_v20  ;;  %v1197_v2 = vadd.f32 %v9237_v32, %v15755_v29  ;;  %v9131_v0 = vadd.f32 %v9130_v18, %v9129_v12  ;;  %v9132_v59 = vpop.f32.mrb[18].mxu0 }
 0x19a   : > { %1946 = vmatmul.mubr.bf16.gmra.mrb[120].mxu1 %v15585_v44  ;;  %1319 = vst.msk [vmem:[#allocation2 + $0x18] sm:$0xff] %vm1315_vm0, %v990_v21  ;;  %v9133_v48 = vpop.f32.mrb[19].mxu0 }
 0x19b   : > { %v1200_v23 = vadd.f32 %v9240_v22, %v15755_v29  ;;  %1953 = vmatprep.mubr.bf16.mxu1 %v15589_v5  ;;  %v9134_v32 = vadd.f32 %v9133_v48, %v9132_v59  ;;  %v893_v42 = vadd.f32 %v9131_v0, %v15750_v8 }
 0x19c   : > { %1640 = vmatmul.mubr.bf16.gmra.mrb[124].mxu0 %v15599_v37 }
 0x19d   : > { %v1302_v63 = vpack.c.bf16 %v1200_v23, %v1197_v2  ;;  %v9241_v16 = vpop.f32.mrb[16].mxu1  ;;  %v896_v13 = vadd.f32 %v9134_v32, %v15750_v8  ;;  %2183 = vmatprep.mubr.bf16.mxu0 %v15186_v35 }
 0x19e   : > { %v9242_v19 = vpop.f32.mrb[17].mxu1 }
 0x19f   : > { %1327 = vst.msk [vmem:[#allocation3 + $0x18] sm:$0xff] %vm1315_vm0, %v1302_v63  ;;  %v9243_v36 = vadd.f32 %v9242_v19, %v9241_v16  ;;  %v9244_v20 = vpop.f32.mrb[18].mxu1  ;;  %v991_v21 = vpack.c.bf16 %v896_v13, %v893_v42  ;;  %v9135_v12 = vpop.f32.mrb[20].mxu0  ;;  %v12549_v13 = vld [vmem:[%s20534_s5 + $0x1c8] sm:$0xff]  }
 0x1a0   : > { %v9245_v11 = vpop.f32.mrb[19].mxu1  ;;  %v9136_v18 = vpop.f32.mrb[21].mxu0 }
 0x1a1   : > { %v9246_v22 = vadd.f32 %v9245_v11, %v9244_v20  ;;  %v1205_v2 = vadd.f32 %v9243_v36, %v15755_v29  ;;  %1320 = vst.msk [vmem:[#allocation2 + $0x20] sm:$0xff] %vm1315_vm0, %v991_v21  ;;  %v9137_v0 = vadd.f32 %v9136_v18, %v9135_v12  ;;  %v9138_v59 = vpop.f32.mrb[22].mxu0  ;;  %v12547_v20 = vld [vmem:[%s20534_s5 + $0x180] sm:$0xff]  }
 0x1a2   : > { %1954 = vmatmul.mubr.bf16.gmra.mrb[124].mxu1 %v15601_v38  ;;  %v9139_v32 = vpop.f32.mrb[23].mxu0  ;;  %v12548_v11 = vld [vmem:[%s20889_s4 + $0x180] sm:$0xff]  }
 0x1a3   : > { %v1208_v23 = vadd.f32 %v9246_v22, %v15755_v29  ;;  %2497 = vmatprep.mubr.bf16.mxu1 %v15191_v39  ;;  %v9140_v22 = vadd.f32 %v9139_v32, %v9138_v59  ;;  %v901_v21 = vadd.f32 %v9137_v0, %v15750_v8  ;;  %v12552_v0 = vld [vmem:[%s20889_s4 + $0x188] sm:$0xff]  }
 0x1a4   : > { %2184 = vmatmul.mubr.bf16.vlgmr.msra.gmra.mrb[128].mxu0 %v15193_v40 }
 0x1a5   : > { %v1303_v63 = vpack.c.bf16 %v1208_v23, %v1205_v2  ;;  %v9247_v16 = vpop.f32.mrb[20].mxu1  ;;  %v12550_v23 = vld [vmem:[%s20889_s4 + $0x1c8] sm:$0xff]   ;;  %v904_v12 = vadd.f32 %v9140_v22, %v15750_v8  ;;  %9762 = vmatpush3.bf16.msra.mxu0 %v12547_v20  ;;  %2191 = vmatprep.mubr.bf16.mxu0 %v15219_v52 }
 0x1a6   : > { %v9248_v19 = vpop.f32.mrb[21].mxu1  ;;  %9763 = vmatprep.subr.bf16.mxu0 %v12549_v13  ;;  %v12555_v13 = vld [vmem:[%s20534_s5 + $0x190] sm:$0xff]  }
 0x1a7   : > { %1328 = vst.msk [vmem:[#allocation3 + $0x20] sm:$0xff] %vm1315_vm0, %v1303_v63  ;;  %v9249_v36 = vadd.f32 %v9248_v19, %v9247_v16  ;;  %v9250_v48 = vpop.f32.mrb[22].mxu1  ;;  %v12551_v63 = vld [vmem:[%s20534_s5 + $0x188] sm:$0xff]   ;;  %v12553_v19 = vld [vmem:[%s20534_s5 + $0x1d0] sm:$0xff]   ;;  %v992_v59 = vpack.c.bf16 %v904_v12, %v901_v21  ;;  %v9141_v20 = vpop.f32.mrb[24].mxu0 }
 0x1a8   : > { %v9251_v42 = vpop.f32.mrb[23].mxu1 }
 0x1a9   : > { %v9252_v2 = vadd.f32 %v9251_v42, %v9250_v48  ;;  %v1213_v16 = vadd.f32 %v9249_v36, %v15755_v29  ;;  %v12554_v36 = vld [vmem:[%s20889_s4 + $0x1d0] sm:$0xff]   ;;  %1321 = vst.msk [vmem:[#allocation2 + $0x28] sm:$0xff] %vm1315_vm0, %v992_v59  ;;  %9764 = vmatpush3.bf16.msra.mxu0 %v12551_v63  ;;  %v12557_v63 = vld [vmem:[%s20534_s5 + $0x1d8] sm:$0xff]  }
 0x1aa   : > { %2498 = vmatmul.mubr.bf16.vlgmr.msra.gmra.mrb[128].mxu1 %v15198_v43  ;;  %9765 = vmatprep.subr.bf16.mxu0 %v12553_v19 }
 0x1ab   : > { %v1216_v18 = vadd.f32 %v9252_v2, %v15755_v29  ;;  %9874 = vmatpush3.bf16.msra.mxu1 %v12548_v11  ;;  %2505 = vmatprep.mubr.bf16.mxu1 %v15221_v53  ;;  %v9142_v11 = vpop.f32.mrb[25].mxu0 }
 0x1ac   : > { %9875 = vmatprep.subr.bf16.mxu1 %v12550_v23  ;;  %v9143_v22 = vadd.f32 %v9142_v11, %v9141_v20  ;;  %v9144_v2 = vpop.f32.mrb[26].mxu0  ;;  %v12556_v23 = vld [vmem:[%s20889_s4 + $0x190] sm:$0xff]   ;;  %2192 = vmatmul.mubr.bf16.gmra.mrb[132].mxu0 %v15226_v57 }
 0x1ad   : > { %v1304_v48 = vpack.c.bf16 %v1216_v18, %v1213_v16  ;;  %v9253_v32 = vpop.f32.mrb[24].mxu1  ;;  %v9145_v53 = vpop.f32.mrb[27].mxu0  ;;  %2199 = vmatprep.mubr.bf16.mxu0 %v15235_v62  ;;  %9766 = vmatpush3.bf16.msra.mxu0 %v12555_v13  ;;  %v12562_v13 = vld [vmem:[%s20889_s4 + $0x1e0] sm:$0xff]  }
 0x1ae   : > { %v9254_v42 = vpop.f32.mrb[25].mxu1  ;;  %v9146_v16 = vadd.f32 %v9145_v53, %v9144_v2  ;;  %v909_v19 = vadd.f32 %v9143_v22, %v15750_v8  ;;  %9767 = vmatprep.subr.bf16.mxu0 %v12557_v63  ;;  %v12560_v22 = vld [vmem:[%s20889_s4 + $0x198] sm:$0xff]  }
 0x1af   : > { %1329 = vst.msk [vmem:[#allocation3 + $0x28] sm:$0xff] %vm1315_vm0, %v1304_v48  ;;  %v9255_v21 = vadd.f32 %v9254_v42, %v9253_v32  ;;  %v9256_v12 = vpop.f32.mrb[26].mxu1  ;;  %9876 = vmatpush3.bf16.msra.mxu1 %v12552_v0  ;;  %v12558_v0 = vld [vmem:[%s20889_s4 + $0x1d8] sm:$0xff]   ;;  %v9147_v11 = vpop.f32.mrb[28].mxu0  ;;  %v12561_v42 = vld [vmem:[%s20534_s5 + $0x1e0] sm:$0xff]  }
 0x1b0   : > { %v9257_v18 = vpop.f32.mrb[27].mxu1  ;;  %9877 = vmatprep.subr.bf16.mxu1 %v12554_v36  ;;  %v912_v53 = vadd.f32 %v9146_v16, %v15750_v8  ;;  %v12559_v48 = vld [vmem:[%s20534_s5 + $0x198] sm:$0xff]  }
 0x1b1   : > { %v9258_v59 = vadd.f32 %v9257_v18, %v9256_v12  ;;  %v1221_v20 = vadd.f32 %v9255_v21, %v15755_v29  ;;  %v9148_v12 = vpop.f32.mrb[29].mxu0  ;;  %9768 = vmatpush3.bf16.msra.mxu0 %v12559_v48  ;;  %v12566_v48 = vld [vmem:[%s20889_s4 + $0x1e8] sm:$0xff]  }
 0x1b2   : > { %2506 = vmatmul.mubr.bf16.gmra.mrb[132].mxu1 %v15233_v61  ;;  %v993_v32 = vpack.c.bf16 %v912_v53, %v909_v19  ;;  %v9149_v16 = vadd.f32 %v9148_v12, %v9147_v11  ;;  %v12563_v53 = vld [vmem:[%s20534_s5 + $0x1a0] sm:$0xff]   ;;  %9769 = vmatprep.subr.bf16.mxu0 %v12561_v42  ;;  %v12567_v12 = vld [vmem:[%s20534_s5 + $0x1a8] sm:$0xff]  }
 0x1b3   : > { %v1224_v36 = vadd.f32 %v9258_v59, %v15755_v29  ;;  %2513 = vmatprep.mubr.bf16.mxu1 %v15239_v1  ;;  %9878 = vmatpush3.bf16.msra.mxu1 %v12556_v23  ;;  %v9150_v23 = vpop.f32.mrb[30].mxu0 }
 0x1b4   : > { %9879 = vmatprep.subr.bf16.mxu1 %v12558_v0  ;;  %1322 = vst.msk [vmem:[#allocation2 + $0x30] sm:$0xff] %vm1315_vm0, %v993_v32  ;;  %v9151_v19 = vpop.f32.mrb[31].mxu0  ;;  %v12565_v32 = vld [vmem:[%s20534_s5 + $0x1e8] sm:$0xff]   ;;  %2200 = vmatmul.mubr.bf16.gmra.mrb[136].mxu0 %v15261_v10 }
 0x1b5   : > { %v1305_v2 = vpack.c.bf16 %v1224_v36, %v1221_v20  ;;  %v9259_v21 = vpop.f32.mrb[28].mxu1  ;;  %v9152_v0 = vadd.f32 %v9151_v19, %v9150_v23  ;;  %v12564_v36 = vld [vmem:[%s20889_s4 + $0x1a0] sm:$0xff]   ;;  %2207 = vmatprep.mubr.bf16.mxu0 %v15268_v15  ;;  %9770 = vmatpush3.bf16.msra.mxu0 %v12563_v53  ;;  %v12569_v23 = vld [vmem:[%s20534_s5 + $0x1f0] sm:$0xff]  }
 0x1b6   : > { %v9260_v18 = vpop.f32.mrb[29].mxu1  ;;  %9771 = vmatprep.subr.bf16.mxu0 %v12565_v32  ;;  %v12570_v53 = vld [vmem:[%s20889_s4 + $0x1f0] sm:$0xff]  }
 0x1b7   : > { %1330 = vst.msk [vmem:[#allocation3 + $0x30] sm:$0xff] %vm1315_vm0, %v1305_v2  ;;  %v9261_v63 = vadd.f32 %v9260_v18, %v9259_v21  ;;  %v9262_v59 = vpop.f32.mrb[30].mxu1  ;;  %9880 = vmatpush3.bf16.msra.mxu1 %v12560_v22  ;;  %v917_v2 = vadd.f32 %v9149_v16, %v15750_v8  ;;  %v920_v22 = vadd.f32 %v9152_v0, %v15750_v8  ;;  %v9153_v18 = vpop.f32.mrb[32].mxu0  ;;  %v12568_v16 = vld [vmem:[%s20889_s4 + $0x1a8] sm:$0xff]  }
 0x1b8   : > { %v9263_v20 = vpop.f32.mrb[31].mxu1  ;;  %9881 = vmatprep.subr.bf16.mxu1 %v12562_v13  ;;  %v9154_v19 = vpop.f32.mrb[33].mxu0 }
 0x1b9   : > { %v9264_v11 = vadd.f32 %v9263_v20, %v9262_v59  ;;  %v1229_v42 = vadd.f32 %v9261_v63, %v15755_v29  ;;  %v994_v13 = vpack.c.bf16 %v920_v22, %v917_v2  ;;  %v9155_v0 = vadd.f32 %v9154_v19, %v9153_v18  ;;  %9772 = vmatpush3.bf16.msra.mxu0 %v12567_v12  ;;  %v12571_v22 = vld [vmem:[%s20534_s5 + $0x1b0] sm:$0xff]   ;;  %v12574_v12 = vld [vmem:[%s20889_s4 + $0x1f8] sm:$0xff]  }
 0x1ba   : > { %2514 = vmatmul.mubr.bf16.gmra.mrb[136].mxu1 %v15266_v14  ;;  %9773 = vmatprep.subr.bf16.mxu0 %v12569_v23  ;;  %v12575_v19 = vld [vmem:[%s20534_s5 + $0x1b8] sm:$0xff]  }
 0x1bb   : > { %v1232_v21 = vadd.f32 %v9264_v11, %v15755_v29  ;;  %2521 = vmatprep.mubr.bf16.mxu1 %v15271_v17  ;;  %9882 = vmatpush3.bf16.msra.mxu1 %v12564_v36  ;;  %1323 = vst.msk [vmem:[#allocation2 + $0x38] sm:$0xff] %vm1315_vm0, %v994_v13  ;;  %v9156_v36 = vpop.f32.mrb[34].mxu0  ;;  %v12573_v13 = vld [vmem:[%s20534_s5 + $0x1f8] sm:$0xff]  }
 0x1bc   : > { %9883 = vmatprep.subr.bf16.mxu1 %v12566_v48  ;;  %v9157_v2 = vpop.f32.mrb[35].mxu0  ;;  %2208 = vmatmul.mubr.bf16.gmra.mrb[140].mxu0 %v15291_v28 }
 0x1bd   : > { %v1306_v63 = vpack.c.bf16 %v1232_v21, %v1229_v42  ;;  %v9265_v59 = vpop.f32.mrb[32].mxu1  ;;  %v9158_v48 = vadd.f32 %v9157_v2, %v9156_v36  ;;  %v12572_v21 = vld [vmem:[%s20889_s4 + $0x1b0] sm:$0xff]   ;;  %2215 = vmatprep.mubr.bf16.mxu0 %v15298_v31  ;;  %9774 = vmatpush3.bf16.msra.mxu0 %v12571_v22 }
 0x1be   : > { %v9266_v20 = vpop.f32.mrb[33].mxu1  ;;  %9775 = vmatprep.subr.bf16.mxu0 %v12573_v13 }
 0x1bf   : > { %1331 = vst.msk [vmem:[#allocation3 + $0x38] sm:$0xff] %vm1315_vm0, %v1306_v63  ;;  %v9267_v32 = vadd.f32 %v9266_v20, %v9265_v59  ;;  %v9268_v11 = vpop.f32.mrb[34].mxu1  ;;  %9884 = vmatpush3.bf16.msra.mxu1 %v12568_v16  ;;  %v925_v63 = vadd.f32 %v9155_v0, %v15750_v8  ;;  %v928_v16 = vadd.f32 %v9158_v48, %v15750_v8  ;;  %v9159_v20 = vpop.f32.mrb[36].mxu0  ;;  %v12576_v0 = vld [vmem:[%s20889_s4 + $0x1b8] sm:$0xff]  }
 0x1c0   : > { %v9269_v42 = vpop.f32.mrb[35].mxu1  ;;  %9885 = vmatprep.subr.bf16.mxu1 %v12570_v53 }
 0x1c1   : > { %v9270_v18 = vadd.f32 %v9269_v42, %v9268_v11  ;;  %v1237_v23 = vadd.f32 %v9267_v32, %v15755_v29  ;;  %v995_v53 = vpack.c.bf16 %v928_v16, %v925_v63  ;;  %v9160_v32 = vpop.f32.mrb[37].mxu0  ;;  %9776 = vmatpush3.bf16.msra.mxu0 %v12575_v19 }
 0x1c2   : > { %2522 = vmatmul.mubr.bf16.gmra.mrb[140].mxu1 %v15296_v30  ;;  %v9161_v2 = vadd.f32 %v9160_v32, %v9159_v20  ;;  %v9162_v48 = vpop.f32.mrb[38].mxu0 }
 0x1c3   : > { %v1240_v59 = vadd.f32 %v9270_v18, %v15755_v29  ;;  %2529 = vmatprep.mubr.bf16.mxu1 %v15303_v33  ;;  %9886 = vmatpush3.bf16.msra.mxu1 %v12572_v21  ;;  %1333 = vst.msk [vmem:[#allocation2 + $0x100] sm:$0xff] %vm1315_vm0, %v995_v53  ;;  %v9163_v63 = vpop.f32.mrb[39].mxu0 }
 0x1c4   : > { %9887 = vmatprep.subr.bf16.mxu1 %v12574_v12  ;;  %v9164_v21 = vadd.f32 %v9163_v63, %v9162_v48  ;;  %2216 = vmatmul.mubr.bf16.gmra.mrb[144].mxu0 %v15320_v47 }
 0x1c5   : > { %v1307_v36 = vpack.c.bf16 %v1240_v59, %v1237_v23  ;;  %v9271_v11 = vpop.f32.mrb[36].mxu1  ;;  %v933_v23 = vadd.f32 %v9161_v2, %v15750_v8  ;;  %2223 = vmatprep.mubr.bf16.mxu0 %v15327_v50 }
 0x1c6   : > { %v9272_v22 = vpop.f32.mrb[37].mxu1  ;;  %v936_v12 = vadd.f32 %v9164_v21, %v15750_v8 }
 0x1c7   : > { %1342 = vst.msk [vmem:[#allocation3 + $0x100] sm:$0xff] %vm1315_vm0, %v1307_v36  ;;  %v9273_v42 = vadd.f32 %v9272_v22, %v9271_v11  ;;  %v9274_v18 = vpop.f32.mrb[38].mxu1  ;;  %9888 = vmatpush3.bf16.msra.mxu1 %v12576_v0  ;;  %v9165_v20 = vpop.f32.mrb[40].mxu0 }
 0x1c8   : > { %v9275_v13 = vpop.f32.mrb[39].mxu1  ;;  %v996_v19 = vpack.c.bf16 %v936_v12, %v933_v23  ;;  %v9166_v11 = vpop.f32.mrb[41].mxu0 }
 0x1c9   : > { %v9276_v16 = vadd.f32 %v9275_v13, %v9274_v18  ;;  %v1245_v59 = vadd.f32 %v9273_v42, %v15755_v29  ;;  %v9167_v32 = vadd.f32 %v9166_v11, %v9165_v20  ;;  %v9168_v22 = vpop.f32.mrb[42].mxu0 }
 0x1ca   : > { %2530 = vmatmul.mubr.bf16.gmra.mrb[144].mxu1 %v15325_v49  ;;  %1334 = vst.msk [vmem:[#allocation2 + $0x108] sm:$0xff] %vm1315_vm0, %v996_v19  ;;  %v9169_v63 = vpop.f32.mrb[43].mxu0 }
 0x1cb   : > { %v1248_v53 = vadd.f32 %v9276_v16, %v15755_v29  ;;  %2537 = vmatprep.mubr.bf16.mxu1 %v15332_v54  ;;  %v9170_v42 = vadd.f32 %v9169_v63, %v9168_v22  ;;  %v941_v16 = vadd.f32 %v9167_v32, %v15750_v8 }
 0x1cc   : > { %2224 = vmatmul.mubr.bf16.gmra.mrb[148].mxu0 %v15349_v4 }
 0x1cd   : > { %v1308_v0 = vpack.c.bf16 %v1248_v53, %v1245_v59  ;;  %v9277_v36 = vpop.f32.mrb[40].mxu1  ;;  %v944_v23 = vadd.f32 %v9170_v42, %v15750_v8  ;;  %2231 = vmatprep.mubr.bf16.mxu0 %v15356_v7 }
 0x1ce   : > { %v9278_v2 = vpop.f32.mrb[41].mxu1 }
 0x1cf   : > { %1343 = vst.msk [vmem:[#allocation3 + $0x108] sm:$0xff] %vm1315_vm0, %v1308_v0  ;;  %v9279_v48 = vadd.f32 %v9278_v2, %v9277_v36  ;;  %v9280_v18 = vpop.f32.mrb[42].mxu1  ;;  %v997_v53 = vpack.c.bf16 %v944_v23, %v941_v16  ;;  %v9171_v19 = vpop.f32.mrb[44].mxu0 }
 0x1d0   : > { %v9281_v21 = vpop.f32.mrb[43].mxu1  ;;  %v9172_v36 = vpop.f32.mrb[45].mxu0 }
 0x1d1   : > { %v9282_v13 = vadd.f32 %v9281_v21, %v9280_v18  ;;  %v1253_v12 = vadd.f32 %v9279_v48, %v15755_v29  ;;  %1335 = vst.msk [vmem:[#allocation2 + $0x110] sm:$0xff] %vm1315_vm0, %v997_v53  ;;  %v9173_v11 = vadd.f32 %v9172_v36, %v9171_v19  ;;  %v9174_v2 = vpop.f32.mrb[46].mxu0 }
 0x1d2   : > { %2538 = vmatmul.mubr.bf16.gmra.mrb[148].mxu1 %v15354_v6  ;;  %v9175_v63 = vpop.f32.mrb[47].mxu0 }
 0x1d3   : > { %v1256_v59 = vadd.f32 %v9282_v13, %v15755_v29  ;;  %2545 = vmatprep.mubr.bf16.mxu1 %v15361_v9  ;;  %v9176_v48 = vadd.f32 %v9175_v63, %v9174_v2  ;;  %v949_v13 = vadd.f32 %v9173_v11, %v15750_v8 }
 0x1d4   : > { %2232 = vmatmul.mubr.bf16.gmra.mrb[152].mxu0 %v15381_v24 }
 0x1d5   : > { %v1309_v20 = vpack.c.bf16 %v1256_v59, %v1253_v12  ;;  %v9283_v0 = vpop.f32.mrb[44].mxu1  ;;  %v952_v16 = vadd.f32 %v9176_v48, %v15750_v8  ;;  %2239 = vmatprep.mubr.bf16.mxu0 %v15385_v26 }
 0x1d6   : > { %v9284_v32 = vpop.f32.mrb[45].mxu1 }
 0x1d7   : > { %1344 = vst.msk [vmem:[#allocation3 + $0x110] sm:$0xff] %vm1315_vm0, %v1309_v20  ;;  %v9285_v22 = vadd.f32 %v9284_v32, %v9283_v0  ;;  %v9286_v18 = vpop.f32.mrb[46].mxu1  ;;  %v998_v59 = vpack.c.bf16 %v952_v16, %v949_v13  ;;  %v9177_v53 = vpop.f32.mrb[48].mxu0 }
 0x1d8   : > { %v9287_v42 = vpop.f32.mrb[47].mxu1  ;;  %v9178_v0 = vpop.f32.mrb[49].mxu0 }
 0x1d9   : > { %v9288_v21 = vadd.f32 %v9287_v42, %v9286_v18  ;;  %v1261_v23 = vadd.f32 %v9285_v22, %v15755_v29  ;;  %1336 = vst.msk [vmem:[#allocation2 + $0x118] sm:$0xff] %vm1315_vm0, %v998_v59  ;;  %v9179_v36 = vadd.f32 %v9178_v0, %v9177_v53  ;;  %v9180_v32 = vpop.f32.mrb[50].mxu0 }
 0x1da   : > { %2546 = vmatmul.mubr.bf16.gmra.mrb[152].mxu1 %v15383_v25  ;;  %v9181_v63 = vpop.f32.mrb[51].mxu0 }
 0x1db   : > { %v1264_v12 = vadd.f32 %v9288_v21, %v15755_v29  ;;  %2553 = vmatprep.mubr.bf16.mxu1 %v15387_v27  ;;  %v9182_v22 = vadd.f32 %v9181_v63, %v9180_v32  ;;  %v957_v21 = vadd.f32 %v9179_v36, %v15750_v8 }
 0x1dc   : > { %2240 = vmatmul.mubr.bf16.gmra.mrb[156].mxu0 %v15413_v51 }
 0x1dd   : > { %v1310_v19 = vpack.c.bf16 %v1264_v12, %v1261_v23  ;;  %v9289_v20 = vpop.f32.mrb[48].mxu1  ;;  %v960_v13 = vadd.f32 %v9182_v22, %v15750_v8  ;;  %2247 = vmatprep.mubr.bf16.mxu0 %v15417_v56 }
 0x1de   : > { %v9290_v11 = vpop.f32.mrb[49].mxu1 }
 0x1df   : > { %1345 = vst.msk [vmem:[#allocation3 + $0x118] sm:$0xff] %vm1315_vm0, %v1310_v19  ;;  %v9291_v2 = vadd.f32 %v9290_v11, %v9289_v20  ;;  %v9292_v18 = vpop.f32.mrb[50].mxu1  ;;  %v999_v12 = vpack.c.bf16 %v960_v13, %v957_v21  ;;  %v9183_v59 = vpop.f32.mrb[52].mxu0 }
 0x1e0   : > { %v9293_v48 = vpop.f32.mrb[51].mxu1  ;;  %v9184_v20 = vpop.f32.mrb[53].mxu0 }
 0x1e1   : > { %v9294_v42 = vadd.f32 %v9293_v48, %v9292_v18  ;;  %v1269_v16 = vadd.f32 %v9291_v2, %v15755_v29  ;;  %1337 = vst.msk [vmem:[#allocation2 + $0x120] sm:$0xff] %vm1315_vm0, %v999_v12  ;;  %v9185_v0 = vadd.f32 %v9184_v20, %v9183_v59  ;;  %v9186_v11 = vpop.f32.mrb[54].mxu0 }
 0x1e2   : > { %2554 = vmatmul.mubr.bf16.gmra.mrb[156].mxu1 %v15415_v55  ;;  %v9187_v63 = vpop.f32.mrb[55].mxu0 }
 0x1e3   : > { %v1272_v23 = vadd.f32 %v9294_v42, %v15755_v29  ;;  %2561 = vmatprep.mubr.bf16.mxu1 %v15419_v58  ;;  %v9188_v2 = vadd.f32 %v9187_v63, %v9186_v11  ;;  %v20927_v42 = vld [vmem:[#allocation22_spill] sm:$0xff]  ;;  %v965_v21 = vadd.f32 %v9185_v0, %v15750_v8 }
 0x1e4   : > { %2248 = vmatmul.mubr.bf16.gmra.mrb[160].mxu0 %v20927_v42  ;;  %v20931_v58 = vld [vmem:[#allocation26_spill] sm:$0xff] }
 0x1e5   : > { %v1311_v53 = vpack.c.bf16 %v1272_v23, %v1269_v16  ;;  %v9295_v19 = vpop.f32.mrb[52].mxu1  ;;  %v968_v13 = vadd.f32 %v9188_v2, %v15750_v8  ;;  %v20928_v16 = vld [vmem:[#allocation23_spill] sm:$0xff]  ;;  %v20929_v23 = vld [vmem:[#allocation24_spill] sm:$0xff] }
 0x1e6   : > { %v9296_v36 = vpop.f32.mrb[53].mxu1  ;;  %2255 = vmatprep.mubr.bf16.mxu0 %v20929_v23 }
 0x1e7   : > { %1346 = vst.msk [vmem:[#allocation3 + $0x120] sm:$0xff] %vm1315_vm0, %v1311_v53  ;;  %v9297_v32 = vadd.f32 %v9296_v36, %v9295_v19  ;;  %v9298_v18 = vpop.f32.mrb[54].mxu1  ;;  %v20930_v53 = vld [vmem:[#allocation25_spill] sm:$0xff]  ;;  %v1000_v19 = vpack.c.bf16 %v968_v13, %v965_v21  ;;  %v9189_v20 = vpop.f32.mrb[56].mxu0 }
 0x1e8   : > { %v9299_v22 = vpop.f32.mrb[55].mxu1 }
 0x1e9   : > { %v9300_v48 = vadd.f32 %v9299_v22, %v9298_v18  ;;  %v1277_v12 = vadd.f32 %v9297_v32, %v15755_v29  ;;  %v9190_v18 = vpop.f32.mrb[57].mxu0  ;;  %1338 = vst.msk [vmem:[#allocation2 + $0x128] sm:$0xff] %vm1315_vm0, %v1000_v19 }
 0x1ea   : > { %2562 = vmatmul.mubr.bf16.gmra.mrb[160].mxu1 %v20928_v16  ;;  %v9191_v0 = vadd.f32 %v9190_v18, %v9189_v20  ;;  %v9192_v2 = vpop.f32.mrb[58].mxu0 }
 0x1eb   : > { %v1280_v59 = vadd.f32 %v9300_v48, %v15755_v29  ;;  %2569 = vmatprep.mubr.bf16.mxu1 %v20930_v53  ;;  %v9193_v16 = vpop.f32.mrb[59].mxu0  ;;  %v20935_v53 = vld [vmem:[#allocation30_spill] sm:$0xff] }
 0x1ec   : > { %v9194_v32 = vadd.f32 %v9193_v16, %v9192_v2  ;;  %2256 = vmatmul.mubr.bf16.gmra.mrb[164].mxu0 %v20931_v58  ;;  %v973_v21 = vadd.f32 %v9191_v0, %v15750_v8 }
 0x1ed   : > { %v1312_v36 = vpack.c.bf16 %v1280_v59, %v1277_v12  ;;  %v9301_v11 = vpop.f32.mrb[56].mxu1  ;;  %v20932_v12 = vld [vmem:[#allocation27_spill] sm:$0xff]  ;;  %v20933_v59 = vld [vmem:[#allocation28_spill] sm:$0xff] }
 0x1ee   : > { %v9302_v63 = vpop.f32.mrb[57].mxu1  ;;  %v976_v13 = vadd.f32 %v9194_v32, %v15750_v8  ;;  %2263 = vmatprep.mubr.bf16.mxu0 %v20933_v59 }
 0x1ef   : > { %1347 = vst.msk [vmem:[#allocation3 + $0x128] sm:$0xff] %vm1315_vm0, %v1312_v36  ;;  %v9303_v22 = vadd.f32 %v9302_v63, %v9301_v11  ;;  %v9304_v23 = vpop.f32.mrb[58].mxu1  ;;  %v20934_v36 = vld [vmem:[#allocation29_spill] sm:$0xff]  ;;  %v9195_v16 = vpop.f32.mrb[60].mxu0 }
 0x1f0   : > { %v9305_v42 = vpop.f32.mrb[59].mxu1  ;;  %v1001_v11 = vpack.c.bf16 %v976_v13, %v973_v21 }
 0x1f1   : > { %v9306_v48 = vadd.f32 %v9305_v42, %v9304_v23  ;;  %v1285_v19 = vadd.f32 %v9303_v22, %v15755_v29  ;;  %v9196_v23 = vpop.f32.mrb[61].mxu0 }
 0x1f2   : > { %2570 = vmatmul.mubr.bf16.gmra.mrb[164].mxu1 %v20932_v12  ;;  %1339 = vst.msk [vmem:[#allocation2 + $0x130] sm:$0xff] %vm1315_vm0, %v1001_v11  ;;  %v9197_v0 = vadd.f32 %v9196_v23, %v9195_v16  ;;  %v9198_v2 = vpop.f32.mrb[62].mxu0 }
 0x1f3   : > { %v1288_v20 = vadd.f32 %v9306_v48, %v15755_v29  ;;  %2577 = vmatprep.mubr.bf16.mxu1 %v20934_v36  ;;  %v9199_v12 = vpop.f32.mrb[63].mxu0  ;;  %v20943_v36 = vld [vmem:[#allocation38_spill] sm:$0xff] }
 0x1f4   : > { %v9200_v22 = vadd.f32 %v9199_v12, %v9198_v2  ;;  %2264 = vmatmul.mubr.bf16.gmra.mrb[168].mxu0 %v20935_v53  ;;  %v981_v21 = vadd.f32 %v9197_v0, %v15750_v8  ;;  %v16010_v2 = vld [vmem:[%s20915_s14 + $0x1] ss:$0 sm:$0xff] }
 0x1f5   : > { %v1313_v18 = vpack.c.bf16 %v1288_v20, %v1285_v19  ;;  %v9307_v42 = vpop.f32.mrb[60].mxu1  ;;  %v20936_v19 = vld [vmem:[#allocation31_spill] sm:$0xff]  ;;  %v20937_v20 = vld [vmem:[#allocation32_spill] sm:$0xff] }
 0x1f6   : > { %v9308_v63 = vpop.f32.mrb[61].mxu1  ;;  %v984_v13 = vadd.f32 %v9200_v22, %v15750_v8  ;;  %2271 = vmatprep.mubr.bf16.mxu0 %v20937_v20 }
 0x1f7   : > { %1348 = vst.msk [vmem:[#allocation3 + $0x130] sm:$0xff] %vm1315_vm0, %v1313_v18  ;;  %v9309_v32 = vadd.f32 %v9308_v63, %v9307_v42  ;;  %v9310_v59 = vpop.f32.mrb[62].mxu1  ;;  %v20938_v18 = vld [vmem:[#allocation33_spill] sm:$0xff]  ;;  %v9329_v12 = vpop.f32.mrb[64].mxu0 }
 0x1f8   : > { %v9311_v58 = vpop.f32.mrb[63].mxu1  ;;  %v1002_v42 = vpack.c.bf16 %v984_v13, %v981_v21 }
 0x1f9   : > { %v9312_v48 = vadd.f32 %v9311_v58, %v9310_v59  ;;  %v1293_v11 = vadd.f32 %v9309_v32, %v15755_v29  ;;  %v9330_v59 = vpop.f32.mrb[65].mxu0 }
 0x1fa   : > { %2578 = vmatmul.mubr.bf16.gmra.mrb[168].mxu1 %v20936_v19  ;;  %1340 = vst.msk [vmem:[#allocation2 + $0x138] sm:$0xff] %vm1315_vm0, %v1002_v42  ;;  %v9331_v0 = vadd.f32 %v9330_v59, %v9329_v12  ;;  %v9332_v8 = vpop.f32.mrb[66].mxu0  ;;  %v20941_v59 = vld [vmem:[#allocation36_spill] sm:$0xff] }
 0x1fb   : > { %v1296_v16 = vadd.f32 %v9312_v48, %v15755_v29  ;;  %2585 = vmatprep.mubr.bf16.mxu1 %v20938_v18  ;;  %v9333_v22 = vpop.f32.mrb[67].mxu0  ;;  %v16015_v48 = vld [vmem:[%s20916_s7 + $0x1] ss:$0 sm:$0xff]  ;;  %v20942_v18 = vld [vmem:[#allocation37_spill] sm:$0xff] }
 0x1fc   : > { %v9334_v21 = vadd.f32 %v9333_v22, %v9332_v8  ;;  %v1522_v42 = vadd.f32 %v9331_v0, %v16010_v2 }
 0x1fd   : > { %v1314_v23 = vpack.c.bf16 %v1296_v16, %v1293_v11  ;;  %v9441_v58 = vpop.f32.mrb[64].mxu1  ;;  %v20939_v16 = vld [vmem:[#allocation34_spill] sm:$0xff] }
 0x1fe   : > { %v9442_v63 = vpop.f32.mrb[65].mxu1  ;;  %2272 = vmatmul.mubr.bf16.gmra.mrb[172].mxu0 %v20939_v16  ;;  %v1525_v12 = vadd.f32 %v9334_v21, %v16010_v2 }
 0x1ff   : > { %1349 = vst.msk [vmem:[#allocation3 + $0x138] sm:$0xff] %vm1315_vm0, %v1314_v23  ;;  %v9443_v29 = vadd.f32 %v9442_v63, %v9441_v58  ;;  %v9444_v32 = vpop.f32.mrb[66].mxu1  ;;  %v20940_v23 = vld [vmem:[#allocation35_spill] sm:$0xff]  ;;  %2279 = vmatprep.mubr.bf16.mxu0 %v20941_v59  ;;  %v9335_v8 = vpop.f32.mrb[68].mxu0 }
 0x200   : > { %v9445_v13 = vpop.f32.mrb[67].mxu1  ;;  %v1648_v20 = vpack.c.bf16 %v1525_v12, %v1522_v42 }
 0x201   : > { %v9446_v11 = vadd.f32 %v9445_v13, %v9444_v32  ;;  %v1836_v58 = vadd.f32 %v9443_v29, %v16015_v48  ;;  %v9336_v13 = vpop.f32.mrb[69].mxu0 }
 0x202   : > { %2586 = vmatmul.mubr.bf16.gmra.mrb[172].mxu1 %v20940_v23  ;;  %1979 = vst.msk [vmem:[#allocation2 + $0x40] sm:$0xff] %vm1315_vm0, %v1648_v20  ;;  %v9337_v0 = vadd.f32 %v9336_v13, %v9335_v8  ;;  %v9338_v21 = vpop.f32.mrb[70].mxu0  ;;  %v20945_v20 = vld [vmem:[#allocation40_spill] sm:$0xff] }
 0x203   : > { %v1839_v63 = vadd.f32 %v9446_v11, %v16015_v48  ;;  %2593 = vmatprep.mubr.bf16.mxu1 %v20942_v18  ;;  %v9339_v19 = vpop.f32.mrb[71].mxu0 }
 0x204   : > { %v9340_v29 = vadd.f32 %v9339_v19, %v9338_v21  ;;  %v1530_v42 = vadd.f32 %v9337_v0, %v16010_v2 }
 0x205   : > { %v1962_v22 = vpack.c.bf16 %v1839_v63, %v1836_v58  ;;  %v9447_v32 = vpop.f32.mrb[68].mxu1  ;;  %v20944_v58 = vld [vmem:[#allocation39_spill] sm:$0xff] }
 0x206   : > { %v9448_v16 = vpop.f32.mrb[69].mxu1  ;;  %2280 = vmatmul.mubr.bf16.gmra.mrb[176].mxu0 %v20943_v36  ;;  %v1533_v12 = vadd.f32 %v9340_v29, %v16010_v2 }
 0x207   : > { %1988 = vst.msk [vmem:[#allocation3 + $0x40] sm:$0xff] %vm1315_vm0, %v1962_v22  ;;  %v9449_v23 = vadd.f32 %v9448_v16, %v9447_v32  ;;  %v9450_v59 = vpop.f32.mrb[70].mxu1  ;;  %2287 = vmatprep.mubr.bf16.mxu0 %v20945_v20  ;;  %v9341_v19 = vpop.f32.mrb[72].mxu0 }
 0x208   : > { %v9451_v53 = vpop.f32.mrb[71].mxu1  ;;  %v1649_v16 = vpack.c.bf16 %v1533_v12, %v1530_v42 }
 0x209   : > { %v9452_v11 = vadd.f32 %v9451_v53, %v9450_v59  ;;  %v1844_v63 = vadd.f32 %v9449_v23, %v16015_v48  ;;  %v9342_v59 = vpop.f32.mrb[73].mxu0 }
 0x20a   : > { %2594 = vmatmul.mubr.bf16.gmra.mrb[176].mxu1 %v20944_v58  ;;  %1980 = vst.msk [vmem:[#allocation2 + $0x48] sm:$0xff] %vm1315_vm0, %v1649_v16  ;;  %v9343_v32 = vadd.f32 %v9342_v59, %v9341_v19  ;;  %v9344_v0 = vpop.f32.mrb[74].mxu0 }
 0x20b   : > { %v1847_v8 = vadd.f32 %v9452_v11, %v16015_v48  ;;  %2601 = vmatprep.mubr.bf16.mxu1 %v20924_v41  ;;  %v9345_v20 = vpop.f32.mrb[75].mxu0 }
 0x20c   : > { %v9346_v23 = vadd.f32 %v9345_v20, %v9344_v0  ;;  %v1538_v42 = vadd.f32 %v9343_v32, %v16010_v2 }
 0x20d   : > { %v1963_v22 = vpack.c.bf16 %v1847_v8, %v1844_v63  ;;  %v9453_v53 = vpop.f32.mrb[72].mxu1  ;;  %v20946_v63 = vld [vmem:[#allocation44_spill] sm:$0xff] }
 0x20e   : > { %v9454_v13 = vpop.f32.mrb[73].mxu1  ;;  %2288 = vmatmul.mubr.bf16.gmra.mrb[180].mxu0 %v20925_v46  ;;  %v1541_v12 = vadd.f32 %v9346_v23, %v16010_v2 }
 0x20f   : > { %1989 = vst.msk [vmem:[#allocation3 + $0x48] sm:$0xff] %vm1315_vm0, %v1963_v22  ;;  %v9455_v21 = vadd.f32 %v9454_v13, %v9453_v53  ;;  %v9456_v29 = vpop.f32.mrb[74].mxu1  ;;  %2295 = vmatprep.mubr.bf16.mxu0 %v20946_v63  ;;  %v9347_v20 = vpop.f32.mrb[76].mxu0 }
 0x210   : > { %v9457_v58 = vpop.f32.mrb[75].mxu1  ;;  %v1650_v19 = vpack.c.bf16 %v1541_v12, %v1538_v42  ;;  %v9348_v53 = vpop.f32.mrb[77].mxu0 }
 0x211   : > { %v9458_v11 = vadd.f32 %v9457_v58, %v9456_v29  ;;  %v1852_v8 = vadd.f32 %v9455_v21, %v16015_v48  ;;  %v9349_v59 = vadd.f32 %v9348_v53, %v9347_v20  ;;  %v9350_v13 = vpop.f32.mrb[78].mxu0 }
 0x212   : > { %2602 = vmatmul.mubr.bf16.gmra.mrb[180].mxu1 %v20926_v60  ;;  %1981 = vst.msk [vmem:[#allocation2 + $0x50] sm:$0xff] %vm1315_vm0, %v1650_v19  ;;  %v9351_v23 = vpop.f32.mrb[79].mxu0 }
 0x213   : > { %v1855_v16 = vadd.f32 %v9458_v11, %v16015_v48  ;;  %2609 = vmatprep.mubr.bf16.mxu1 %v15569_v34  ;;  %v9352_v21 = vadd.f32 %v9351_v23, %v9350_v13  ;;  %v1546_v42 = vadd.f32 %v9349_v59, %v16010_v2 }
 0x215   : > { %v1964_v22 = vpack.c.bf16 %v1855_v16, %v1852_v8  ;;  %v9459_v58 = vpop.f32.mrb[76].mxu1  ;;  %v1549_v12 = vadd.f32 %v9352_v21, %v16010_v2 }
 0x216   : > { %v9460_v32 = vpop.f32.mrb[77].mxu1  ;;  %2296 = vmatmul.mubr.bf16.gmra.mrb[184].mxu0 %v15583_v3 }
 0x217   : > { %1990 = vst.msk [vmem:[#allocation3 + $0x50] sm:$0xff] %vm1315_vm0, %v1964_v22  ;;  %v9461_v0 = vadd.f32 %v9460_v32, %v9459_v58  ;;  %v9462_v29 = vpop.f32.mrb[78].mxu1  ;;  %2303 = vmatprep.mubr.bf16.mxu0 %v15587_v45  ;;  %v1651_v19 = vpack.c.bf16 %v1549_v12, %v1546_v42  ;;  %v9353_v20 = vpop.f32.mrb[80].mxu0 }
 0x218   : > { %v9463_v63 = vpop.f32.mrb[79].mxu1  ;;  %v9354_v58 = vpop.f32.mrb[81].mxu0 }
 0x219   : > { %v9464_v11 = vadd.f32 %v9463_v63, %v9462_v29  ;;  %v1860_v8 = vadd.f32 %v9461_v0, %v16015_v48  ;;  %1982 = vst.msk [vmem:[#allocation2 + $0x58] sm:$0xff] %vm1315_vm0, %v1651_v19  ;;  %v9355_v53 = vadd.f32 %v9354_v58, %v9353_v20  ;;  %v9356_v32 = vpop.f32.mrb[82].mxu0 }
 0x21a   : > { %2610 = vmatmul.mubr.bf16.gmra.mrb[184].mxu1 %v15585_v44  ;;  %v9357_v23 = vpop.f32.mrb[83].mxu0 }
 0x21b   : > { %v1863_v16 = vadd.f32 %v9464_v11, %v16015_v48  ;;  %2617 = vmatprep.mubr.bf16.mxu1 %v15589_v5  ;;  %v9358_v0 = vadd.f32 %v9357_v23, %v9356_v32  ;;  %v1554_v42 = vadd.f32 %v9355_v53, %v16010_v2 }
 0x21d   : > { %v1965_v22 = vpack.c.bf16 %v1863_v16, %v1860_v8  ;;  %v9465_v63 = vpop.f32.mrb[80].mxu1  ;;  %v1557_v12 = vadd.f32 %v9358_v0, %v16010_v2 }
 0x21e   : > { %v9466_v59 = vpop.f32.mrb[81].mxu1  ;;  %2304 = vmatmul.mubr.bf16.gmra.mrb[188].mxu0 %v15599_v37 }
 0x21f   : > { %1991 = vst.msk [vmem:[#allocation3 + $0x58] sm:$0xff] %vm1315_vm0, %v1965_v22  ;;  %v9467_v13 = vadd.f32 %v9466_v59, %v9465_v63  ;;  %v9468_v29 = vpop.f32.mrb[82].mxu1  ;;  %2847 = vmatprep.mubr.bf16.mxu0 %v15186_v35  ;;  %v1652_v19 = vpack.c.bf16 %v1557_v12, %v1554_v42  ;;  %v9359_v20 = vpop.f32.mrb[84].mxu0 }
 0x220   : > { %v9469_v21 = vpop.f32.mrb[83].mxu1  ;;  %v9360_v58 = vpop.f32.mrb[85].mxu0 }
 0x221   : > { %v9470_v11 = vadd.f32 %v9469_v21, %v9468_v29  ;;  %v1868_v8 = vadd.f32 %v9467_v13, %v16015_v48  ;;  %1983 = vst.msk [vmem:[#allocation2 + $0x60] sm:$0xff] %vm1315_vm0, %v1652_v19  ;;  %v9361_v53 = vadd.f32 %v9360_v58, %v9359_v20  ;;  %v9362_v32 = vpop.f32.mrb[86].mxu0 }
 0x222   : > { %2618 = vmatmul.mubr.bf16.gmra.mrb[188].mxu1 %v15601_v38  ;;  %v9363_v23 = vpop.f32.mrb[87].mxu0 }
 0x223   : > { %v1871_v16 = vadd.f32 %v9470_v11, %v16015_v48  ;;  %3161 = vmatprep.mubr.bf16.mxu1 %v15191_v39  ;;  %v9364_v13 = vadd.f32 %v9363_v23, %v9362_v32  ;;  %v1562_v39 = vadd.f32 %v9361_v53, %v16010_v2 }
 0x225   : > { %v1966_v22 = vpack.c.bf16 %v1871_v16, %v1868_v8  ;;  %v9471_v63 = vpop.f32.mrb[84].mxu1  ;;  %v1565_v11 = vadd.f32 %v9364_v13, %v16010_v2  ;;  %v20947_v8 = vld [vmem:[#allocation20_spill] sm:$0xff] }
 0x226   : > { %v9472_v59 = vpop.f32.mrb[85].mxu1  ;;  %2848 = vmatmul.mubr.bf16.vlgmr.msra.gmra.mrb[192].mxu0 %v15193_v40 }
 0x227   : > { %1992 = vst.msk [vmem:[#allocation3 + $0x60] sm:$0xff] %vm1315_vm0, %v1966_v22  ;;  %v9473_v29 = vadd.f32 %v9472_v59, %v9471_v63  ;;  %v9474_v35 = vpop.f32.mrb[86].mxu1  ;;  %2855 = vmatprep.mubr.bf16.mxu0 %v15219_v52  ;;  %v1653_v16 = vpack.c.bf16 %v1565_v11, %v1562_v39  ;;  %v9365_v19 = vpop.f32.mrb[88].mxu0 }
 0x228   : > { %v9475_v0 = vpop.f32.mrb[87].mxu1  ;;  %v9366_v63 = vpop.f32.mrb[89].mxu0 }
 0x229   : > { %v9476_v21 = vadd.f32 %v9475_v0, %v9474_v35  ;;  %v1876_v42 = vadd.f32 %v9473_v29, %v16015_v48  ;;  %1984 = vst.msk [vmem:[#allocation2 + $0x68] sm:$0xff] %vm1315_vm0, %v1653_v16  ;;  %v9367_v40 = vadd.f32 %v9366_v63, %v9365_v19  ;;  %v9368_v53 = vpop.f32.mrb[90].mxu0 }
 0x22a   : > { %3162 = vmatmul.mubr.bf16.vlgmr.msra.gmra.mrb[192].mxu1 %v15198_v43  ;;  %v9369_v59 = vpop.f32.mrb[91].mxu0 }
 0x22b   : > { %v1879_v12 = vadd.f32 %v9476_v21, %v16015_v48  ;;  %3169 = vmatprep.mubr.bf16.mxu1 %v20947_v8  ;;  %v9370_v32 = vadd.f32 %v9369_v59, %v9368_v53  ;;  %v1570_v23 = vadd.f32 %v9367_v40, %v16010_v2 }
 0x22d   : > { %v1967_v20 = vpack.c.bf16 %v1879_v12, %v1876_v42  ;;  %v9477_v22 = vpop.f32.mrb[88].mxu1  ;;  %v1573_v13 = vadd.f32 %v9370_v32, %v16010_v2 }
 0x22e   : > { %v9478_v58 = vpop.f32.mrb[89].mxu1  ;;  %2856 = vmatmul.mubr.bf16.gmra.mrb[196].mxu0 %v15226_v57 }
 0x22f   : > { %1993 = vst.msk [vmem:[#allocation3 + $0x68] sm:$0xff] %vm1315_vm0, %v1967_v20  ;;  %v9479_v43 = vadd.f32 %v9478_v58, %v9477_v22  ;;  %v9480_v52 = vpop.f32.mrb[90].mxu1  ;;  %2863 = vmatprep.mubr.bf16.mxu0 %v15235_v62  ;;  %v1654_v39 = vpack.c.bf16 %v1573_v13, %v1570_v23  ;;  %v9371_v11 = vpop.f32.mrb[92].mxu0 }
 0x230   : > { %v9481_v29 = vpop.f32.mrb[91].mxu1  ;;  %v9372_v8 = vpop.f32.mrb[93].mxu0 }
 0x231   : > { %v9482_v35 = vadd.f32 %v9481_v29, %v9480_v52  ;;  %v1884_v0 = vadd.f32 %v9479_v43, %v16015_v48  ;;  %1985 = vst.msk [vmem:[#allocation2 + $0x70] sm:$0xff] %vm1315_vm0, %v1654_v39  ;;  %v9373_v57 = vadd.f32 %v9372_v8, %v9371_v11  ;;  %v9374_v19 = vpop.f32.mrb[94].mxu0 }
 0x232   : > { %3170 = vmatmul.mubr.bf16.gmra.mrb[196].mxu1 %v15233_v61  ;;  %v9375_v20 = vpop.f32.mrb[95].mxu0 }
 0x233   : > { %v1887_v21 = vadd.f32 %v9482_v35, %v16015_v48  ;;  %3177 = vmatprep.mubr.bf16.mxu1 %v15239_v1  ;;  %v9376_v22 = vadd.f32 %v9375_v20, %v9374_v19  ;;  %v1578_v1 = vadd.f32 %v9373_v57, %v16010_v2 }
 0x235   : > { %v1968_v42 = vpack.c.bf16 %v1887_v21, %v1884_v0  ;;  %v9483_v12 = vpop.f32.mrb[92].mxu1  ;;  %v1581_v58 = vadd.f32 %v9376_v22, %v16010_v2 }
 0x236   : > { %v9484_v16 = vpop.f32.mrb[93].mxu1  ;;  %2864 = vmatmul.mubr.bf16.gmra.mrb[200].mxu0 %v15261_v10 }
 0x237   : > { %1994 = vst.msk [vmem:[#allocation3 + $0x70] sm:$0xff] %vm1315_vm0, %v1968_v42  ;;  %v9485_v61 = vadd.f32 %v9484_v16, %v9483_v12  ;;  %v9486_v62 = vpop.f32.mrb[94].mxu1  ;;  %2871 = vmatprep.mubr.bf16.mxu0 %v15268_v15  ;;  %v1655_v52 = vpack.c.bf16 %v1581_v58, %v1578_v1  ;;  %v9377_v59 = vpop.f32.mrb[96].mxu0 }
 0x238   : > { %v9487_v63 = vpop.f32.mrb[95].mxu1  ;;  %v9378_v35 = vpop.f32.mrb[97].mxu0 }
 0x239   : > { %v9488_v40 = vadd.f32 %v9487_v63, %v9486_v62  ;;  %v1892_v53 = vadd.f32 %v9485_v61, %v16015_v48  ;;  %1986 = vst.msk [vmem:[#allocation2 + $0x78] sm:$0xff] %vm1315_vm0, %v1655_v52  ;;  %v9379_v10 = vadd.f32 %v9378_v35, %v9377_v59  ;;  %v9380_v13 = vpop.f32.mrb[98].mxu0 }
 0x23a   : > { %3178 = vmatmul.mubr.bf16.gmra.mrb[200].mxu1 %v15266_v14  ;;  %v9381_v0 = vpop.f32.mrb[99].mxu0 }
 0x23b   : > { %v1895_v43 = vadd.f32 %v9488_v40, %v16015_v48  ;;  %3185 = vmatprep.mubr.bf16.mxu1 %v15271_v17  ;;  %v9382_v21 = vadd.f32 %v9381_v0, %v9380_v13  ;;  %v1586_v17 = vadd.f32 %v9379_v10, %v16010_v2 }
 0x23d   : > { %v1969_v32 = vpack.c.bf16 %v1895_v43, %v1892_v53  ;;  %v9489_v29 = vpop.f32.mrb[96].mxu1  ;;  %v1589_v42 = vadd.f32 %v9382_v21, %v16010_v2 }
 0x23e   : > { %v9490_v23 = vpop.f32.mrb[97].mxu1  ;;  %2872 = vmatmul.mubr.bf16.gmra.mrb[204].mxu0 %v15291_v28 }
 0x23f   : > { %1995 = vst.msk [vmem:[#allocation3 + $0x78] sm:$0xff] %vm1315_vm0, %v1969_v32  ;;  %v9491_v14 = vadd.f32 %v9490_v23, %v9489_v29  ;;  %v9492_v15 = vpop.f32.mrb[98].mxu1  ;;  %2879 = vmatprep.mubr.bf16.mxu0 %v15298_v31  ;;  %v1656_v57 = vpack.c.bf16 %v1589_v42, %v1586_v17  ;;  %v9383_v16 = vpop.f32.mrb[100].mxu0 }
 0x240   : > { %v9493_v39 = vpop.f32.mrb[99].mxu1  ;;  %v9384_v62 = vpop.f32.mrb[101].mxu0 }
 0x241   : > { %v9494_v11 = vadd.f32 %v9493_v39, %v9492_v15  ;;  %v1900_v12 = vadd.f32 %v9491_v14, %v16015_v48  ;;  %1997 = vst.msk [vmem:[#allocation2 + $0x140] sm:$0xff] %vm1315_vm0, %v1656_v57  ;;  %v9385_v28 = vadd.f32 %v9384_v62, %v9383_v16  ;;  %v9386_v22 = vpop.f32.mrb[102].mxu0 }
 0x242   : > { %3186 = vmatmul.mubr.bf16.gmra.mrb[204].mxu1 %v15296_v30  ;;  %v9387_v63 = vpop.f32.mrb[103].mxu0 }
 0x243   : > { %v1903_v8 = vadd.f32 %v9494_v11, %v16015_v48  ;;  %3193 = vmatprep.mubr.bf16.mxu1 %v15303_v33  ;;  %v9388_v40 = vadd.f32 %v9387_v63, %v9386_v22  ;;  %v1594_v33 = vadd.f32 %v9385_v28, %v16010_v2 }
 0x245   : > { %v1970_v19 = vpack.c.bf16 %v1903_v8, %v1900_v12  ;;  %v9495_v61 = vpop.f32.mrb[100].mxu1  ;;  %v1597_v53 = vadd.f32 %v9388_v40, %v16010_v2 }
 0x246   : > { %v9496_v20 = vpop.f32.mrb[101].mxu1  ;;  %2880 = vmatmul.mubr.bf16.gmra.mrb[208].mxu0 %v15320_v47 }
 0x247   : > { %2006 = vst.msk [vmem:[#allocation3 + $0x140] sm:$0xff] %vm1315_vm0, %v1970_v19  ;;  %v9497_v30 = vadd.f32 %v9496_v20, %v9495_v61  ;;  %v9498_v31 = vpop.f32.mrb[102].mxu1  ;;  %2887 = vmatprep.mubr.bf16.mxu0 %v15327_v50  ;;  %v1657_v59 = vpack.c.bf16 %v1597_v53, %v1594_v33  ;;  %v9389_v32 = vpop.f32.mrb[104].mxu0 }
 0x248   : > { %v9499_v1 = vpop.f32.mrb[103].mxu1  ;;  %v9390_v10 = vpop.f32.mrb[105].mxu0 }
 0x249   : > { %v9500_v58 = vadd.f32 %v9499_v1, %v9498_v31  ;;  %v1908_v43 = vadd.f32 %v9497_v30, %v16015_v48  ;;  %1998 = vst.msk [vmem:[#allocation2 + $0x148] sm:$0xff] %vm1315_vm0, %v1657_v59  ;;  %v9391_v47 = vadd.f32 %v9390_v10, %v9389_v32  ;;  %v9392_v13 = vpop.f32.mrb[106].mxu0 }
 0x24a   : > { %3194 = vmatmul.mubr.bf16.gmra.mrb[208].mxu1 %v15325_v49  ;;  %v9393_v14 = vpop.f32.mrb[107].mxu0 }
 0x24b   : > { %v1911_v52 = vadd.f32 %v9500_v58, %v16015_v48  ;;  %3201 = vmatprep.mubr.bf16.mxu1 %v15332_v54  ;;  %v9394_v15 = vadd.f32 %v9393_v14, %v9392_v13  ;;  %v1602_v54 = vadd.f32 %v9391_v47, %v16010_v2  ;;  %v20948_v13 = vld [vmem:[#allocation21_spill] sm:$0xff] }
 0x24d   : > { %v1971_v29 = vpack.c.bf16 %v1911_v52, %v1908_v43  ;;  %v9501_v35 = vpop.f32.mrb[104].mxu1  ;;  %v1605_v39 = vadd.f32 %v9394_v15, %v16010_v2 }
 0x24e   : > { %v9502_v23 = vpop.f32.mrb[105].mxu1  ;;  %2888 = vmatmul.mubr.bf16.gmra.mrb[212].mxu0 %v15349_v4 }
 0x24f   : > { %2007 = vst.msk [vmem:[#allocation3 + $0x148] sm:$0xff] %vm1315_vm0, %v1971_v29  ;;  %v9503_v49 = vadd.f32 %v9502_v23, %v9501_v35  ;;  %v9504_v50 = vpop.f32.mrb[106].mxu1  ;;  %2895 = vmatprep.mubr.bf16.mxu0 %v15356_v7  ;;  %v1658_v42 = vpack.c.bf16 %v1605_v39, %v1602_v54  ;;  %v9395_v12 = vpop.f32.mrb[108].mxu0 }
 0x250   : > { %v9505_v0 = vpop.f32.mrb[107].mxu1  ;;  %v9396_v16 = vpop.f32.mrb[109].mxu0 }
 0x251   : > { %v9506_v21 = vadd.f32 %v9505_v0, %v9504_v50  ;;  %v1916_v11 = vadd.f32 %v9503_v49, %v16015_v48  ;;  %1999 = vst.msk [vmem:[#allocation2 + $0x150] sm:$0xff] %vm1315_vm0, %v1658_v42  ;;  %v9397_v4 = vadd.f32 %v9396_v16, %v9395_v12  ;;  %v9398_v61 = vpop.f32.mrb[110].mxu0  ;;  %v20949_v12 = vld [vmem:[#allocation22_spill] sm:$0xff]  ;;  %v20950_v16 = vld [vmem:[#allocation23_spill] sm:$0xff] }
 0x252   : > { %3202 = vmatmul.mubr.bf16.gmra.mrb[212].mxu1 %v15354_v6  ;;  %v9399_v62 = vpop.f32.mrb[111].mxu0 }
 0x253   : > { %v1919_v17 = vadd.f32 %v9506_v21, %v16015_v48  ;;  %3209 = vmatprep.mubr.bf16.mxu1 %v15361_v9  ;;  %v9400_v28 = vadd.f32 %v9399_v62, %v9398_v61  ;;  %v1610_v9 = vadd.f32 %v9397_v4, %v16010_v2  ;;  %v20951_v4 = vld [vmem:[#allocation24_spill] sm:$0xff] }
 0x255   : > { %v1972_v8 = vpack.c.bf16 %v1919_v17, %v1916_v11  ;;  %v9507_v57 = vpop.f32.mrb[108].mxu1  ;;  %v1613_v30 = vadd.f32 %v9400_v28, %v16010_v2 }
 0x256   : > { %v9508_v19 = vpop.f32.mrb[109].mxu1  ;;  %2896 = vmatmul.mubr.bf16.gmra.mrb[216].mxu0 %v15381_v24 }
 0x257   : > { %2008 = vst.msk [vmem:[#allocation3 + $0x150] sm:$0xff] %vm1315_vm0, %v1972_v8  ;;  %v9509_v6 = vadd.f32 %v9508_v19, %v9507_v57  ;;  %v9510_v7 = vpop.f32.mrb[110].mxu1  ;;  %2903 = vmatprep.mubr.bf16.mxu0 %v15385_v26  ;;  %v1659_v40 = vpack.c.bf16 %v1613_v30, %v1610_v9  ;;  %v9401_v1 = vpop.f32.mrb[112].mxu0 }
 0x258   : > { %v9511_v20 = vpop.f32.mrb[111].mxu1  ;;  %v9402_v53 = vpop.f32.mrb[113].mxu0 }
 0x259   : > { %v9512_v22 = vadd.f32 %v9511_v20, %v9510_v7  ;;  %v1924_v31 = vadd.f32 %v9509_v6, %v16015_v48  ;;  %2000 = vst.msk [vmem:[#allocation2 + $0x158] sm:$0xff] %vm1315_vm0, %v1659_v40  ;;  %v9403_v24 = vadd.f32 %v9402_v53, %v9401_v1  ;;  %v9404_v52 = vpop.f32.mrb[114].mxu0  ;;  %v20952_v6 = vld [vmem:[#allocation25_spill] sm:$0xff] }
 0x25a   : > { %3210 = vmatmul.mubr.bf16.gmra.mrb[216].mxu1 %v15383_v25  ;;  %v9405_v59 = vpop.f32.mrb[115].mxu0 }
 0x25b   : > { %v1927_v63 = vadd.f32 %v9512_v22, %v16015_v48  ;;  %3217 = vmatprep.mubr.bf16.mxu1 %v15387_v27  ;;  %v9406_v32 = vadd.f32 %v9405_v59, %v9404_v52  ;;  %v1618_v27 = vadd.f32 %v9403_v24, %v16010_v2  ;;  %v20953_v24 = vld [vmem:[#allocation26_spill] sm:$0xff] }
 0x25d   : > { %v1973_v58 = vpack.c.bf16 %v1927_v63, %v1924_v31  ;;  %v9513_v33 = vpop.f32.mrb[112].mxu1  ;;  %v1621_v10 = vadd.f32 %v9406_v32, %v16010_v2 }
 0x25e   : > { %v9514_v43 = vpop.f32.mrb[113].mxu1  ;;  %2904 = vmatmul.mubr.bf16.gmra.mrb[220].mxu0 %v15413_v51 }
 0x25f   : > { %2009 = vst.msk [vmem:[#allocation3 + $0x158] sm:$0xff] %vm1315_vm0, %v1973_v58  ;;  %v9515_v25 = vadd.f32 %v9514_v43, %v9513_v33  ;;  %v9516_v26 = vpop.f32.mrb[114].mxu1  ;;  %2911 = vmatprep.mubr.bf16.mxu0 %v15417_v56  ;;  %v1660_v49 = vpack.c.bf16 %v1621_v10, %v1618_v27  ;;  %v9407_v50 = vpop.f32.mrb[116].mxu0 }
 0x260   : > { %v9517_v29 = vpop.f32.mrb[115].mxu1  ;;  %v9408_v0 = vpop.f32.mrb[117].mxu0 }
 0x261   : > { %v9518_v35 = vadd.f32 %v9517_v29, %v9516_v26  ;;  %v1932_v47 = vadd.f32 %v9515_v25, %v16015_v48  ;;  %2001 = vst.msk [vmem:[#allocation2 + $0x160] sm:$0xff] %vm1315_vm0, %v1660_v49  ;;  %v9409_v51 = vadd.f32 %v9408_v0, %v9407_v50  ;;  %v9410_v54 = vpop.f32.mrb[118].mxu0  ;;  %v20954_v25 = vld [vmem:[#allocation27_spill] sm:$0xff]  ;;  %v20955_v26 = vld [vmem:[#allocation28_spill] sm:$0xff]  ;;  %v20956_v29 = vld [vmem:[#allocation29_spill] sm:$0xff] }
 0x262   : > { %3218 = vmatmul.mubr.bf16.gmra.mrb[220].mxu1 %v15415_v55  ;;  %v9411_v39 = vpop.f32.mrb[119].mxu0 }
 0x263   : > { %v1935_v23 = vadd.f32 %v9518_v35, %v16015_v48  ;;  %3225 = vmatprep.mubr.bf16.mxu1 %v20948_v13  ;;  %v9412_v11 = vadd.f32 %v9411_v39, %v9410_v54  ;;  %v1626_v8 = vadd.f32 %v9409_v51, %v16010_v2 }
 0x265   : > { %v1974_v14 = vpack.c.bf16 %v1935_v23, %v1932_v47  ;;  %v9519_v15 = vpop.f32.mrb[116].mxu1  ;;  %v1629_v57 = vadd.f32 %v9412_v11, %v16010_v2  ;;  %v20958_v11 = vld [vmem:[#allocation31_spill] sm:$0xff] }
 0x266   : > { %v9520_v21 = vpop.f32.mrb[117].mxu1  ;;  %2912 = vmatmul.mubr.bf16.gmra.mrb[224].mxu0 %v20949_v12 }
 0x267   : > { %2010 = vst.msk [vmem:[#allocation3 + $0x160] sm:$0xff] %vm1315_vm0, %v1974_v14  ;;  %v9521_v55 = vadd.f32 %v9520_v21, %v9519_v15  ;;  %v9522_v56 = vpop.f32.mrb[118].mxu1  ;;  %2919 = vmatprep.mubr.bf16.mxu0 %v20951_v4  ;;  %v1661_v7 = vpack.c.bf16 %v1629_v57, %v1626_v8  ;;  %v9413_v62 = vpop.f32.mrb[120].mxu0  ;;  %v20960_v8 = vld [vmem:[#allocation33_spill] sm:$0xff] }
 0x268   : > { %v9523_v17 = vpop.f32.mrb[119].mxu1  ;;  %v9414_v22 = vpop.f32.mrb[121].mxu0 }
 0x269   : > { %v9524_v42 = vadd.f32 %v9523_v17, %v9522_v56  ;;  %v1940_v19 = vadd.f32 %v9521_v55, %v16015_v48  ;;  %2002 = vst.msk [vmem:[#allocation2 + $0x168] sm:$0xff] %vm1315_vm0, %v1661_v7  ;;  %v9415_v9 = vadd.f32 %v9414_v22, %v9413_v62  ;;  %v9416_v31 = vpop.f32.mrb[122].mxu0  ;;  %v20957_v55 = vld [vmem:[#allocation30_spill] sm:$0xff]  ;;  %v20959_v17 = vld [vmem:[#allocation32_spill] sm:$0xff]  ;;  %v16180_v62 = vld [vmem:[%s20915_s14 + $0x2] ss:$0 sm:$0xff] }
 0x26a   : > { %3226 = vmatmul.mubr.bf16.gmra.mrb[224].mxu1 %v20950_v16  ;;  %v9417_v1 = vpop.f32.mrb[123].mxu0  ;;  %v16185_v22 = vld [vmem:[%s20916_s7 + $0x2] ss:$0 sm:$0xff] }
 0x26b   : > { %v1943_v61 = vadd.f32 %v9524_v42, %v16015_v48  ;;  %3233 = vmatprep.mubr.bf16.mxu1 %v20952_v6  ;;  %v9418_v58 = vadd.f32 %v9417_v1, %v9416_v31  ;;  %v1634_v43 = vadd.f32 %v9415_v9, %v16010_v2 }
 0x26d   : > { %v1975_v28 = vpack.c.bf16 %v1943_v61, %v1940_v19  ;;  %v9525_v20 = vpop.f32.mrb[120].mxu1  ;;  %v1637_v52 = vadd.f32 %v9418_v58, %v16010_v2  ;;  %v20962_v58 = vld [vmem:[#allocation35_spill] sm:$0xff] }
 0x26e   : > { %v9526_v30 = vpop.f32.mrb[121].mxu1  ;;  %2920 = vmatmul.mubr.bf16.gmra.mrb[228].mxu0 %v20953_v24 }
 0x26f   : > { %2011 = vst.msk [vmem:[#allocation3 + $0x168] sm:$0xff] %vm1315_vm0, %v1975_v28  ;;  %v9527_v63 = vadd.f32 %v9526_v30, %v9525_v20  ;;  %v9528_v40 = vpop.f32.mrb[122].mxu1  ;;  %2927 = vmatprep.mubr.bf16.mxu0 %v20955_v26  ;;  %v1662_v35 = vpack.c.bf16 %v1637_v52, %v1634_v43  ;;  %v9419_v27 = vpop.f32.mrb[124].mxu0 }
 0x270   : > { %v9529_v33 = vpop.f32.mrb[123].mxu1  ;;  %v9420_v23 = vpop.f32.mrb[125].mxu0 }
 0x271   : > { %v9530_v53 = vadd.f32 %v9529_v33, %v9528_v40  ;;  %v1948_v59 = vadd.f32 %v9527_v63, %v16015_v48  ;;  %2003 = vst.msk [vmem:[#allocation2 + $0x170] sm:$0xff] %vm1315_vm0, %v1662_v35  ;;  %v9421_v13 = vadd.f32 %v9420_v23, %v9419_v27  ;;  %v9422_v50 = vpop.f32.mrb[126].mxu0  ;;  %v20961_v63 = vld [vmem:[#allocation34_spill] sm:$0xff]  ;;  %v20963_v33 = vld [vmem:[#allocation36_spill] sm:$0xff] }
 0x272   : > { %3234 = vmatmul.mubr.bf16.gmra.mrb[228].mxu1 %v20954_v25  ;;  %v9423_v0 = vpop.f32.mrb[127].mxu0 }
 0x273   : > { %v1951_v32 = vadd.f32 %v9530_v53, %v16015_v48  ;;  %3241 = vmatprep.mubr.bf16.mxu1 %v20956_v29  ;;  %v9424_v51 = vadd.f32 %v9423_v0, %v9422_v50  ;;  %v1642_v56 = vadd.f32 %v9421_v13, %v16010_v2 }
 0x275   : > { %v1976_v10 = vpack.c.bf16 %v1951_v32, %v1948_v59  ;;  %v9531_v47 = vpop.f32.mrb[124].mxu1  ;;  %v1645_v39 = vadd.f32 %v9424_v51, %v16010_v2 }
 0x276   : > { %v9532_v49 = vpop.f32.mrb[125].mxu1  ;;  %2928 = vmatmul.mubr.bf16.gmra.mrb[232].mxu0 %v20957_v55 }
 0x277   : > { %2012 = vst.msk [vmem:[#allocation3 + $0x170] sm:$0xff] %vm1315_vm0, %v1976_v10  ;;  %v9533_v14 = vadd.f32 %v9532_v49, %v9531_v47  ;;  %v9534_v15 = vpop.f32.mrb[126].mxu1  ;;  %2935 = vmatprep.mubr.bf16.mxu0 %v20959_v17  ;;  %v1663_v57 = vpack.c.bf16 %v1645_v39, %v1642_v56  ;;  %v9553_v16 = vpop.f32.mrb[128].mxu0 }
 0x278   : > { %v9535_v21 = vpop.f32.mrb[127].mxu1  ;;  %v9554_v61 = vpop.f32.mrb[129].mxu0 }
 0x279   : > { %v9536_v54 = vadd.f32 %v9535_v21, %v9534_v15  ;;  %v1956_v42 = vadd.f32 %v9533_v14, %v16015_v48  ;;  %2004 = vst.msk [vmem:[#allocation2 + $0x178] sm:$0xff] %vm1315_vm0, %v1663_v57  ;;  %v9555_v6 = vadd.f32 %v9554_v61, %v9553_v16  ;;  %v9556_v2 = vpop.f32.mrb[130].mxu0  ;;  %v20964_v14 = vld [vmem:[#allocation39_spill] sm:$0xff]  ;;  %v20965_v15 = vld [vmem:[#allocation40_spill] sm:$0xff] }
 0x27a   : > { %3242 = vmatmul.mubr.bf16.gmra.mrb[232].mxu1 %v20958_v11  ;;  %v9557_v20 = vpop.f32.mrb[131].mxu0  ;;  %v20966_v61 = vld [vmem:[#allocation44_spill] sm:$0xff] }
 0x27b   : > { %v1959_v12 = vadd.f32 %v9536_v54, %v16015_v48  ;;  %3249 = vmatprep.mubr.bf16.mxu1 %v20960_v8  ;;  %v9558_v9 = vadd.f32 %v9557_v20, %v9556_v2  ;;  %v2186_v40 = vadd.f32 %v9555_v6, %v16180_v62 }
 0x27d   : > { %v1977_v4 = vpack.c.bf16 %v1959_v12, %v1956_v42  ;;  %v9665_v19 = vpop.f32.mrb[128].mxu1  ;;  %v2189_v1 = vadd.f32 %v9558_v9, %v16180_v62 }
 0x27e   : > { %v9666_v7 = vpop.f32.mrb[129].mxu1  ;;  %2936 = vmatmul.mubr.bf16.gmra.mrb[236].mxu0 %v20961_v63 }
 0x27f   : > { %2013 = vst.msk [vmem:[#allocation3 + $0x178] sm:$0xff] %vm1315_vm0, %v1977_v4  ;;  %v9667_v48 = vadd.f32 %v9666_v7, %v9665_v19  ;;  %v9668_v28 = vpop.f32.mrb[130].mxu1  ;;  %2943 = vmatprep.mubr.bf16.mxu0 %v20963_v33  ;;  %v2312_v43 = vpack.c.bf16 %v2189_v1, %v2186_v40  ;;  %v9559_v52 = vpop.f32.mrb[132].mxu0 }
 0x280   : > { %v9669_v30 = vpop.f32.mrb[131].mxu1  ;;  %v9560_v59 = vpop.f32.mrb[133].mxu0 }
 0x281   : > { %v9670_v31 = vadd.f32 %v9669_v30, %v9668_v28  ;;  %v2500_v53 = vadd.f32 %v9667_v48, %v16185_v22  ;;  %2643 = vst.msk [vmem:[#allocation2 + $0x80] sm:$0xff] %vm1315_vm0, %v2312_v43  ;;  %v9561_v32 = vadd.f32 %v9560_v59, %v9559_v52  ;;  %v9562_v35 = vpop.f32.mrb[134].mxu0 }
 0x282   : > { %3250 = vmatmul.mubr.bf16.gmra.mrb[236].mxu1 %v20962_v58  ;;  %v9563_v47 = vpop.f32.mrb[135].mxu0 }
 0x283   : > { %v2503_v24 = vadd.f32 %v9670_v31, %v16185_v22  ;;  %3257 = vmatprep.mubr.bf16.mxu1 %v20942_v18  ;;  %v9564_v23 = vadd.f32 %v9563_v47, %v9562_v35  ;;  %v2194_v18 = vadd.f32 %v9561_v32, %v16180_v62 }
 0x285   : > { %v2626_v25 = vpack.c.bf16 %v2503_v24, %v2500_v53  ;;  %v9671_v26 = vpop.f32.mrb[132].mxu1  ;;  %v2197_v50 = vadd.f32 %v9564_v23, %v16180_v62 }
 0x286   : > { %v9672_v29 = vpop.f32.mrb[133].mxu1  ;;  %2944 = vmatmul.mubr.bf16.gmra.mrb[240].mxu0 %v20943_v36 }
 0x287   : > { %2652 = vst.msk [vmem:[#allocation3 + $0x80] sm:$0xff] %vm1315_vm0, %v2626_v25  ;;  %v9673_v27 = vadd.f32 %v9672_v29, %v9671_v26  ;;  %v9674_v10 = vpop.f32.mrb[134].mxu1  ;;  %2951 = vmatprep.mubr.bf16.mxu0 %v20965_v15  ;;  %v2313_v21 = vpack.c.bf16 %v2197_v50, %v2194_v18  ;;  %v9565_v54 = vpop.f32.mrb[136].mxu0 }
 0x288   : > { %v9675_v13 = vpop.f32.mrb[135].mxu1  ;;  %v9566_v39 = vpop.f32.mrb[137].mxu0 }
 0x289   : > { %v9676_v49 = vadd.f32 %v9675_v13, %v9674_v10  ;;  %v2508_v0 = vadd.f32 %v9673_v27, %v16185_v22  ;;  %2644 = vst.msk [vmem:[#allocation2 + $0x88] sm:$0xff] %vm1315_vm0, %v2313_v21  ;;  %v9567_v36 = vadd.f32 %v9566_v39, %v9565_v54  ;;  %v9568_v17 = vpop.f32.mrb[138].mxu0 }
 0x28a   : > { %3258 = vmatmul.mubr.bf16.gmra.mrb[240].mxu1 %v20964_v14  ;;  %v9569_v8 = vpop.f32.mrb[139].mxu0 }
 0x28b   : > { %v2511_v51 = vadd.f32 %v9676_v49, %v16185_v22  ;;  %3265 = vmatprep.mubr.bf16.mxu1 %v20924_v41  ;;  %v9570_v57 = vadd.f32 %v9569_v8, %v9568_v17  ;;  %v2202_v41 = vadd.f32 %v9567_v36, %v16180_v62 }
 0x28d   : > { %v2627_v55 = vpack.c.bf16 %v2511_v51, %v2508_v0  ;;  %v9677_v56 = vpop.f32.mrb[136].mxu1  ;;  %v2205_v19 = vadd.f32 %v9570_v57, %v16180_v62 }
 0x28e   : > { %v9678_v11 = vpop.f32.mrb[137].mxu1  ;;  %2952 = vmatmul.mubr.bf16.gmra.mrb[244].mxu0 %v20925_v46 }
 0x28f   : > { %2653 = vst.msk [vmem:[#allocation3 + $0x88] sm:$0xff] %vm1315_vm0, %v2627_v55  ;;  %v9679_v42 = vadd.f32 %v9678_v11, %v9677_v56  ;;  %v9680_v12 = vpop.f32.mrb[138].mxu1  ;;  %2959 = vmatprep.mubr.bf16.mxu0 %v20966_v61  ;;  %v2314_v2 = vpack.c.bf16 %v2205_v19, %v2202_v41  ;;  %v9571_v48 = vpop.f32.mrb[140].mxu0 }
 0x290   : > { %v9681_v16 = vpop.f32.mrb[139].mxu1  ;;  %v9572_v9 = vpop.f32.mrb[141].mxu0 }
 0x291   : > { %v9682_v4 = vadd.f32 %v9681_v16, %v9680_v12  ;;  %v2516_v6 = vadd.f32 %v9679_v42, %v16185_v22  ;;  %2645 = vst.msk [vmem:[#allocation2 + $0x90] sm:$0xff] %vm1315_vm0, %v2314_v2  ;;  %v9573_v46 = vadd.f32 %v9572_v9, %v9571_v48  ;;  %v9574_v31 = vpop.f32.mrb[142].mxu0 }
 0x292   : > { %3266 = vmatmul.mubr.bf16.gmra.mrb[244].mxu1 %v20926_v60  ;;  %v9575_v40 = vpop.f32.mrb[143].mxu0 }
 0x293   : > { %v2519_v7 = vadd.f32 %v9682_v4, %v16185_v22  ;;  %3273 = vmatprep.mubr.bf16.mxu1 %v15569_v34  ;;  %v9576_v1 = vadd.f32 %v9575_v40, %v9574_v31  ;;  %v2210_v34 = vadd.f32 %v9573_v46, %v16180_v62 }
 0x295   : > { %v2628_v28 = vpack.c.bf16 %v2519_v7, %v2516_v6  ;;  %v9683_v20 = vpop.f32.mrb[140].mxu1  ;;  %v2213_v53 = vadd.f32 %v9576_v1, %v16180_v62 }
 0x296   : > { %v9684_v30 = vpop.f32.mrb[141].mxu1  ;;  %2960 = vmatmul.mubr.bf16.gmra.mrb[248].mxu0 %v15583_v3 }
 0x297   : > { %2654 = vst.msk [vmem:[#allocation3 + $0x90] sm:$0xff] %vm1315_vm0, %v2628_v28  ;;  %v9685_v60 = vadd.f32 %v9684_v30, %v9683_v20  ;;  %v9686_v63 = vpop.f32.mrb[142].mxu1  ;;  %2967 = vmatprep.mubr.bf16.mxu0 %v15587_v45  ;;  %v2315_v52 = vpack.c.bf16 %v2213_v53, %v2210_v34  ;;  %v9577_v25 = vpop.f32.mrb[144].mxu0 }
 0x298   : > { %v9687_v58 = vpop.f32.mrb[143].mxu1  ;;  %v9578_v32 = vpop.f32.mrb[145].mxu0 }
 0x299   : > { %v9688_v33 = vadd.f32 %v9687_v58, %v9686_v63  ;;  %v2524_v24 = vadd.f32 %v9685_v60, %v16185_v22  ;;  %2646 = vst.msk [vmem:[#allocation2 + $0x98] sm:$0xff] %vm1315_vm0, %v2315_v52  ;;  %v9579_v3 = vadd.f32 %v9578_v32, %v9577_v25  ;;  %v9580_v35 = vpop.f32.mrb[146].mxu0 }
 0x29a   : > { %3274 = vmatmul.mubr.bf16.gmra.mrb[248].mxu1 %v15585_v44  ;;  %v9581_v27 = vpop.f32.mrb[147].mxu0 }
 0x29b   : > { %v2527_v43 = vadd.f32 %v9688_v33, %v16185_v22  ;;  %3281 = vmatprep.mubr.bf16.mxu1 %v15589_v5  ;;  %v9582_v10 = vadd.f32 %v9581_v27, %v9580_v35  ;;  %v2218_v5 = vadd.f32 %v9579_v3, %v16180_v62 }
 0x29d   : > { %v2629_v26 = vpack.c.bf16 %v2527_v43, %v2524_v24  ;;  %v9689_v59 = vpop.f32.mrb[144].mxu1  ;;  %v2221_v13 = vadd.f32 %v9582_v10, %v16180_v62 }
 0x29e   : > { %v9690_v29 = vpop.f32.mrb[145].mxu1  ;;  %2968 = vmatmul.mubr.bf16.gmra.mrb[252].mxu0 %v15599_v37 }
 0x29f   : > { %2655 = vst.msk [vmem:[#allocation3 + $0x98] sm:$0xff] %vm1315_vm0, %v2629_v26  ;;  %v9691_v44 = vadd.f32 %v9690_v29, %v9689_v59  ;;  %v9692_v45 = vpop.f32.mrb[146].mxu1  ;;  %v2316_v50 = vpack.c.bf16 %v2221_v13, %v2218_v5  ;;  %v9583_v14 = vpop.f32.mrb[148].mxu0 }
 0x2a0   : > { %v9693_v47 = vpop.f32.mrb[147].mxu1  ;;  %v9584_v51 = vpop.f32.mrb[149].mxu0 }
 0x2a1   : > { %v9694_v23 = vadd.f32 %v9693_v47, %v9692_v45  ;;  %v2532_v49 = vadd.f32 %v9691_v44, %v16185_v22  ;;  %2647 = vst.msk [vmem:[#allocation2 + $0xa0] sm:$0xff] %vm1315_vm0, %v2316_v50  ;;  %v9585_v21 = vadd.f32 %v9584_v51, %v9583_v14  ;;  %v9586_v37 = vpop.f32.mrb[150].mxu0 }
 0x2a2   : > { %3282 = vmatmul.mubr.bf16.gmra.mrb[252].mxu1 %v15601_v38  ;;  %v9587_v39 = vpop.f32.mrb[151].mxu0 }
 0x2a3   : > { %v2535_v18 = vadd.f32 %v9694_v23, %v16185_v22  ;;  %v9588_v38 = vadd.f32 %v9587_v39, %v9586_v37  ;;  %v2226_v17 = vadd.f32 %v9585_v21, %v16180_v62 }
 0x2a5   : > { %v2630_v15 = vpack.c.bf16 %v2535_v18, %v2532_v49  ;;  %v9695_v0 = vpop.f32.mrb[148].mxu1  ;;  %v2229_v42 = vadd.f32 %v9588_v38, %v16180_v62 }
 0x2a6   : > { %v9696_v54 = vpop.f32.mrb[149].mxu1 }
 0x2a7   : > { %2656 = vst.msk [vmem:[#allocation3 + $0xa0] sm:$0xff] %vm1315_vm0, %v2630_v15  ;;  %v9697_v55 = vadd.f32 %v9696_v54, %v9695_v0  ;;  %v9698_v56 = vpop.f32.mrb[150].mxu1  ;;  %v2317_v57 = vpack.c.bf16 %v2229_v42, %v2226_v17  ;;  %v9589_v16 = vpop.f32.mrb[152].mxu0 }
 0x2a8   : > { %v9699_v36 = vpop.f32.mrb[151].mxu1  ;;  %v9590_v19 = vpop.f32.mrb[153].mxu0 }
 0x2a9   : > { %v9700_v11 = vadd.f32 %v9699_v36, %v9698_v56  ;;  %v2540_v12 = vadd.f32 %v9697_v55, %v16185_v22  ;;  %2648 = vst.msk [vmem:[#allocation2 + $0xa8] sm:$0xff] %vm1315_vm0, %v2317_v57  ;;  %v9591_v61 = vadd.f32 %v9590_v19, %v9589_v16  ;;  %v9592_v7 = vpop.f32.mrb[154].mxu0 }
 0x2aa   : > { %v9593_v28 = vpop.f32.mrb[155].mxu0 }
 0x2ab   : > { %v2543_v8 = vadd.f32 %v9700_v11, %v16185_v22  ;;  %v9594_v20 = vadd.f32 %v9593_v28, %v9592_v7  ;;  %v2234_v30 = vadd.f32 %v9591_v61, %v16180_v62 }
 0x2ad   : > { %v2631_v4 = vpack.c.bf16 %v2543_v8, %v2540_v12  ;;  %v9701_v41 = vpop.f32.mrb[152].mxu1  ;;  %v2237_v31 = vadd.f32 %v9594_v20, %v16180_v62 }
 0x2ae   : > { %v9702_v6 = vpop.f32.mrb[153].mxu1 }
 0x2af   : > { %2657 = vst.msk [vmem:[#allocation3 + $0xa8] sm:$0xff] %vm1315_vm0, %v2631_v4  ;;  %v9703_v2 = vadd.f32 %v9702_v6, %v9701_v41  ;;  %v9704_v48 = vpop.f32.mrb[154].mxu1  ;;  %v2318_v40 = vpack.c.bf16 %v2237_v31, %v2234_v30  ;;  %v9595_v1 = vpop.f32.mrb[156].mxu0 }
 0x2b0   : > { %v9705_v9 = vpop.f32.mrb[155].mxu1  ;;  %v9596_v34 = vpop.f32.mrb[157].mxu0 }
 0x2b1   : > { %v9706_v46 = vadd.f32 %v9705_v9, %v9704_v48  ;;  %v2548_v60 = vadd.f32 %v9703_v2, %v16185_v22  ;;  %2649 = vst.msk [vmem:[#allocation2 + $0xb0] sm:$0xff] %vm1315_vm0, %v2318_v40  ;;  %v9597_v53 = vadd.f32 %v9596_v34, %v9595_v1  ;;  %v9598_v43 = vpop.f32.mrb[158].mxu0 }
 0x2b2   : > { %v9599_v26 = vpop.f32.mrb[159].mxu0 }
 0x2b3   : > { %v2551_v63 = vadd.f32 %v9706_v46, %v16185_v22  ;;  %v9600_v59 = vadd.f32 %v9599_v26, %v9598_v43  ;;  %v2242_v29 = vadd.f32 %v9597_v53, %v16180_v62 }
 0x2b5   : > { %v2632_v58 = vpack.c.bf16 %v2551_v63, %v2548_v60  ;;  %v9707_v33 = vpop.f32.mrb[156].mxu1  ;;  %v2245_v35 = vadd.f32 %v9600_v59, %v16180_v62 }
 0x2b6   : > { %v9708_v24 = vpop.f32.mrb[157].mxu1 }
 0x2b7   : > { %2658 = vst.msk [vmem:[#allocation3 + $0xb0] sm:$0xff] %vm1315_vm0, %v2632_v58  ;;  %v9709_v52 = vadd.f32 %v9708_v24, %v9707_v33  ;;  %v9710_v25 = vpop.f32.mrb[158].mxu1  ;;  %v2319_v27 = vpack.c.bf16 %v2245_v35, %v2242_v29  ;;  %v9601_v10 = vpop.f32.mrb[160].mxu0 }
 0x2b8   : > { %v9711_v32 = vpop.f32.mrb[159].mxu1  ;;  %v9602_v5 = vpop.f32.mrb[161].mxu0 }
 0x2b9   : > { %v9712_v3 = vadd.f32 %v9711_v32, %v9710_v25  ;;  %v2556_v44 = vadd.f32 %v9709_v52, %v16185_v22  ;;  %2650 = vst.msk [vmem:[#allocation2 + $0xb8] sm:$0xff] %vm1315_vm0, %v2319_v27  ;;  %v9603_v13 = vadd.f32 %v9602_v5, %v9601_v10  ;;  %v9604_v18 = vpop.f32.mrb[162].mxu0 }
 0x2ba   : > { %v9605_v15 = vpop.f32.mrb[163].mxu0 }
 0x2bb   : > { %v2559_v45 = vadd.f32 %v9712_v3, %v16185_v22  ;;  %v9606_v0 = vadd.f32 %v9605_v15, %v9604_v18  ;;  %v2250_v54 = vadd.f32 %v9603_v13, %v16180_v62 }
 0x2bd   : > { %v2633_v47 = vpack.c.bf16 %v2559_v45, %v2556_v44  ;;  %v9713_v23 = vpop.f32.mrb[160].mxu1  ;;  %v2253_v37 = vadd.f32 %v9606_v0, %v16180_v62 }
 0x2be   : > { %v9714_v49 = vpop.f32.mrb[161].mxu1 }
 0x2bf   : > { %2659 = vst.msk [vmem:[#allocation3 + $0xb8] sm:$0xff] %vm1315_vm0, %v2633_v47  ;;  %v9715_v50 = vadd.f32 %v9714_v49, %v9713_v23  ;;  %v9716_v14 = vpop.f32.mrb[162].mxu1  ;;  %v2320_v39 = vpack.c.bf16 %v2253_v37, %v2250_v54  ;;  %v9607_v38 = vpop.f32.mrb[164].mxu0 }
 0x2c0   : > { %v9717_v51 = vpop.f32.mrb[163].mxu1  ;;  %v9608_v17 = vpop.f32.mrb[165].mxu0 }
 0x2c1   : > { %v9718_v21 = vadd.f32 %v9717_v51, %v9716_v14  ;;  %v2564_v55 = vadd.f32 %v9715_v50, %v16185_v22  ;;  %2661 = vst.msk [vmem:[#allocation2 + $0x180] sm:$0xff] %vm1315_vm0, %v2320_v39  ;;  %v9609_v42 = vadd.f32 %v9608_v17, %v9607_v38  ;;  %v9610_v8 = vpop.f32.mrb[166].mxu0 }
 0x2c2   : > { %v9611_v4 = vpop.f32.mrb[167].mxu0 }
 0x2c3   : > { %v2567_v56 = vadd.f32 %v9718_v21, %v16185_v22  ;;  %v9612_v41 = vadd.f32 %v9611_v4, %v9610_v8  ;;  %v2258_v6 = vadd.f32 %v9609_v42, %v16180_v62 }
 0x2c5   : > { %v2634_v36 = vpack.c.bf16 %v2567_v56, %v2564_v55  ;;  %v9719_v11 = vpop.f32.mrb[164].mxu1  ;;  %v2261_v7 = vadd.f32 %v9612_v41, %v16180_v62 }
 0x2c6   : > { %v9720_v12 = vpop.f32.mrb[165].mxu1 }
 0x2c7   : > { %2670 = vst.msk [vmem:[#allocation3 + $0x180] sm:$0xff] %vm1315_vm0, %v2634_v36  ;;  %v9721_v57 = vadd.f32 %v9720_v12, %v9719_v11  ;;  %v9722_v16 = vpop.f32.mrb[166].mxu1  ;;  %v2321_v28 = vpack.c.bf16 %v2261_v7, %v2258_v6  ;;  %v9613_v20 = vpop.f32.mrb[168].mxu0 }
 0x2c8   : > { %v9723_v19 = vpop.f32.mrb[167].mxu1  ;;  %v9614_v30 = vpop.f32.mrb[169].mxu0 }
 0x2c9   : > { %v9724_v61 = vadd.f32 %v9723_v19, %v9722_v16  ;;  %v2572_v2 = vadd.f32 %v9721_v57, %v16185_v22  ;;  %2662 = vst.msk [vmem:[#allocation2 + $0x188] sm:$0xff] %vm1315_vm0, %v2321_v28  ;;  %v9615_v31 = vadd.f32 %v9614_v30, %v9613_v20  ;;  %v9616_v63 = vpop.f32.mrb[170].mxu0 }
 0x2ca   : > { %v9617_v58 = vpop.f32.mrb[171].mxu0 }
 0x2cb   : > { %v2575_v48 = vadd.f32 %v9724_v61, %v16185_v22  ;;  %v9618_v33 = vadd.f32 %v9617_v58, %v9616_v63  ;;  %v2266_v24 = vadd.f32 %v9615_v31, %v16180_v62 }
 0x2cd   : > { %v2635_v9 = vpack.c.bf16 %v2575_v48, %v2572_v2  ;;  %v9725_v46 = vpop.f32.mrb[168].mxu1  ;;  %v2269_v43 = vadd.f32 %v9618_v33, %v16180_v62 }
 0x2ce   : > { %v9726_v60 = vpop.f32.mrb[169].mxu1 }
 0x2cf   : > { %2671 = vst.msk [vmem:[#allocation3 + $0x188] sm:$0xff] %vm1315_vm0, %v2635_v9  ;;  %v9727_v40 = vadd.f32 %v9726_v60, %v9725_v46  ;;  %v9728_v1 = vpop.f32.mrb[170].mxu1  ;;  %v2322_v26 = vpack.c.bf16 %v2269_v43, %v2266_v24 }
 0x2d0   : > { %v9729_v34 = vpop.f32.mrb[171].mxu1 }
 0x2d1   : > { %v9730_v53 = vadd.f32 %v9729_v34, %v9728_v1  ;;  %v2580_v52 = vadd.f32 %v9727_v40, %v16185_v22  ;;  %v9619_v59 = vpop.f32.mrb[172].mxu0  ;;  %2663 = vst.msk [vmem:[#allocation2 + $0x190] sm:$0xff] %vm1315_vm0, %v2322_v26 }
 0x2d2   : > { %v9620_v29 = vpop.f32.mrb[173].mxu0 }
 0x2d3   : > { %v2583_v25 = vadd.f32 %v9730_v53, %v16185_v22  ;;  %v9621_v35 = vadd.f32 %v9620_v29, %v9619_v59  ;;  %v9622_v45 = vpop.f32.mrb[174].mxu0 }
 0x2d4   : > { %v9623_v47 = vpop.f32.mrb[175].mxu0 }
 0x2d5   : > { %v2636_v32 = vpack.c.bf16 %v2583_v25, %v2580_v52  ;;  %v9731_v3 = vpop.f32.mrb[172].mxu1  ;;  %v9624_v23 = vadd.f32 %v9623_v47, %v9622_v45  ;;  %v2274_v49 = vadd.f32 %v9621_v35, %v16180_v62 }
 0x2d6   : > { %v9732_v44 = vpop.f32.mrb[173].mxu1 }
 0x2d7   : > { %2672 = vst.msk [vmem:[#allocation3 + $0x190] sm:$0xff] %vm1315_vm0, %v2636_v32  ;;  %v9733_v27 = vadd.f32 %v9732_v44, %v9731_v3  ;;  %v9734_v10 = vpop.f32.mrb[174].mxu1  ;;  %v2277_v18 = vadd.f32 %v9624_v23, %v16180_v62 }
 0x2d8   : > { %v9735_v5 = vpop.f32.mrb[175].mxu1 }
 0x2d9   : > { %v9736_v13 = vadd.f32 %v9735_v5, %v9734_v10  ;;  %v2588_v50 = vadd.f32 %v9733_v27, %v16185_v22  ;;  %v2323_v15 = vpack.c.bf16 %v2277_v18, %v2274_v49  ;;  %v9625_v0 = vpop.f32.mrb[176].mxu0 }
 0x2da   : > { %v9626_v54 = vpop.f32.mrb[177].mxu0 }
 0x2db   : > { %v2591_v14 = vadd.f32 %v9736_v13, %v16185_v22  ;;  %2664 = vst.msk [vmem:[#allocation2 + $0x198] sm:$0xff] %vm1315_vm0, %v2323_v15  ;;  %v9627_v37 = vadd.f32 %v9626_v54, %v9625_v0  ;;  %v9628_v56 = vpop.f32.mrb[178].mxu0 }
 0x2dc   : > { %v9629_v36 = vpop.f32.mrb[179].mxu0 }
 0x2dd   : > { %v2637_v51 = vpack.c.bf16 %v2591_v14, %v2588_v50  ;;  %v9737_v21 = vpop.f32.mrb[176].mxu1  ;;  %v9630_v11 = vadd.f32 %v9629_v36, %v9628_v56  ;;  %v2282_v12 = vadd.f32 %v9627_v37, %v16180_v62 }
 0x2de   : > { %v9738_v55 = vpop.f32.mrb[177].mxu1 }
 0x2df   : > { %2673 = vst.msk [vmem:[#allocation3 + $0x198] sm:$0xff] %vm1315_vm0, %v2637_v51  ;;  %v9739_v39 = vadd.f32 %v9738_v55, %v9737_v21  ;;  %v9740_v38 = vpop.f32.mrb[178].mxu1  ;;  %v2285_v8 = vadd.f32 %v9630_v11, %v16180_v62 }
 0x2e0   : > { %v9741_v17 = vpop.f32.mrb[179].mxu1 }
 0x2e1   : > { %v9742_v42 = vadd.f32 %v9741_v17, %v9740_v38  ;;  %v2596_v57 = vadd.f32 %v9739_v39, %v16185_v22  ;;  %v2324_v4 = vpack.c.bf16 %v2285_v8, %v2282_v12  ;;  %v9631_v41 = vpop.f32.mrb[180].mxu0 }
 0x2e2   : > { %v9632_v6 = vpop.f32.mrb[181].mxu0 }
 0x2e3   : > { %v2599_v16 = vadd.f32 %v9742_v42, %v16185_v22  ;;  %2665 = vst.msk [vmem:[#allocation2 + $0x1a0] sm:$0xff] %vm1315_vm0, %v2324_v4  ;;  %v9633_v7 = vadd.f32 %v9632_v6, %v9631_v41  ;;  %v9634_v48 = vpop.f32.mrb[182].mxu0 }
 0x2e4   : > { %v9635_v9 = vpop.f32.mrb[183].mxu0 }
 0x2e5   : > { %v2638_v19 = vpack.c.bf16 %v2599_v16, %v2596_v57  ;;  %v9743_v61 = vpop.f32.mrb[180].mxu1  ;;  %v9636_v46 = vadd.f32 %v9635_v9, %v9634_v48  ;;  %v2290_v60 = vadd.f32 %v9633_v7, %v16180_v62 }
 0x2e6   : > { %v9744_v2 = vpop.f32.mrb[181].mxu1 }
 0x2e7   : > { %2674 = vst.msk [vmem:[#allocation3 + $0x1a0] sm:$0xff] %vm1315_vm0, %v2638_v19  ;;  %v9745_v28 = vadd.f32 %v9744_v2, %v9743_v61  ;;  %v9746_v20 = vpop.f32.mrb[182].mxu1  ;;  %v2293_v63 = vadd.f32 %v9636_v46, %v16180_v62  ;;  %v16309_v19 = vld [vmem:[%s20916_s7 + $0x3] ss:$0 sm:$0xff] }
 0x2e8   : > { %v9747_v30 = vpop.f32.mrb[183].mxu1 }
 0x2e9   : > { %v9748_v31 = vadd.f32 %v9747_v30, %v9746_v20  ;;  %v2604_v40 = vadd.f32 %v9745_v28, %v16185_v22  ;;  %v2325_v58 = vpack.c.bf16 %v2293_v63, %v2290_v60  ;;  %v9637_v33 = vpop.f32.mrb[184].mxu0 }
 0x2ea   : > { %v9638_v24 = vpop.f32.mrb[185].mxu0 }
 0x2eb   : > { %v2607_v1 = vadd.f32 %v9748_v31, %v16185_v22  ;;  %2666 = vst.msk [vmem:[#allocation2 + $0x1a8] sm:$0xff] %vm1315_vm0, %v2325_v58  ;;  %v9639_v43 = vadd.f32 %v9638_v24, %v9637_v33  ;;  %v9640_v25 = vpop.f32.mrb[186].mxu0 }
 0x2ec   : > { %v9641_v32 = vpop.f32.mrb[187].mxu0 }
 0x2ed   : > { %v2639_v34 = vpack.c.bf16 %v2607_v1, %v2604_v40  ;;  %v9749_v53 = vpop.f32.mrb[184].mxu1  ;;  %v9642_v3 = vadd.f32 %v9641_v32, %v9640_v25  ;;  %v2298_v44 = vadd.f32 %v9639_v43, %v16180_v62 }
 0x2ee   : > { %v9750_v52 = vpop.f32.mrb[185].mxu1 }
 0x2ef   : > { %2675 = vst.msk [vmem:[#allocation3 + $0x1a8] sm:$0xff] %vm1315_vm0, %v2639_v34  ;;  %v9751_v26 = vadd.f32 %v9750_v52, %v9749_v53  ;;  %v9752_v59 = vpop.f32.mrb[186].mxu1  ;;  %v2301_v45 = vadd.f32 %v9642_v3, %v16180_v62 }
 0x2f0   : > { %v9753_v29 = vpop.f32.mrb[187].mxu1 }
 0x2f1   : > { %v9754_v35 = vadd.f32 %v9753_v29, %v9752_v59  ;;  %v2612_v27 = vadd.f32 %v9751_v26, %v16185_v22  ;;  %v2326_v47 = vpack.c.bf16 %v2301_v45, %v2298_v44  ;;  %v9643_v23 = vpop.f32.mrb[188].mxu0 }
 0x2f2   : > { %v9644_v49 = vpop.f32.mrb[189].mxu0 }
 0x2f3   : > { %v2615_v10 = vadd.f32 %v9754_v35, %v16185_v22  ;;  %2667 = vst.msk [vmem:[#allocation2 + $0x1b0] sm:$0xff] %vm1315_vm0, %v2326_v47  ;;  %v9645_v18 = vadd.f32 %v9644_v49, %v9643_v23  ;;  %v9646_v14 = vpop.f32.mrb[190].mxu0 }
 0x2f4   : > { %v9647_v51 = vpop.f32.mrb[191].mxu0 }
 0x2f5   : > { %v2640_v5 = vpack.c.bf16 %v2615_v10, %v2612_v27  ;;  %v9755_v13 = vpop.f32.mrb[188].mxu1  ;;  %v9648_v21 = vadd.f32 %v9647_v51, %v9646_v14  ;;  %v2306_v55 = vadd.f32 %v9645_v18, %v16180_v62 }
 0x2f6   : > { %v9756_v50 = vpop.f32.mrb[189].mxu1 }
 0x2f7   : > { %2676 = vst.msk [vmem:[#allocation3 + $0x1b0] sm:$0xff] %vm1315_vm0, %v2640_v5  ;;  %v9757_v15 = vadd.f32 %v9756_v50, %v9755_v13  ;;  %v9758_v0 = vpop.f32.mrb[190].mxu1  ;;  %v2309_v56 = vadd.f32 %v9648_v21, %v16180_v62  ;;  %v16304_v62 = vld [vmem:[%s20915_s14 + $0x3] ss:$0 sm:$0xff] }
 0x2f8   : > { %v9759_v54 = vpop.f32.mrb[191].mxu1 }
 0x2f9   : > { %v9760_v37 = vadd.f32 %v9759_v54, %v9758_v0  ;;  %v2620_v39 = vadd.f32 %v9757_v15, %v16185_v22  ;;  %v2327_v36 = vpack.c.bf16 %v2309_v56, %v2306_v55  ;;  %v9777_v11 = vpop.f32.mrb[192].mxu0 }
 0x2fa   : > { %v9778_v12 = vpop.f32.mrb[193].mxu0 }
 0x2fb   : > { %v2623_v38 = vadd.f32 %v9760_v37, %v16185_v22  ;;  %2668 = vst.msk [vmem:[#allocation2 + $0x1b8] sm:$0xff] %vm1315_vm0, %v2327_v36  ;;  %v9779_v8 = vadd.f32 %v9778_v12, %v9777_v11  ;;  %v9780_v16 = vpop.f32.mrb[194].mxu0 }
 0x2fc   : > { %v9781_v22 = vpop.f32.mrb[195].mxu0 }
 0x2fd   : > { %v2641_v17 = vpack.c.bf16 %v2623_v38, %v2620_v39  ;;  %v9889_v42 = vpop.f32.mrb[192].mxu1  ;;  %v9782_v61 = vadd.f32 %v9781_v22, %v9780_v16  ;;  %v2850_v2 = vadd.f32 %v9779_v8, %v16304_v62 }
 0x2fe   : > { %v9890_v57 = vpop.f32.mrb[193].mxu1 }
 0x2ff   : > { %2677 = vst.msk [vmem:[#allocation3 + $0x1b8] sm:$0xff] %vm1315_vm0, %v2641_v17  ;;  %v9891_v4 = vadd.f32 %v9890_v57, %v9889_v42  ;;  %v9892_v41 = vpop.f32.mrb[194].mxu1  ;;  %v2853_v48 = vadd.f32 %v9782_v61, %v16304_v62 }
 0x300   : > { %v9893_v6 = vpop.f32.mrb[195].mxu1 }
 0x301   : > { %v9894_v7 = vadd.f32 %v9893_v6, %v9892_v41  ;;  %v3164_v28 = vadd.f32 %v9891_v4, %v16309_v19  ;;  %v2976_v9 = vpack.c.bf16 %v2853_v48, %v2850_v2  ;;  %v9783_v46 = vpop.f32.mrb[196].mxu0 }
 0x302   : > { %v9784_v60 = vpop.f32.mrb[197].mxu0 }
 0x303   : > { %v3167_v20 = vadd.f32 %v9894_v7, %v16309_v19  ;;  %3307 = vst.msk [vmem:[#allocation2 + $0xc0] sm:$0xff] %vm1315_vm0, %v2976_v9  ;;  %v9785_v63 = vadd.f32 %v9784_v60, %v9783_v46  ;;  %v9786_v1 = vpop.f32.mrb[198].mxu0 }
 0x304   : > { %v9787_v34 = vpop.f32.mrb[199].mxu0 }
 0x305   : > { %v3290_v30 = vpack.c.bf16 %v3167_v20, %v3164_v28  ;;  %v9895_v31 = vpop.f32.mrb[196].mxu1  ;;  %v9788_v53 = vadd.f32 %v9787_v34, %v9786_v1  ;;  %v2858_v52 = vadd.f32 %v9785_v63, %v16304_v62 }
 0x306   : > { %v9896_v40 = vpop.f32.mrb[197].mxu1 }
 0x307   : > { %3316 = vst.msk [vmem:[#allocation3 + $0xc0] sm:$0xff] %vm1315_vm0, %v3290_v30  ;;  %v9897_v58 = vadd.f32 %v9896_v40, %v9895_v31  ;;  %v9898_v33 = vpop.f32.mrb[198].mxu1  ;;  %v2861_v25 = vadd.f32 %v9788_v53, %v16304_v62 }
 0x308   : > { %v9899_v24 = vpop.f32.mrb[199].mxu1 }
 0x309   : > { %v9900_v43 = vadd.f32 %v9899_v24, %v9898_v33  ;;  %v3172_v26 = vadd.f32 %v9897_v58, %v16309_v19  ;;  %v2977_v32 = vpack.c.bf16 %v2861_v25, %v2858_v52  ;;  %v9789_v3 = vpop.f32.mrb[200].mxu0 }
 0x30a   : > { %v9790_v44 = vpop.f32.mrb[201].mxu0 }
 0x30b   : > { %v3175_v59 = vadd.f32 %v9900_v43, %v16309_v19  ;;  %3308 = vst.msk [vmem:[#allocation2 + $0xc8] sm:$0xff] %vm1315_vm0, %v2977_v32  ;;  %v9791_v45 = vadd.f32 %v9790_v44, %v9789_v3  ;;  %v9792_v10 = vpop.f32.mrb[202].mxu0 }
 0x30c   : > { %v9793_v5 = vpop.f32.mrb[203].mxu0 }
 0x30d   : > { %v3291_v29 = vpack.c.bf16 %v3175_v59, %v3172_v26  ;;  %v9901_v35 = vpop.f32.mrb[200].mxu1  ;;  %v9794_v13 = vadd.f32 %v9793_v5, %v9792_v10  ;;  %v2866_v50 = vadd.f32 %v9791_v45, %v16304_v62 }
 0x30e   : > { %v9902_v27 = vpop.f32.mrb[201].mxu1 }
 0x30f   : > { %3317 = vst.msk [vmem:[#allocation3 + $0xc8] sm:$0xff] %vm1315_vm0, %v3291_v29  ;;  %v9903_v47 = vadd.f32 %v9902_v27, %v9901_v35  ;;  %v9904_v23 = vpop.f32.mrb[202].mxu1  ;;  %v2869_v14 = vadd.f32 %v9794_v13, %v16304_v62 }
 0x310   : > { %v9905_v49 = vpop.f32.mrb[203].mxu1 }
 0x311   : > { %v9906_v18 = vadd.f32 %v9905_v49, %v9904_v23  ;;  %v3180_v15 = vadd.f32 %v9903_v47, %v16309_v19  ;;  %v2978_v51 = vpack.c.bf16 %v2869_v14, %v2866_v50  ;;  %v9795_v21 = vpop.f32.mrb[204].mxu0 }
 0x312   : > { %v9796_v55 = vpop.f32.mrb[205].mxu0 }
 0x313   : > { %v3183_v0 = vadd.f32 %v9906_v18, %v16309_v19  ;;  %3309 = vst.msk [vmem:[#allocation2 + $0xd0] sm:$0xff] %vm1315_vm0, %v2978_v51  ;;  %v9797_v56 = vadd.f32 %v9796_v55, %v9795_v21  ;;  %v9798_v38 = vpop.f32.mrb[206].mxu0 }
 0x314   : > { %v9799_v17 = vpop.f32.mrb[207].mxu0 }
 0x315   : > { %v3292_v54 = vpack.c.bf16 %v3183_v0, %v3180_v15  ;;  %v9907_v37 = vpop.f32.mrb[204].mxu1  ;;  %v9800_v42 = vadd.f32 %v9799_v17, %v9798_v38  ;;  %v2874_v57 = vadd.f32 %v9797_v56, %v16304_v62 }
 0x316   : > { %v9908_v39 = vpop.f32.mrb[205].mxu1 }
 0x317   : > { %3318 = vst.msk [vmem:[#allocation3 + $0xd0] sm:$0xff] %vm1315_vm0, %v3292_v54  ;;  %v9909_v36 = vadd.f32 %v9908_v39, %v9907_v37  ;;  %v9910_v11 = vpop.f32.mrb[206].mxu1  ;;  %v2877_v16 = vadd.f32 %v9800_v42, %v16304_v62 }
 0x318   : > { %v9911_v12 = vpop.f32.mrb[207].mxu1 }
 0x319   : > { %v9912_v8 = vadd.f32 %v9911_v12, %v9910_v11  ;;  %v3188_v4 = vadd.f32 %v9909_v36, %v16309_v19  ;;  %v2979_v22 = vpack.c.bf16 %v2877_v16, %v2874_v57  ;;  %v9801_v61 = vpop.f32.mrb[208].mxu0 }
 0x31a   : > { %v9802_v2 = vpop.f32.mrb[209].mxu0 }
 0x31b   : > { %v3191_v41 = vadd.f32 %v9912_v8, %v16309_v19  ;;  %3310 = vst.msk [vmem:[#allocation2 + $0xd8] sm:$0xff] %vm1315_vm0, %v2979_v22  ;;  %v9803_v48 = vadd.f32 %v9802_v2, %v9801_v61  ;;  %v9804_v20 = vpop.f32.mrb[210].mxu0 }
 0x31c   : > { %v9805_v30 = vpop.f32.mrb[211].mxu0 }
 0x31d   : > { %v3293_v6 = vpack.c.bf16 %v3191_v41, %v3188_v4  ;;  %v9913_v7 = vpop.f32.mrb[208].mxu1  ;;  %v9806_v31 = vadd.f32 %v9805_v30, %v9804_v20  ;;  %v2882_v40 = vadd.f32 %v9803_v48, %v16304_v62 }
 0x31e   : > { %v9914_v28 = vpop.f32.mrb[209].mxu1 }
 0x31f   : > { %3319 = vst.msk [vmem:[#allocation3 + $0xd8] sm:$0xff] %vm1315_vm0, %v3293_v6  ;;  %v9915_v9 = vadd.f32 %v9914_v28, %v9913_v7  ;;  %v9916_v46 = vpop.f32.mrb[210].mxu1  ;;  %v2885_v1 = vadd.f32 %v9806_v31, %v16304_v62 }
 0x320   : > { %v9917_v60 = vpop.f32.mrb[211].mxu1 }
 0x321   : > { %v9918_v63 = vadd.f32 %v9917_v60, %v9916_v46  ;;  %v3196_v58 = vadd.f32 %v9915_v9, %v16309_v19  ;;  %v2980_v34 = vpack.c.bf16 %v2885_v1, %v2882_v40  ;;  %v9807_v53 = vpop.f32.mrb[212].mxu0 }
 0x322   : > { %v9808_v52 = vpop.f32.mrb[213].mxu0 }
 0x323   : > { %v3199_v33 = vadd.f32 %v9918_v63, %v16309_v19  ;;  %3311 = vst.msk [vmem:[#allocation2 + $0xe0] sm:$0xff] %vm1315_vm0, %v2980_v34  ;;  %v9809_v25 = vadd.f32 %v9808_v52, %v9807_v53  ;;  %v9810_v59 = vpop.f32.mrb[214].mxu0 }
 0x324   : > { %v9811_v29 = vpop.f32.mrb[215].mxu0 }
 0x325   : > { %v3294_v24 = vpack.c.bf16 %v3199_v33, %v3196_v58  ;;  %v9919_v43 = vpop.f32.mrb[212].mxu1  ;;  %v9812_v35 = vadd.f32 %v9811_v29, %v9810_v59  ;;  %v2890_v27 = vadd.f32 %v9809_v25, %v16304_v62 }
 0x326   : > { %v9920_v26 = vpop.f32.mrb[213].mxu1 }
 0x327   : > { %3320 = vst.msk [vmem:[#allocation3 + $0xe0] sm:$0xff] %vm1315_vm0, %v3294_v24  ;;  %v9921_v32 = vadd.f32 %v9920_v26, %v9919_v43  ;;  %v9922_v3 = vpop.f32.mrb[214].mxu1  ;;  %v2893_v10 = vadd.f32 %v9812_v35, %v16304_v62 }
 0x328   : > { %v9923_v44 = vpop.f32.mrb[215].mxu1 }
 0x329   : > { %v9924_v45 = vadd.f32 %v9923_v44, %v9922_v3  ;;  %v3204_v47 = vadd.f32 %v9921_v32, %v16309_v19  ;;  %v2981_v5 = vpack.c.bf16 %v2893_v10, %v2890_v27  ;;  %v9813_v13 = vpop.f32.mrb[216].mxu0 }
 0x32a   : > { %v9814_v50 = vpop.f32.mrb[217].mxu0 }
 0x32b   : > { %v3207_v23 = vadd.f32 %v9924_v45, %v16309_v19  ;;  %3312 = vst.msk [vmem:[#allocation2 + $0xe8] sm:$0xff] %vm1315_vm0, %v2981_v5  ;;  %v9815_v14 = vadd.f32 %v9814_v50, %v9813_v13  ;;  %v9816_v0 = vpop.f32.mrb[218].mxu0 }
 0x32c   : > { %v9817_v54 = vpop.f32.mrb[219].mxu0 }
 0x32d   : > { %v3295_v49 = vpack.c.bf16 %v3207_v23, %v3204_v47  ;;  %v9925_v18 = vpop.f32.mrb[216].mxu1  ;;  %v9818_v37 = vadd.f32 %v9817_v54, %v9816_v0  ;;  %v2898_v39 = vadd.f32 %v9815_v14, %v16304_v62 }
 0x32e   : > { %v9926_v15 = vpop.f32.mrb[217].mxu1 }
 0x32f   : > { %3321 = vst.msk [vmem:[#allocation3 + $0xe8] sm:$0xff] %vm1315_vm0, %v3295_v49  ;;  %v9927_v51 = vadd.f32 %v9926_v15, %v9925_v18  ;;  %v9928_v21 = vpop.f32.mrb[218].mxu1  ;;  %v2901_v38 = vadd.f32 %v9818_v37, %v16304_v62 }
 0x330   : > { %v9929_v55 = vpop.f32.mrb[219].mxu1 }
 0x331   : > { %v9930_v56 = vadd.f32 %v9929_v55, %v9928_v21  ;;  %v3212_v36 = vadd.f32 %v9927_v51, %v16309_v19  ;;  %v2982_v17 = vpack.c.bf16 %v2901_v38, %v2898_v39  ;;  %v9819_v42 = vpop.f32.mrb[220].mxu0 }
 0x332   : > { %v9820_v57 = vpop.f32.mrb[221].mxu0 }
 0x333   : > { %v3215_v11 = vadd.f32 %v9930_v56, %v16309_v19  ;;  %3313 = vst.msk [vmem:[#allocation2 + $0xf0] sm:$0xff] %vm1315_vm0, %v2982_v17  ;;  %v9821_v16 = vadd.f32 %v9820_v57, %v9819_v42  ;;  %v9822_v41 = vpop.f32.mrb[222].mxu0 }
 0x334   : > { %v9823_v6 = vpop.f32.mrb[223].mxu0 }
 0x335   : > { %v3296_v12 = vpack.c.bf16 %v3215_v11, %v3212_v36  ;;  %v9931_v8 = vpop.f32.mrb[220].mxu1  ;;  %v9824_v7 = vadd.f32 %v9823_v6, %v9822_v41  ;;  %v2906_v28 = vadd.f32 %v9821_v16, %v16304_v62 }
 0x336   : > { %v9932_v4 = vpop.f32.mrb[221].mxu1 }
 0x337   : > { %3322 = vst.msk [vmem:[#allocation3 + $0xf0] sm:$0xff] %vm1315_vm0, %v3296_v12  ;;  %v9933_v22 = vadd.f32 %v9932_v4, %v9931_v8  ;;  %v9934_v61 = vpop.f32.mrb[222].mxu1  ;;  %v2909_v20 = vadd.f32 %v9824_v7, %v16304_v62 }
 0x338   : > { %v9935_v2 = vpop.f32.mrb[223].mxu1 }
 0x339   : > { %v9936_v48 = vadd.f32 %v9935_v2, %v9934_v61  ;;  %v3220_v9 = vadd.f32 %v9933_v22, %v16309_v19  ;;  %v2983_v30 = vpack.c.bf16 %v2909_v20, %v2906_v28  ;;  %v9825_v31 = vpop.f32.mrb[224].mxu0 }
 0x33a   : > { %v9826_v40 = vpop.f32.mrb[225].mxu0 }
 0x33b   : > { %v3223_v46 = vadd.f32 %v9936_v48, %v16309_v19  ;;  %3314 = vst.msk [vmem:[#allocation2 + $0xf8] sm:$0xff] %vm1315_vm0, %v2983_v30  ;;  %v9827_v1 = vadd.f32 %v9826_v40, %v9825_v31  ;;  %v9828_v33 = vpop.f32.mrb[226].mxu0 }
 0x33c   : > { %v9829_v24 = vpop.f32.mrb[227].mxu0 }
 0x33d   : > { %v3297_v60 = vpack.c.bf16 %v3223_v46, %v3220_v9  ;;  %v9937_v63 = vpop.f32.mrb[224].mxu1  ;;  %v9830_v43 = vadd.f32 %v9829_v24, %v9828_v33  ;;  %v2914_v26 = vadd.f32 %v9827_v1, %v16304_v62 }
 0x33e   : > { %v9938_v58 = vpop.f32.mrb[225].mxu1 }
 0x33f   : > { %3323 = vst.msk [vmem:[#allocation3 + $0xf8] sm:$0xff] %vm1315_vm0, %v3297_v60  ;;  %v9939_v34 = vadd.f32 %v9938_v58, %v9937_v63  ;;  %v9940_v53 = vpop.f32.mrb[226].mxu1  ;;  %v2917_v59 = vadd.f32 %v9830_v43, %v16304_v62 }
 0x340   : > { %v9941_v52 = vpop.f32.mrb[227].mxu1 }
 0x341   : > { %v9942_v25 = vadd.f32 %v9941_v52, %v9940_v53  ;;  %v3228_v32 = vadd.f32 %v9939_v34, %v16309_v19  ;;  %v2984_v29 = vpack.c.bf16 %v2917_v59, %v2914_v26  ;;  %v9831_v35 = vpop.f32.mrb[228].mxu0 }
 0x342   : > { %v9832_v27 = vpop.f32.mrb[229].mxu0 }
 0x343   : > { %v3231_v3 = vadd.f32 %v9942_v25, %v16309_v19  ;;  %3325 = vst.msk [vmem:[#allocation2 + $0x1c0] sm:$0xff] %vm1315_vm0, %v2984_v29  ;;  %v9833_v10 = vadd.f32 %v9832_v27, %v9831_v35  ;;  %v9834_v23 = vpop.f32.mrb[230].mxu0 }
 0x344   : > { %v9835_v49 = vpop.f32.mrb[231].mxu0 }
 0x345   : > { %v3298_v44 = vpack.c.bf16 %v3231_v3, %v3228_v32  ;;  %v9943_v45 = vpop.f32.mrb[228].mxu1  ;;  %v9836_v18 = vadd.f32 %v9835_v49, %v9834_v23  ;;  %v2922_v15 = vadd.f32 %v9833_v10, %v16304_v62 }
 0x346   : > { %v9944_v47 = vpop.f32.mrb[229].mxu1 }
 0x347   : > { %3334 = vst.msk [vmem:[#allocation3 + $0x1c0] sm:$0xff] %vm1315_vm0, %v3298_v44  ;;  %v9945_v5 = vadd.f32 %v9944_v47, %v9943_v45  ;;  %v9946_v13 = vpop.f32.mrb[230].mxu1  ;;  %v2925_v0 = vadd.f32 %v9836_v18, %v16304_v62 }
 0x348   : > { %v9947_v50 = vpop.f32.mrb[231].mxu1 }
 0x349   : > { %v9948_v14 = vadd.f32 %v9947_v50, %v9946_v13  ;;  %v3236_v51 = vadd.f32 %v9945_v5, %v16309_v19  ;;  %v2985_v54 = vpack.c.bf16 %v2925_v0, %v2922_v15  ;;  %v9837_v37 = vpop.f32.mrb[232].mxu0 }
 0x34a   : > { %v9838_v39 = vpop.f32.mrb[233].mxu0 }
 0x34b   : > { %v3239_v21 = vadd.f32 %v9948_v14, %v16309_v19  ;;  %3326 = vst.msk [vmem:[#allocation2 + $0x1c8] sm:$0xff] %vm1315_vm0, %v2985_v54  ;;  %v9839_v38 = vadd.f32 %v9838_v39, %v9837_v37  ;;  %v9840_v11 = vpop.f32.mrb[234].mxu0 }
 0x34c   : > { %v9841_v12 = vpop.f32.mrb[235].mxu0 }
 0x34d   : > { %v3299_v55 = vpack.c.bf16 %v3239_v21, %v3236_v51  ;;  %v9949_v56 = vpop.f32.mrb[232].mxu1  ;;  %v9842_v8 = vadd.f32 %v9841_v12, %v9840_v11  ;;  %v2930_v4 = vadd.f32 %v9839_v38, %v16304_v62 }
 0x34e   : > { %v9950_v36 = vpop.f32.mrb[233].mxu1 }
 0x34f   : > { %3335 = vst.msk [vmem:[#allocation3 + $0x1c8] sm:$0xff] %vm1315_vm0, %v3299_v55  ;;  %v9951_v17 = vadd.f32 %v9950_v36, %v9949_v56  ;;  %v9952_v42 = vpop.f32.mrb[234].mxu1  ;;  %v2933_v41 = vadd.f32 %v9842_v8, %v16304_v62 }
 0x350   : > { %v9953_v57 = vpop.f32.mrb[235].mxu1 }
 0x351   : > { %v9954_v16 = vadd.f32 %v9953_v57, %v9952_v42  ;;  %v3244_v22 = vadd.f32 %v9951_v17, %v16309_v19  ;;  %v2986_v6 = vpack.c.bf16 %v2933_v41, %v2930_v4  ;;  %v9843_v7 = vpop.f32.mrb[236].mxu0 }
 0x352   : > { %v9844_v28 = vpop.f32.mrb[237].mxu0 }
 0x353   : > { %v3247_v61 = vadd.f32 %v9954_v16, %v16309_v19  ;;  %3327 = vst.msk [vmem:[#allocation2 + $0x1d0] sm:$0xff] %vm1315_vm0, %v2986_v6  ;;  %v9845_v20 = vadd.f32 %v9844_v28, %v9843_v7  ;;  %v9846_v46 = vpop.f32.mrb[238].mxu0 }
 0x354   : > { %v9847_v60 = vpop.f32.mrb[239].mxu0 }
 0x355   : > { %v3300_v2 = vpack.c.bf16 %v3247_v61, %v3244_v22  ;;  %v9955_v48 = vpop.f32.mrb[236].mxu1  ;;  %v9848_v63 = vadd.f32 %v9847_v60, %v9846_v46  ;;  %v2938_v58 = vadd.f32 %v9845_v20, %v16304_v62 }
 0x356   : > { %v9956_v9 = vpop.f32.mrb[237].mxu1 }
 0x357   : > { %3336 = vst.msk [vmem:[#allocation3 + $0x1d0] sm:$0xff] %vm1315_vm0, %v3300_v2  ;;  %v9957_v30 = vadd.f32 %v9956_v9, %v9955_v48  ;;  %v9958_v31 = vpop.f32.mrb[238].mxu1  ;;  %v2941_v33 = vadd.f32 %v9848_v63, %v16304_v62 }
 0x358   : > { %v9959_v40 = vpop.f32.mrb[239].mxu1 }
 0x359   : > { %v9960_v1 = vadd.f32 %v9959_v40, %v9958_v31  ;;  %v3252_v34 = vadd.f32 %v9957_v30, %v16309_v19  ;;  %v2987_v24 = vpack.c.bf16 %v2941_v33, %v2938_v58  ;;  %v9849_v43 = vpop.f32.mrb[240].mxu0 }
 0x35a   : > { %v9850_v26 = vpop.f32.mrb[241].mxu0 }
 0x35b   : > { %v3255_v53 = vadd.f32 %v9960_v1, %v16309_v19  ;;  %3328 = vst.msk [vmem:[#allocation2 + $0x1d8] sm:$0xff] %vm1315_vm0, %v2987_v24  ;;  %v9851_v59 = vadd.f32 %v9850_v26, %v9849_v43  ;;  %v9852_v3 = vpop.f32.mrb[242].mxu0 }
 0x35c   : > { %v9853_v44 = vpop.f32.mrb[243].mxu0 }
 0x35d   : > { %v3301_v52 = vpack.c.bf16 %v3255_v53, %v3252_v34  ;;  %v9961_v25 = vpop.f32.mrb[240].mxu1  ;;  %v9854_v45 = vadd.f32 %v9853_v44, %v9852_v3  ;;  %v2946_v47 = vadd.f32 %v9851_v59, %v16304_v62 }
 0x35e   : > { %v9962_v32 = vpop.f32.mrb[241].mxu1 }
 0x35f   : > { %3337 = vst.msk [vmem:[#allocation3 + $0x1d8] sm:$0xff] %vm1315_vm0, %v3301_v52  ;;  %v9963_v29 = vadd.f32 %v9962_v32, %v9961_v25  ;;  %v9964_v35 = vpop.f32.mrb[242].mxu1  ;;  %v2949_v23 = vadd.f32 %v9854_v45, %v16304_v62 }
 0x360   : > { %v9965_v27 = vpop.f32.mrb[243].mxu1 }
 0x361   : > { %v9966_v10 = vadd.f32 %v9965_v27, %v9964_v35  ;;  %v3260_v5 = vadd.f32 %v9963_v29, %v16309_v19  ;;  %v2988_v49 = vpack.c.bf16 %v2949_v23, %v2946_v47  ;;  %v9855_v18 = vpop.f32.mrb[244].mxu0 }
 0x362   : > { %v9856_v15 = vpop.f32.mrb[245].mxu0 }
 0x363   : > { %v3263_v13 = vadd.f32 %v9966_v10, %v16309_v19  ;;  %3329 = vst.msk [vmem:[#allocation2 + $0x1e0] sm:$0xff] %vm1315_vm0, %v2988_v49  ;;  %v9857_v0 = vadd.f32 %v9856_v15, %v9855_v18  ;;  %v9858_v21 = vpop.f32.mrb[246].mxu0 }
 0x364   : > { %v9859_v55 = vpop.f32.mrb[247].mxu0 }
 0x365   : > { %v3302_v50 = vpack.c.bf16 %v3263_v13, %v3260_v5  ;;  %v9967_v14 = vpop.f32.mrb[244].mxu1  ;;  %v9860_v56 = vadd.f32 %v9859_v55, %v9858_v21  ;;  %v2954_v36 = vadd.f32 %v9857_v0, %v16304_v62 }
 0x366   : > { %v9968_v51 = vpop.f32.mrb[245].mxu1 }
 0x367   : > { %3338 = vst.msk [vmem:[#allocation3 + $0x1e0] sm:$0xff] %vm1315_vm0, %v3302_v50  ;;  %v9969_v54 = vadd.f32 %v9968_v51, %v9967_v14  ;;  %v9970_v37 = vpop.f32.mrb[246].mxu1  ;;  %v2957_v11 = vadd.f32 %v9860_v56, %v16304_v62 }
 0x368   : > { %v9971_v39 = vpop.f32.mrb[247].mxu1 }
 0x369   : > { %v9972_v38 = vadd.f32 %v9971_v39, %v9970_v37  ;;  %v3268_v17 = vadd.f32 %v9969_v54, %v16309_v19  ;;  %v2989_v12 = vpack.c.bf16 %v2957_v11, %v2954_v36  ;;  %v9861_v8 = vpop.f32.mrb[248].mxu0 }
 0x36a   : > { %v9862_v4 = vpop.f32.mrb[249].mxu0 }
 0x36b   : > { %v3271_v42 = vadd.f32 %v9972_v38, %v16309_v19  ;;  %3330 = vst.msk [vmem:[#allocation2 + $0x1e8] sm:$0xff] %vm1315_vm0, %v2989_v12  ;;  %v9863_v41 = vadd.f32 %v9862_v4, %v9861_v8  ;;  %v9864_v61 = vpop.f32.mrb[250].mxu0 }
 0x36c   : > { %v9865_v2 = vpop.f32.mrb[251].mxu0 }
 0x36d   : > { %v3303_v57 = vpack.c.bf16 %v3271_v42, %v3268_v17  ;;  %v9973_v16 = vpop.f32.mrb[248].mxu1  ;;  %v9866_v48 = vadd.f32 %v9865_v2, %v9864_v61  ;;  %v2962_v9 = vadd.f32 %v9863_v41, %v16304_v62 }
 0x36e   : > { %v9974_v22 = vpop.f32.mrb[249].mxu1 }
 0x36f   : > { %3339 = vst.msk [vmem:[#allocation3 + $0x1e8] sm:$0xff] %vm1315_vm0, %v3303_v57  ;;  %v9975_v6 = vadd.f32 %v9974_v22, %v9973_v16  ;;  %v9976_v7 = vpop.f32.mrb[250].mxu1  ;;  %v2965_v46 = vadd.f32 %v9866_v48, %v16304_v62 }
 0x370   : > { %v9977_v28 = vpop.f32.mrb[251].mxu1 }
 0x371   : > { %v9978_v20 = vadd.f32 %v9977_v28, %v9976_v7  ;;  %v3276_v30 = vadd.f32 %v9975_v6, %v16309_v19  ;;  %v2990_v60 = vpack.c.bf16 %v2965_v46, %v2962_v9  ;;  %v9867_v63 = vpop.f32.mrb[252].mxu0 }
 0x372   : > { %v9868_v58 = vpop.f32.mrb[253].mxu0 }
 0x373   : > { %v3279_v31 = vadd.f32 %v9978_v20, %v16309_v19  ;;  %3331 = vst.msk [vmem:[#allocation2 + $0x1f0] sm:$0xff] %vm1315_vm0, %v2990_v60  ;;  %v9869_v33 = vadd.f32 %v9868_v58, %v9867_v63  ;;  %v9870_v53 = vpop.f32.mrb[254].mxu0 }
 0x374   : > { %v9871_v52 = vpop.f32.mrb[255].mxu0 }
 0x375   : > { %v3304_v40 = vpack.c.bf16 %v3279_v31, %v3276_v30  ;;  %v9979_v1 = vpop.f32.mrb[252].mxu1  ;;  %v9872_v25 = vadd.f32 %v9871_v52, %v9870_v53  ;;  %v2970_v32 = vadd.f32 %v9869_v33, %v16304_v62 }
 0x376   : > { %v9980_v34 = vpop.f32.mrb[253].mxu1 }
 0x377   : > { %3340 = vst.msk [vmem:[#allocation3 + $0x1f0] sm:$0xff] %vm1315_vm0, %v3304_v40  ;;  %v9981_v24 = vadd.f32 %v9980_v34, %v9979_v1  ;;  %v9982_v43 = vpop.f32.mrb[254].mxu1  ;;  %v2973_v3 = vadd.f32 %v9872_v25, %v16304_v62 }
 0x378   : > { %v9983_v26 = vpop.f32.mrb[255].mxu1 }
 0x379   : > { %v9984_v59 = vadd.f32 %v9983_v26, %v9982_v43  ;;  %v3284_v29 = vadd.f32 %v9981_v24, %v16309_v19  ;;  %v2991_v44 = vpack.c.bf16 %v2973_v3, %v2970_v32 }
 0x37b   : > { %v3287_v35 = vadd.f32 %v9984_v59, %v16309_v19  ;;  %3332 = vst.msk [vmem:[#allocation2 + $0x1f8] sm:$0xff] %vm1315_vm0, %v2991_v44 }
 0x37d   : > { %v3305_v45 = vpack.c.bf16 %v3287_v35, %v3284_v29 }
 0x37f   : > { %3341 = vst.msk [vmem:[#allocation3 + $0x1f8] sm:$0xff] %vm1315_vm0, %v3305_v45 }
 0x380 PF: > { %s20967_s8 = sld [smem:[#allocation454_spill]]  ;;  %v3343_v22 = vld [vmem:[%s15082_s28 + $0x8] sm:$0xff]  ;;  %v3345_v61 = vld [vmem:[%s15082_s28 + $0x18] sm:$0xff]  ;;  %v3342_v6 = vld [vmem:[%s15082_s28] sm:$0xff]  ;;  %s20968_s15 = sld [smem:[#allocation455_spill]]  ;;  %vm3630_vm1 = vcmask 523264  }
 0x381   : > { %v16506_v7 = vpack.c.bf16 %v3345_v61, %v3343_v22  ;;  %v3344_v2 = vld [vmem:[%s15082_s28 + $0x10] sm:$0xff]  ;;  %v3347_v30 = vld [vmem:[%s15082_s28 + $0x28] sm:$0xff]  ;;  %v3349_v31 = vld [vmem:[%s15082_s28 + $0x38] sm:$0xff]  ;;  %s17261_s10 = smov 0  }
 0x382   : > { %v16509_v48 = vpack.c.bf16 %v3344_v2, %v3342_v6  ;;  %v16529_v60 = vpack.c.bf16 %v3349_v31, %v3347_v30  ;;  %v3346_v63 = vld [vmem:[%s15082_s28 + $0x20] sm:$0xff]  ;;  %v3348_v40 = vld [vmem:[%s15082_s28 + $0x30] sm:$0xff]  ;;  %v3351_v24 = vld [vmem:[%s15082_s28 + $0x48] sm:$0xff] }
 0x383   : > { %3557 = vmatprep.mubr.bf16.mxu0 %v16506_v7  ;;  %3808 = vmatprep.mubr.bf16.mxu1 %v16506_v7  ;;  %v16538_v58 = vpack.c.bf16 %v3348_v40, %v3346_v63  ;;  %v3353_v43 = vld [vmem:[%s15082_s28 + $0x58] sm:$0xff]  ;;  %v3350_v52 = vld [vmem:[%s15082_s28 + $0x40] sm:$0xff]  ;;  %v3352_v25 = vld [vmem:[%s15082_s28 + $0x50] sm:$0xff] }
 0x384   : > { %v16555_v26 = vpack.c.bf16 %v3353_v43, %v3351_v24  ;;  %v16571_v35 = vpack.c.bf16 %v3352_v25, %v3350_v52  ;;  %v3355_v44 = vld [vmem:[%s15082_s28 + $0x68] sm:$0xff]  ;;  %v3357_v45 = vld [vmem:[%s15082_s28 + $0x78] sm:$0xff]  ;;  %v3368_v30 = vld [vmem:[%s15082_s28 + $0xd0] sm:$0xff] }
 0x385   : > { %v3369_v22 = vld [vmem:[%s15082_s28 + $0xd8] sm:$0xff]  ;;  %v3371_v31 = vld [vmem:[%s15082_s28 + $0xe8] sm:$0xff] }
 0x386   : > { %v12577_v27 = vld [vmem:[%s20967_s8 + $0x40] sm:$0xff]   ;;  %v12581_v47 = vld [vmem:[%s20967_s8 + $0x48] sm:$0xff]   ;;  %v12585_v49 = vld [vmem:[%s20967_s8 + $0x50] sm:$0xff]  }
 0x387   : > { %v12578_v10 = vld [vmem:[%s20967_s8 + $0xc0] sm:$0xff]   ;;  %9985 = vmatprep.subr.bf16.mxu0 %v12577_v27  ;;  %v12582_v23 = vld [vmem:[%s20967_s8 + $0xc8] sm:$0xff]   ;;  %v12586_v18 = vld [vmem:[%s20967_s8 + $0xd0] sm:$0xff]   ;;  %v16575_v27 = vpack.c.bf16 %v3357_v45, %v3355_v44 }
 0x388   : > { %v12579_v62 = vld [vmem:[%s20967_s8] sm:$0xff]   ;;  %10049 = vmatprep.subr.bf16.mxu1 %v12578_v10  ;;  %v12583_v5 = vld [vmem:[%s20967_s8 + $0x8] sm:$0xff]   ;;  %v12587_v50 = vld [vmem:[%s20967_s8 + $0x10] sm:$0xff]  }
 0x389   : > { %v12580_v19 = vld [vmem:[%s20967_s8 + $0x80] sm:$0xff]   ;;  %9986 = vmatpush3.bf16.msra.mxu0 %v12579_v62  ;;  %v12584_v13 = vld [vmem:[%s20967_s8 + $0x88] sm:$0xff]   ;;  %v12588_v14 = vld [vmem:[%s20967_s8 + $0x90] sm:$0xff]  }
 0x38a   : > { %10050 = vmatpush3.bf16.msra.mxu1 %v12580_v19  ;;  %9987 = vmatprep.subr.bf16.mxu0 %v12581_v47  ;;  %v12589_v15 = vld [vmem:[%s20967_s8 + $0x58] sm:$0xff]   ;;  %v12593_v54 = vld [vmem:[%s20967_s8 + $0x60] sm:$0xff]   ;;  %v12597_v39 = vld [vmem:[%s20967_s8 + $0x68] sm:$0xff]  }
 0x38b   : > { %10051 = vmatprep.subr.bf16.mxu1 %v12582_v23  ;;  %v12590_v0 = vld [vmem:[%s20967_s8 + $0xd8] sm:$0xff]   ;;  %v12594_v37 = vld [vmem:[%s20967_s8 + $0xe0] sm:$0xff]   ;;  %v12598_v38 = vld [vmem:[%s20967_s8 + $0xe8] sm:$0xff]  }
 0x38c   : > { %v12591_v51 = vld [vmem:[%s20967_s8 + $0x18] sm:$0xff]   ;;  %v12595_v55 = vld [vmem:[%s20967_s8 + $0x20] sm:$0xff]   ;;  %v12599_v36 = vld [vmem:[%s20967_s8 + $0x28] sm:$0xff]  }
 0x38d   : > { %9988 = vmatpush3.bf16.msra.mxu0 %v12583_v5  ;;  %v12592_v21 = vld [vmem:[%s20967_s8 + $0x98] sm:$0xff]   ;;  %v12596_v56 = vld [vmem:[%s20967_s8 + $0xa0] sm:$0xff]   ;;  %v12600_v11 = vld [vmem:[%s20967_s8 + $0xa8] sm:$0xff]  }
 0x38e   : > { %10052 = vmatpush3.bf16.msra.mxu1 %v12584_v13  ;;  %9989 = vmatprep.subr.bf16.mxu0 %v12585_v49  ;;  %v12601_v17 = vld [vmem:[%s20967_s8 + $0x70] sm:$0xff]   ;;  %v12605_v57 = vld [vmem:[%s20967_s8 + $0x78] sm:$0xff]   ;;  %v12609_v28 = vld [vmem:[%s20967_s8 + $0x140] sm:$0xff]  }
 0x38f   : > { %10053 = vmatprep.subr.bf16.mxu1 %v12586_v18  ;;  %v12602_v42 = vld [vmem:[%s20967_s8 + $0xf0] sm:$0xff]   ;;  %v12606_v16 = vld [vmem:[%s20967_s8 + $0xf8] sm:$0xff]   ;;  %v12610_v20 = vld [vmem:[%s20967_s8 + $0x1c0] sm:$0xff]  }
 0x390   : > { %v12603_v12 = vld [vmem:[%s20967_s8 + $0x30] sm:$0xff]   ;;  %v12607_v4 = vld [vmem:[%s20967_s8 + $0x38] sm:$0xff]   ;;  %v12611_v9 = vld [vmem:[%s20967_s8 + $0x100] sm:$0xff]  }
 0x391   : > { %9990 = vmatpush3.bf16.msra.mxu0 %v12587_v50  ;;  %v12604_v8 = vld [vmem:[%s20967_s8 + $0xb0] sm:$0xff]   ;;  %v12608_v41 = vld [vmem:[%s20967_s8 + $0xb8] sm:$0xff]   ;;  %v12612_v46 = vld [vmem:[%s20967_s8 + $0x180] sm:$0xff]  }
 0x392   : > { %10054 = vmatpush3.bf16.msra.mxu1 %v12588_v14  ;;  %9991 = vmatprep.subr.bf16.mxu0 %v12589_v15  ;;  %v12613_v1 = vld [vmem:[%s20967_s8 + $0x148] sm:$0xff]   ;;  %v12617_v59 = vld [vmem:[%s20967_s8 + $0x150] sm:$0xff]   ;;  %v12621_v10 = vld [vmem:[%s20967_s8 + $0x158] sm:$0xff]  }
 0x393   : > { %10055 = vmatprep.subr.bf16.mxu1 %v12590_v0  ;;  %v12614_v33 = vld [vmem:[%s20967_s8 + $0x1c8] sm:$0xff]   ;;  %v12618_v32 = vld [vmem:[%s20967_s8 + $0x1d0] sm:$0xff]   ;;  %v12622_v62 = vld [vmem:[%s20967_s8 + $0x1d8] sm:$0xff]  }
 0x394   : > { %v12615_v34 = vld [vmem:[%s20967_s8 + $0x108] sm:$0xff]   ;;  %v12619_v3 = vld [vmem:[%s20967_s8 + $0x110] sm:$0xff]   ;;  %v12623_v19 = vld [vmem:[%s20967_s8 + $0x118] sm:$0xff]  }
 0x395   : > { %9992 = vmatpush3.bf16.msra.mxu0 %v12591_v51  ;;  %v12616_v53 = vld [vmem:[%s20967_s8 + $0x188] sm:$0xff]   ;;  %v12620_v29 = vld [vmem:[%s20967_s8 + $0x190] sm:$0xff]   ;;  %v3354_v47 = vld [vmem:[%s15082_s28 + $0x60] sm:$0xff] }
 0x396   : > { %10056 = vmatpush3.bf16.msra.mxu1 %v12592_v21  ;;  %9993 = vmatprep.subr.bf16.mxu0 %v12593_v54  ;;  %v3356_v23 = vld [vmem:[%s15082_s28 + $0x70] sm:$0xff]  ;;  %v12624_v5 = vld [vmem:[%s20967_s8 + $0x198] sm:$0xff]   ;;  %v3359_v13 = vld [vmem:[%s15082_s28 + $0x88] sm:$0xff] }
 0x397   : > { %10057 = vmatprep.subr.bf16.mxu1 %v12594_v37  ;;  %v3361_v49 = vld [vmem:[%s15082_s28 + $0x98] sm:$0xff]  ;;  %v12625_v18 = vld [vmem:[%s20967_s8 + $0x160] sm:$0xff]   ;;  %v16600_v50 = vpack.c.bf16 %v3356_v23, %v3354_v47  ;;  %v3360_v54 = vld [vmem:[%s15082_s28 + $0x90] sm:$0xff] }
 0x398   : > { %v12626_v14 = vld [vmem:[%s20967_s8 + $0x1e0] sm:$0xff]   ;;  %v16605_v15 = vpack.c.bf16 %v3361_v49, %v3359_v13  ;;  %v3363_v37 = vld [vmem:[%s15082_s28 + $0xa8] sm:$0xff]  ;;  %v12637_v61 = vld [vmem:[%s20967_s8 + $0x178] sm:$0xff]  }
 0x399   : > { %9994 = vmatpush3.bf16.msra.mxu0 %v12595_v55  ;;  %v12627_v0 = vld [vmem:[%s20967_s8 + $0x120] sm:$0xff]   ;;  %v3365_v55 = vld [vmem:[%s15082_s28 + $0xb8] sm:$0xff] }
 0x39a   : > { %10058 = vmatpush3.bf16.msra.mxu1 %v12596_v56  ;;  %9995 = vmatprep.subr.bf16.mxu0 %v12597_v39  ;;  %v12628_v51 = vld [vmem:[%s20967_s8 + $0x1a0] sm:$0xff]   ;;  %v12629_v56 = vld [vmem:[%s20967_s8 + $0x168] sm:$0xff]   ;;  %v12638_v2 = vld [vmem:[%s20967_s8 + $0x1f8] sm:$0xff]  }
 0x39b   : > { %10059 = vmatprep.subr.bf16.mxu1 %v12598_v38  ;;  %v3358_v21 = vld [vmem:[%s15082_s28 + $0x80] sm:$0xff]  ;;  %v12630_v39 = vld [vmem:[%s20967_s8 + $0x1e8] sm:$0xff]   ;;  %v3373_v63 = vld [vmem:[%s15082_s28 + $0xf8] sm:$0xff] }
 0x39c   : > { %v12631_v38 = vld [vmem:[%s20967_s8 + $0x128] sm:$0xff]  }
 0x39d   : > { %9996 = vmatpush3.bf16.msra.mxu0 %v12599_v36  ;;  %v12632_v36 = vld [vmem:[%s20967_s8 + $0x1a8] sm:$0xff]  }
 0x39e   : > { %10060 = vmatpush3.bf16.msra.mxu1 %v12600_v11  ;;  %9997 = vmatprep.subr.bf16.mxu0 %v12601_v17  ;;  %v16633_v11 = vpack.c.bf16 %v3360_v54, %v3358_v21  ;;  %v16635_v17 = vpack.c.bf16 %v3365_v55, %v3363_v37 }
 0x39f   : > { %10061 = vmatprep.subr.bf16.mxu1 %v12602_v42  ;;  %v12633_v42 = vld [vmem:[%s20967_s8 + $0x170] sm:$0xff]  }
 0x3a1   : > { %9998 = vmatpush3.bf16.msra.mxu0 %v12603_v12  ;;  %v12634_v12 = vld [vmem:[%s20967_s8 + $0x1f0] sm:$0xff]  }
 0x3a2   : > { %10062 = vmatpush3.bf16.msra.mxu1 %v12604_v8  ;;  %9999 = vmatprep.subr.bf16.mxu0 %v12605_v57  ;;  %v12635_v8 = vld [vmem:[%s20967_s8 + $0x130] sm:$0xff]   ;;  %v3362_v57 = vld [vmem:[%s15082_s28 + $0xa0] sm:$0xff] }
 0x3a3   : > { %10063 = vmatprep.subr.bf16.mxu1 %v12606_v16  ;;  %v3364_v16 = vld [vmem:[%s15082_s28 + $0xb0] sm:$0xff] }
 0x3a4   : > { %v3384_v6 = vpack.c.bf16 %v3364_v16, %v3362_v57 }
 0x3a5   : > { %10000 = vmatpush3.bf16.msra.mxu0 %v12607_v4  ;;  %v12636_v4 = vld [vmem:[%s20967_s8 + $0x1b0] sm:$0xff]  }
 0x3a6   : > { %10064 = vmatpush3.bf16.msra.mxu1 %v12608_v41  ;;  %10113 = vmatprep.subr.bf16.mxu0 %v12609_v28  ;;  %v3367_v41 = vld [vmem:[%s15082_s28 + $0xc8] sm:$0xff] }
 0x3a7   : > { %10177 = vmatprep.subr.bf16.mxu1 %v12610_v20  ;;  %v3387_v28 = vpack.c.bf16 %v3369_v22, %v3367_v41  ;;  %v12639_v20 = vld [vmem:[%s20967_s8 + $0x138] sm:$0xff]  }
 0x3a8   : > { %3558 = vmatmul.mubr.bf16.vlgmr.msra.gmra.mrb[0].mxu0 %v16509_v48 }
 0x3a9   : > { %3809 = vmatmul.mubr.bf16.vlgmr.msra.gmra.mrb[0].mxu1 %v16509_v48  ;;  %10114 = vmatpush3.bf16.msra.mxu0 %v12611_v9  ;;  %v12640_v9 = vld [vmem:[%s20967_s8 + $0x1b8] sm:$0xff]  }
 0x3aa   : > { %10178 = vmatpush3.bf16.msra.mxu1 %v12612_v46  ;;  %3565 = vmatprep.mubr.bf16.mxu0 %v16529_v60  ;;  %v3366_v46 = vld [vmem:[%s15082_s28 + $0xc0] sm:$0xff] }
 0x3ab   : > { %3816 = vmatprep.mubr.bf16.mxu1 %v16529_v60  ;;  %10115 = vmatprep.subr.bf16.mxu0 %v12613_v1  ;;  %v3386_v40 = vpack.c.bf16 %v3368_v30, %v3366_v46  ;;  %v3389_v1 = vpack.c.bf16 %v3373_v63, %v3371_v31 }
 0x3ac   : > { %10179 = vmatprep.subr.bf16.mxu1 %v12614_v33  ;;  %v3370_v33 = vld [vmem:[%s15082_s28 + $0xe0] sm:$0xff] }
 0x3ad   : > { %10116 = vmatpush3.bf16.msra.mxu0 %v12615_v34  ;;  %v3372_v34 = vld [vmem:[%s15082_s28 + $0xf0] sm:$0xff] }
 0x3ae   : > { %10180 = vmatpush3.bf16.msra.mxu1 %v12616_v53  ;;  %10117 = vmatprep.subr.bf16.mxu0 %v12617_v59  ;;  %v3388_v53 = vpack.c.bf16 %v3372_v34, %v3370_v33  ;;  %v16705_v59 = vld [vmem:[%s20968_s15 + $0x1] ss:$0 sm:$0xff] }
 0x3af   : > { %10181 = vmatprep.subr.bf16.mxu1 %v12618_v32 }
 0x3b0   : > { %3566 = vmatmul.mubr.bf16.gmra.mrb[4].mxu0 %v16538_v58 }
 0x3b1   : > { %3817 = vmatmul.mubr.bf16.gmra.mrb[4].mxu1 %v16538_v58  ;;  %3573 = vmatprep.mubr.bf16.mxu0 %v16555_v26 }
 0x3b2   : > { %3824 = vmatprep.mubr.bf16.mxu1 %v16555_v26  ;;  %10118 = vmatpush3.bf16.msra.mxu0 %v12619_v3 }
 0x3b3   : > { %10182 = vmatpush3.bf16.msra.mxu1 %v12620_v29  ;;  %10119 = vmatprep.subr.bf16.mxu0 %v12621_v10 }
 0x3b4   : > { %10183 = vmatprep.subr.bf16.mxu1 %v12622_v62 }
 0x3b6   : > { %10120 = vmatpush3.bf16.msra.mxu0 %v12623_v19 }
 0x3b7   : > { %10184 = vmatpush3.bf16.msra.mxu1 %v12624_v5  ;;  %10121 = vmatprep.subr.bf16.mxu0 %v12625_v18 }
 0x3b8   : > { %3574 = vmatmul.mubr.bf16.gmra.mrb[8].mxu0 %v16571_v35  ;;  %10185 = vmatprep.subr.bf16.mxu1 %v12626_v14 }
 0x3b9   : > { %3825 = vmatmul.mubr.bf16.gmra.mrb[8].mxu1 %v16571_v35  ;;  %3581 = vmatprep.mubr.bf16.mxu0 %v16575_v27 }
 0x3ba   : > { %3832 = vmatprep.mubr.bf16.mxu1 %v16575_v27  ;;  %10122 = vmatpush3.bf16.msra.mxu0 %v12627_v0 }
 0x3bb   : > { %10186 = vmatpush3.bf16.msra.mxu1 %v12628_v51  ;;  %10123 = vmatprep.subr.bf16.mxu0 %v12629_v56 }
 0x3bc   : > { %10187 = vmatprep.subr.bf16.mxu1 %v12630_v39 }
 0x3be   : > { %10124 = vmatpush3.bf16.msra.mxu0 %v12631_v38 }
 0x3bf   : > { %10188 = vmatpush3.bf16.msra.mxu1 %v12632_v36  ;;  %10125 = vmatprep.subr.bf16.mxu0 %v12633_v42 }
 0x3c0   : > { %3582 = vmatmul.mubr.bf16.gmra.mrb[12].mxu0 %v16600_v50  ;;  %10189 = vmatprep.subr.bf16.mxu1 %v12634_v12 }
 0x3c1   : > { %3833 = vmatmul.mubr.bf16.gmra.mrb[12].mxu1 %v16600_v50  ;;  %3589 = vmatprep.mubr.bf16.mxu0 %v16605_v15 }
 0x3c2   : > { %3840 = vmatprep.mubr.bf16.mxu1 %v16605_v15  ;;  %10126 = vmatpush3.bf16.msra.mxu0 %v12635_v8 }
 0x3c3   : > { %10190 = vmatpush3.bf16.msra.mxu1 %v12636_v4  ;;  %10127 = vmatprep.subr.bf16.mxu0 %v12637_v61 }
 0x3c4   : > { %10191 = vmatprep.subr.bf16.mxu1 %v12638_v2 }
 0x3c6   : > { %10128 = vmatpush3.bf16.msra.mxu0 %v12639_v20 }
 0x3c7   : > { %10192 = vmatpush3.bf16.msra.mxu1 %v12640_v9 }
 0x3c8   : > { %3590 = vmatmul.mubr.bf16.gmra.mrb[16].mxu0 %v16633_v11 }
 0x3c9   : > { %3841 = vmatmul.mubr.bf16.gmra.mrb[16].mxu1 %v16633_v11  ;;  %3597 = vmatprep.mubr.bf16.mxu0 %v16635_v17 }
 0x3ca   : > { %3848 = vmatprep.mubr.bf16.mxu1 %v16635_v17 }
 0x3d0   : > { %3598 = vmatmul.mubr.bf16.gmra.mrb[20].mxu0 %v3384_v6 }
 0x3d1   : > { %3849 = vmatmul.mubr.bf16.gmra.mrb[20].mxu1 %v3384_v6  ;;  %3605 = vmatprep.mubr.bf16.mxu0 %v3387_v28 }
 0x3d2   : > { %3856 = vmatprep.mubr.bf16.mxu1 %v3387_v28 }
 0x3d8   : > { %3606 = vmatmul.mubr.bf16.gmra.mrb[24].mxu0 %v3386_v40 }
 0x3d9   : > { %3857 = vmatmul.mubr.bf16.gmra.mrb[24].mxu1 %v3386_v40  ;;  %3613 = vmatprep.mubr.bf16.mxu0 %v3389_v1 }
 0x3da   : > { %3864 = vmatprep.mubr.bf16.mxu1 %v3389_v1 }
 0x3e0   : > { %3614 = vmatmul.mubr.bf16.gmra.mrb[28].mxu0 %v3388_v53 }
 0x3e1   : > { %3865 = vmatmul.mubr.bf16.gmra.mrb[28].mxu1 %v3388_v53  ;;  %4059 = vmatprep.mubr.bf16.mxu0 %v16506_v7 }
 0x3e2   : > { %4310 = vmatprep.mubr.bf16.mxu1 %v16506_v7 }
 0x3e8   : > { %4060 = vmatmul.mubr.bf16.vlgmr.msra.gmra.mrb[32].mxu0 %v16509_v48 }
 0x3e9   : > { %4311 = vmatmul.mubr.bf16.vlgmr.msra.gmra.mrb[32].mxu1 %v16509_v48  ;;  %4067 = vmatprep.mubr.bf16.mxu0 %v16529_v60 }
 0x3ea   : > { %4318 = vmatprep.mubr.bf16.mxu1 %v16529_v60 }
 0x3f0   : > { %4068 = vmatmul.mubr.bf16.gmra.mrb[36].mxu0 %v16538_v58 }
 0x3f1   : > { %4319 = vmatmul.mubr.bf16.gmra.mrb[36].mxu1 %v16538_v58  ;;  %4075 = vmatprep.mubr.bf16.mxu0 %v16555_v26 }
 0x3f2   : > { %4326 = vmatprep.mubr.bf16.mxu1 %v16555_v26  ;;  %v16700_v26 = vld [vmem:[%s20968_s15] ss:$0 sm:$0xff] }
 0x3f8   : > { %4076 = vmatmul.mubr.bf16.gmra.mrb[40].mxu0 %v16571_v35 }
 0x3f9   : > { %4327 = vmatmul.mubr.bf16.gmra.mrb[40].mxu1 %v16571_v35  ;;  %4083 = vmatprep.mubr.bf16.mxu0 %v16575_v27 }
 0x3fa   : > { %4334 = vmatprep.mubr.bf16.mxu1 %v16575_v27 }
 0x400   : > { %4084 = vmatmul.mubr.bf16.gmra.mrb[44].mxu0 %v16600_v50 }
 0x401   : > { %4335 = vmatmul.mubr.bf16.gmra.mrb[44].mxu1 %v16600_v50  ;;  %4091 = vmatprep.mubr.bf16.mxu0 %v16605_v15 }
 0x402   : > { %4342 = vmatprep.mubr.bf16.mxu1 %v16605_v15 }
 0x408   : > { %4092 = vmatmul.mubr.bf16.gmra.mrb[48].mxu0 %v16633_v11 }
 0x409   : > { %4343 = vmatmul.mubr.bf16.gmra.mrb[48].mxu1 %v16633_v11  ;;  %4099 = vmatprep.mubr.bf16.mxu0 %v16635_v17 }
 0x40a   : > { %4350 = vmatprep.mubr.bf16.mxu1 %v16635_v17 }
 0x410   : > { %4100 = vmatmul.mubr.bf16.gmra.mrb[52].mxu0 %v3384_v6 }
 0x411   : > { %4351 = vmatmul.mubr.bf16.gmra.mrb[52].mxu1 %v3384_v6  ;;  %4107 = vmatprep.mubr.bf16.mxu0 %v3387_v28 }
 0x412   : > { %4358 = vmatprep.mubr.bf16.mxu1 %v3387_v28 }
 0x418   : > { %4108 = vmatmul.mubr.bf16.gmra.mrb[56].mxu0 %v3386_v40 }
 0x419   : > { %4359 = vmatmul.mubr.bf16.gmra.mrb[56].mxu1 %v3386_v40  ;;  %4115 = vmatprep.mubr.bf16.mxu0 %v3389_v1 }
 0x41a   : > { %4366 = vmatprep.mubr.bf16.mxu1 %v3389_v1 }
 0x420   : > { %4116 = vmatmul.mubr.bf16.gmra.mrb[60].mxu0 %v3388_v53 }
 0x421   : > { %4367 = vmatmul.mubr.bf16.gmra.mrb[60].mxu1 %v3388_v53 }
 0x47b   : > { %v10001_v7 = vpop.f32.mrb[0].mxu0 }
 0x47c   : > { %v10065_v48 = vpop.f32.mrb[0].mxu1  ;;  %v10002_v60 = vpop.f32.mrb[1].mxu0 }
 0x47d   : > { %v10066_v58 = vpop.f32.mrb[1].mxu1  ;;  %v10003_v24 = vadd.f32 %v10002_v60, %v10001_v7  ;;  %v10004_v52 = vpop.f32.mrb[2].mxu0 }
 0x47e   : > { %v10067_v43 = vadd.f32 %v10066_v58, %v10065_v48  ;;  %v10068_v25 = vpop.f32.mrb[2].mxu1  ;;  %v10005_v32 = vpop.f32.mrb[3].mxu0 }
 0x47f   : > { %v10069_v3 = vpop.f32.mrb[3].mxu1  ;;  %v10006_v29 = vadd.f32 %v10005_v32, %v10004_v52  ;;  %v3560_v44 = vadd.f32 %v10003_v24, %v16700_v26 }
 0x480   : > { %v10070_v35 = vadd.f32 %v10069_v3, %v10068_v25  ;;  %v3811_v45 = vadd.f32 %v10067_v43, %v16705_v59 }
 0x481   : > { %v3563_v27 = vadd.f32 %v10006_v29, %v16700_v26 }
 0x482   : > { %v3814_v10 = vadd.f32 %v10070_v35, %v16705_v59 }
 0x483   : > { %v3622_v62 = vpack.c.bf16 %v3563_v27, %v3560_v44  ;;  %v10007_v47 = vpop.f32.mrb[4].mxu0 }
 0x484   : > { %v3873_v19 = vpack.c.bf16 %v3814_v10, %v3811_v45  ;;  %v10071_v23 = vpop.f32.mrb[4].mxu1  ;;  %v10008_v5 = vpop.f32.mrb[5].mxu0 }
 0x485   : > { %v10072_v13 = vpop.f32.mrb[5].mxu1  ;;  %3631 = vst.msk [vmem:[#allocation4] sm:$0xff] %vm3630_vm1, %v3622_v62  ;;  %v10009_v49 = vadd.f32 %v10008_v5, %v10007_v47  ;;  %v10010_v50 = vpop.f32.mrb[6].mxu0 }
 0x486   : > { %3882 = vst.msk [vmem:[#allocation4 + $0x40] sm:$0xff] %vm3630_vm1, %v3873_v19  ;;  %v10073_v18 = vadd.f32 %v10072_v13, %v10071_v23  ;;  %v10074_v14 = vpop.f32.mrb[6].mxu1  ;;  %v10011_v15 = vpop.f32.mrb[7].mxu0 }
 0x487   : > { %v10075_v0 = vpop.f32.mrb[7].mxu1  ;;  %v10012_v51 = vadd.f32 %v10011_v15, %v10010_v50  ;;  %v3568_v54 = vadd.f32 %v10009_v49, %v16700_v26 }
 0x488   : > { %v10076_v21 = vadd.f32 %v10075_v0, %v10074_v14  ;;  %v3819_v37 = vadd.f32 %v10073_v18, %v16705_v59 }
 0x489   : > { %v3571_v55 = vadd.f32 %v10012_v51, %v16700_v26 }
 0x48a   : > { %v3822_v56 = vadd.f32 %v10076_v21, %v16705_v59 }
 0x48b   : > { %v3623_v39 = vpack.c.bf16 %v3571_v55, %v3568_v54  ;;  %v10013_v36 = vpop.f32.mrb[8].mxu0 }
 0x48c   : > { %v3874_v38 = vpack.c.bf16 %v3822_v56, %v3819_v37  ;;  %v10077_v11 = vpop.f32.mrb[8].mxu1  ;;  %v16717_v17 = vld [vmem:[#allocation4] sm:$0xff]  ;;  %v10014_v12 = vpop.f32.mrb[9].mxu0 }
 0x48d   : > { %20969 = vst [vmem:[#allocation45_spill] sm:$0xff] %v16717_v17  ;;  %v16719_v42 = vld [vmem:[#allocation4 + $0x40] sm:$0xff]  ;;  %v10078_v8 = vpop.f32.mrb[9].mxu1  ;;  %3632 = vst.msk [vmem:[#allocation4 + $0x8] sm:$0xff] %vm3630_vm1, %v3623_v39  ;;  %v10015_v57 = vadd.f32 %v10014_v12, %v10013_v36  ;;  %v10016_v4 = vpop.f32.mrb[10].mxu0  ;;  %v17003_v17 = vmov 0.0  }
 0x48e   : > { %20970 = vst [vmem:[#allocation46_spill] sm:$0xff] %v16719_v42  ;;  %3883 = vst.msk [vmem:[#allocation4 + $0x48] sm:$0xff] %vm3630_vm1, %v3874_v38  ;;  %v10079_v16 = vadd.f32 %v10078_v8, %v10077_v11  ;;  %v10080_v41 = vpop.f32.mrb[10].mxu1  ;;  %v10017_v22 = vpop.f32.mrb[11].mxu0  ;;  %v17001_v42 = vmov 0.0  }
 0x48f   : > { %v10081_v61 = vpop.f32.mrb[11].mxu1  ;;  %v10018_v6 = vadd.f32 %v10017_v22, %v10016_v4  ;;  %v3576_v28 = vadd.f32 %v10015_v57, %v16700_v26  ;;  %21025 = vst [vmem:[#allocation101_spill] sm:$0xff] %v17001_v42  ;;  %21026 = vst [vmem:[#allocation102_spill] sm:$0xff] %v17003_v17  ;;  %v17023_v42 = vmov 0.0   ;;  %v17025_v17 = vmov 0.0  }
 0x490   : > { %v10082_v2 = vadd.f32 %v10081_v61, %v10080_v41  ;;  %v3827_v20 = vadd.f32 %v10079_v16, %v16705_v59  ;;  %21036 = vst [vmem:[#allocation112_spill] sm:$0xff] %v17023_v42  ;;  %21037 = vst [vmem:[#allocation113_spill] sm:$0xff] %v17025_v17  ;;  %v17045_v42 = vmov 0.0   ;;  %v17047_v17 = vmov 0.0  }
 0x491   : > { %v3579_v9 = vadd.f32 %v10018_v6, %v16700_v26  ;;  %21047 = vst [vmem:[#allocation123_spill] sm:$0xff] %v17045_v42  ;;  %21048 = vst [vmem:[#allocation124_spill] sm:$0xff] %v17047_v17  ;;  %v17067_v42 = vmov 0.0   ;;  %v17069_v17 = vmov 0.0  }
 0x492   : > { %v3830_v46 = vadd.f32 %v10082_v2, %v16705_v59  ;;  %21058 = vst [vmem:[#allocation134_spill] sm:$0xff] %v17067_v42  ;;  %21059 = vst [vmem:[#allocation135_spill] sm:$0xff] %v17069_v17  ;;  %v17089_v42 = vmov 0.0   ;;  %v17091_v17 = vmov 0.0  }
 0x493   : > { %v3624_v30 = vpack.c.bf16 %v3579_v9, %v3576_v28  ;;  %v10019_v63 = vpop.f32.mrb[12].mxu0  ;;  %21069 = vst [vmem:[#allocation145_spill] sm:$0xff] %v17089_v42  ;;  %21070 = vst [vmem:[#allocation146_spill] sm:$0xff] %v17091_v17  ;;  %v17111_v42 = vmov 0.0   ;;  %v17113_v17 = vmov 0.0  }
 0x494   : > { %v3875_v31 = vpack.c.bf16 %v3830_v46, %v3827_v20  ;;  %v10083_v40 = vpop.f32.mrb[12].mxu1  ;;  %v16727_v1 = vld [vmem:[#allocation4 + $0x8] sm:$0xff]  ;;  %v10020_v34 = vpop.f32.mrb[13].mxu0  ;;  %21080 = vst [vmem:[#allocation156_spill] sm:$0xff] %v17111_v42  ;;  %21081 = vst [vmem:[#allocation157_spill] sm:$0xff] %v17113_v17  ;;  %v17133_v42 = vmov -inf  }
 0x495   : > { %20971 = vst [vmem:[#allocation47_spill] sm:$0xff] %v16727_v1  ;;  %v16729_v33 = vld [vmem:[#allocation4 + $0x48] sm:$0xff]  ;;  %v10084_v53 = vpop.f32.mrb[13].mxu1  ;;  %3633 = vst.msk [vmem:[#allocation4 + $0x10] sm:$0xff] %vm3630_vm1, %v3624_v30  ;;  %v10021_v7 = vadd.f32 %v10020_v34, %v10019_v63  ;;  %v10022_v60 = vpop.f32.mrb[14].mxu0  ;;  %v16999_v1 = vmov 0.0  }
 0x496   : > { %20972 = vst [vmem:[#allocation48_spill] sm:$0xff] %v16729_v33  ;;  %3884 = vst.msk [vmem:[#allocation4 + $0x50] sm:$0xff] %vm3630_vm1, %v3875_v31  ;;  %v10085_v48 = vadd.f32 %v10084_v53, %v10083_v40  ;;  %v10086_v58 = vpop.f32.mrb[14].mxu1  ;;  %v10023_v24 = vpop.f32.mrb[15].mxu0  ;;  %v16997_v33 = vmov 0.0   ;;  %v17135_v17 = vmov -inf  }
 0x497   : > { %v10087_v43 = vpop.f32.mrb[15].mxu1  ;;  %v10024_v52 = vadd.f32 %v10023_v24, %v10022_v60  ;;  %v3584_v32 = vadd.f32 %v10021_v7, %v16700_v26  ;;  %21023 = vst [vmem:[#allocation99_spill] sm:$0xff] %v16997_v33  ;;  %21024 = vst [vmem:[#allocation100_spill] sm:$0xff] %v16999_v1  ;;  %v17019_v33 = vmov 0.0   ;;  %v17021_v1 = vmov 0.0  }
 0x498   : > { %v10088_v25 = vadd.f32 %v10087_v43, %v10086_v58  ;;  %v3835_v3 = vadd.f32 %v10085_v48, %v16705_v59  ;;  %21034 = vst [vmem:[#allocation110_spill] sm:$0xff] %v17019_v33  ;;  %21035 = vst [vmem:[#allocation111_spill] sm:$0xff] %v17021_v1  ;;  %v17041_v33 = vmov 0.0   ;;  %v17043_v1 = vmov 0.0  }
 0x499   : > { %v3587_v29 = vadd.f32 %v10024_v52, %v16700_v26  ;;  %21045 = vst [vmem:[#allocation121_spill] sm:$0xff] %v17041_v33  ;;  %21046 = vst [vmem:[#allocation122_spill] sm:$0xff] %v17043_v1  ;;  %v17063_v33 = vmov 0.0   ;;  %v17065_v1 = vmov 0.0  }
 0x49a   : > { %v3838_v35 = vadd.f32 %v10088_v25, %v16705_v59  ;;  %21056 = vst [vmem:[#allocation132_spill] sm:$0xff] %v17063_v33  ;;  %21057 = vst [vmem:[#allocation133_spill] sm:$0xff] %v17065_v1  ;;  %v17085_v33 = vmov 0.0   ;;  %v17087_v1 = vmov 0.0  }
 0x49b   : > { %v3625_v44 = vpack.c.bf16 %v3587_v29, %v3584_v32  ;;  %v10025_v27 = vpop.f32.mrb[16].mxu0  ;;  %21067 = vst [vmem:[#allocation143_spill] sm:$0xff] %v17085_v33  ;;  %21068 = vst [vmem:[#allocation144_spill] sm:$0xff] %v17087_v1  ;;  %v17107_v33 = vmov 0.0   ;;  %v17109_v1 = vmov 0.0  }
 0x49c   : > { %v3876_v45 = vpack.c.bf16 %v3838_v35, %v3835_v3  ;;  %v10089_v10 = vpop.f32.mrb[16].mxu1  ;;  %v16737_v62 = vld [vmem:[#allocation4 + $0x10] sm:$0xff]  ;;  %v10026_v47 = vpop.f32.mrb[17].mxu0  ;;  %21078 = vst [vmem:[#allocation154_spill] sm:$0xff] %v17107_v33  ;;  %21079 = vst [vmem:[#allocation155_spill] sm:$0xff] %v17109_v1  ;;  %v17129_v33 = vmov 0.0  }
 0x49d   : > { %20973 = vst [vmem:[#allocation49_spill] sm:$0xff] %v16737_v62  ;;  %v16739_v19 = vld [vmem:[#allocation4 + $0x50] sm:$0xff]  ;;  %v10090_v23 = vpop.f32.mrb[17].mxu1  ;;  %3634 = vst.msk [vmem:[#allocation4 + $0x18] sm:$0xff] %vm3630_vm1, %v3625_v44  ;;  %v10027_v5 = vadd.f32 %v10026_v47, %v10025_v27  ;;  %v10028_v49 = vpop.f32.mrb[18].mxu0  ;;  %v16995_v62 = vmov 0.0  }
 0x49e   : > { %20974 = vst [vmem:[#allocation50_spill] sm:$0xff] %v16739_v19  ;;  %3885 = vst.msk [vmem:[#allocation4 + $0x58] sm:$0xff] %vm3630_vm1, %v3876_v45  ;;  %v10091_v13 = vadd.f32 %v10090_v23, %v10089_v10  ;;  %v10092_v18 = vpop.f32.mrb[18].mxu1  ;;  %v10029_v50 = vpop.f32.mrb[19].mxu0  ;;  %v16993_v19 = vmov 0.0   ;;  %v17131_v1 = vmov 0.0  }
 0x49f   : > { %v10093_v14 = vpop.f32.mrb[19].mxu1  ;;  %v10030_v15 = vadd.f32 %v10029_v50, %v10028_v49  ;;  %v3592_v51 = vadd.f32 %v10027_v5, %v16700_v26  ;;  %21021 = vst [vmem:[#allocation97_spill] sm:$0xff] %v16993_v19  ;;  %21022 = vst [vmem:[#allocation98_spill] sm:$0xff] %v16995_v62  ;;  %v17015_v19 = vmov 0.0   ;;  %v17017_v62 = vmov 0.0  }
 0x4a0   : > { %v10094_v0 = vadd.f32 %v10093_v14, %v10092_v18  ;;  %v3843_v21 = vadd.f32 %v10091_v13, %v16705_v59  ;;  %21032 = vst [vmem:[#allocation108_spill] sm:$0xff] %v17015_v19  ;;  %21033 = vst [vmem:[#allocation109_spill] sm:$0xff] %v17017_v62  ;;  %v17037_v19 = vmov 0.0   ;;  %v17039_v62 = vmov 0.0  }
 0x4a1   : > { %v3595_v54 = vadd.f32 %v10030_v15, %v16700_v26  ;;  %21043 = vst [vmem:[#allocation119_spill] sm:$0xff] %v17037_v19  ;;  %21044 = vst [vmem:[#allocation120_spill] sm:$0xff] %v17039_v62  ;;  %v17059_v19 = vmov 0.0   ;;  %v17061_v62 = vmov 0.0  }
 0x4a2   : > { %v3846_v37 = vadd.f32 %v10094_v0, %v16705_v59  ;;  %21054 = vst [vmem:[#allocation130_spill] sm:$0xff] %v17059_v19  ;;  %21055 = vst [vmem:[#allocation131_spill] sm:$0xff] %v17061_v62  ;;  %v17081_v19 = vmov 0.0   ;;  %v17083_v62 = vmov 0.0  }
 0x4a3   : > { %v3626_v55 = vpack.c.bf16 %v3595_v54, %v3592_v51  ;;  %v10031_v39 = vpop.f32.mrb[20].mxu0  ;;  %21065 = vst [vmem:[#allocation141_spill] sm:$0xff] %v17081_v19  ;;  %21066 = vst [vmem:[#allocation142_spill] sm:$0xff] %v17083_v62  ;;  %v17103_v19 = vmov 0.0   ;;  %v17105_v62 = vmov 0.0  }
 0x4a4   : > { %v3877_v56 = vpack.c.bf16 %v3846_v37, %v3843_v21  ;;  %v10095_v38 = vpop.f32.mrb[20].mxu1  ;;  %v16747_v36 = vld [vmem:[#allocation4 + $0x18] sm:$0xff]  ;;  %v10032_v12 = vpop.f32.mrb[21].mxu0  ;;  %21076 = vst [vmem:[#allocation152_spill] sm:$0xff] %v17103_v19  ;;  %21077 = vst [vmem:[#allocation153_spill] sm:$0xff] %v17105_v62  ;;  %v17125_v19 = vmov 0.0  }
 0x4a5   : > { %20975 = vst [vmem:[#allocation51_spill] sm:$0xff] %v16747_v36  ;;  %v16749_v11 = vld [vmem:[#allocation4 + $0x58] sm:$0xff]  ;;  %v10096_v8 = vpop.f32.mrb[21].mxu1  ;;  %3635 = vst.msk [vmem:[#allocation4 + $0x20] sm:$0xff] %vm3630_vm1, %v3626_v55  ;;  %v10033_v57 = vadd.f32 %v10032_v12, %v10031_v39  ;;  %v10034_v4 = vpop.f32.mrb[22].mxu0  ;;  %v16991_v36 = vmov 0.0  }
 0x4a6   : > { %20976 = vst [vmem:[#allocation52_spill] sm:$0xff] %v16749_v11  ;;  %3886 = vst.msk [vmem:[#allocation4 + $0x60] sm:$0xff] %vm3630_vm1, %v3877_v56  ;;  %v10097_v16 = vadd.f32 %v10096_v8, %v10095_v38  ;;  %v10098_v41 = vpop.f32.mrb[22].mxu1  ;;  %v10035_v22 = vpop.f32.mrb[23].mxu0  ;;  %v16989_v11 = vmov 0.0   ;;  %v17127_v62 = vmov 0.0  }
 0x4a7   : > { %v10099_v61 = vpop.f32.mrb[23].mxu1  ;;  %v10036_v6 = vadd.f32 %v10035_v22, %v10034_v4  ;;  %v3600_v28 = vadd.f32 %v10033_v57, %v16700_v26  ;;  %21019 = vst [vmem:[#allocation95_spill] sm:$0xff] %v16989_v11  ;;  %21020 = vst [vmem:[#allocation96_spill] sm:$0xff] %v16991_v36  ;;  %v17011_v11 = vmov 0.0   ;;  %v17013_v36 = vmov 0.0  }
 0x4a8   : > { %v10100_v2 = vadd.f32 %v10099_v61, %v10098_v41  ;;  %v3851_v20 = vadd.f32 %v10097_v16, %v16705_v59  ;;  %21030 = vst [vmem:[#allocation106_spill] sm:$0xff] %v17011_v11  ;;  %21031 = vst [vmem:[#allocation107_spill] sm:$0xff] %v17013_v36  ;;  %v17033_v11 = vmov 0.0   ;;  %v17035_v36 = vmov 0.0  }
 0x4a9   : > { %v3603_v9 = vadd.f32 %v10036_v6, %v16700_v26  ;;  %21041 = vst [vmem:[#allocation117_spill] sm:$0xff] %v17033_v11  ;;  %21042 = vst [vmem:[#allocation118_spill] sm:$0xff] %v17035_v36  ;;  %v17055_v11 = vmov 0.0   ;;  %v17057_v36 = vmov 0.0  }
 0x4aa   : > { %v3854_v46 = vadd.f32 %v10100_v2, %v16705_v59  ;;  %21052 = vst [vmem:[#allocation128_spill] sm:$0xff] %v17055_v11  ;;  %21053 = vst [vmem:[#allocation129_spill] sm:$0xff] %v17057_v36  ;;  %v17077_v11 = vmov 0.0   ;;  %v17079_v36 = vmov 0.0  }
 0x4ab   : > { %v3627_v30 = vpack.c.bf16 %v3603_v9, %v3600_v28  ;;  %v10037_v63 = vpop.f32.mrb[24].mxu0  ;;  %21063 = vst [vmem:[#allocation139_spill] sm:$0xff] %v17077_v11  ;;  %21064 = vst [vmem:[#allocation140_spill] sm:$0xff] %v17079_v36  ;;  %v17099_v11 = vmov 0.0   ;;  %v17101_v36 = vmov 0.0  }
 0x4ac   : > { %v3878_v31 = vpack.c.bf16 %v3854_v46, %v3851_v20  ;;  %v10101_v40 = vpop.f32.mrb[24].mxu1  ;;  %v16757_v34 = vld [vmem:[#allocation4 + $0x20] sm:$0xff]  ;;  %v10038_v7 = vpop.f32.mrb[25].mxu0  ;;  %21074 = vst [vmem:[#allocation150_spill] sm:$0xff] %v17099_v11  ;;  %21075 = vst [vmem:[#allocation151_spill] sm:$0xff] %v17101_v36  ;;  %v17121_v11 = vmov 0.0  }
 0x4ad   : > { %20977 = vst [vmem:[#allocation53_spill] sm:$0xff] %v16757_v34  ;;  %v16759_v53 = vld [vmem:[#allocation4 + $0x60] sm:$0xff]  ;;  %v10102_v48 = vpop.f32.mrb[25].mxu1  ;;  %3636 = vst.msk [vmem:[#allocation4 + $0x28] sm:$0xff] %vm3630_vm1, %v3627_v30  ;;  %v10039_v60 = vadd.f32 %v10038_v7, %v10037_v63  ;;  %v10040_v24 = vpop.f32.mrb[26].mxu0  ;;  %v16987_v34 = vmov 0.0  }
 0x4ae   : > { %20978 = vst [vmem:[#allocation54_spill] sm:$0xff] %v16759_v53  ;;  %3887 = vst.msk [vmem:[#allocation4 + $0x68] sm:$0xff] %vm3630_vm1, %v3878_v31  ;;  %v10103_v58 = vadd.f32 %v10102_v48, %v10101_v40  ;;  %v10104_v43 = vpop.f32.mrb[26].mxu1  ;;  %v10041_v52 = vpop.f32.mrb[27].mxu0  ;;  %v16791_v20 = vld [vmem:[%s20968_s15 + $0x3] ss:$0 sm:$0xff] }
 0x4af   : > { %v10105_v25 = vpop.f32.mrb[27].mxu1  ;;  %v10042_v32 = vadd.f32 %v10041_v52, %v10040_v24  ;;  %v3608_v29 = vadd.f32 %v10039_v60, %v16700_v26  ;;  %v16985_v53 = vmov 0.0   ;;  %21018 = vst [vmem:[#allocation94_spill] sm:$0xff] %v16987_v34  ;;  %v17009_v34 = vmov 0.0   ;;  %21085 = vst [vmem:[#allocation161_spill] sm:$0xff] %v17121_v11 }
 0x4b0   : > { %v10106_v3 = vadd.f32 %v10105_v25, %v10104_v43  ;;  %v3859_v35 = vadd.f32 %v10103_v58, %v16705_v59  ;;  %21017 = vst [vmem:[#allocation93_spill] sm:$0xff] %v16985_v53  ;;  %v17007_v53 = vmov 0.0   ;;  %21029 = vst [vmem:[#allocation105_spill] sm:$0xff] %v17009_v34  ;;  %v17031_v34 = vmov 0.0  }
 0x4b1   : > { %v3611_v44 = vadd.f32 %v10042_v32, %v16700_v26  ;;  %21028 = vst [vmem:[#allocation104_spill] sm:$0xff] %v17007_v53  ;;  %v17029_v53 = vmov 0.0   ;;  %21040 = vst [vmem:[#allocation116_spill] sm:$0xff] %v17031_v34  ;;  %v17053_v34 = vmov 0.0   ;;  %v17123_v36 = vmov 0.0  }
 0x4b2   : > { %v3862_v45 = vadd.f32 %v10106_v3, %v16705_v59  ;;  %21039 = vst [vmem:[#allocation115_spill] sm:$0xff] %v17029_v53  ;;  %v17051_v53 = vmov 0.0   ;;  %21051 = vst [vmem:[#allocation127_spill] sm:$0xff] %v17053_v34  ;;  %v17075_v34 = vmov 0.0   ;;  %v17143_v11 = vmov -inf  }
 0x4b3   : > { %v3628_v27 = vpack.c.bf16 %v3611_v44, %v3608_v29  ;;  %v10043_v47 = vpop.f32.mrb[28].mxu0  ;;  %21050 = vst [vmem:[#allocation126_spill] sm:$0xff] %v17051_v53  ;;  %v17073_v53 = vmov 0.0   ;;  %21062 = vst [vmem:[#allocation138_spill] sm:$0xff] %v17075_v34  ;;  %v17097_v34 = vmov 0.0  }
 0x4b4   : > { %v3879_v10 = vpack.c.bf16 %v3862_v45, %v3859_v35  ;;  %v10107_v23 = vpop.f32.mrb[28].mxu1  ;;  %v16767_v5 = vld [vmem:[#allocation4 + $0x28] sm:$0xff]  ;;  %v10044_v49 = vpop.f32.mrb[29].mxu0  ;;  %21061 = vst [vmem:[#allocation137_spill] sm:$0xff] %v17073_v53  ;;  %v17095_v53 = vmov 0.0   ;;  %21073 = vst [vmem:[#allocation149_spill] sm:$0xff] %v17097_v34 }
 0x4b5   : > { %20979 = vst [vmem:[#allocation55_spill] sm:$0xff] %v16767_v5  ;;  %v16769_v13 = vld [vmem:[#allocation4 + $0x68] sm:$0xff]  ;;  %v10108_v18 = vpop.f32.mrb[29].mxu1  ;;  %3637 = vst.msk [vmem:[#allocation4 + $0x30] sm:$0xff] %vm3630_vm1, %v3628_v27  ;;  %v10045_v50 = vadd.f32 %v10044_v49, %v10043_v47  ;;  %v10046_v15 = vpop.f32.mrb[30].mxu0  ;;  %v16983_v5 = vmov 0.0  }
 0x4b6   : > { %20980 = vst [vmem:[#allocation56_spill] sm:$0xff] %v16769_v13  ;;  %3888 = vst.msk [vmem:[#allocation4 + $0x70] sm:$0xff] %vm3630_vm1, %v3879_v10  ;;  %v10109_v14 = vadd.f32 %v10108_v18, %v10107_v23  ;;  %v10110_v0 = vpop.f32.mrb[30].mxu1  ;;  %v10047_v51 = vpop.f32.mrb[31].mxu0  ;;  %v16981_v13 = vmov 0.0   ;;  %v17119_v34 = vmov 0.0  }
 0x4b7   : > { %v10111_v21 = vpop.f32.mrb[31].mxu1  ;;  %v10048_v54 = vadd.f32 %v10047_v51, %v10046_v15  ;;  %v3616_v55 = vadd.f32 %v10045_v50, %v16700_v26  ;;  %21016 = vst [vmem:[#allocation92_spill] sm:$0xff] %v16983_v5  ;;  %v17005_v5 = vmov 0.0   ;;  %21072 = vst [vmem:[#allocation148_spill] sm:$0xff] %v17095_v53  ;;  %v17117_v53 = vmov 0.0  }
 0x4b8   : > { %v10112_v37 = vadd.f32 %v10111_v21, %v10110_v0  ;;  %v3867_v56 = vadd.f32 %v10109_v14, %v16705_v59  ;;  %21027 = vst [vmem:[#allocation103_spill] sm:$0xff] %v17005_v5  ;;  %v17027_v5 = vmov 0.0   ;;  %21083 = vst [vmem:[#allocation159_spill] sm:$0xff] %v17117_v53  ;;  %v17139_v53 = vmov -inf  }
 0x4b9   : > { %v3619_v39 = vadd.f32 %v10048_v54, %v16700_v26  ;;  %21038 = vst [vmem:[#allocation114_spill] sm:$0xff] %v17027_v5  ;;  %v17049_v5 = vmov 0.0   ;;  %21084 = vst [vmem:[#allocation160_spill] sm:$0xff] %v17119_v34  ;;  %v17141_v34 = vmov -inf  }
 0x4ba   : > { %v3870_v38 = vadd.f32 %v10112_v37, %v16705_v59  ;;  %v16786_v59 = vld [vmem:[%s20968_s15 + $0x2] ss:$0 sm:$0xff]  ;;  %21049 = vst [vmem:[#allocation125_spill] sm:$0xff] %v17049_v5  ;;  %v17071_v5 = vmov 0.0   ;;  %21086 = vst [vmem:[#allocation162_spill] sm:$0xff] %v17123_v36  ;;  %v17145_v36 = vmov -inf  }
 0x4bb   : > { %v3629_v12 = vpack.c.bf16 %v3619_v39, %v3616_v55  ;;  %v10129_v57 = vpop.f32.mrb[32].mxu0  ;;  %21060 = vst [vmem:[#allocation136_spill] sm:$0xff] %v17071_v5  ;;  %v17093_v5 = vmov 0.0   ;;  %21087 = vst [vmem:[#allocation163_spill] sm:$0xff] %v17125_v19  ;;  %v17147_v19 = vmov -inf  }
 0x4bc   : > { %v3880_v8 = vpack.c.bf16 %v3870_v38, %v3867_v56  ;;  %v10193_v16 = vpop.f32.mrb[32].mxu1  ;;  %v16777_v4 = vld [vmem:[#allocation4 + $0x30] sm:$0xff]  ;;  %v10130_v22 = vpop.f32.mrb[33].mxu0  ;;  %21071 = vst [vmem:[#allocation147_spill] sm:$0xff] %v17093_v5  ;;  %v17115_v5 = vmov 0.0   ;;  %21088 = vst [vmem:[#allocation164_spill] sm:$0xff] %v17127_v62 }
 0x4bd   : > { %20981 = vst [vmem:[#allocation57_spill] sm:$0xff] %v16777_v4  ;;  %v16779_v41 = vld [vmem:[#allocation4 + $0x70] sm:$0xff]  ;;  %v10194_v61 = vpop.f32.mrb[33].mxu1  ;;  %3638 = vst.msk [vmem:[#allocation4 + $0x38] sm:$0xff] %vm3630_vm1, %v3629_v12  ;;  %v10131_v6 = vadd.f32 %v10130_v22, %v10129_v57  ;;  %v10132_v28 = vpop.f32.mrb[34].mxu0  ;;  %v16979_v4 = vmov 0.0  }
 0x4be   : > { %20982 = vst [vmem:[#allocation58_spill] sm:$0xff] %v16779_v41  ;;  %3889 = vst.msk [vmem:[#allocation4 + $0x78] sm:$0xff] %vm3630_vm1, %v3880_v8  ;;  %v10195_v2 = vadd.f32 %v10194_v61, %v10193_v16  ;;  %v10196_v26 = vpop.f32.mrb[34].mxu1  ;;  %v10133_v9 = vpop.f32.mrb[35].mxu0  ;;  %v16977_v41 = vmov 0.0   ;;  %v17149_v62 = vmov -inf  }
 0x4bf   : > { %v10197_v46 = vpop.f32.mrb[35].mxu1  ;;  %v10134_v30 = vadd.f32 %v10133_v9, %v10132_v28  ;;  %v4062_v63 = vadd.f32 %v10131_v6, %v16786_v59  ;;  %21014 = vst [vmem:[#allocation90_spill] sm:$0xff] %v16977_v41  ;;  %21015 = vst [vmem:[#allocation91_spill] sm:$0xff] %v16979_v4 }
 0x4c0   : > { %v10198_v31 = vadd.f32 %v10197_v46, %v10196_v26  ;;  %v4313_v40 = vadd.f32 %v10195_v2, %v16791_v20  ;;  %21082 = vst [vmem:[#allocation158_spill] sm:$0xff] %v17115_v5  ;;  %21089 = vst [vmem:[#allocation165_spill] sm:$0xff] %v17129_v33  ;;  %v17137_v5 = vmov -inf   ;;  %v17151_v33 = vmov -inf  }
 0x4c1   : > { %v4065_v7 = vadd.f32 %v10134_v30, %v16786_v59  ;;  %21090 = vst [vmem:[#allocation166_spill] sm:$0xff] %v17131_v1  ;;  %21091 = vst [vmem:[#allocation167_spill] sm:$0xff] %v17133_v42  ;;  %v17153_v1 = vmov -inf   ;;  %v17155_v42 = vmov -inf  }
 0x4c2   : > { %v4316_v48 = vadd.f32 %v10198_v31, %v16791_v20  ;;  %21092 = vst [vmem:[#allocation168_spill] sm:$0xff] %v17135_v17  ;;  %21093 = vst [vmem:[#allocation169_spill] sm:$0xff] %v17137_v5  ;;  %v17157_v17 = vmov -inf   ;;  %v17159_v5 = vmov -inf  }
 0x4c3   : > { %v4124_v60 = vpack.c.bf16 %v4065_v7, %v4062_v63  ;;  %v10135_v24 = vpop.f32.mrb[36].mxu0  ;;  %21094 = vst [vmem:[#allocation170_spill] sm:$0xff] %v17139_v53  ;;  %21095 = vst [vmem:[#allocation171_spill] sm:$0xff] %v17141_v34  ;;  %v17161_v53 = vmov -inf   ;;  %v17163_v34 = vmov -inf  }
 0x4c4   : > { %v4375_v58 = vpack.c.bf16 %v4316_v48, %v4313_v40  ;;  %v10199_v43 = vpop.f32.mrb[36].mxu1  ;;  %v16797_v52 = vld [vmem:[#allocation4 + $0x38] sm:$0xff]  ;;  %v10136_v32 = vpop.f32.mrb[37].mxu0  ;;  %21096 = vst [vmem:[#allocation172_spill] sm:$0xff] %v17143_v11  ;;  %21097 = vst [vmem:[#allocation173_spill] sm:$0xff] %v17145_v36  ;;  %v17165_v11 = vmov -inf  }
 0x4c5   : > { %20983 = vst [vmem:[#allocation59_spill] sm:$0xff] %v16797_v52  ;;  %v16799_v25 = vld [vmem:[#allocation4 + $0x78] sm:$0xff]  ;;  %v10200_v3 = vpop.f32.mrb[37].mxu1  ;;  %4133 = vst.msk [vmem:[#allocation4 + $0x80] sm:$0xff] %vm3630_vm1, %v4124_v60  ;;  %v10137_v29 = vadd.f32 %v10136_v32, %v10135_v24  ;;  %v10138_v44 = vpop.f32.mrb[38].mxu0  ;;  %v16975_v52 = vmov 0.0  }
 0x4c6   : > { %20984 = vst [vmem:[#allocation60_spill] sm:$0xff] %v16799_v25  ;;  %4384 = vst.msk [vmem:[#allocation4 + $0xc0] sm:$0xff] %vm3630_vm1, %v4375_v58  ;;  %v10201_v35 = vadd.f32 %v10200_v3, %v10199_v43  ;;  %v10202_v45 = vpop.f32.mrb[38].mxu1  ;;  %v10139_v27 = vpop.f32.mrb[39].mxu0  ;;  %v16973_v25 = vmov 0.0   ;;  %v17167_v36 = vmov -inf  }
 0x4c7   : > { %v10203_v10 = vpop.f32.mrb[39].mxu1  ;;  %v10140_v47 = vadd.f32 %v10139_v27, %v10138_v44  ;;  %v4070_v49 = vadd.f32 %v10137_v29, %v16786_v59  ;;  %21013 = vst [vmem:[#allocation89_spill] sm:$0xff] %v16975_v52  ;;  %21098 = vst [vmem:[#allocation174_spill] sm:$0xff] %v17147_v19  ;;  %v17169_v19 = vmov -inf  }
 0x4c8   : > { %v10204_v23 = vadd.f32 %v10203_v10, %v10202_v45  ;;  %v4321_v18 = vadd.f32 %v10201_v35, %v16791_v20  ;;  %21099 = vst [vmem:[#allocation175_spill] sm:$0xff] %v17149_v62  ;;  %21100 = vst [vmem:[#allocation176_spill] sm:$0xff] %v17151_v33  ;;  %v17171_v62 = vmov -inf   ;;  %v17173_v33 = vmov -inf  }
 0x4c9   : > { %v4073_v50 = vadd.f32 %v10140_v47, %v16786_v59  ;;  %21101 = vst [vmem:[#allocation177_spill] sm:$0xff] %v17153_v1  ;;  %21102 = vst [vmem:[#allocation178_spill] sm:$0xff] %v17155_v42  ;;  %v17175_v1 = vmov -inf   ;;  %v17177_v42 = vmov -inf  }
 0x4ca   : > { %v4324_v14 = vadd.f32 %v10204_v23, %v16791_v20  ;;  %21103 = vst [vmem:[#allocation179_spill] sm:$0xff] %v17157_v17  ;;  %21104 = vst [vmem:[#allocation180_spill] sm:$0xff] %v17159_v5  ;;  %v17179_v17 = vmov -inf   ;;  %v17181_v5 = vmov -inf  }
 0x4cb   : > { %v4125_v15 = vpack.c.bf16 %v4073_v50, %v4070_v49  ;;  %v10141_v51 = vpop.f32.mrb[40].mxu0  ;;  %21105 = vst [vmem:[#allocation181_spill] sm:$0xff] %v17161_v53  ;;  %21106 = vst [vmem:[#allocation182_spill] sm:$0xff] %v17163_v34  ;;  %v17183_v53 = vmov -inf   ;;  %v17185_v34 = vmov -inf  }
 0x4cc   : > { %v4376_v0 = vpack.c.bf16 %v4324_v14, %v4321_v18  ;;  %v10205_v21 = vpop.f32.mrb[40].mxu1  ;;  %v16807_v54 = vld [vmem:[#allocation4 + $0x80] sm:$0xff]  ;;  %v10142_v55 = vpop.f32.mrb[41].mxu0  ;;  %21107 = vst [vmem:[#allocation183_spill] sm:$0xff] %v17165_v11  ;;  %21108 = vst [vmem:[#allocation184_spill] sm:$0xff] %v17167_v36  ;;  %v17187_v11 = vmov -inf  }
 0x4cd   : > { %20985 = vst [vmem:[#allocation61_spill] sm:$0xff] %v16807_v54  ;;  %v16809_v37 = vld [vmem:[#allocation4 + $0xc0] sm:$0xff]  ;;  %v10206_v56 = vpop.f32.mrb[41].mxu1  ;;  %4134 = vst.msk [vmem:[#allocation4 + $0x88] sm:$0xff] %vm3630_vm1, %v4125_v15  ;;  %v10143_v39 = vadd.f32 %v10142_v55, %v10141_v51  ;;  %v10144_v12 = vpop.f32.mrb[42].mxu0  ;;  %v16971_v54 = vmov 0.0  }
 0x4ce   : > { %20986 = vst [vmem:[#allocation62_spill] sm:$0xff] %v16809_v37  ;;  %4385 = vst.msk [vmem:[#allocation4 + $0xc8] sm:$0xff] %vm3630_vm1, %v4376_v0  ;;  %v10207_v38 = vadd.f32 %v10206_v56, %v10205_v21  ;;  %v10208_v8 = vpop.f32.mrb[42].mxu1  ;;  %v10145_v57 = vpop.f32.mrb[43].mxu0  ;;  %v16969_v37 = vmov 0.0   ;;  %v17189_v36 = vmov -inf  }
 0x4cf   : > { %v10209_v16 = vpop.f32.mrb[43].mxu1  ;;  %v10146_v22 = vadd.f32 %v10145_v57, %v10144_v12  ;;  %v4078_v6 = vadd.f32 %v10143_v39, %v16786_v59  ;;  %21012 = vst [vmem:[#allocation88_spill] sm:$0xff] %v16971_v54  ;;  %21109 = vst [vmem:[#allocation185_spill] sm:$0xff] %v17169_v19  ;;  %v17191_v19 = vmov -inf  }
 0x4d0   : > { %v10210_v61 = vadd.f32 %v10209_v16, %v10208_v8  ;;  %v4329_v2 = vadd.f32 %v10207_v38, %v16791_v20  ;;  %21110 = vst [vmem:[#allocation186_spill] sm:$0xff] %v17171_v62  ;;  %21111 = vst [vmem:[#allocation187_spill] sm:$0xff] %v17173_v33  ;;  %v17193_v62 = vmov -inf   ;;  %v17195_v33 = vmov -inf  }
 0x4d1   : > { %v4081_v28 = vadd.f32 %v10146_v22, %v16786_v59  ;;  %21112 = vst [vmem:[#allocation188_spill] sm:$0xff] %v17175_v1  ;;  %21113 = vst [vmem:[#allocation189_spill] sm:$0xff] %v17177_v42  ;;  %v17197_v1 = vmov -inf   ;;  %v17199_v42 = vmov -inf  }
 0x4d2   : > { %v4332_v26 = vadd.f32 %v10210_v61, %v16791_v20  ;;  %21114 = vst [vmem:[#allocation190_spill] sm:$0xff] %v17179_v17  ;;  %21115 = vst [vmem:[#allocation191_spill] sm:$0xff] %v17181_v5  ;;  %v17201_v17 = vmov -inf   ;;  %v17203_v5 = vmov -inf  }
 0x4d3   : > { %v4126_v9 = vpack.c.bf16 %v4081_v28, %v4078_v6  ;;  %v10147_v30 = vpop.f32.mrb[44].mxu0  ;;  %21116 = vst [vmem:[#allocation192_spill] sm:$0xff] %v17183_v53  ;;  %21117 = vst [vmem:[#allocation193_spill] sm:$0xff] %v17185_v34  ;;  %v17205_v53 = vmov -inf   ;;  %v17207_v34 = vmov -inf  }
 0x4d4   : > { %v4377_v46 = vpack.c.bf16 %v4332_v26, %v4329_v2  ;;  %v10211_v31 = vpop.f32.mrb[44].mxu1  ;;  %v16817_v63 = vld [vmem:[#allocation4 + $0x88] sm:$0xff]  ;;  %v10148_v7 = vpop.f32.mrb[45].mxu0  ;;  %21118 = vst [vmem:[#allocation194_spill] sm:$0xff] %v17187_v11  ;;  %21119 = vst [vmem:[#allocation195_spill] sm:$0xff] %v17189_v36  ;;  %v17209_v11 = vmov -inf  }
 0x4d5   : > { %20987 = vst [vmem:[#allocation63_spill] sm:$0xff] %v16817_v63  ;;  %v16819_v40 = vld [vmem:[#allocation4 + $0xc8] sm:$0xff]  ;;  %v10212_v48 = vpop.f32.mrb[45].mxu1  ;;  %4135 = vst.msk [vmem:[#allocation4 + $0x90] sm:$0xff] %vm3630_vm1, %v4126_v9  ;;  %v10149_v60 = vadd.f32 %v10148_v7, %v10147_v30  ;;  %v10150_v24 = vpop.f32.mrb[46].mxu0  ;;  %v16967_v63 = vmov 0.0  }
 0x4d6   : > { %20988 = vst [vmem:[#allocation64_spill] sm:$0xff] %v16819_v40  ;;  %4386 = vst.msk [vmem:[#allocation4 + $0xd0] sm:$0xff] %vm3630_vm1, %v4377_v46  ;;  %v10213_v58 = vadd.f32 %v10212_v48, %v10211_v31  ;;  %v10214_v43 = vpop.f32.mrb[46].mxu1  ;;  %v10151_v32 = vpop.f32.mrb[47].mxu0  ;;  %v16965_v40 = vmov 0.0   ;;  %v17211_v36 = vmov -inf  }
 0x4d7   : > { %v10215_v3 = vpop.f32.mrb[47].mxu1  ;;  %v10152_v29 = vadd.f32 %v10151_v32, %v10150_v24  ;;  %v4086_v44 = vadd.f32 %v10149_v60, %v16786_v59  ;;  %21010 = vst [vmem:[#allocation86_spill] sm:$0xff] %v16965_v40  ;;  %21011 = vst [vmem:[#allocation87_spill] sm:$0xff] %v16967_v63 }
 0x4d8   : > { %v10216_v35 = vadd.f32 %v10215_v3, %v10214_v43  ;;  %v4337_v45 = vadd.f32 %v10213_v58, %v16791_v20  ;;  %21120 = vst [vmem:[#allocation196_spill] sm:$0xff] %v17191_v19  ;;  %21121 = vst [vmem:[#allocation197_spill] sm:$0xff] %v17193_v62  ;;  %v17213_v19 = vmov -inf   ;;  %v17215_v62 = vmov -inf  }
 0x4d9   : > { %v4089_v27 = vadd.f32 %v10152_v29, %v16786_v59  ;;  %21122 = vst [vmem:[#allocation198_spill] sm:$0xff] %v17195_v33  ;;  %21123 = vst [vmem:[#allocation199_spill] sm:$0xff] %v17197_v1  ;;  %v17217_v33 = vmov -inf   ;;  %v17219_v1 = vmov -inf  }
 0x4da   : > { %v4340_v10 = vadd.f32 %v10216_v35, %v16791_v20  ;;  %21124 = vst [vmem:[#allocation200_spill] sm:$0xff] %v17199_v42  ;;  %21125 = vst [vmem:[#allocation201_spill] sm:$0xff] %v17201_v17  ;;  %v17221_v42 = vmov -inf   ;;  %v17223_v17 = vmov -inf  }
 0x4db   : > { %v4127_v47 = vpack.c.bf16 %v4089_v27, %v4086_v44  ;;  %v10153_v49 = vpop.f32.mrb[48].mxu0  ;;  %21126 = vst [vmem:[#allocation202_spill] sm:$0xff] %v17203_v5  ;;  %21127 = vst [vmem:[#allocation203_spill] sm:$0xff] %v17205_v53  ;;  %v17225_v5 = vmov -inf   ;;  %v17227_v53 = vmov -inf  }
 0x4dc   : > { %v4378_v23 = vpack.c.bf16 %v4340_v10, %v4337_v45  ;;  %v10217_v18 = vpop.f32.mrb[48].mxu1  ;;  %v16827_v50 = vld [vmem:[#allocation4 + $0x90] sm:$0xff]  ;;  %v10154_v15 = vpop.f32.mrb[49].mxu0  ;;  %21128 = vst [vmem:[#allocation204_spill] sm:$0xff] %v17207_v34  ;;  %21129 = vst [vmem:[#allocation205_spill] sm:$0xff] %v17209_v11  ;;  %v17229_v34 = vmov -inf  }
 0x4dd   : > { %20989 = vst [vmem:[#allocation65_spill] sm:$0xff] %v16827_v50  ;;  %v16829_v14 = vld [vmem:[#allocation4 + $0xd0] sm:$0xff]  ;;  %v10218_v0 = vpop.f32.mrb[49].mxu1  ;;  %4136 = vst.msk [vmem:[#allocation4 + $0x98] sm:$0xff] %vm3630_vm1, %v4127_v47  ;;  %v10155_v51 = vadd.f32 %v10154_v15, %v10153_v49  ;;  %v10156_v55 = vpop.f32.mrb[50].mxu0  ;;  %v16963_v50 = vmov 0.0  }
 0x4de   : > { %20990 = vst [vmem:[#allocation66_spill] sm:$0xff] %v16829_v14  ;;  %4387 = vst.msk [vmem:[#allocation4 + $0xd8] sm:$0xff] %vm3630_vm1, %v4378_v23  ;;  %v10219_v21 = vadd.f32 %v10218_v0, %v10217_v18  ;;  %v10220_v56 = vpop.f32.mrb[50].mxu1  ;;  %v10157_v39 = vpop.f32.mrb[51].mxu0  ;;  %v16961_v14 = vmov 0.0   ;;  %v17231_v11 = vmov -inf  }
 0x4df   : > { %v10221_v38 = vpop.f32.mrb[51].mxu1  ;;  %v10158_v12 = vadd.f32 %v10157_v39, %v10156_v55  ;;  %v4094_v57 = vadd.f32 %v10155_v51, %v16786_v59  ;;  %21130 = vst [vmem:[#allocation206_spill] sm:$0xff] %v17211_v36  ;;  %21131 = vst [vmem:[#allocation207_spill] sm:$0xff] %v17213_v19  ;;  %v17233_v36 = vmov -inf   ;;  %v17235_v19 = vmov -inf  }
 0x4e0   : > { %v10222_v8 = vadd.f32 %v10221_v38, %v10220_v56  ;;  %v4345_v16 = vadd.f32 %v10219_v21, %v16791_v20  ;;  %21132 = vst [vmem:[#allocation208_spill] sm:$0xff] %v17215_v62  ;;  %21133 = vst [vmem:[#allocation209_spill] sm:$0xff] %v17217_v33  ;;  %v17237_v62 = vmov -inf   ;;  %v17239_v33 = vmov -inf  }
 0x4e1   : > { %v4097_v22 = vadd.f32 %v10158_v12, %v16786_v59  ;;  %21134 = vst [vmem:[#allocation210_spill] sm:$0xff] %v17219_v1  ;;  %21135 = vst [vmem:[#allocation211_spill] sm:$0xff] %v17221_v42  ;;  %v17241_v1 = vmov -inf   ;;  %v17243_v42 = vmov -inf  }
 0x4e2   : > { %v4348_v61 = vadd.f32 %v10222_v8, %v16791_v20  ;;  %21136 = vst [vmem:[#allocation212_spill] sm:$0xff] %v17223_v17  ;;  %21137 = vst [vmem:[#allocation213_spill] sm:$0xff] %v17225_v5  ;;  %v17245_v17 = vmov -inf   ;;  %v17247_v5 = vmov -inf  }
 0x4e3   : > { %v4128_v6 = vpack.c.bf16 %v4097_v22, %v4094_v57  ;;  %v10159_v28 = vpop.f32.mrb[52].mxu0  ;;  %21138 = vst [vmem:[#allocation214_spill] sm:$0xff] %v17227_v53  ;;  %21139 = vst [vmem:[#allocation215_spill] sm:$0xff] %v17229_v34  ;;  %v17249_v53 = vmov -inf   ;;  %v17251_v34 = vmov -inf  }
 0x4e4   : > { %v4379_v2 = vpack.c.bf16 %v4348_v61, %v4345_v16  ;;  %v10223_v26 = vpop.f32.mrb[52].mxu1  ;;  %v16837_v9 = vld [vmem:[#allocation4 + $0x98] sm:$0xff]  ;;  %v10160_v30 = vpop.f32.mrb[53].mxu0  ;;  %21140 = vst [vmem:[#allocation216_spill] sm:$0xff] %v17231_v11  ;;  %21141 = vst [vmem:[#allocation217_spill] sm:$0xff] %v17233_v36  ;;  %v17253_v11 = vmov -inf  }
 0x4e5   : > { %20991 = vst [vmem:[#allocation67_spill] sm:$0xff] %v16837_v9  ;;  %v16839_v46 = vld [vmem:[#allocation4 + $0xd8] sm:$0xff]  ;;  %v10224_v31 = vpop.f32.mrb[53].mxu1  ;;  %4137 = vst.msk [vmem:[#allocation4 + $0xa0] sm:$0xff] %vm3630_vm1, %v4128_v6  ;;  %v10161_v7 = vadd.f32 %v10160_v30, %v10159_v28  ;;  %v10162_v60 = vpop.f32.mrb[54].mxu0  ;;  %v16959_v9 = vmov 0.0  }
 0x4e6   : > { %20992 = vst [vmem:[#allocation68_spill] sm:$0xff] %v16839_v46  ;;  %4388 = vst.msk [vmem:[#allocation4 + $0xe0] sm:$0xff] %vm3630_vm1, %v4379_v2  ;;  %v10225_v48 = vadd.f32 %v10224_v31, %v10223_v26  ;;  %v10226_v58 = vpop.f32.mrb[54].mxu1  ;;  %v10163_v24 = vpop.f32.mrb[55].mxu0  ;;  %v16957_v46 = vmov 0.0   ;;  %v17255_v36 = vmov -inf  }
 0x4e7   : > { %v10227_v43 = vpop.f32.mrb[55].mxu1  ;;  %v10164_v32 = vadd.f32 %v10163_v24, %v10162_v60  ;;  %v4102_v29 = vadd.f32 %v10161_v7, %v16786_v59  ;;  %21142 = vst [vmem:[#allocation218_spill] sm:$0xff] %v17235_v19  ;;  %21143 = vst [vmem:[#allocation219_spill] sm:$0xff] %v17237_v62  ;;  %v17257_v19 = vmov -inf   ;;  %v17259_v62 = vmov -inf  }
 0x4e8   : > { %v10228_v3 = vadd.f32 %v10227_v43, %v10226_v58  ;;  %v4353_v35 = vadd.f32 %v10225_v48, %v16791_v20  ;;  %21144 = vst [vmem:[#allocation220_spill] sm:$0xff] %v17257_v19 }
 0x4e9   : > { %v4105_v44 = vadd.f32 %v10164_v32, %v16786_v59 }
 0x4ea   : > { %v4356_v45 = vadd.f32 %v10228_v3, %v16791_v20 }
 0x4eb   : > { %v4129_v27 = vpack.c.bf16 %v4105_v44, %v4102_v29  ;;  %v10165_v47 = vpop.f32.mrb[56].mxu0 }
 0x4ec   : > { %v4380_v10 = vpack.c.bf16 %v4356_v45, %v4353_v35  ;;  %v10229_v23 = vpop.f32.mrb[56].mxu1  ;;  %v16847_v49 = vld [vmem:[#allocation4 + $0xa0] sm:$0xff]  ;;  %v10166_v15 = vpop.f32.mrb[57].mxu0 }
 0x4ed   : > { %20993 = vst [vmem:[#allocation69_spill] sm:$0xff] %v16847_v49  ;;  %v16849_v18 = vld [vmem:[#allocation4 + $0xe0] sm:$0xff]  ;;  %v10230_v0 = vpop.f32.mrb[57].mxu1  ;;  %4138 = vst.msk [vmem:[#allocation4 + $0xa8] sm:$0xff] %vm3630_vm1, %v4129_v27  ;;  %v10167_v51 = vadd.f32 %v10166_v15, %v10165_v47  ;;  %v10168_v55 = vpop.f32.mrb[58].mxu0  ;;  %v16955_v49 = vmov 0.0  }
 0x4ee   : > { %20994 = vst [vmem:[#allocation70_spill] sm:$0xff] %v16849_v18  ;;  %4389 = vst.msk [vmem:[#allocation4 + $0xe8] sm:$0xff] %vm3630_vm1, %v4380_v10  ;;  %v10231_v21 = vadd.f32 %v10230_v0, %v10229_v23  ;;  %v10232_v56 = vpop.f32.mrb[58].mxu1  ;;  %v10169_v39 = vpop.f32.mrb[59].mxu0  ;;  %v16953_v18 = vmov 0.0  }
 0x4ef   : > { %v10233_v38 = vpop.f32.mrb[59].mxu1  ;;  %v10170_v12 = vadd.f32 %v10169_v39, %v10168_v55  ;;  %v4110_v57 = vadd.f32 %v10167_v51, %v16786_v59  ;;  %v16877_v55 = vmov 0.0   ;;  %v16885_v39 = vmov 0.0  }
 0x4f0   : > { %v10234_v8 = vadd.f32 %v10233_v38, %v10232_v56  ;;  %v4361_v16 = vadd.f32 %v10231_v21, %v16791_v20  ;;  %v16879_v56 = vmov 0.0   ;;  %21002 = vst [vmem:[#allocation78_spill] sm:$0xff] %v16885_v39  ;;  %v16887_v38 = vmov 0.0  }
 0x4f1   : > { %v4113_v22 = vadd.f32 %v10170_v12, %v16786_v59  ;;  %21003 = vst [vmem:[#allocation79_spill] sm:$0xff] %v16887_v38  ;;  %v16889_v12 = vmov 0.0  }
 0x4f2   : > { %v4364_v61 = vadd.f32 %v10234_v8, %v16791_v20  ;;  %v16891_v8 = vmov 0.0  }
 0x4f3   : > { %v4130_v6 = vpack.c.bf16 %v4113_v22, %v4110_v57  ;;  %v10171_v28 = vpop.f32.mrb[60].mxu0  ;;  %21004 = vst [vmem:[#allocation80_spill] sm:$0xff] %v16891_v8  ;;  %v16893_v57 = vmov 0.0   ;;  %v16897_v22 = vmov 0.0  }
 0x4f4   : > { %v4381_v2 = vpack.c.bf16 %v4364_v61, %v4361_v16  ;;  %v10235_v26 = vpop.f32.mrb[60].mxu1  ;;  %v16857_v30 = vld [vmem:[#allocation4 + $0xa8] sm:$0xff]  ;;  %v10172_v7 = vpop.f32.mrb[61].mxu0  ;;  %v16895_v16 = vmov 0.0   ;;  %v16899_v61 = vmov 0.0  }
 0x4f5   : > { %20995 = vst [vmem:[#allocation71_spill] sm:$0xff] %v16857_v30  ;;  %v16859_v31 = vld [vmem:[#allocation4 + $0xe8] sm:$0xff]  ;;  %v10236_v48 = vpop.f32.mrb[61].mxu1  ;;  %4139 = vst.msk [vmem:[#allocation4 + $0xb0] sm:$0xff] %vm3630_vm1, %v4130_v6  ;;  %v10173_v60 = vadd.f32 %v10172_v7, %v10171_v28  ;;  %v10174_v24 = vpop.f32.mrb[62].mxu0  ;;  %v16901_v6 = vmov 0.0  }
 0x4f6   : > { %20996 = vst [vmem:[#allocation72_spill] sm:$0xff] %v16859_v31  ;;  %4390 = vst.msk [vmem:[#allocation4 + $0xf0] sm:$0xff] %vm3630_vm1, %v4381_v2  ;;  %v10237_v58 = vadd.f32 %v10236_v48, %v10235_v26  ;;  %v10238_v43 = vpop.f32.mrb[62].mxu1  ;;  %v10175_v32 = vpop.f32.mrb[63].mxu0  ;;  %v16903_v2 = vmov 0.0   ;;  %v16905_v28 = vmov 0.0  }
 0x4f7   : > { %v10239_v3 = vpop.f32.mrb[63].mxu1  ;;  %v10176_v29 = vadd.f32 %v10175_v32, %v10174_v24  ;;  %v4118_v44 = vadd.f32 %v10173_v60, %v16786_v59  ;;  %v16907_v26 = vmov 0.0   ;;  %v16909_v7 = vmov 0.0  }
 0x4f8   : > { %v10240_v35 = vadd.f32 %v10239_v3, %v10238_v43  ;;  %v4369_v45 = vadd.f32 %v10237_v58, %v16791_v20  ;;  %v16911_v48 = vmov 0.0   ;;  %v16913_v60 = vmov 0.0  }
 0x4f9   : > { %v4121_v27 = vadd.f32 %v10176_v29, %v16786_v59  ;;  %v16881_v59 = vmov 0.0   ;;  %21005 = vst [vmem:[#allocation81_spill] sm:$0xff] %v16911_v48  ;;  %v16915_v58 = vmov 0.0   ;;  %v16917_v24 = vmov 0.0  }
 0x4fa   : > { %v4372_v10 = vadd.f32 %v10240_v35, %v16791_v20  ;;  %v16883_v20 = vmov 0.0   ;;  %v16919_v43 = vmov 0.0   ;;  %v16921_v32 = vmov 0.0  }
 0x4fb   : > { %v4131_v47 = vpack.c.bf16 %v4121_v27, %v4118_v44  ;;  %21001 = vst [vmem:[#allocation77_spill] sm:$0xff] %v16883_v20  ;;  %21006 = vst [vmem:[#allocation82_spill] sm:$0xff] %v16921_v32  ;;  %v16923_v3 = vmov 0.0   ;;  %v16925_v29 = vmov 0.0   ;;  %v16927_v35 = vmov 0.0  }
 0x4fc   : > { %v4382_v23 = vpack.c.bf16 %v4372_v10, %v4369_v45  ;;  %v16867_v15 = vld [vmem:[#allocation4 + $0xb0] sm:$0xff]  ;;  %21007 = vst [vmem:[#allocation83_spill] sm:$0xff] %v16923_v3  ;;  %v16929_v44 = vmov 0.0   ;;  %v16931_v45 = vmov 0.0   ;;  %v16933_v27 = vmov 0.0  }
 0x4fd   : > { %20997 = vst [vmem:[#allocation73_spill] sm:$0xff] %v16867_v15  ;;  %v16869_v0 = vld [vmem:[#allocation4 + $0xf0] sm:$0xff]  ;;  %4140 = vst.msk [vmem:[#allocation4 + $0xb8] sm:$0xff] %vm3630_vm1, %v4131_v47  ;;  %v16935_v10 = vmov 0.0   ;;  %v16937_v47 = vmov 0.0   ;;  %v16947_v15 = vmov 0.0  }
 0x4fe   : > { %20998 = vst [vmem:[#allocation74_spill] sm:$0xff] %v16869_v0  ;;  %4391 = vst.msk [vmem:[#allocation4 + $0xf8] sm:$0xff] %vm3630_vm1, %v4382_v23  ;;  %v16939_v23 = vmov 0.0   ;;  %v16945_v0 = vmov 0.0   ;;  %v16949_v31 = vmov 0.0   ;;  %v16951_v30 = vmov 0.0  }
 0x4ff   : > { %21008 = vst [vmem:[#allocation84_spill] sm:$0xff] %v16939_v23  ;;  %21009 = vst [vmem:[#allocation85_spill] sm:$0xff] %v16947_v15 }
 0x504   : > { %v16873_v51 = vld [vmem:[#allocation4 + $0xb8] sm:$0xff] }
 0x505   : > { %20999 = vst [vmem:[#allocation75_spill] sm:$0xff] %v16873_v51  ;;  %v16875_v21 = vld [vmem:[#allocation4 + $0xf8] sm:$0xff]  ;;  %v16943_v51 = vmov 0.0  }
 0x506   : > { %21000 = vst [vmem:[#allocation76_spill] sm:$0xff] %v16875_v21  ;;  %v16941_v21 = vmov 0.0  }
 0x507 LB: >> { %21289 = vst [vmem:[#allocation221_spill] sm:$0xff] %v14033_v55  ;;  %21290 = vst [vmem:[#allocation222_spill] sm:$0xff] %v14037_v56  ;;  %v21292_v20 = vld [vmem:[#allocation77_spill] sm:$0xff]  ;;  %v21294_v39 = vld [vmem:[#allocation78_spill] sm:$0xff]  ;;  %s9086_s13 = sshll.u32 %s14801_s10, 8  ;;  %s4429_s17 = sadd.s32 1, %s14801_s10   ;;  %s14801_s10 = sphi %s17261_s10, %s22657_s10   ;;  %v14797_v62 = vphi %v17259_v62, %v22656_v62   ;;  %v14789_v36 = vphi %v17255_v36, %v22653_v36   ;;  %v14785_v11 = vphi %v17253_v11, %v22652_v11   ;;  %v14781_v34 = vphi %v17251_v34, %v22651_v34   ;;  %v14777_v53 = vphi %v17249_v53, %v22650_v53   ;;  %v14773_v5 = vphi %v17247_v5, %v22649_v5   ;;  %v14769_v17 = vphi %v17245_v17, %v22648_v17   ;;  %v14765_v42 = vphi %v17243_v42, %v22647_v42   ;;  %v14761_v1 = vphi %v17241_v1, %v22646_v1   ;;  %v14757_v33 = vphi %v17239_v33, %v22645_v33   ;;  %v14241_v13 = vphi %v16981_v13, %v22388_v13   ;;  %v14225_v25 = vphi %v16973_v25, %v22381_v25   ;;  %v14217_v37 = vphi %v16969_v37, %v22378_v37   ;;  %v14205_v50 = vphi %v16963_v50, %v22373_v50   ;;  %v14201_v14 = vphi %v16961_v14, %v22372_v14   ;;  %v14197_v9 = vphi %v16959_v9, %v22371_v9   ;;  %v14193_v46 = vphi %v16957_v46, %v22370_v46   ;;  %v14189_v49 = vphi %v16955_v49, %v22369_v49   ;;  %v14185_v18 = vphi %v16953_v18, %v22368_v18   ;;  %v14181_v30 = vphi %v16951_v30, %v22367_v30   ;;  %v14177_v31 = vphi %v16949_v31, %v22366_v31   ;;  %v14169_v0 = vphi %v16945_v0, %v22363_v0   ;;  %v14165_v51 = vphi %v16943_v51, %v22362_v51   ;;  %v14161_v21 = vphi %v16941_v21, %v22361_v21   ;;  %v14153_v47 = vphi %v16937_v47, %v22358_v47   ;;  %v14149_v10 = vphi %v16935_v10, %v22357_v10   ;;  %v14145_v27 = vphi %v16933_v27, %v22356_v27   ;;  %v14141_v45 = vphi %v16931_v45, %v22355_v45   ;;  %v14137_v44 = vphi %v16929_v44, %v22354_v44   ;;  %v14133_v35 = vphi %v16927_v35, %v22353_v35   ;;  %v14129_v29 = vphi %v16925_v29, %v22352_v29   ;;  %v14117_v43 = vphi %v16919_v43, %v22347_v43   ;;  %v14113_v24 = vphi %v16917_v24, %v19556_v24   ;;  %v14109_v58 = vphi %v16915_v58, %v22346_v58   ;;  %v14105_v60 = vphi %v16913_v60, %v19586_v60   ;;  %v14097_v7 = vphi %v16909_v7, %v22344_v7   ;;  %v14093_v26 = vphi %v16907_v26, %v22343_v26   ;;  %v14089_v28 = vphi %v16905_v28, %v22342_v28   ;;  %v14085_v2 = vphi %v16903_v2, %v22341_v2   ;;  %v14081_v6 = vphi %v16901_v6, %v22340_v6   ;;  %v14077_v61 = vphi %v16899_v61, %v22339_v61   ;;  %v14073_v22 = vphi %v16897_v22, %v22338_v22   ;;  %v14069_v16 = vphi %v16895_v16, %v22337_v16   ;;  %v14065_v57 = vphi %v16893_v57, %v22336_v57   ;;  %v14057_v12 = vphi %v16889_v12, %v22333_v12   ;;  %v14041_v59 = vphi %v16881_v59, %v22329_v59   ;;  %v14037_v56 = vphi %v16879_v56, %v22328_v56   ;;  %v14033_v55 = vphi %v16877_v55, %v22327_v55  }
 0x508   : >> { %21291 = vst [vmem:[#allocation223_spill] sm:$0xff] %v14041_v59  ;;  %21293 = vst [vmem:[#allocation77_spill] sm:$0xff] %v21292_v20  ;;  %v21296_v38 = vld [vmem:[#allocation79_spill] sm:$0xff]  ;;  %v21299_v8 = vld [vmem:[#allocation80_spill] sm:$0xff]  ;;  %s17849_s20 = scalar_lea.vmem [#allocation2], %s9086_s13  ;;  %s18053_s28 = scalar_lea.vmem [#allocation3], %s9086_s13 }
 0x509   : >> { %21295 = vst [vmem:[#allocation78_spill] sm:$0xff] %v21294_v39  ;;  %21297 = vst [vmem:[#allocation79_spill] sm:$0xff] %v21296_v38  ;;  %v21310_v48 = vld [vmem:[#allocation81_spill] sm:$0xff]  ;;  %v21316_v32 = vld [vmem:[#allocation82_spill] sm:$0xff]  ;;  %p19607_p11 = scmp.ge.s32.totalorder %s4429_s17, 2   ;;  %s22657_s10 = smov %s4429_s17 }
 0x50a   : >> { %21298 = vst [vmem:[#allocation224_spill] sm:$0xff] %v14057_v12  ;;  %21300 = vst [vmem:[#allocation80_spill] sm:$0xff] %v21299_v8  ;;  %v21318_v3 = vld [vmem:[#allocation83_spill] sm:$0xff]  ;;  %v21327_v23 = vld [vmem:[#allocation84_spill] sm:$0xff]  ;;  %s22779_s11 = sld [smem:[#allocation460_spill]] (%p19607_p11)  ;;  %s9088_s29 = sshll.u32 (%p19607_p11), %s14013_s23, 5 }
 0x50b   : >> { %21301 = vst [vmem:[#allocation225_spill] sm:$0xff] %v14065_v57  ;;  %21302 = vst [vmem:[#allocation226_spill] sm:$0xff] %v14069_v16  ;;  %v21332_v15 = vld [vmem:[#allocation85_spill] sm:$0xff]  ;;  %v21342_v40 = vld [vmem:[#allocation86_spill] sm:$0xff]  ;;  %s9080_s16 = sshll.u32 (%p19607_p11), %s14017_s24, 6  ;;  %s7743_s24 = sshll.u32 (%p19607_p11), %s15084_s12, 4  ;;  %s20461_s24 = int_to_ptr.vmem [resolvable:$true] %s7743_s24 }
 0x50c   : >> { %21303 = vst [vmem:[#allocation227_spill] sm:$0xff] %v14073_v22  ;;  %21304 = vst [vmem:[#allocation228_spill] sm:$0xff] %v14077_v61  ;;  %v21344_v63 = vld [vmem:[#allocation87_spill] sm:$0xff]  ;;  %v21347_v54 = vld [vmem:[#allocation88_spill] sm:$0xff]  ;;  %s7740_s10 = sadd.s32 (%p19607_p11), %s9088_s29, %s9080_s16  ;;  %s22780_s13 = sld [smem:[#allocation16_spill]] (%p19607_p11) }
 0x50d   : >> { %21305 = vst [vmem:[#allocation229_spill] sm:$0xff] %v14081_v6  ;;  %21306 = vst [vmem:[#allocation230_spill] sm:$0xff] %v14085_v2  ;;  %v21350_v52 = vld [vmem:[#allocation89_spill] sm:$0xff]  ;;  %v21352_v41 = vld [vmem:[#allocation90_spill] sm:$0xff]  ;;  %s9081_s23 = sshll.u32 (%p19607_p11), %s7740_s10, 7  ;;  %s22781_s17 = sld [smem:[#allocation461_spill]] (%p19607_p11) }
 0x50e   : >> { %21307 = vst [vmem:[#allocation231_spill] sm:$0xff] %v14089_v28  ;;  %21308 = vst [vmem:[#allocation232_spill] sm:$0xff] %v14093_v26  ;;  %v21354_v4 = vld [vmem:[#allocation91_spill] sm:$0xff]  ;;  %v21357_v59 = vld [vmem:[#allocation92_spill] sm:$0xff]  ;;  %s22783_s30 = sand.u32 (%p19607_p11), 1, %s13993_s18   ;;  %s13131_s29 = scalar_lea.vmem (%p19607_p11), %s20461_s24, 4096 }
 0x50f   : >> { %21309 = vst [vmem:[#allocation233_spill] sm:$0xff] %v14097_v7  ;;  %21311 = vst [vmem:[#allocation81_spill] sm:$0xff] %v21310_v48  ;;  %v21359_v55 = vld [vmem:[#allocation93_spill] sm:$0xff]  ;;  %v21361_v20 = vld [vmem:[#allocation94_spill] sm:$0xff]  ;;  %p13132_p13 = scmp.ne.s32.totalorder (%p19607_p11), %s20461_s24, %s13131_s29  ;;  %s14810_s16 = smov (%p19607_p11), [#allocation10]  }
 0x510   : >> { %21312 = vst [vmem:[#allocation234_spill] sm:$0xff] %v14105_v60  ;;  %21313 = vst [vmem:[#allocation235_spill] sm:$0xff] %v14109_v58  ;;  %v21363_v56 = vld [vmem:[#allocation95_spill] sm:$0xff]  ;;  %v21365_v60 = vld [vmem:[#allocation96_spill] sm:$0xff]  ;;  %s13135_s10 = sshll.u32 (%p19607_p11), %s14810_s16, 4  ;;  %s13136_s10 = int_to_ptr.vmem [resolvable:$false] %s13135_s10 }
 0x511   : >> { %21314 = vst [vmem:[#allocation236_spill] sm:$0xff] %v14113_v24  ;;  %21315 = vst [vmem:[#allocation237_spill] sm:$0xff] %v14117_v43  ;;  %v21367_v7 = vld [vmem:[#allocation97_spill] sm:$0xff]  ;;  %v21369_v58 = vld [vmem:[#allocation98_spill] sm:$0xff]  ;;  %p13138_p8 = scmp.lt.s32.totalorder (%p19607_p11), %s20461_s24, %s13136_s10 }
 0x512   : >> { %21317 = vst [vmem:[#allocation82_spill] sm:$0xff] %v21316_v32  ;;  %21319 = vst [vmem:[#allocation83_spill] sm:$0xff] %v21318_v3  ;;  %v21371_v48 = vld [vmem:[#allocation99_spill] sm:$0xff]  ;;  %v21373_v12 = vld [vmem:[#allocation100_spill] sm:$0xff]  ;;  %p22784_p0 = scmp.ne.s32.totalorder (%p19607_p11), %s22780_s13, 0 }
 0x513   : >> { %21320 = vst [vmem:[#allocation238_spill] sm:$0xff] %v14129_v29  ;;  %21321 = vst [vmem:[#allocation239_spill] sm:$0xff] %v14133_v35  ;;  %v21375_v39 = vld [vmem:[#allocation101_spill] sm:$0xff]  ;;  %v21377_v8 = vld [vmem:[#allocation102_spill] sm:$0xff]  ;;  %s22782_s3 = smov (%p19607_p11), %s22781_s17  ;;  %s20459_s6 = scalar_lea.hbm (%p19607_p11), %s22781_s17, %s9081_s23 }
 0x514   : >> { %21322 = vst [vmem:[#allocation240_spill] sm:$0xff] %v14137_v44  ;;  %21323 = vst [vmem:[#allocation241_spill] sm:$0xff] %v14141_v45  ;;  %v21379_v32 = vld [vmem:[#allocation103_spill] sm:$0xff]  ;;  %v21381_v38 = vld [vmem:[#allocation104_spill] sm:$0xff]  ;;  %p13133_p2 = pnand (%p19607_p11), %p13132_p13, %p22784_p0  ;;  %s13137_s23 = scalar_lea.vmem (%p19607_p11), %s13136_s10, 8192 }
 0x515   : >> { %21324 = vst [vmem:[#allocation242_spill] sm:$0xff] %v14145_v27  ;;  %21325 = vst [vmem:[#allocation243_spill] sm:$0xff] %v14149_v10  ;;  %v21383_v24 = vld [vmem:[#allocation105_spill] sm:$0xff]  ;;  %v21385_v3 = vld [vmem:[#allocation106_spill] sm:$0xff]  ;;  %p13139_p12 = scmp.lt.s32.totalorder (%p19607_p11), %s13137_s23, %s13131_s29 }
 0x516   : >> { %21326 = vst [vmem:[#allocation244_spill] sm:$0xff] %v14153_v47  ;;  %21328 = vst [vmem:[#allocation84_spill] sm:$0xff] %v21327_v23  ;;  %v21387_v43 = vld [vmem:[#allocation107_spill] sm:$0xff]  ;;  %v21389_v22 = vld [vmem:[#allocation108_spill] sm:$0xff]  ;;  %p13134_p5 = pneg (%p19607_p11), %p13133_p2 }
 0x517   : >> { %21329 = vst [vmem:[#allocation245_spill] sm:$0xff] %v14161_v21  ;;  %21330 = vst [vmem:[#allocation246_spill] sm:$0xff] %v14165_v51  ;;  %v21391_v57 = vld [vmem:[#allocation109_spill] sm:$0xff]  ;;  %v21393_v61 = vld [vmem:[#allocation110_spill] sm:$0xff]  ;;  %p13140_p1 = por (%p19607_p11), %p13139_p12, %p13138_p8 }
 0x518   : >> { %21331 = vst [vmem:[#allocation247_spill] sm:$0xff] %v14169_v0  ;;  %21333 = vst [vmem:[#allocation85_spill] sm:$0xff] %v21332_v15  ;;  %v21395_v16 = vld [vmem:[#allocation111_spill] sm:$0xff]  ;;  %v21397_v44 = vld [vmem:[#allocation112_spill] sm:$0xff] }
 0x519   : >> { %21334 = vst [vmem:[#allocation248_spill] sm:$0xff] %v14177_v31  ;;  %21335 = vst [vmem:[#allocation249_spill] sm:$0xff] %v14181_v30  ;;  %v21399_v29 = vld [vmem:[#allocation113_spill] sm:$0xff]  ;;  %v21401_v45 = vld [vmem:[#allocation114_spill] sm:$0xff]  ;;  %p13141_p6 = pnand (%p19607_p11), %p13140_p1, %p13134_p5 }
 0x51a   : >> { %21336 = vst [vmem:[#allocation250_spill] sm:$0xff] %v14185_v18  ;;  %21337 = vst [vmem:[#allocation251_spill] sm:$0xff] %v14189_v49  ;;  %v21403_v35 = vld [vmem:[#allocation115_spill] sm:$0xff]  ;;  %v21405_v28 = vld [vmem:[#allocation116_spill] sm:$0xff] }
 0x51b   : >> { %21338 = vst [vmem:[#allocation252_spill] sm:$0xff] %v14193_v46  ;;  %21339 = vst [vmem:[#allocation253_spill] sm:$0xff] %v14197_v9  ;;  %v21407_v6 = vld [vmem:[#allocation117_spill] sm:$0xff]  ;;  %v21409_v26 = vld [vmem:[#allocation118_spill] sm:$0xff] }
 0x51c   : >> { %21340 = vst [vmem:[#allocation254_spill] sm:$0xff] %v14201_v14  ;;  %21341 = vst [vmem:[#allocation255_spill] sm:$0xff] %v14205_v50  ;;  %v21411_v2 = vld [vmem:[#allocation119_spill] sm:$0xff]  ;;  %v21413_v47 = vld [vmem:[#allocation120_spill] sm:$0xff] }
 0x51d   : >> { %21343 = vst [vmem:[#allocation86_spill] sm:$0xff] %v21342_v40  ;;  %21345 = vst [vmem:[#allocation87_spill] sm:$0xff] %v21344_v63  ;;  %v21415_v27 = vld [vmem:[#allocation121_spill] sm:$0xff]  ;;  %v21417_v23 = vld [vmem:[#allocation122_spill] sm:$0xff] }
 0x51e   : >> { %21346 = vst [vmem:[#allocation256_spill] sm:$0xff] %v14217_v37  ;;  %21348 = vst [vmem:[#allocation88_spill] sm:$0xff] %v21347_v54  ;;  %v21419_v10 = vld [vmem:[#allocation123_spill] sm:$0xff]  ;;  %v21421_v0 = vld [vmem:[#allocation124_spill] sm:$0xff] }
 0x51f   : >> { %21349 = vst [vmem:[#allocation257_spill] sm:$0xff] %v14225_v25  ;;  %21351 = vst [vmem:[#allocation89_spill] sm:$0xff] %v21350_v52  ;;  %v21423_v21 = vld [vmem:[#allocation125_spill] sm:$0xff]  ;;  %v21425_v15 = vld [vmem:[#allocation126_spill] sm:$0xff] }
 0x520   : >> { %21353 = vst [vmem:[#allocation90_spill] sm:$0xff] %v21352_v41  ;;  %21355 = vst [vmem:[#allocation91_spill] sm:$0xff] %v21354_v4  ;;  %v21427_v51 = vld [vmem:[#allocation127_spill] sm:$0xff]  ;;  %v21429_v41 = vld [vmem:[#allocation128_spill] sm:$0xff] }
 0x521   : >> { %21356 = vst [vmem:[#allocation258_spill] sm:$0xff] %v14241_v13  ;;  %21358 = vst [vmem:[#allocation92_spill] sm:$0xff] %v21357_v59  ;;  %v21431_v25 = vld [vmem:[#allocation129_spill] sm:$0xff]  ;;  %v21433_v4 = vld [vmem:[#allocation130_spill] sm:$0xff] }
 0x522   : >> { %21360 = vst [vmem:[#allocation93_spill] sm:$0xff] %v21359_v55  ;;  %21362 = vst [vmem:[#allocation94_spill] sm:$0xff] %v21361_v20  ;;  %v21435_v52 = vld [vmem:[#allocation131_spill] sm:$0xff]  ;;  %v21449_v31 = vld [vmem:[#allocation138_spill] sm:$0xff] }
 0x523   : >> { %21364 = vst [vmem:[#allocation95_spill] sm:$0xff] %v21363_v56  ;;  %21366 = vst [vmem:[#allocation96_spill] sm:$0xff] %v21365_v60  ;;  %v21443_v18 = vld [vmem:[#allocation135_spill] sm:$0xff]  ;;  %v21453_v30 = vld [vmem:[#allocation140_spill] sm:$0xff] }
 0x524   : >> { %21368 = vst [vmem:[#allocation97_spill] sm:$0xff] %v21367_v7  ;;  %21370 = vst [vmem:[#allocation98_spill] sm:$0xff] %v21369_v58  ;;  %v21451_v49 = vld [vmem:[#allocation139_spill] sm:$0xff]  ;;  %v21457_v55 = vld [vmem:[#allocation142_spill] sm:$0xff] }
 0x525   : >> { %21372 = vst [vmem:[#allocation99_spill] sm:$0xff] %v21371_v48  ;;  %21374 = vst [vmem:[#allocation100_spill] sm:$0xff] %v21373_v12  ;;  %v21461_v13 = vld [vmem:[#allocation144_spill] sm:$0xff]  ;;  %v21463_v20 = vld [vmem:[#allocation145_spill] sm:$0xff] }
 0x526   : >> { %21376 = vst [vmem:[#allocation101_spill] sm:$0xff] %v21375_v39  ;;  %21378 = vst [vmem:[#allocation102_spill] sm:$0xff] %v21377_v8  ;;  %v21465_v59 = vld [vmem:[#allocation146_spill] sm:$0xff]  ;;  %v21475_v14 = vld [vmem:[#allocation151_spill] sm:$0xff] }
 0x527   : >> { %21380 = vst [vmem:[#allocation103_spill] sm:$0xff] %v21379_v32  ;;  %21382 = vst [vmem:[#allocation104_spill] sm:$0xff] %v21381_v38  ;;  %v21437_v32 = vld [vmem:[#allocation132_spill] sm:$0xff]  ;;  %v21441_v38 = vld [vmem:[#allocation134_spill] sm:$0xff] }
 0x528   : >> { %21384 = vst [vmem:[#allocation105_spill] sm:$0xff] %v21383_v24  ;;  %21386 = vst [vmem:[#allocation106_spill] sm:$0xff] %v21385_v3  ;;  %v21439_v24 = vld [vmem:[#allocation133_spill] sm:$0xff]  ;;  %v21477_v46 = vld [vmem:[#allocation152_spill] sm:$0xff] }
 0x529   : >> { %21388 = vst [vmem:[#allocation107_spill] sm:$0xff] %v21387_v43  ;;  %21390 = vst [vmem:[#allocation108_spill] sm:$0xff] %v21389_v22  ;;  %v21447_v3 = vld [vmem:[#allocation137_spill] sm:$0xff]  ;;  %v21483_v50 = vld [vmem:[#allocation155_spill] sm:$0xff] }
 0x52a   : >> { %21392 = vst [vmem:[#allocation109_spill] sm:$0xff] %v21391_v57  ;;  %21394 = vst [vmem:[#allocation110_spill] sm:$0xff] %v21393_v61  ;;  %v21467_v57 = vld [vmem:[#allocation147_spill] sm:$0xff]  ;;  %v21473_v61 = vld [vmem:[#allocation150_spill] sm:$0xff] }
 0x52b   : >> { %21396 = vst [vmem:[#allocation111_spill] sm:$0xff] %v21395_v16  ;;  %21398 = vst [vmem:[#allocation112_spill] sm:$0xff] %v21397_v44  ;;  %v21479_v43 = vld [vmem:[#allocation153_spill] sm:$0xff]  ;;  %v21485_v9 = vld [vmem:[#allocation156_spill] sm:$0xff] }
 0x52c   : >> { %21400 = vst [vmem:[#allocation113_spill] sm:$0xff] %v21399_v29  ;;  %21402 = vst [vmem:[#allocation114_spill] sm:$0xff] %v21401_v45  ;;  %v21489_v7 = vld [vmem:[#allocation158_spill] sm:$0xff]  ;;  %v21491_v22 = vld [vmem:[#allocation159_spill] sm:$0xff] }
 0x52d   : >> { %21404 = vst [vmem:[#allocation115_spill] sm:$0xff] %v21403_v35  ;;  %21406 = vst [vmem:[#allocation116_spill] sm:$0xff] %v21405_v28  ;;  %v21493_v56 = vld [vmem:[#allocation160_spill] sm:$0xff]  ;;  %v21495_v58 = vld [vmem:[#allocation161_spill] sm:$0xff] }
 0x52e   : >> { %21408 = vst [vmem:[#allocation117_spill] sm:$0xff] %v21407_v6  ;;  %21410 = vst [vmem:[#allocation118_spill] sm:$0xff] %v21409_v26  ;;  %v21497_v60 = vld [vmem:[#allocation162_spill] sm:$0xff]  ;;  %v21499_v29 = vld [vmem:[#allocation163_spill] sm:$0xff] }
 0x52f   : >> { %21412 = vst [vmem:[#allocation119_spill] sm:$0xff] %v21411_v2  ;;  %21414 = vst [vmem:[#allocation120_spill] sm:$0xff] %v21413_v47  ;;  %v21455_v2 = vld [vmem:[#allocation141_spill] sm:$0xff]  ;;  %v21469_v47 = vld [vmem:[#allocation148_spill] sm:$0xff] }
 0x530   : >> { %21416 = vst [vmem:[#allocation121_spill] sm:$0xff] %v21415_v27  ;;  %21418 = vst [vmem:[#allocation122_spill] sm:$0xff] %v21417_v23  ;;  %v21445_v27 = vld [vmem:[#allocation136_spill] sm:$0xff]  ;;  %v21459_v23 = vld [vmem:[#allocation143_spill] sm:$0xff] }
 0x531   : >> { %21420 = vst [vmem:[#allocation123_spill] sm:$0xff] %v21419_v10  ;;  %21422 = vst [vmem:[#allocation124_spill] sm:$0xff] %v21421_v0  ;;  %v21487_v10 = vld [vmem:[#allocation157_spill] sm:$0xff]  ;;  %v21501_v0 = vld [vmem:[#allocation164_spill] sm:$0xff] }
 0x532   : >> { %21424 = vst [vmem:[#allocation125_spill] sm:$0xff] %v21423_v21  ;;  %21426 = vst [vmem:[#allocation126_spill] sm:$0xff] %v21425_v15  ;;  %v21471_v21 = vld [vmem:[#allocation149_spill] sm:$0xff]  ;;  %v21481_v15 = vld [vmem:[#allocation154_spill] sm:$0xff] }
 0x533   : >> { %21428 = vst [vmem:[#allocation127_spill] sm:$0xff] %v21427_v51  ;;  %21430 = vst [vmem:[#allocation128_spill] sm:$0xff] %v21429_v41  ;;  %v21505_v45 = vld [vmem:[#allocation166_spill] sm:$0xff]  ;;  %v21507_v16 = vld [vmem:[#allocation167_spill] sm:$0xff] }
 0x534   : >> { %21432 = vst [vmem:[#allocation129_spill] sm:$0xff] %v21431_v25  ;;  %21434 = vst [vmem:[#allocation130_spill] sm:$0xff] %v21433_v4  ;;  %v21503_v25 = vld [vmem:[#allocation165_spill] sm:$0xff]  ;;  %v21509_v37 = vld [vmem:[#allocation168_spill] sm:$0xff] }
 0x535   : >> { %21436 = vst [vmem:[#allocation131_spill] sm:$0xff] %v21435_v52  ;;  %21438 = vst [vmem:[#allocation132_spill] sm:$0xff] %v21437_v32  ;;  %v21511_v4 = vld [vmem:[#allocation169_spill] sm:$0xff]  ;;  %v21513_v40 = vld [vmem:[#allocation170_spill] sm:$0xff] }
 0x536   : >> { %21440 = vst [vmem:[#allocation133_spill] sm:$0xff] %v21439_v24  ;;  %21442 = vst [vmem:[#allocation134_spill] sm:$0xff] %v21441_v38  ;;  %v21515_v39 = vld [vmem:[#allocation171_spill] sm:$0xff]  ;;  %v21517_v54 = vld [vmem:[#allocation172_spill] sm:$0xff] }
 0x537   : >> { %21444 = vst [vmem:[#allocation135_spill] sm:$0xff] %v21443_v18  ;;  %21446 = vst [vmem:[#allocation136_spill] sm:$0xff] %v21445_v27  ;;  %v21519_v48 = vld [vmem:[#allocation173_spill] sm:$0xff]  ;;  %v21521_v63 = vld [vmem:[#allocation174_spill] sm:$0xff] }
 0x538   : >> { %21448 = vst [vmem:[#allocation137_spill] sm:$0xff] %v21447_v3  ;;  %21450 = vst [vmem:[#allocation138_spill] sm:$0xff] %v21449_v31  ;;  %v21523_v8 = vld [vmem:[#allocation175_spill] sm:$0xff]  ;;  %v21525_v51 = vld [vmem:[#allocation176_spill] sm:$0xff] }
 0x539   : >> { %21452 = vst [vmem:[#allocation139_spill] sm:$0xff] %v21451_v49  ;;  %21454 = vst [vmem:[#allocation140_spill] sm:$0xff] %v21453_v30  ;;  %v21527_v44 = vld [vmem:[#allocation177_spill] sm:$0xff]  ;;  %v21529_v6 = vld [vmem:[#allocation178_spill] sm:$0xff] }
 0x53a   : >> { %21456 = vst [vmem:[#allocation141_spill] sm:$0xff] %v21455_v2  ;;  %21458 = vst [vmem:[#allocation142_spill] sm:$0xff] %v21457_v55  ;;  %v21531_v12 = vld [vmem:[#allocation179_spill] sm:$0xff]  ;;  %v21533_v41 = vld [vmem:[#allocation180_spill] sm:$0xff] }
 0x53b   : >> { %21460 = vst [vmem:[#allocation143_spill] sm:$0xff] %v21459_v23  ;;  %21462 = vst [vmem:[#allocation144_spill] sm:$0xff] %v21461_v13  ;;  %v21535_v24 = vld [vmem:[#allocation181_spill] sm:$0xff]  ;;  %v21537_v26 = vld [vmem:[#allocation182_spill] sm:$0xff] }
 0x53c   : >> { %21464 = vst [vmem:[#allocation145_spill] sm:$0xff] %v21463_v20  ;;  %21466 = vst [vmem:[#allocation146_spill] sm:$0xff] %v21465_v59  ;;  %v21539_v35 = vld [vmem:[#allocation183_spill] sm:$0xff]  ;;  %v21541_v38 = vld [vmem:[#allocation184_spill] sm:$0xff] }
 0x53d   : >> { %21468 = vst [vmem:[#allocation147_spill] sm:$0xff] %v21467_v57  ;;  %21470 = vst [vmem:[#allocation148_spill] sm:$0xff] %v21469_v47  ;;  %v21543_v52 = vld [vmem:[#allocation185_spill] sm:$0xff]  ;;  %v21545_v28 = vld [vmem:[#allocation186_spill] sm:$0xff] }
 0x53e   : >> { %21472 = vst [vmem:[#allocation149_spill] sm:$0xff] %v21471_v21  ;;  %21474 = vst [vmem:[#allocation150_spill] sm:$0xff] %v21473_v61  ;;  %v21547_v3 = vld [vmem:[#allocation187_spill] sm:$0xff]  ;;  %v21549_v32 = vld [vmem:[#allocation188_spill] sm:$0xff] }
 0x53f   : >> { %21476 = vst [vmem:[#allocation151_spill] sm:$0xff] %v21475_v14  ;;  %21478 = vst [vmem:[#allocation152_spill] sm:$0xff] %v21477_v46  ;;  %v21553_v31 = vld [vmem:[#allocation190_spill] sm:$0xff]  ;;  %v21555_v18 = vld [vmem:[#allocation191_spill] sm:$0xff] }
 0x540   : >> { %21480 = vst [vmem:[#allocation153_spill] sm:$0xff] %v21479_v43  ;;  %21482 = vst [vmem:[#allocation154_spill] sm:$0xff] %v21481_v15  ;;  %v21551_v43 = vld [vmem:[#allocation189_spill] sm:$0xff]  ;;  %v21557_v15 = vld [vmem:[#allocation192_spill] sm:$0xff] }
 0x541   : >> { %21484 = vst [vmem:[#allocation155_spill] sm:$0xff] %v21483_v50  ;;  %21486 = vst [vmem:[#allocation156_spill] sm:$0xff] %v21485_v9  ;;  %v21559_v14 = vld [vmem:[#allocation193_spill] sm:$0xff]  ;;  %v21561_v27 = vld [vmem:[#allocation194_spill] sm:$0xff] }
 0x542   : >> { %21488 = vst [vmem:[#allocation157_spill] sm:$0xff] %v21487_v10  ;;  %21490 = vst [vmem:[#allocation158_spill] sm:$0xff] %v21489_v7  ;;  %v21563_v2 = vld [vmem:[#allocation195_spill] sm:$0xff]  ;;  %v21565_v46 = vld [vmem:[#allocation196_spill] sm:$0xff] }
 0x543   : >> { %21492 = vst [vmem:[#allocation159_spill] sm:$0xff] %v21491_v22  ;;  %21494 = vst [vmem:[#allocation160_spill] sm:$0xff] %v21493_v56  ;;  %v21567_v10 = vld [vmem:[#allocation197_spill] sm:$0xff]  ;;  %v21569_v55 = vld [vmem:[#allocation198_spill] sm:$0xff] }
 0x544   : >> { %21496 = vst [vmem:[#allocation161_spill] sm:$0xff] %v21495_v58  ;;  %21498 = vst [vmem:[#allocation162_spill] sm:$0xff] %v21497_v60  ;;  %v21571_v49 = vld [vmem:[#allocation199_spill] sm:$0xff]  ;;  %v21573_v7 = vld [vmem:[#allocation200_spill] sm:$0xff] }
 0x545   : >> { %21500 = vst [vmem:[#allocation163_spill] sm:$0xff] %v21499_v29  ;;  %21502 = vst [vmem:[#allocation164_spill] sm:$0xff] %v21501_v0  ;;  %v21575_v50 = vld [vmem:[#allocation201_spill] sm:$0xff]  ;;  %v21577_v30 = vld [vmem:[#allocation202_spill] sm:$0xff] }
 0x546   : >> { %21504 = vst [vmem:[#allocation165_spill] sm:$0xff] %v21503_v25  ;;  %21506 = vst [vmem:[#allocation166_spill] sm:$0xff] %v21505_v45  ;;  %v21579_v20 = vld [vmem:[#allocation203_spill] sm:$0xff]  ;;  %v21581_v9 = vld [vmem:[#allocation204_spill] sm:$0xff] }
 0x547   : >> { %21508 = vst [vmem:[#allocation167_spill] sm:$0xff] %v21507_v16  ;;  %21510 = vst [vmem:[#allocation168_spill] sm:$0xff] %v21509_v37  ;;  %v21582_v58 = vld [vmem:[#allocation205_spill] sm:$0xff]  ;;  %v21584_v59 = vld [vmem:[#allocation206_spill] sm:$0xff] }
 0x548   : >> { %21512 = vst [vmem:[#allocation169_spill] sm:$0xff] %v21511_v4  ;;  %21514 = vst [vmem:[#allocation170_spill] sm:$0xff] %v21513_v40  ;;  %v21586_v23 = vld [vmem:[#allocation207_spill] sm:$0xff]  ;;  %v21588_v60 = vld [vmem:[#allocation208_spill] sm:$0xff] }
 0x549   : >> { %21516 = vst [vmem:[#allocation171_spill] sm:$0xff] %v21515_v39  ;;  %21518 = vst [vmem:[#allocation172_spill] sm:$0xff] %v21517_v54  ;;  %v21589_v22 = vld [vmem:[#allocation209_spill] sm:$0xff]  ;;  %v21590_v13 = vld [vmem:[#allocation210_spill] sm:$0xff] }
 0x54a   : >> { %21520 = vst [vmem:[#allocation173_spill] sm:$0xff] %v21519_v48  ;;  %21522 = vst [vmem:[#allocation174_spill] sm:$0xff] %v21521_v63  ;;  %v21591_v21 = vld [vmem:[#allocation211_spill] sm:$0xff]  ;;  %v21592_v56 = vld [vmem:[#allocation212_spill] sm:$0xff] }
 0x54b   : >> { %21524 = vst [vmem:[#allocation175_spill] sm:$0xff] %v21523_v8  ;;  %21526 = vst [vmem:[#allocation176_spill] sm:$0xff] %v21525_v51  ;;  %v21593_v25 = vld [vmem:[#allocation213_spill] sm:$0xff]  ;;  %v21594_v61 = vld [vmem:[#allocation214_spill] sm:$0xff] }
 0x54c   : >> { %21528 = vst [vmem:[#allocation177_spill] sm:$0xff] %v21527_v44  ;;  %21530 = vst [vmem:[#allocation178_spill] sm:$0xff] %v21529_v6  ;;  %v21596_v57 = vld [vmem:[#allocation215_spill] sm:$0xff]  ;;  %v21598_v45 = vld [vmem:[#allocation216_spill] sm:$0xff] }
 0x54d   : >> { %21532 = vst [vmem:[#allocation179_spill] sm:$0xff] %v21531_v12  ;;  %21534 = vst [vmem:[#allocation180_spill] sm:$0xff] %v21533_v41  ;;  %v21600_v29 = vld [vmem:[#allocation217_spill] sm:$0xff]  ;;  %v21602_v47 = vld [vmem:[#allocation218_spill] sm:$0xff] }
 0x54e   : >> { %21536 = vst [vmem:[#allocation181_spill] sm:$0xff] %v21535_v24  ;;  %21538 = vst [vmem:[#allocation182_spill] sm:$0xff] %v21537_v26  ;;  %v21604_v0 = vld [vmem:[#allocation219_spill] sm:$0xff]  ;;  %v21609_v19 = vld [vmem:[#allocation220_spill] sm:$0xff] }
 0x54f   : >> { %21540 = vst [vmem:[#allocation183_spill] sm:$0xff] %v21539_v35  ;;  %21542 = vst [vmem:[#allocation184_spill] sm:$0xff] %v21541_v38  ;;  %v21612_v16 = vld [vmem:[#allocation45_spill] sm:$0xff]  ;;  %v21613_v37 = vld [vmem:[#allocation46_spill] sm:$0xff] }
 0x550   : >> { %21544 = vst [vmem:[#allocation185_spill] sm:$0xff] %v21543_v52  ;;  %21546 = vst [vmem:[#allocation186_spill] sm:$0xff] %v21545_v28  ;;  %10385 = vmatprep.mubr.msk.bf16.mxu0 %vm3630_vm1, %v21612_v16  ;;  %10417 = vmatprep.mubr.msk.bf16.mxu1 %vm3630_vm1, %v21613_v37  ;;  %v4625_v4 = vld [vmem:[%s17849_s20] sm:$0xff]  ;;  %v4626_v52 = vld [vmem:[%s17849_s20 + $0x8] sm:$0xff] }
 0x551   : >> { %21548 = vst [vmem:[#allocation187_spill] sm:$0xff] %v21547_v3  ;;  %21550 = vst [vmem:[#allocation188_spill] sm:$0xff] %v21549_v32  ;;  %v4633_v40 = vld [vmem:[%s17849_s20 + $0x40] sm:$0xff]  ;;  %10753 = vmatprep.subr.msk.bf16.mxu0 %vm3630_vm1, %v4625_v4  ;;  %v4716_v16 = vsel %vm3630_vm1, %v4625_v4, 0  ;;  %v4634_v28 = vld [vmem:[%s17849_s20 + $0x48] sm:$0xff]  ;;  %v4719_v35 = vsel %vm3630_vm1, %v4626_v52, 0 }
 0x552   : >> { %21552 = vst [vmem:[#allocation189_spill] sm:$0xff] %v21551_v43  ;;  %21554 = vst [vmem:[#allocation190_spill] sm:$0xff] %v21553_v31  ;;  %10761 = vmatprep.subr.msk.bf16.mxu1 %vm3630_vm1, %v4633_v40  ;;  %v4861_v37 = vsel %vm3630_vm1, %v4633_v40, 0  ;;  %10370 = vmatpush3.bf16.xpose.msra.mxu0 %v4716_v16  ;;  %v4864_v38 = vsel %vm3630_vm1, %v4634_v28, 0  ;;  %v4627_v48 = vld [vmem:[%s17849_s20 + $0x10] sm:$0xff]  ;;  %v4628_v16 = vld [vmem:[%s17849_s20 + $0x18] sm:$0xff] }
 0x553   : >> { %21556 = vst [vmem:[#allocation191_spill] sm:$0xff] %v21555_v18  ;;  %21558 = vst [vmem:[#allocation192_spill] sm:$0xff] %v21557_v15  ;;  %10402 = vmatpush3.bf16.xpose.msra.mxu1 %v4861_v37  ;;  %10754 = vmatprep.subr.msk.bf16.mxu0 %vm3630_vm1, %v4626_v52  ;;  %v4635_v63 = vld [vmem:[%s17849_s20 + $0x50] sm:$0xff]  ;;  %v4722_v4 = vsel %vm3630_vm1, %v4627_v48, 0  ;;  %v4636_v37 = vld [vmem:[%s17849_s20 + $0x58] sm:$0xff]  ;;  %v4725_v52 = vsel %vm3630_vm1, %v4628_v16, 0 }
 0x554   : >> { %21560 = vst [vmem:[#allocation193_spill] sm:$0xff] %v21559_v14  ;;  %21562 = vst [vmem:[#allocation194_spill] sm:$0xff] %v21561_v27  ;;  %10762 = vmatprep.subr.msk.bf16.mxu1 %vm3630_vm1, %v4634_v28  ;;  %v4867_v40 = vsel %vm3630_vm1, %v4635_v63, 0  ;;  %v4629_v28 = vld [vmem:[%s17849_s20 + $0x20] sm:$0xff]  ;;  %v21614_v43 = vld [vmem:[#allocation47_spill] sm:$0xff] }
 0x555   : >> { %21564 = vst [vmem:[#allocation195_spill] sm:$0xff] %v21563_v2  ;;  %21566 = vst [vmem:[#allocation196_spill] sm:$0xff] %v21565_v46  ;;  %v4659_v14 = vld [vmem:[%s18053_s28] sm:$0xff]  ;;  %v4669_v46 = vld [vmem:[%s18053_s28 + $0x50] sm:$0xff] }
 0x556   : >> { %21568 = vst [vmem:[#allocation197_spill] sm:$0xff] %v21567_v10  ;;  %21570 = vst [vmem:[#allocation198_spill] sm:$0xff] %v21569_v55  ;;  %v4667_v51 = vld [vmem:[%s18053_s28 + $0x40] sm:$0xff]  ;;  %v4660_v10 = vld [vmem:[%s18053_s28 + $0x8] sm:$0xff] }
 0x557   : >> { %21572 = vst [vmem:[#allocation199_spill] sm:$0xff] %v21571_v49  ;;  %21574 = vst [vmem:[#allocation200_spill] sm:$0xff] %v21573_v7  ;;  %v4668_v55 = vld [vmem:[%s18053_s28 + $0x48] sm:$0xff]  ;;  %v4671_v49 = vld [vmem:[%s18053_s28 + $0x60] sm:$0xff] }
 0x558   : >> { %21576 = vst [vmem:[#allocation201_spill] sm:$0xff] %v21575_v50  ;;  %21578 = vst [vmem:[#allocation202_spill] sm:$0xff] %v21577_v30  ;;  %v4673_v7 = vld [vmem:[%s18053_s28 + $0x70] sm:$0xff] }
 0x559   : >> { %21580 = vst [vmem:[#allocation203_spill] sm:$0xff] %v21579_v20  ;;  %21583 = vst [vmem:[#allocation204_spill] sm:$0xff] %v21582_v58 }
 0x55a   : >> { %21585 = vst [vmem:[#allocation205_spill] sm:$0xff] %v21584_v59  ;;  %21587 = vst [vmem:[#allocation206_spill] sm:$0xff] %v21586_v23  ;;  %10372 = vmatpush3.bf16.xpose.msra.mxu0 %v4719_v35  ;;  %v4637_v35 = vld [vmem:[%s17849_s20 + $0x60] sm:$0xff] }
 0x55b   : >> { %21595 = vst [vmem:[#allocation208_spill] sm:$0xff] %v21594_v61  ;;  %21597 = vst [vmem:[#allocation215_spill] sm:$0xff] %v21596_v57  ;;  %10404 = vmatpush3.bf16.xpose.msra.mxu1 %v4864_v38  ;;  %10755 = vmatprep.subr.msk.bf16.mxu0 %vm3630_vm1, %v4627_v48  ;;  %v4870_v38 = vsel %vm3630_vm1, %v4636_v37, 0  ;;  %v4873_v48 = vsel %vm3630_vm1, %v4637_v35, 0 }
 0x55c   : >> { %21599 = vst [vmem:[#allocation209_spill] sm:$0xff] %v21598_v45  ;;  %21601 = vst [vmem:[#allocation210_spill] sm:$0xff] %v21600_v29  ;;  %10763 = vmatprep.subr.msk.bf16.mxu1 %vm3630_vm1, %v4635_v63  ;;  %v4728_v63 = vsel %vm3630_vm1, %v4629_v28, 0  ;;  %v4662_v29 = vld [vmem:[%s18053_s28 + $0x18] sm:$0xff] }
 0x55d   : >> { %21603 = vst [vmem:[#allocation211_spill] sm:$0xff] %v21602_v47  ;;  %21605 = vst [vmem:[#allocation212_spill] sm:$0xff] %v14757_v33  ;;  %v4670_v47 = vld [vmem:[%s18053_s28 + $0x58] sm:$0xff] }
 0x55e   : >> { %21606 = vst [vmem:[#allocation213_spill] sm:$0xff] %v14761_v1  ;;  %21607 = vst [vmem:[#allocation214_spill] sm:$0xff] %v14765_v42 }
 0x55f   : >> { %21608 = vst [vmem:[#allocation216_spill] sm:$0xff] %v14777_v53  ;;  %21610 = vst [vmem:[#allocation220_spill] sm:$0xff] %v21609_v19 }
 0x560   : >> { %21611 = vst [vmem:[#allocation217_spill] sm:$0xff] %v14797_v62 }
 0x562   : >> { %10374 = vmatpush3.bf16.xpose.msra.mxu0 %v4722_v4  ;;  %v4630_v4 = vld [vmem:[%s17849_s20 + $0x28] sm:$0xff] }
 0x563   : >> { %10406 = vmatpush3.bf16.xpose.msra.mxu1 %v4867_v40  ;;  %10756 = vmatprep.subr.msk.bf16.mxu0 %vm3630_vm1, %v4628_v16  ;;  %v4638_v40 = vld [vmem:[%s17849_s20 + $0x68] sm:$0xff]  ;;  %v4731_v16 = vsel %vm3630_vm1, %v4630_v4, 0 }
 0x564   : >> { %10764 = vmatprep.subr.msk.bf16.mxu1 %vm3630_vm1, %v4636_v37  ;;  %v4876_v37 = vsel %vm3630_vm1, %v4638_v40, 0 }
 0x56a   : >> { %10376 = vmatpush3.bf16.xpose.msra.mxu0 %v4725_v52  ;;  %v4631_v52 = vld [vmem:[%s17849_s20 + $0x30] sm:$0xff] }
 0x56b   : >> { %10408 = vmatpush3.bf16.xpose.msra.mxu1 %v4870_v38  ;;  %10757 = vmatprep.subr.msk.bf16.mxu0 %vm3630_vm1, %v4629_v28  ;;  %v4639_v38 = vld [vmem:[%s17849_s20 + $0x70] sm:$0xff]  ;;  %v4734_v28 = vsel %vm3630_vm1, %v4631_v52, 0 }
 0x56c   : >> { %10765 = vmatprep.subr.msk.bf16.mxu1 %vm3630_vm1, %v4637_v35  ;;  %v4879_v35 = vsel %vm3630_vm1, %v4639_v38, 0 }
 0x572   : >> { %10378 = vmatpush3.bf16.xpose.msra.mxu0 %v4728_v63  ;;  %v4632_v63 = vld [vmem:[%s17849_s20 + $0x38] sm:$0xff] }
 0x573   : >> { %10410 = vmatpush3.bf16.xpose.msra.mxu1 %v4873_v48  ;;  %10758 = vmatprep.subr.msk.bf16.mxu0 %vm3630_vm1, %v4630_v4  ;;  %v4640_v48 = vld [vmem:[%s17849_s20 + $0x78] sm:$0xff]  ;;  %v4737_v4 = vsel %vm3630_vm1, %v4632_v63, 0 }
 0x574   : >> { %10766 = vmatprep.subr.msk.bf16.mxu1 %vm3630_vm1, %v4638_v40  ;;  %v4882_v40 = vsel %vm3630_vm1, %v4640_v48, 0 }
 0x57a   : >> { %10380 = vmatpush3.bf16.xpose.msra.mxu0 %v4731_v16  ;;  %v4641_v16 = vld [vmem:[%s17849_s20 + $0x80] sm:$0xff] }
 0x57b   : >> { %10412 = vmatpush3.bf16.xpose.msra.mxu1 %v4876_v37  ;;  %10759 = vmatprep.subr.msk.bf16.mxu0 %vm3630_vm1, %v4631_v52  ;;  %v4649_v37 = vld [vmem:[%s17849_s20 + $0xc0] sm:$0xff]  ;;  %v5006_v52 = vsel %vm3630_vm1, %v4641_v16, 0 }
 0x57c   : >> { %10767 = vmatprep.subr.msk.bf16.mxu1 %vm3630_vm1, %v4639_v38  ;;  %v5151_v38 = vsel %vm3630_vm1, %v4649_v37, 0 }
 0x582   : >> { %10382 = vmatpush3.bf16.xpose.msra.mxu0 %v4734_v28  ;;  %v4642_v28 = vld [vmem:[%s17849_s20 + $0x88] sm:$0xff] }
 0x583   : >> { %10414 = vmatpush3.bf16.xpose.msra.mxu1 %v4879_v35  ;;  %10760 = vmatprep.subr.msk.bf16.mxu0 %vm3630_vm1, %v4632_v63  ;;  %v4650_v35 = vld [vmem:[%s17849_s20 + $0xc8] sm:$0xff]  ;;  %v21615_v63 = vld [vmem:[#allocation48_spill] sm:$0xff] }
 0x584   : >> { %10768 = vmatprep.subr.msk.bf16.mxu1 %vm3630_vm1, %v4640_v48  ;;  %v21616_v48 = vld [vmem:[#allocation49_spill] sm:$0xff] }
 0x58a   : >> { %10384 = vmatpush3.bf16.xpose.msra.mxu0 %v4737_v4  ;;  %v21617_v4 = vld [vmem:[#allocation50_spill] sm:$0xff] }
 0x58b   : >> { %10416 = vmatpush3.bf16.xpose.msra.mxu1 %v4882_v40  ;;  %10769 = vmatprep.subr.msk.bf16.mxu0 %vm3630_vm1, %v4641_v16  ;;  %v5009_v40 = vsel %vm3630_vm1, %v4642_v28, 0  ;;  %v4643_v16 = vld [vmem:[%s17849_s20 + $0x90] sm:$0xff] }
 0x58c   : >> { %10777 = vmatprep.subr.msk.bf16.mxu1 %vm3630_vm1, %v4649_v37  ;;  %v4651_v37 = vld [vmem:[%s17849_s20 + $0xd0] sm:$0xff] }
 0x591   : >> { %10386 = vmatmul.mubr.msk.bf16.vlgmr.msra.gmra.mrb[0].mxu0 %vm3630_vm1, %v21614_v43  ;;  %v5154_v43 = vsel %vm3630_vm1, %v4650_v35, 0 }
 0x592   : >> { %10418 = vmatmul.mubr.msk.bf16.vlgmr.msra.gmra.mrb[0].mxu1 %vm3630_vm1, %v21615_v63  ;;  %10434 = vmatpush3.bf16.xpose.msra.mxu0 %v5006_v52  ;;  %v21618_v52 = vld [vmem:[#allocation51_spill] sm:$0xff]  ;;  %v21620_v63 = vld [vmem:[#allocation53_spill] sm:$0xff] }
 0x593   : >> { %10466 = vmatpush3.bf16.xpose.msra.mxu1 %v5151_v38  ;;  %10770 = vmatprep.subr.msk.bf16.mxu0 %vm3630_vm1, %v4642_v28  ;;  %v21619_v38 = vld [vmem:[#allocation52_spill] sm:$0xff]  ;;  %v21621_v28 = vld [vmem:[#allocation54_spill] sm:$0xff] }
 0x594   : >> { %10778 = vmatprep.subr.msk.bf16.mxu1 %vm3630_vm1, %v4650_v35  ;;  %10389 = vmatprep.mubr.msk.bf16.mxu0 %vm3630_vm1, %v21616_v48  ;;  %v5012_v35 = vsel %vm3630_vm1, %v4643_v16, 0  ;;  %v5157_v48 = vsel %vm3630_vm1, %v4651_v37, 0 }
 0x595   : >> { %10421 = vmatprep.mubr.msk.bf16.mxu1 %vm3630_vm1, %v21617_v4  ;;  %v4644_v4 = vld [vmem:[%s17849_s20 + $0x98] sm:$0xff] }
 0x599   : >> { %10390 = vmatmul.mubr.msk.bf16.gmra.mrb[4].mxu0 %vm3630_vm1, %v21618_v52  ;;  %v4652_v52 = vld [vmem:[%s17849_s20 + $0xd8] sm:$0xff] }
 0x59a   : >> { %10422 = vmatmul.mubr.msk.bf16.gmra.mrb[4].mxu1 %vm3630_vm1, %v21619_v38  ;;  %10436 = vmatpush3.bf16.xpose.msra.mxu0 %v5009_v40  ;;  %v21622_v40 = vld [vmem:[#allocation55_spill] sm:$0xff]  ;;  %v21624_v38 = vld [vmem:[#allocation57_spill] sm:$0xff] }
 0x59b   : >> { %10468 = vmatpush3.bf16.xpose.msra.mxu1 %v5154_v43  ;;  %10771 = vmatprep.subr.msk.bf16.mxu0 %vm3630_vm1, %v4643_v16  ;;  %v21623_v43 = vld [vmem:[#allocation56_spill] sm:$0xff]  ;;  %v21625_v16 = vld [vmem:[#allocation58_spill] sm:$0xff] }
 0x59c   : >> { %10779 = vmatprep.subr.msk.bf16.mxu1 %vm3630_vm1, %v4651_v37  ;;  %10393 = vmatprep.mubr.msk.bf16.mxu0 %vm3630_vm1, %v21620_v63  ;;  %v5015_v37 = vsel %vm3630_vm1, %v4644_v4, 0  ;;  %v5160_v63 = vsel %vm3630_vm1, %v4652_v52, 0 }
 0x59d   : >> { %10425 = vmatprep.mubr.msk.bf16.mxu1 %vm3630_vm1, %v21621_v28  ;;  %v4645_v28 = vld [vmem:[%s17849_s20 + $0xa0] sm:$0xff] }
 0x5a1   : >> { %10394 = vmatmul.mubr.msk.bf16.gmra.mrb[8].mxu0 %vm3630_vm1, %v21622_v40  ;;  %v4653_v40 = vld [vmem:[%s17849_s20 + $0xe0] sm:$0xff] }
 0x5a2   : >> { %10426 = vmatmul.mubr.msk.bf16.gmra.mrb[8].mxu1 %vm3630_vm1, %v21623_v43  ;;  %10438 = vmatpush3.bf16.xpose.msra.mxu0 %v5012_v35  ;;  %v21626_v35 = vld [vmem:[#allocation59_spill] sm:$0xff]  ;;  %v21628_v43 = vld [vmem:[#allocation61_spill] sm:$0xff] }
 0x5a3   : >> { %10470 = vmatpush3.bf16.xpose.msra.mxu1 %v5157_v48  ;;  %10772 = vmatprep.subr.msk.bf16.mxu0 %vm3630_vm1, %v4644_v4  ;;  %v21627_v48 = vld [vmem:[#allocation60_spill] sm:$0xff]  ;;  %v21629_v4 = vld [vmem:[#allocation62_spill] sm:$0xff] }
 0x5a4   : >> { %10780 = vmatprep.subr.msk.bf16.mxu1 %vm3630_vm1, %v4652_v52  ;;  %10397 = vmatprep.mubr.msk.bf16.mxu0 %vm3630_vm1, %v21624_v38  ;;  %v5018_v52 = vsel %vm3630_vm1, %v4645_v28, 0  ;;  %v5163_v38 = vsel %vm3630_vm1, %v4653_v40, 0 }
 0x5a5   : >> { %10429 = vmatprep.mubr.msk.bf16.mxu1 %vm3630_vm1, %v21625_v16  ;;  %v4646_v16 = vld [vmem:[%s17849_s20 + $0xa8] sm:$0xff] }
 0x5a9   : >> { %10398 = vmatmul.mubr.msk.bf16.gmra.mrb[12].mxu0 %vm3630_vm1, %v21626_v35 }
 0x5aa   : >> { %10430 = vmatmul.mubr.msk.bf16.gmra.mrb[12].mxu1 %vm3630_vm1, %v21627_v48  ;;  %10440 = vmatpush3.bf16.xpose.msra.mxu0 %v5015_v37  ;;  %v4654_v37 = vld [vmem:[%s17849_s20 + $0xe8] sm:$0xff]  ;;  %v4647_v48 = vld [vmem:[%s17849_s20 + $0xb0] sm:$0xff] }
 0x5ab   : >> { %10472 = vmatpush3.bf16.xpose.msra.mxu1 %v5160_v63  ;;  %10773 = vmatprep.subr.msk.bf16.mxu0 %vm3630_vm1, %v4645_v28  ;;  %v5021_v63 = vsel %vm3630_vm1, %v4646_v16, 0  ;;  %v5166_v35 = vsel %vm3630_vm1, %v4654_v37, 0  ;;  %v5024_v28 = vsel %vm3630_vm1, %v4647_v48, 0 }
 0x5ac   : >> { %10781 = vmatprep.subr.msk.bf16.mxu1 %vm3630_vm1, %v4653_v40  ;;  %10449 = vmatprep.mubr.msk.bf16.mxu0 %vm3630_vm1, %v21628_v43  ;;  %v4655_v43 = vld [vmem:[%s17849_s20 + $0xf0] sm:$0xff] }
 0x5ad   : >> { %10481 = vmatprep.mubr.msk.bf16.mxu1 %vm3630_vm1, %v21629_v4  ;;  %v5169_v40 = vsel %vm3630_vm1, %v4655_v43, 0  ;;  %v4648_v4 = vld [vmem:[%s17849_s20 + $0xb8] sm:$0xff] }
 0x5b2   : >> { %10442 = vmatpush3.bf16.xpose.msra.mxu0 %v5018_v52  ;;  %v4656_v52 = vld [vmem:[%s17849_s20 + $0xf8] sm:$0xff] }
 0x5b3   : >> { %10474 = vmatpush3.bf16.xpose.msra.mxu1 %v5163_v38  ;;  %10774 = vmatprep.subr.msk.bf16.mxu0 %vm3630_vm1, %v4646_v16  ;;  %v5027_v38 = vsel %vm3630_vm1, %v4648_v4, 0  ;;  %v5172_v16 = vsel %vm3630_vm1, %v4656_v52, 0 }
 0x5b4   : >> { %10782 = vmatprep.subr.msk.bf16.mxu1 %vm3630_vm1, %v4654_v37  ;;  %v21630_v37 = vld [vmem:[#allocation63_spill] sm:$0xff] }
 0x5ba   : >> { %10444 = vmatpush3.bf16.xpose.msra.mxu0 %v5021_v63  ;;  %v21631_v63 = vld [vmem:[#allocation64_spill] sm:$0xff] }
 0x5bb   : >> { %10476 = vmatpush3.bf16.xpose.msra.mxu1 %v5166_v35  ;;  %10775 = vmatprep.subr.msk.bf16.mxu0 %vm3630_vm1, %v4647_v48  ;;  %v21632_v35 = vld [vmem:[#allocation65_spill] sm:$0xff]  ;;  %v21633_v48 = vld [vmem:[#allocation66_spill] sm:$0xff] }
 0x5bc   : >> { %10783 = vmatprep.subr.msk.bf16.mxu1 %vm3630_vm1, %v4655_v43  ;;  %v21634_v43 = vld [vmem:[#allocation67_spill] sm:$0xff] }
 0x5c2   : >> { %10446 = vmatpush3.bf16.xpose.msra.mxu0 %v5024_v28  ;;  %v21635_v28 = vld [vmem:[#allocation68_spill] sm:$0xff] }
 0x5c3   : >> { %10478 = vmatpush3.bf16.xpose.msra.mxu1 %v5169_v40  ;;  %10776 = vmatprep.subr.msk.bf16.mxu0 %vm3630_vm1, %v4648_v4  ;;  %v21636_v40 = vld [vmem:[#allocation69_spill] sm:$0xff]  ;;  %v21637_v4 = vld [vmem:[#allocation70_spill] sm:$0xff] }
 0x5c4   : >> { %10784 = vmatprep.subr.msk.bf16.mxu1 %vm3630_vm1, %v4656_v52  ;;  %v21638_v52 = vld [vmem:[#allocation71_spill] sm:$0xff] }
 0x5ca   : >> { %10448 = vmatpush3.bf16.xpose.msra.mxu0 %v5027_v38  ;;  %v21639_v38 = vld [vmem:[#allocation72_spill] sm:$0xff] }
 0x5cb   : >> { %10480 = vmatpush3.bf16.xpose.msra.mxu1 %v5172_v16  ;;  %v21640_v16 = vld [vmem:[#allocation73_spill] sm:$0xff]  ;;  %10497 = vmatprep.subr.bf16.mxu0 %v4659_v14 }
 0x5cc   : >> { %10529 = vmatprep.subr.bf16.mxu1 %v4667_v51 }
 0x5d1   : >> { %10450 = vmatmul.mubr.msk.bf16.vlgmr.msra.gmra.mrb[16].mxu0 %vm3630_vm1, %v21630_v37  ;;  %v21641_v37 = vld [vmem:[#allocation74_spill] sm:$0xff] }
 0x5d2   : >> { %10482 = vmatmul.mubr.msk.bf16.vlgmr.msra.gmra.mrb[16].mxu1 %vm3630_vm1, %v21631_v63  ;;  %10453 = vmatprep.mubr.msk.bf16.mxu0 %vm3630_vm1, %v21632_v35  ;;  %v21642_v63 = vld [vmem:[#allocation75_spill] sm:$0xff]  ;;  %v21643_v35 = vld [vmem:[#allocation76_spill] sm:$0xff] }
 0x5d3   : >> { %10485 = vmatprep.mubr.msk.bf16.mxu1 %vm3630_vm1, %v21633_v48  ;;  %10498 = vmatpush3.bf16.msra.mxu0 %v4659_v14  ;;  %v4661_v14 = vld [vmem:[%s18053_s28 + $0x10] sm:$0xff] }
 0x5d4   : >> { %10530 = vmatpush3.bf16.msra.mxu1 %v4667_v51  ;;  %10499 = vmatprep.subr.bf16.mxu0 %v4660_v10 }
 0x5d5   : >> { %10531 = vmatprep.subr.bf16.mxu1 %v4668_v55 }
 0x5d7   : >> { %10500 = vmatpush3.bf16.msra.mxu0 %v4660_v10 }
 0x5d8   : >> { %10532 = vmatpush3.bf16.msra.mxu1 %v4668_v55  ;;  %10501 = vmatprep.subr.bf16.mxu0 %v4661_v14 }
 0x5d9   : >> { %10454 = vmatmul.mubr.msk.bf16.gmra.mrb[20].mxu0 %vm3630_vm1, %v21634_v43  ;;  %10533 = vmatprep.subr.bf16.mxu1 %v4669_v46 }
 0x5da   : >> { %10486 = vmatmul.mubr.msk.bf16.gmra.mrb[20].mxu1 %vm3630_vm1, %v21635_v28  ;;  %10457 = vmatprep.mubr.msk.bf16.mxu0 %vm3630_vm1, %v21636_v40 }
 0x5db   : >> { %10489 = vmatprep.mubr.msk.bf16.mxu1 %vm3630_vm1, %v21637_v4  ;;  %10502 = vmatpush3.bf16.msra.mxu0 %v4661_v14  ;;  %v4663_v14 = vld [vmem:[%s18053_s28 + $0x20] sm:$0xff] }
 0x5dc   : >> { %10534 = vmatpush3.bf16.msra.mxu1 %v4669_v46  ;;  %10503 = vmatprep.subr.bf16.mxu0 %v4662_v29  ;;  %v4664_v46 = vld [vmem:[%s18053_s28 + $0x28] sm:$0xff] }
 0x5dd   : >> { %10535 = vmatprep.subr.bf16.mxu1 %v4670_v47 }
 0x5df   : >> { %10504 = vmatpush3.bf16.msra.mxu0 %v4662_v29  ;;  %v4672_v29 = vld [vmem:[%s18053_s28 + $0x68] sm:$0xff] }
 0x5e0   : >> { %10536 = vmatpush3.bf16.msra.mxu1 %v4670_v47  ;;  %10505 = vmatprep.subr.bf16.mxu0 %v4663_v14  ;;  %v4665_v47 = vld [vmem:[%s18053_s28 + $0x30] sm:$0xff] }
 0x5e1   : >> { %10458 = vmatmul.mubr.msk.bf16.gmra.mrb[24].mxu0 %vm3630_vm1, %v21638_v52  ;;  %10537 = vmatprep.subr.bf16.mxu1 %v4671_v49 }
 0x5e2   : >> { %10490 = vmatmul.mubr.msk.bf16.gmra.mrb[24].mxu1 %vm3630_vm1, %v21639_v38  ;;  %10461 = vmatprep.mubr.msk.bf16.mxu0 %vm3630_vm1, %v21640_v16 }
 0x5e3   : >> { %10493 = vmatprep.mubr.msk.bf16.mxu1 %vm3630_vm1, %v21641_v37  ;;  %10506 = vmatpush3.bf16.msra.mxu0 %v4663_v14  ;;  %v4674_v14 = vld [vmem:[%s18053_s28 + $0x78] sm:$0xff] }
 0x5e4   : >> { %10538 = vmatpush3.bf16.msra.mxu1 %v4671_v49  ;;  %10507 = vmatprep.subr.bf16.mxu0 %v4664_v46  ;;  %v4666_v49 = vld [vmem:[%s18053_s28 + $0x38] sm:$0xff] }
 0x5e5   : >> { %10539 = vmatprep.subr.bf16.mxu1 %v4672_v29 }
 0x5e7   : >> { %10508 = vmatpush3.bf16.msra.mxu0 %v4664_v46 }
 0x5e8   : >> { %10540 = vmatpush3.bf16.msra.mxu1 %v4672_v29  ;;  %10509 = vmatprep.subr.bf16.mxu0 %v4665_v47 }
 0x5e9   : >> { %10462 = vmatmul.mubr.msk.bf16.gmra.mrb[28].mxu0 %vm3630_vm1, %v21642_v63  ;;  %10541 = vmatprep.subr.bf16.mxu1 %v4673_v7 }
 0x5ea   : >> { %10494 = vmatmul.mubr.msk.bf16.gmra.mrb[28].mxu1 %vm3630_vm1, %v21643_v35 }
 0x5eb   : >> { %10510 = vmatpush3.bf16.msra.mxu0 %v4665_v47 }
 0x5ec   : >> { %10542 = vmatpush3.bf16.msra.mxu1 %v4673_v7  ;;  %10511 = vmatprep.subr.bf16.mxu0 %v4666_v49 }
 0x5ed   : >> { %10543 = vmatprep.subr.bf16.mxu1 %v4674_v14 }
 0x5ef   : >> { %10512 = vmatpush3.bf16.msra.mxu0 %v4666_v49 }
 0x5f0   : >> { %10544 = vmatpush3.bf16.msra.mxu1 %v4674_v14 }
 0x664   : >> { %v18007_v48 = vpop.f32.mrb[0].mxu0 }
 0x665   : >> { %v18009_v43 = vpop.f32.mrb[0].mxu1  ;;  %5275 = vmax.xlane.f32.xlu0 %v18007_v48  ;;  %v18014_v40 = vpop.f32.mrb[1].mxu0 }
 0x666   : >> { %v18011_v28 = vpop.f32.mrb[1].mxu1  ;;  %v18017_v4 = vpop.f32.mrb[2].mxu0 }
 0x667   : >> { %5303 = vmax.xlane.f32.xlu1 %v18011_v28  ;;  %v18019_v52 = vpop.f32.mrb[2].mxu1  ;;  %v18021_v38 = vpop.f32.mrb[3].mxu0 }
 0x668   : >> { %v18023_v16 = vpop.f32.mrb[3].mxu1 }
 0x669   : >> { %5307 = vmax.xlane.f32.xlu0 %v18009_v43 }
 0x66b   : >> { %5277 = vmax.xlane.f32.xlu1 %v18017_v4 }
 0x66c   : >> { %v18027_v37 = vpop.f32.mrb[4].mxu0 }
 0x66d   : >> { %v18029_v63 = vpop.f32.mrb[4].mxu1  ;;  %5271 = vmax.xlane.f32.xlu0 %v18014_v40  ;;  %v18032_v35 = vpop.f32.mrb[5].mxu0 }
 0x66e   : >> { %v18034_v31 = vpop.f32.mrb[5].mxu1  ;;  %v18037_v39 = vpop.f32.mrb[6].mxu0 }
 0x66f   : >> { %5309 = vmax.xlane.f32.xlu1 %v18019_v52  ;;  %v18039_v54 = vpop.f32.mrb[6].mxu1  ;;  %v18041_v3 = vpop.f32.mrb[7].mxu0 }
 0x670   : >> { %v18043_v32 = vpop.f32.mrb[7].mxu1 }
 0x671   : >> { %5273 = vmax.xlane.f32.xlu0 %v18021_v38 }
 0x673   : >> { %5305 = vmax.xlane.f32.xlu1 %v18023_v16 }
 0x674   : >> { %v18047_v44 = vpop.f32.mrb[8].mxu0 }
 0x675   : >> { %v18049_v6 = vpop.f32.mrb[8].mxu1  ;;  %5283 = vmax.xlane.f32.xlu0 %v18027_v37  ;;  %v18057_v27 = vpop.f32.mrb[9].mxu0 }
 0x676   : >> { %21644 = vst [vmem:[#allocation218_spill] sm:$0xff] %v18057_v27  ;;  %v18059_v8 = vpop.f32.mrb[9].mxu1  ;;  %v18063_v18 = vpop.f32.mrb[10].mxu0 }
 0x677   : >> { %21645 = vst [vmem:[#allocation219_spill] sm:$0xff] %v18059_v8  ;;  %5285 = vmax.xlane.f32.xlu1 %v18037_v39  ;;  %v18065_v15 = vpop.f32.mrb[10].mxu1  ;;  %v18067_v24 = vpop.f32.mrb[11].mxu0 }
 0x678   : >> { %21646 = vst [vmem:[#allocation207_spill] sm:$0xff] %v18067_v24  ;;  %v18069_v26 = vpop.f32.mrb[11].mxu1 }
 0x679   : >> { %21647 = vst [vmem:[#allocation259_spill] sm:$0xff] %v18069_v26  ;;  %5315 = vmax.xlane.f32.xlu0 %v18029_v63 }
 0x67b   : >> { %5317 = vmax.xlane.f32.xlu1 %v18039_v54 }
 0x67c   : >> { %v18075_v12 = vpop.f32.mrb[12].mxu0 }
 0x67d   : >> { %21648 = vst [vmem:[#allocation260_spill] sm:$0xff] %v18075_v12  ;;  %v18077_v41 = vpop.f32.mrb[12].mxu1  ;;  %5279 = vmax.xlane.f32.xlu0 %v18032_v35  ;;  %v18081_v51 = vpop.f32.mrb[13].mxu0 }
 0x67e   : >> { %21649 = vst [vmem:[#allocation261_spill] sm:$0xff] %v18077_v41  ;;  %21650 = vst [vmem:[#allocation262_spill] sm:$0xff] %v18081_v51  ;;  %v18083_v2 = vpop.f32.mrb[13].mxu1  ;;  %v18087_v10 = vpop.f32.mrb[14].mxu0 }
 0x67f   : >> { %21651 = vst [vmem:[#allocation263_spill] sm:$0xff] %v18083_v2  ;;  %5281 = vmax.xlane.f32.xlu1 %v18041_v3  ;;  %21652 = vst [vmem:[#allocation264_spill] sm:$0xff] %v18087_v10  ;;  %v18089_v50 = vpop.f32.mrb[14].mxu1  ;;  %v18091_v55 = vpop.f32.mrb[15].mxu0 }
 0x680   : >> { %21653 = vst [vmem:[#allocation265_spill] sm:$0xff] %v18089_v50  ;;  %21654 = vst [vmem:[#allocation266_spill] sm:$0xff] %v18091_v55  ;;  %v18093_v30 = vpop.f32.mrb[15].mxu1 }
 0x681   : >> { %21655 = vst [vmem:[#allocation267_spill] sm:$0xff] %v18093_v30  ;;  %5311 = vmax.xlane.f32.xlu0 %v18034_v31 }
 0x683   : >> { %5313 = vmax.xlane.f32.xlu1 %v18043_v32 }
 0x685   : >> { %5291 = vmax.xlane.f32.xlu0 %v18047_v44 }
 0x687   : >> { %5293 = vmax.xlane.f32.xlu1 %v18063_v18 }
 0x689   : >> { %5323 = vmax.xlane.f32.xlu0 %v18049_v6 }
 0x68b   : >> { %5325 = vmax.xlane.f32.xlu1 %v18065_v15 }
 0x68d   : >> { %5287 = vmax.xlane.f32.xlu0 %v18057_v27 }
 0x68f   : >> { %5289 = vmax.xlane.f32.xlu1 %v18067_v24 }
 0x691   : >> { %5319 = vmax.xlane.f32.xlu0 %v18059_v8 }
 0x693   : >> { %5321 = vmax.xlane.f32.xlu1 %v18069_v26 }
 0x695   : >> { %5299 = vmax.xlane.f32.xlu0 %v18075_v12 }
 0x697   : >> { %5301 = vmax.xlane.f32.xlu1 %v18087_v10 }
 0x699   : >> { %5331 = vmax.xlane.f32.xlu0 %v18077_v41 }
 0x69b   : >> { %5333 = vmax.xlane.f32.xlu1 %v18089_v50 }
 0x69d   : >> { %5295 = vmax.xlane.f32.xlu0 %v18081_v51 }
 0x69f   : >> { %5297 = vmax.xlane.f32.xlu1 %v18091_v55 }
 0x6a1   : >> { %5327 = vmax.xlane.f32.xlu0 %v18083_v2 }
 0x6a3   : >> { %5329 = vmax.xlane.f32.xlu1 %v18093_v30 }
 0x6a4   : >> { %v18123_v7 = vpop.f32.mrb[16].mxu0 }
 0x6a5   : >> { %21656 = vst [vmem:[#allocation268_spill] sm:$0xff] %v18123_v7  ;;  %v18125_v46 = vpop.f32.mrb[16].mxu1  ;;  %5339 = vmax.xlane.f32.xlu0 %v18123_v7  ;;  %v18128_v29 = vpop.f32.mrb[17].mxu0 }
 0x6a6   : >> { %21657 = vst [vmem:[#allocation269_spill] sm:$0xff] %v18125_v46  ;;  %21658 = vst [vmem:[#allocation270_spill] sm:$0xff] %v18128_v29  ;;  %v18130_v47 = vpop.f32.mrb[17].mxu1  ;;  %v18132_v49 = vpop.f32.mrb[18].mxu0 }
 0x6a7   : >> { %21659 = vst [vmem:[#allocation271_spill] sm:$0xff] %v18130_v47  ;;  %21660 = vst [vmem:[#allocation272_spill] sm:$0xff] %v18132_v49  ;;  %v18134_v14 = vpop.f32.mrb[18].mxu1  ;;  %5341 = vmax.xlane.f32.xlu1 %v18132_v49  ;;  %v18137_v55 = vpop.f32.mrb[19].mxu0 }
 0x6a8   : >> { %21661 = vst [vmem:[#allocation273_spill] sm:$0xff] %v18134_v14  ;;  %21662 = vst [vmem:[#allocation274_spill] sm:$0xff] %v18137_v55  ;;  %v18139_v2 = vpop.f32.mrb[19].mxu1 }
 0x6a9   : >> { %21663 = vst [vmem:[#allocation275_spill] sm:$0xff] %v18139_v2  ;;  %5371 = vmax.xlane.f32.xlu0 %v18125_v46 }
 0x6ab   : >> { %5373 = vmax.xlane.f32.xlu1 %v18134_v14 }
 0x6ac   : >> { %v18143_v30 = vpop.f32.mrb[20].mxu0 }
 0x6ad   : >> { %21664 = vst [vmem:[#allocation276_spill] sm:$0xff] %v18143_v30  ;;  %v18145_v7 = vpop.f32.mrb[20].mxu1  ;;  %5335 = vmax.xlane.f32.xlu0 %v18128_v29  ;;  %v18148_v51 = vpop.f32.mrb[21].mxu0 }
 0x6ae   : >> { %21665 = vst [vmem:[#allocation277_spill] sm:$0xff] %v18145_v7  ;;  %v18150_v50 = vpop.f32.mrb[21].mxu1  ;;  %v18152_v49 = vpop.f32.mrb[22].mxu0 }
 0x6af   : >> { %21666 = vst [vmem:[#allocation278_spill] sm:$0xff] %v18152_v49  ;;  %v18154_v41 = vpop.f32.mrb[22].mxu1  ;;  %5337 = vmax.xlane.f32.xlu1 %v18137_v55  ;;  %v18157_v46 = vpop.f32.mrb[23].mxu0  ;;  %v18173_v55 = vld [vmem:[%s18053_s28 + $0x80] sm:$0xff] }
 0x6b0   : >> { %v18159_v14 = vpop.f32.mrb[23].mxu1  ;;  %10561 = vmatprep.subr.bf16.mxu0 %v18173_v55 }
 0x6b1   : >> { %5367 = vmax.xlane.f32.xlu0 %v18130_v47 }
 0x6b3   : >> { %5369 = vmax.xlane.f32.xlu1 %v18139_v2 }
 0x6b4   : >> { %v18163_v29 = vpop.f32.mrb[24].mxu0 }
 0x6b5   : >> { %v18165_v10 = vpop.f32.mrb[24].mxu1  ;;  %5347 = vmax.xlane.f32.xlu0 %v18143_v30  ;;  %v18168_v12 = vpop.f32.mrb[25].mxu0  ;;  %v18187_v30 = vld [vmem:[%s18053_s28 + $0xc0] sm:$0xff] }
 0x6b6   : >> { %v18170_v57 = vpop.f32.mrb[25].mxu1  ;;  %v18175_v45 = vpop.f32.mrb[26].mxu0  ;;  %10593 = vmatprep.subr.bf16.mxu1 %v18187_v30 }
 0x6b7   : >> { %21667 = vst [vmem:[#allocation279_spill] sm:$0xff] %v18170_v57  ;;  %v18177_v26 = vpop.f32.mrb[26].mxu1  ;;  %5349 = vmax.xlane.f32.xlu1 %v18152_v49  ;;  %v18181_v2 = vpop.f32.mrb[27].mxu0 }
 0x6b8   : >> { %21668 = vst [vmem:[#allocation280_spill] sm:$0xff] %v18181_v2  ;;  %v18183_v47 = vpop.f32.mrb[27].mxu1 }
 0x6b9   : >> { %21669 = vst [vmem:[#allocation281_spill] sm:$0xff] %v18183_v47  ;;  %5379 = vmax.xlane.f32.xlu0 %v18145_v7 }
 0x6bb   : >> { %5381 = vmax.xlane.f32.xlu1 %v18154_v41 }
 0x6bc   : >> { %v18191_v8 = vpop.f32.mrb[28].mxu0 }
 0x6bd   : >> { %21670 = vst [vmem:[#allocation282_spill] sm:$0xff] %v18191_v8  ;;  %v18193_v58 = vpop.f32.mrb[28].mxu1  ;;  %5343 = vmax.xlane.f32.xlu0 %v18148_v51  ;;  %v18196_v59 = vpop.f32.mrb[29].mxu0 }
 0x6be   : >> { %21671 = vst [vmem:[#allocation283_spill] sm:$0xff] %v18193_v58  ;;  %21672 = vst [vmem:[#allocation284_spill] sm:$0xff] %v18196_v59  ;;  %v18198_v49 = vpop.f32.mrb[29].mxu1  ;;  %v18200_v24 = vpop.f32.mrb[30].mxu0 }
 0x6bf   : >> { %21673 = vst [vmem:[#allocation285_spill] sm:$0xff] %v18198_v49  ;;  %v18202_v27 = vpop.f32.mrb[30].mxu1  ;;  %5345 = vmax.xlane.f32.xlu1 %v18157_v46  ;;  %v18205_v7 = vpop.f32.mrb[31].mxu0 }
 0x6c0   : >> { %21674 = vst [vmem:[#allocation286_spill] sm:$0xff] %v18202_v27  ;;  %21675 = vst [vmem:[#allocation287_spill] sm:$0xff] %v18205_v7  ;;  %v18207_v1 = vpop.f32.mrb[31].mxu1 }
 0x6c1   : >> { %21676 = vst [vmem:[#allocation288_spill] sm:$0xff] %v18207_v1  ;;  %5375 = vmax.xlane.f32.xlu0 %v18150_v50 }
 0x6c3   : >> { %5377 = vmax.xlane.f32.xlu1 %v18159_v14 }
 0x6c5   : >> { %5355 = vmax.xlane.f32.xlu0 %v18163_v29 }
 0x6c7   : >> { %5357 = vmax.xlane.f32.xlu1 %v18175_v45 }
 0x6c9   : >> { %5387 = vmax.xlane.f32.xlu0 %v18165_v10 }
 0x6cb   : >> { %5389 = vmax.xlane.f32.xlu1 %v18177_v26 }
 0x6cd   : >> { %5351 = vmax.xlane.f32.xlu0 %v18168_v12 }
 0x6cf   : >> { %5353 = vmax.xlane.f32.xlu1 %v18181_v2 }
 0x6d1   : >> { %5383 = vmax.xlane.f32.xlu0 %v18170_v57 }
 0x6d3   : >> { %5385 = vmax.xlane.f32.xlu1 %v18183_v47 }
 0x6d5   : >> { %5363 = vmax.xlane.f32.xlu0 %v18191_v8 }
 0x6d7   : >> { %5365 = vmax.xlane.f32.xlu1 %v18200_v24 }
 0x6d9   : >> { %5359 = vmax.xlane.f32.xlu0 %v18196_v59 }
 0x6db   : >> { %5361 = vmax.xlane.f32.xlu1 %v18205_v7 }
 0x6dd   : >> { %5391 = vmax.xlane.f32.xlu0 %v18198_v49 }
 0x6df   : >> { %5393 = vmax.xlane.f32.xlu1 %v18207_v1 }
 0x6e1   : >> { %5395 = vmax.xlane.f32.xlu0 %v18193_v58 }
 0x6e3   : >> { %5397 = vmax.xlane.f32.xlu1 %v18202_v27 }
 0x6f2   : >> { %v5276_v2 = vpop.xlane.xlu0 %5275 }
 0x6f3   : >> { %v18228_v57 = vmax.f32 %v14789_v36, %v5276_v2  }
 0x6f4   : >> { %v5304_v47 = vpop.xlane.xlu1 %5303 }
 0x6f5   : >> { %21677 = vst [vmem:[#allocation289_spill] sm:$0xff] %v18228_v57  ;;  %v21678_v19 = vmov %v18228_v57  ;;  %v18231_v8 = vmax.f32 %v21594_v61, %v5304_v47  }
 0x6f6   : >> { %v5657_v49 = vsub.f32 %v18007_v48, %v21678_v19  ;;  %v5308_v58 = vpop.xlane.xlu0 %5307 }
 0x6f7   : >> { %21679 = vst [vmem:[#allocation290_spill] sm:$0xff] %v18231_v8  ;;  %v21680_v42 = vmov %v18231_v8  ;;  %v18240_v27 = vmax.f32 %v21592_v56, %v5308_v58  }
 0x6f8   : >> { %v5723_v7 = vmul.f32 1.442695, %v5657_v49  ;;  %v5278_v2 = vpop.xlane.xlu1 %5277 }
 0x6f9   : >> { %21681 = vst [vmem:[#allocation291_spill] sm:$0xff] %v18240_v27  ;;  %v21682_v33 = vmov %v18240_v27  ;;  %v18243_v57 = vmax.f32 %v14785_v11, %v5278_v2   ;;  %v21685_v27 = vld [vmem:[#allocation217_spill] sm:$0xff] }
 0x6fa   : >> { %v5673_v47 = vsub.f32 %v18009_v43, %v21682_v33  ;;  %12641 = vpow2.f32 %v5723_v7  ;;  %v5272_v1 = vpop.xlane.xlu0 %5271  ;;  %v5671_v43 = vsub.f32 %v18011_v28, %v21680_v42 }
 0x6fb   : >> { %21683 = vst [vmem:[#allocation292_spill] sm:$0xff] %v18243_v57  ;;  %v21684_v62 = vmov %v18243_v57  ;;  %v18254_v59 = vmax.f32 %v21685_v27, %v5272_v1  }
 0x6fc   : >> { %v5658_v49 = vsub.f32 %v18017_v4, %v21684_v62  ;;  %v5755_v58 = vmul.f32 1.442695, %v5673_v47  ;;  %v5310_v2 = vpop.xlane.xlu1 %5309  ;;  %v5751_v27 = vmul.f32 1.442695, %v5671_v43 }
 0x6fd   : >> { %21686 = vst [vmem:[#allocation293_spill] sm:$0xff] %v18254_v59  ;;  %v21687_v19 = vmov %v18254_v59  ;;  %v18257_v61 = vmax.f32 %v21591_v21, %v5310_v2  }
 0x6fe   : >> { %v5725_v57 = vmul.f32 1.442695, %v5658_v49  ;;  %v5655_v48 = vsub.f32 %v18014_v40, %v21687_v19  ;;  %12643 = vpow2.f32 %v5755_v58  ;;  %v5274_v59 = vpop.xlane.xlu0 %5273  ;;  %v21690_v49 = vld [vmem:[#allocation220_spill] sm:$0xff] }
 0x6ff   : >> { %21688 = vst [vmem:[#allocation294_spill] sm:$0xff] %v18257_v61  ;;  %v21689_v8 = vmov %v18257_v61  ;;  %v18270_v61 = vmax.f32 %v21690_v49, %v5274_v59  }
 0x700   : >> { %v5674_v1 = vsub.f32 %v18019_v52, %v21689_v8  ;;  %v5719_v47 = vmul.f32 1.442695, %v5655_v48  ;;  %v5306_v2 = vpop.xlane.xlu1 %5305  ;;  %12645 = vpow2.f32 %v5725_v57 }
 0x701   : >> { %21691 = vst [vmem:[#allocation220_spill] sm:$0xff] %v18270_v61  ;;  %v21692_v62 = vmov %v18270_v61  ;;  %v18273_v7 = vmax.f32 %v21593_v25, %v5306_v2  }
 0x702   : >> { %v5757_v28 = vmul.f32 1.442695, %v5674_v1  ;;  %v5656_v58 = vsub.f32 %v18021_v38, %v21692_v62  ;;  %12647 = vpow2.f32 %v5719_v47  ;;  %v5284_v59 = vpop.xlane.xlu0 %5283 }
 0x703   : >> { %21693 = vst [vmem:[#allocation295_spill] sm:$0xff] %v18273_v7  ;;  %v21694_v42 = vmov %v18273_v7  ;;  %v18284_v1 = vmax.f32 %v14773_v5, %v5284_v59  }
 0x704   : >> { %v5672_v48 = vsub.f32 %v18023_v16, %v21694_v42  ;;  %v5721_v57 = vmul.f32 1.442695, %v5656_v58  ;;  %v5286_v7 = vpop.xlane.xlu1 %5285  ;;  %v18286_v43 = vpop.eup %12641  ;;  %12649 = vpow2.f32 %v5757_v28 }
 0x705   : >> { %21695 = vst [vmem:[#allocation296_spill] sm:$0xff] %v18284_v1  ;;  %v21696_v4 = vmov %v18284_v1  ;;  %v18289_v2 = vmax.f32 %v14769_v17, %v5286_v7   ;;  %12651 = vpow2.f32 %v5751_v27  ;;  %5915 = vadd.xlane.f32.xlu0 %v18286_v43 }
 0x706   : >> { %v5753_v61 = vmul.f32 1.442695, %v5672_v48  ;;  %v5661_v16 = vsub.f32 %v18027_v37, %v21696_v4  ;;  %12653 = vpow2.f32 %v5721_v57  ;;  %v5316_v58 = vpop.xlane.xlu0 %5315 }
 0x707   : >> { %21697 = vst [vmem:[#allocation297_spill] sm:$0xff] %v18289_v2  ;;  %v21698_v40 = vmov %v18289_v2  ;;  %v18301_v59 = vmax.f32 %v21588_v60, %v5316_v58  }
 0x708   : >> { %v5662_v28 = vsub.f32 %v18037_v39, %v21698_v40  ;;  %v5731_v48 = vmul.f32 1.442695, %v5661_v16  ;;  %v5318_v27 = vpop.xlane.xlu1 %5317  ;;  %v18303_v7 = vpop.eup %12643  ;;  %12655 = vpow2.f32 %v5753_v61 }
 0x709   : >> { %21699 = vst [vmem:[#allocation298_spill] sm:$0xff] %v18301_v59  ;;  %v21700_v1 = vmov %v18301_v59  ;;  %v18306_v37 = vmax.f32 %v21586_v23, %v5318_v27   ;;  %5947 = vadd.xlane.f32.xlu0 %v18303_v7 }
 0x70a   : >> { %v5733_v2 = vmul.f32 1.442695, %v5662_v28  ;;  %v5677_v47 = vsub.f32 %v18029_v63, %v21700_v1  ;;  %v12646_v39 = vpop.eup %12645  ;;  %12657 = vpow2.f32 %v5731_v48  ;;  %v5280_v28 = vpop.xlane.xlu0 %5279 }
 0x70b   : >> { %21701 = vst [vmem:[#allocation299_spill] sm:$0xff] %v18306_v37  ;;  %v21702_v52 = vmov %v18306_v37  ;;  %5917 = vadd.xlane.f32.xlu1 %v12646_v39  ;;  %v18318_v59 = vmax.f32 %v14781_v34, %v5280_v28  }
 0x70c   : >> { %v5678_v61 = vsub.f32 %v18039_v54, %v21702_v52  ;;  %v5763_v58 = vmul.f32 1.442695, %v5677_v47  ;;  %v5282_v27 = vpop.xlane.xlu1 %5281  ;;  %v12648_v37 = vpop.eup %12647  ;;  %12659 = vpow2.f32 %v5733_v2  ;;  %v6168_v54 = vpack.c.bf16 %v12646_v39, %v18286_v43 }
 0x70d   : >> { %21703 = vst [vmem:[#allocation300_spill] sm:$0xff] %v18318_v59  ;;  %v21704_v38 = vmov %v18318_v59  ;;  %v18321_v57 = vmax.f32 %v14777_v53, %v5282_v27   ;;  %5911 = vadd.xlane.f32.xlu0 %v12648_v37 }
 0x70e   : >> { %v5765_v63 = vmul.f32 1.442695, %v5678_v61  ;;  %v5659_v16 = vsub.f32 %v18032_v35, %v21704_v38  ;;  %v12650_v47 = vpop.eup %12649  ;;  %12661 = vpow2.f32 %v5763_v58  ;;  %v5312_v61 = vpop.xlane.xlu0 %5311 }
 0x70f   : >> { %21705 = vst [vmem:[#allocation301_spill] sm:$0xff] %v18321_v57  ;;  %v21706_v40 = vmov %v18321_v57  ;;  %v12652_v59 = vpop.eup %12651  ;;  %5949 = vadd.xlane.f32.xlu1 %v12650_v47  ;;  %v18333_v27 = vmax.f32 %v21590_v13, %v5312_v61  }
 0x710   : >> { %v5660_v2 = vsub.f32 %v18041_v3, %v21706_v40  ;;  %v5727_v57 = vmul.f32 1.442695, %v5659_v16  ;;  %v5314_v52 = vpop.xlane.xlu1 %5313  ;;  %v12654_v35 = vpop.eup %12653  ;;  %12663 = vpow2.f32 %v5765_v63  ;;  %v4676_v40 = vld [vmem:[%s18053_s28 + $0x88] sm:$0xff] }
 0x711   : >> { %21707 = vst [vmem:[#allocation302_spill] sm:$0xff] %v18333_v27  ;;  %v21708_v48 = vmov %v18333_v27  ;;  %v18336_v43 = vmax.f32 %v21589_v22, %v5314_v52   ;;  %5943 = vadd.xlane.f32.xlu0 %v12652_v59  ;;  %v6167_v16 = vpack.c.bf16 %v12654_v35, %v12648_v37  ;;  %v6176_v52 = vpack.c.bf16 %v12650_v47, %v18303_v7 }
 0x712   : >> { %v5729_v23 = vmul.f32 1.442695, %v5660_v2  ;;  %v5675_v3 = vsub.f32 %v18034_v31, %v21708_v48  ;;  %v12656_v58 = vpop.eup %12655  ;;  %12665 = vpow2.f32 %v5727_v57  ;;  %v5292_v2 = vpop.xlane.xlu0 %5291 }
 0x713   : >> { %21709 = vst [vmem:[#allocation303_spill] sm:$0xff] %v18336_v43  ;;  %v21710_v38 = vmov %v18336_v43  ;;  %5913 = vadd.xlane.f32.xlu1 %v12654_v35  ;;  %v21711_v43 = vld [vmem:[#allocation212_spill] sm:$0xff]  ;;  %10513 = vmatprep.mubr.bf16.mxu0 %v6167_v16  ;;  %v6175_v47 = vpack.c.bf16 %v12656_v58, %v12652_v59 }
 0x714   : >> { %v5676_v63 = vsub.f32 %v18043_v32, %v21710_v38  ;;  %v5759_v27 = vmul.f32 1.442695, %v5675_v3  ;;  %v18348_v28 = vmax.f32 %v21711_v43, %v5292_v2   ;;  %v5294_v31 = vpop.xlane.xlu1 %5293  ;;  %v18351_v37 = vpop.eup %12657  ;;  %12667 = vpow2.f32 %v5729_v23  ;;  %10514 = vmatmul.mubr.bf16.vlgmr.msra.gmra.mrb[32].mxu0 %v6168_v54  ;;  %v4684_v2 = vld [vmem:[%s18053_s28 + $0xc8] sm:$0xff] }
 0x715   : >> { %v18354_v61 = vmax.f32 %v21604_v0, %v5294_v31   ;;  %5923 = vadd.xlane.f32.xlu0 %v18351_v37  ;;  %10562 = vmatpush3.bf16.msra.mxu0 %v18173_v55  ;;  %v4677_v55 = vld [vmem:[%s18053_s28 + $0x90] sm:$0xff] }
 0x716   : >> { %21712 = vst [vmem:[#allocation304_spill] sm:$0xff] %v18348_v28  ;;  %v21713_v39 = vmov %v18348_v28  ;;  %v5761_v57 = vmul.f32 1.442695, %v5676_v63  ;;  %v18362_v28 = vpop.eup %12659  ;;  %12669 = vpow2.f32 %v5759_v27  ;;  %v5324_v35 = vpop.xlane.xlu0 %5323  ;;  %10563 = vmatprep.subr.bf16.mxu0 %v4676_v40  ;;  %10545 = vmatprep.mubr.bf16.mxu1 %v6175_v47  ;;  %v21720_v47 = vld [vmem:[#allocation214_spill] sm:$0xff] }
 0x717   : >> { %21714 = vst [vmem:[#allocation305_spill] sm:$0xff] %v18354_v61  ;;  %v21715_v53 = vmov %v18354_v61  ;;  %v5665_v7 = vsub.f32 %v18047_v44, %v21713_v39  ;;  %5945 = vadd.xlane.f32.xlu1 %v12656_v58  ;;  %v18369_v44 = vmax.f32 %v21581_v9, %v5324_v35   ;;  %10546 = vmatmul.mubr.bf16.vlgmr.msra.gmra.mrb[32].mxu1 %v6176_v52 }
 0x718   : >> { %v5666_v54 = vsub.f32 %v18063_v18, %v21715_v53  ;;  %v5326_v59 = vpop.xlane.xlu1 %5325  ;;  %v18372_v16 = vpop.eup %12661  ;;  %12671 = vpow2.f32 %v5761_v57  ;;  %10594 = vmatpush3.bf16.msra.mxu1 %v18187_v30 }
 0x719   : >> { %v5739_v3 = vmul.f32 1.442695, %v5665_v7  ;;  %21716 = vst [vmem:[#allocation212_spill] sm:$0xff] %v18369_v44  ;;  %v21717_v32 = vmov %v18369_v44  ;;  %v18375_v63 = vmax.f32 %v21579_v20, %v5326_v59   ;;  %5955 = vadd.xlane.f32.xlu0 %v18372_v16  ;;  %10564 = vmatpush3.bf16.msra.mxu0 %v4676_v40 }
 0x71a   : >> { %v5741_v61 = vmul.f32 1.442695, %v5666_v54  ;;  %v5681_v58 = vsub.f32 %v18049_v6, %v21717_v32  ;;  %v18385_v31 = vpop.eup %12663  ;;  %v5288_v7 = vpop.xlane.xlu0 %5287  ;;  %10565 = vmatprep.subr.bf16.mxu0 %v4677_v55  ;;  %10595 = vmatprep.subr.bf16.mxu1 %v4684_v2 }
 0x71b   : >> { %21718 = vst [vmem:[#allocation306_spill] sm:$0xff] %v18375_v63  ;;  %v21719_v23 = vmov %v18375_v63  ;;  %12673 = vpow2.f32 %v5739_v3  ;;  %5925 = vadd.xlane.f32.xlu1 %v18362_v28  ;;  %v18394_v54 = vmax.f32 %v21720_v47, %v5288_v7   ;;  %v4678_v3 = vld [vmem:[%s18053_s28 + $0x98] sm:$0xff]  ;;  %v21723_v63 = vld [vmem:[#allocation213_spill] sm:$0xff] }
 0x71c   : >> { %v5682_v57 = vsub.f32 %v18065_v15, %v21719_v23  ;;  %v5771_v6 = vmul.f32 1.442695, %v5681_v58  ;;  %v5290_v35 = vpop.xlane.xlu1 %5289  ;;  %v12666_v44 = vpop.eup %12665  ;;  %12675 = vpow2.f32 %v5741_v61  ;;  %v4685_v15 = vld [vmem:[%s18053_s28 + $0xd0] sm:$0xff]  ;;  %v21725_v58 = vld [vmem:[#allocation218_spill] sm:$0xff]  ;;  %10596 = vmatpush3.bf16.msra.mxu1 %v4684_v2  ;;  %v21729_v61 = vld [vmem:[#allocation204_spill] sm:$0xff] }
 0x71d   : >> { %21721 = vst [vmem:[#allocation307_spill] sm:$0xff] %v18394_v54  ;;  %v21722_v40 = vmov %v18394_v54  ;;  %v18398_v52 = vmax.f32 %v21723_v63, %v5290_v35   ;;  %5919 = vadd.xlane.f32.xlu0 %v12666_v44  ;;  %10566 = vmatpush3.bf16.msra.mxu0 %v4677_v55  ;;  %v4679_v55 = vld [vmem:[%s18053_s28 + $0xa0] sm:$0xff] }
 0x71e   : >> { %v5773_v59 = vmul.f32 1.442695, %v5682_v57  ;;  %v5663_v18 = vsub.f32 %v21725_v58, %v21722_v40  ;;  %v12668_v54 = vpop.eup %12667  ;;  %12677 = vpow2.f32 %v5771_v6  ;;  %v21726_v57 = vld [vmem:[#allocation207_spill] sm:$0xff]  ;;  %v5320_v27 = vpop.xlane.xlu0 %5319  ;;  %10567 = vmatprep.subr.bf16.mxu0 %v4678_v3  ;;  %v21727_v58 = vld [vmem:[#allocation205_spill] sm:$0xff]  ;;  %10597 = vmatprep.subr.bf16.mxu1 %v4685_v15 }
 0x71f   : >> { %21724 = vst [vmem:[#allocation308_spill] sm:$0xff] %v18398_v52  ;;  %v5664_v35 = vsub.f32 %v21726_v57, %v18398_v52  ;;  %5957 = vadd.xlane.f32.xlu1 %v18385_v31  ;;  %v18413_v23 = vmax.f32 %v21727_v58, %v5320_v27   ;;  %v21732_v57 = vld [vmem:[#allocation219_spill] sm:$0xff]  ;;  %v6169_v52 = vpack.c.bf16 %v12668_v54, %v12666_v44  ;;  %v4686_v27 = vld [vmem:[%s18053_s28 + $0xd8] sm:$0xff]  ;;  %v21734_v44 = vld [vmem:[#allocation209_spill] sm:$0xff] }
 0x720   : >> { %v5735_v30 = vmul.f32 1.442695, %v5663_v18  ;;  %v5322_v7 = vpop.xlane.xlu1 %5321  ;;  %v12670_v6 = vpop.eup %12669  ;;  %12679 = vpow2.f32 %v5773_v59  ;;  %10598 = vmatpush3.bf16.msra.mxu1 %v4685_v15  ;;  %v4680_v58 = vld [vmem:[%s18053_s28 + $0xa8] sm:$0xff]  ;;  %v21737_v59 = vpack.c.bf16 %v18362_v28, %v18351_v37  ;;  %v21741_v15 = vld [vmem:[#allocation260_spill] sm:$0xff]  ;;  %v21746_v37 = vpack.c.bf16 %v18385_v31, %v18372_v16 }
 0x721   : >> { %21728 = vst [vmem:[#allocation218_spill] sm:$0xff] %v18413_v23  ;;  %v5737_v20 = vmul.f32 1.442695, %v5664_v35  ;;  %v18417_v63 = vmax.f32 %v21729_v61, %v5322_v7   ;;  %v5679_v18 = vsub.f32 %v21732_v57, %v18413_v23  ;;  %5951 = vadd.xlane.f32.xlu0 %v12670_v6  ;;  %10568 = vmatpush3.bf16.msra.mxu0 %v4678_v3  ;;  %v21733_v35 = vld [vmem:[#allocation259_spill] sm:$0xff]  ;;  %v21742_v28 = vld [vmem:[#allocation264_spill] sm:$0xff] }
 0x722   : >> { %v12672_v47 = vpop.eup %12671  ;;  %12681 = vpow2.f32 %v5735_v30  ;;  %10569 = vmatprep.subr.bf16.mxu0 %v4679_v55  ;;  %10517 = vmatprep.mubr.bf16.mxu0 %v6169_v52 }
 0x723   : >> { %21730 = vst [vmem:[#allocation207_spill] sm:$0xff] %v18417_v63  ;;  %v21731_v40 = vmov %v18417_v63  ;;  %v5300_v63 = vpop.xlane.xlu0 %5299  ;;  %v5767_v2 = vmul.f32 1.442695, %v5679_v18  ;;  %5921 = vadd.xlane.f32.xlu1 %v12668_v54  ;;  %12683 = vpow2.f32 %v5737_v20  ;;  %10518 = vmatmul.mubr.bf16.gmra.mrb[36].mxu0 %v21737_v59  ;;  %v6177_v18 = vpack.c.bf16 %v12672_v47, %v12670_v6  ;;  %v4687_v20 = vld [vmem:[%s18053_s28 + $0xe0] sm:$0xff]  ;;  %v21743_v6 = vld [vmem:[#allocation200_spill] sm:$0xff] }
 0x724   : >> { %v5680_v7 = vsub.f32 %v21733_v35, %v21731_v40  ;;  %v18429_v57 = vmax.f32 %v21734_v44, %v5300_v63   ;;  %v5302_v3 = vpop.xlane.xlu1 %5301  ;;  %v21738_v35 = vld [vmem:[#allocation215_spill] sm:$0xff]  ;;  %10599 = vmatprep.subr.bf16.mxu1 %v4686_v27 }
 0x725   : >> { %v18432_v53 = vpop.eup %12673  ;;  %10570 = vmatpush3.bf16.msra.mxu0 %v4679_v55  ;;  %12685 = vpow2.f32 %v5767_v2  ;;  %10600 = vmatpush3.bf16.msra.mxu1 %v4686_v27  ;;  %v4688_v27 = vld [vmem:[%s18053_s28 + $0xe8] sm:$0xff] }
 0x726   : >> { %21735 = vst [vmem:[#allocation219_spill] sm:$0xff] %v18429_v57  ;;  %v21736_v23 = vmov %v18429_v57  ;;  %v5769_v30 = vmul.f32 1.442695, %v5680_v7  ;;  %v18438_v57 = vmax.f32 %v21738_v35, %v5302_v3   ;;  %5931 = vadd.xlane.f32.xlu0 %v18432_v53  ;;  %v18446_v7 = vpop.eup %12675  ;;  %10571 = vmatprep.subr.bf16.mxu0 %v4680_v58 }
 0x727   : >> { %v5669_v54 = vsub.f32 %v21741_v15, %v21736_v23  ;;  %v5332_v63 = vpop.xlane.xlu0 %5331  ;;  %10549 = vmatprep.mubr.bf16.mxu1 %v6177_v18  ;;  %5953 = vadd.xlane.f32.xlu1 %v12672_v47  ;;  %v4681_v15 = vld [vmem:[%s18053_s28 + $0xb0] sm:$0xff]  ;;  %v4682_v47 = vld [vmem:[%s18053_s28 + $0xb8] sm:$0xff] }
 0x728   : >> { %21739 = vst [vmem:[#allocation215_spill] sm:$0xff] %v18438_v57  ;;  %v21740_v40 = vmov %v18438_v57  ;;  %v18453_v3 = vmax.f32 %v21743_v6, %v5332_v63   ;;  %v5334_v55 = vpop.xlane.xlu1 %5333  ;;  %v18456_v61 = vpop.eup %12677  ;;  %12687 = vpow2.f32 %v5769_v30  ;;  %10550 = vmatmul.mubr.bf16.gmra.mrb[36].mxu1 %v21746_v37  ;;  %10601 = vmatprep.subr.bf16.mxu1 %v4687_v20  ;;  %v6172_v30 = vpack.c.bf16 %v18446_v7, %v18432_v53  ;;  %v21750_v37 = vld [vmem:[#allocation265_spill] sm:$0xff] }
 0x729   : >> { %v5670_v59 = vsub.f32 %v21742_v28, %v21740_v40  ;;  %v5747_v57 = vmul.f32 1.442695, %v5669_v54  ;;  %v21747_v28 = vld [vmem:[#allocation199_spill] sm:$0xff]  ;;  %v21749_v54 = vld [vmem:[#allocation261_spill] sm:$0xff]  ;;  %10572 = vmatpush3.bf16.msra.mxu0 %v4680_v58  ;;  %10602 = vmatpush3.bf16.msra.mxu1 %v4687_v20 }
 0x72a   : >> { %21744 = vst [vmem:[#allocation209_spill] sm:$0xff] %v18453_v3  ;;  %v21745_v52 = vmov %v18453_v3  ;;  %v18462_v40 = vmax.f32 %v21747_v28, %v5334_v55   ;;  %5963 = vadd.xlane.f32.xlu0 %v18456_v61  ;;  %v18472_v16 = vpop.eup %12679  ;;  %10573 = vmatprep.subr.bf16.mxu0 %v4681_v15  ;;  %v21751_v55 = vld [vmem:[#allocation211_spill] sm:$0xff]  ;;  %v21754_v6 = vld [vmem:[#allocation210_spill] sm:$0xff] }
 0x72b   : >> { %v5749_v2 = vmul.f32 1.442695, %v5670_v59  ;;  %v5685_v18 = vsub.f32 %v21749_v54, %v21745_v52  ;;  %12689 = vpow2.f32 %v5747_v57  ;;  %v5296_v63 = vpop.xlane.xlu0 %5295  ;;  %5933 = vadd.xlane.f32.xlu1 %v18446_v7  ;;  %10603 = vmatprep.subr.bf16.mxu1 %v4688_v27  ;;  %v4689_v28 = vld [vmem:[%s18053_s28 + $0xf0] sm:$0xff]  ;;  %v6180_v7 = vpack.c.bf16 %v18472_v16, %v18456_v61 }
 0x72c   : >> { %21748 = vst [vmem:[#allocation309_spill] sm:$0xff] %v18462_v40  ;;  %v5686_v59 = vsub.f32 %v21750_v37, %v18462_v40  ;;  %v18480_v54 = vmax.f32 %v21751_v55, %v5296_v63   ;;  %v5298_v58 = vpop.xlane.xlu1 %5297  ;;  %v12682_v57 = vpop.eup %12681  ;;  %v21762_v55 = vld [vmem:[#allocation201_spill] sm:$0xff] }
 0x72d   : >> { %v5779_v3 = vmul.f32 1.442695, %v5685_v18  ;;  %12691 = vpow2.f32 %v5749_v2  ;;  %v18484_v31 = vmax.f32 %v21754_v6, %v5298_v58   ;;  %v21757_v18 = vld [vmem:[#allocation262_spill] sm:$0xff]  ;;  %10574 = vmatpush3.bf16.msra.mxu0 %v4681_v15  ;;  %v12684_v63 = vpop.eup %12683  ;;  %10604 = vmatpush3.bf16.msra.mxu1 %v4688_v27  ;;  %v21765_v27 = vld [vmem:[#allocation263_spill] sm:$0xff] }
 0x72e   : >> { %21752 = vst [vmem:[#allocation310_spill] sm:$0xff] %v18480_v54  ;;  %v21753_v53 = vmov %v18480_v54  ;;  %v5781_v52 = vmul.f32 1.442695, %v5686_v59  ;;  %5927 = vadd.xlane.f32.xlu0 %v12682_v57  ;;  %v21758_v59 = vld [vmem:[#allocation266_spill] sm:$0xff]  ;;  %10575 = vmatprep.subr.bf16.mxu0 %v4682_v47 }
 0x72f   : >> { %21755 = vst [vmem:[#allocation311_spill] sm:$0xff] %v18484_v31  ;;  %v21756_v23 = vmov %v18484_v31  ;;  %v5667_v37 = vsub.f32 %v21757_v18, %v21753_v53  ;;  %12693 = vpow2.f32 %v5779_v3  ;;  %v5328_v54 = vpop.xlane.xlu0 %5327  ;;  %5965 = vadd.xlane.f32.xlu1 %v18472_v16  ;;  %v21759_v18 = vld [vmem:[#allocation202_spill] sm:$0xff]  ;;  %10605 = vmatprep.subr.bf16.mxu1 %v4689_v28  ;;  %v12686_v15 = vpop.eup %12685  ;;  %v4690_v16 = vld [vmem:[%s18053_s28 + $0xf8] sm:$0xff] }
 0x730   : >> { %v5668_v31 = vsub.f32 %v21758_v59, %v21756_v23  ;;  %v18499_v20 = vmax.f32 %v21759_v18, %v5328_v54   ;;  %v5330_v61 = vpop.xlane.xlu1 %5329  ;;  %12695 = vpow2.f32 %v5781_v52  ;;  %v21766_v52 = vld [vmem:[#allocation267_spill] sm:$0xff] }
 0x731   : >> { %v5743_v58 = vmul.f32 1.442695, %v5667_v37  ;;  %v18502_v2 = vmax.f32 %v21762_v55, %v5330_v61   ;;  %v6171_v37 = vpack.c.bf16 %v12684_v63, %v12682_v57  ;;  %10576 = vmatpush3.bf16.msra.mxu0 %v4682_v47  ;;  %10606 = vmatpush3.bf16.msra.mxu1 %v4689_v28  ;;  %v21767_v59 = vld [vmem:[#allocation196_spill] sm:$0xff] }
 0x732   : >> { %21760 = vst [vmem:[#allocation210_spill] sm:$0xff] %v18499_v20  ;;  %v21761_v53 = vmov %v18499_v20  ;;  %v5745_v3 = vmul.f32 1.442695, %v5668_v31  ;;  %5959 = vadd.xlane.f32.xlu0 %v12686_v15  ;;  %v12688_v54 = vpop.eup %12687  ;;  %10607 = vmatprep.subr.bf16.mxu1 %v4690_v16 }
 0x733   : >> { %21763 = vst [vmem:[#allocation201_spill] sm:$0xff] %v18502_v2  ;;  %v21764_v40 = vmov %v18502_v2  ;;  %v5683_v23 = vsub.f32 %v21765_v27, %v21761_v53  ;;  %12697 = vpow2.f32 %v5743_v58  ;;  %v5340_v61 = vpop.xlane.xlu0 %5339  ;;  %10521 = vmatprep.mubr.bf16.mxu0 %v6171_v37  ;;  %5929 = vadd.xlane.f32.xlu1 %v12684_v63  ;;  %v6179_v58 = vpack.c.bf16 %v12688_v54, %v12686_v15 }
 0x734   : >> { %v5684_v31 = vsub.f32 %v21766_v52, %v21764_v40  ;;  %v18514_v18 = vmax.f32 %v21767_v59, %v5340_v61   ;;  %12699 = vpow2.f32 %v5745_v3  ;;  %10522 = vmatmul.mubr.bf16.gmra.mrb[40].mxu0 %v6172_v30  ;;  %v5342_v27 = vpop.xlane.xlu1 %5341  ;;  %v21770_v52 = vld [vmem:[#allocation268_spill] sm:$0xff] }
 0x735   : >> { %v5775_v2 = vmul.f32 1.442695, %v5683_v23  ;;  %v18516_v57 = vpop.eup %12689  ;;  %v21771_v23 = vld [vmem:[#allocation195_spill] sm:$0xff]  ;;  %10553 = vmatprep.mubr.bf16.mxu1 %v6179_v58  ;;  %10608 = vmatpush3.bf16.msra.mxu1 %v4690_v16 }
 0x736   : >> { %21768 = vst [vmem:[#allocation196_spill] sm:$0xff] %v18514_v18  ;;  %v21769_v53 = vmov %v18514_v18  ;;  %v5777_v47 = vmul.f32 1.442695, %v5684_v31  ;;  %v18523_v37 = vmax.f32 %v21771_v23, %v5342_v27   ;;  %5939 = vadd.xlane.f32.xlu0 %v18516_v57  ;;  %10554 = vmatmul.mubr.bf16.gmra.mrb[40].mxu1 %v6180_v7  ;;  %v21774_v31 = vld [vmem:[#allocation272_spill] sm:$0xff]  ;;  %v21775_v27 = vld [vmem:[#allocation180_spill] sm:$0xff]  ;;  %v21777_v58 = vld [vmem:[#allocation179_spill] sm:$0xff] }
 0x737   : >> { %v5689_v28 = vsub.f32 %v21770_v52, %v21769_v53  ;;  %v12692_v63 = vpop.eup %12691  ;;  %12701 = vpow2.f32 %v5775_v2  ;;  %v5372_v18 = vpop.xlane.xlu0 %5371  ;;  %5961 = vadd.xlane.f32.xlu1 %v12688_v54 }
 0x738   : >> { %21772 = vst [vmem:[#allocation312_spill] sm:$0xff] %v18523_v37  ;;  %v21773_v40 = vmov %v18523_v37  ;;  %12703 = vpow2.f32 %v5777_v47  ;;  %v18533_v52 = vmax.f32 %v21775_v27, %v5372_v18   ;;  %v5374_v37 = vpop.xlane.xlu1 %5373  ;;  %v6174_v2 = vpack.c.bf16 %v12692_v63, %v18516_v57  ;;  %v21780_v47 = vld [vmem:[#allocation269_spill] sm:$0xff] }
 0x739   : >> { %v5787_v30 = vmul.f32 1.442695, %v5689_v28  ;;  %v18528_v3 = vpop.eup %12693  ;;  %v5690_v61 = vsub.f32 %v21774_v31, %v21773_v40  ;;  %v18537_v16 = vmax.f32 %v21777_v58, %v5374_v37   ;;  %v21781_v57 = vld [vmem:[#allocation273_spill] sm:$0xff] }
 0x73a   : >> { %21776 = vst [vmem:[#allocation313_spill] sm:$0xff] %v18533_v52  ;;  %5971 = vadd.xlane.f32.xlu0 %v18528_v3  ;;  %v12696_v28 = vpop.eup %12695  ;;  %v5705_v31 = vsub.f32 %v21780_v47, %v18533_v52  ;;  %v21782_v37 = vld [vmem:[#allocation198_spill] sm:$0xff]  ;;  %v21785_v52 = vld [vmem:[#allocation270_spill] sm:$0xff] }
 0x73b   : >> { %21778 = vst [vmem:[#allocation314_spill] sm:$0xff] %v18537_v16  ;;  %v21779_v20 = vmov %v18537_v16  ;;  %12705 = vpow2.f32 %v5787_v30  ;;  %v5789_v7 = vmul.f32 1.442695, %v5690_v61  ;;  %v5336_v15 = vpop.xlane.xlu0 %5335  ;;  %5941 = vadd.xlane.f32.xlu1 %v12692_v63  ;;  %v6182_v54 = vpack.c.bf16 %v12696_v28, %v18528_v3  ;;  %v21792_v47 = vld [vmem:[#allocation274_spill] sm:$0xff] }
 0x73c   : >> { %v5706_v40 = vsub.f32 %v21781_v57, %v21779_v20  ;;  %v18549_v16 = vmax.f32 %v21782_v37, %v5336_v15   ;;  %v5819_v30 = vmul.f32 1.442695, %v5705_v31  ;;  %v5338_v61 = vpop.xlane.xlu1 %5337  ;;  %v21786_v57 = vld [vmem:[#allocation197_spill] sm:$0xff] }
 0x73d   : >> { %v12698_v53 = vpop.eup %12697  ;;  %12707 = vpow2.f32 %v5789_v7  ;;  %v18557_v63 = vmax.f32 %v21786_v57, %v5338_v61   ;;  %v21789_v7 = vld [vmem:[#allocation182_spill] sm:$0xff]  ;;  %v21798_v61 = vld [vmem:[#allocation192_spill] sm:$0xff] }
 0x73e   : >> { %21783 = vst [vmem:[#allocation315_spill] sm:$0xff] %v18549_v16  ;;  %v21784_v23 = vmov %v18549_v16  ;;  %v5821_v27 = vmul.f32 1.442695, %v5706_v40  ;;  %5935 = vadd.xlane.f32.xlu0 %v12698_v53  ;;  %v12700_v58 = vpop.eup %12699  ;;  %12709 = vpow2.f32 %v5819_v30  ;;  %v21793_v30 = vld [vmem:[#allocation271_spill] sm:$0xff] }
 0x73f   : >> { %v5687_v18 = vsub.f32 %v21785_v52, %v21784_v23  ;;  %21787 = vst [vmem:[#allocation316_spill] sm:$0xff] %v18557_v63  ;;  %v21788_v20 = vmov %v18557_v63  ;;  %v5368_v15 = vpop.xlane.xlu0 %5367  ;;  %5973 = vadd.xlane.f32.xlu1 %v12696_v28  ;;  %v6173_v52 = vpack.c.bf16 %v12700_v58, %v12698_v53  ;;  %v21794_v28 = vld [vmem:[#allocation181_spill] sm:$0xff] }
 0x740   : >> { %v18560_v31 = vmax.f32 %v21789_v7, %v5368_v15   ;;  %v5688_v37 = vsub.f32 %v21792_v47, %v21788_v20  ;;  %v5370_v23 = vpop.xlane.xlu1 %5369  ;;  %12711 = vpow2.f32 %v5821_v27  ;;  %v21797_v47 = vld [vmem:[#allocation275_spill] sm:$0xff] }
 0x741   : >> { %v5783_v16 = vmul.f32 1.442695, %v5687_v18  ;;  %v12702_v3 = vpop.eup %12701  ;;  %v18571_v63 = vmax.f32 %v21794_v28, %v5370_v23   ;;  %10525 = vmatprep.mubr.bf16.mxu0 %v6173_v52 }
 0x742   : >> { %21790 = vst [vmem:[#allocation317_spill] sm:$0xff] %v18560_v31  ;;  %v21791_v32 = vmov %v18560_v31  ;;  %5967 = vadd.xlane.f32.xlu0 %v12702_v3  ;;  %v12704_v15 = vpop.eup %12703  ;;  %v5785_v31 = vmul.f32 1.442695, %v5688_v37  ;;  %10526 = vmatmul.mubr.bf16.gmra.mrb[44].mxu0 %v6174_v2  ;;  %v21800_v37 = vld [vmem:[#allocation191_spill] sm:$0xff] }
 0x743   : >> { %v5703_v18 = vsub.f32 %v21793_v30, %v21791_v32  ;;  %21795 = vst [vmem:[#allocation318_spill] sm:$0xff] %v18571_v63  ;;  %v21796_v38 = vmov %v18571_v63  ;;  %v5348_v40 = vpop.xlane.xlu0 %5347  ;;  %12713 = vpow2.f32 %v5783_v16  ;;  %5937 = vadd.xlane.f32.xlu1 %v12700_v58  ;;  %v6181_v63 = vpack.c.bf16 %v12704_v15, %v12702_v3  ;;  %v21803_v58 = vld [vmem:[#allocation276_spill] sm:$0xff] }
 0x744   : >> { %v5704_v30 = vsub.f32 %v21797_v47, %v21796_v38  ;;  %v18580_v23 = vmax.f32 %v21798_v61, %v5348_v40   ;;  %v5350_v32 = vpop.xlane.xlu1 %5349  ;;  %12715 = vpow2.f32 %v5785_v31  ;;  %v21804_v40 = vld [vmem:[#allocation278_spill] sm:$0xff] }
 0x745   : >> { %v5815_v57 = vmul.f32 1.442695, %v5703_v18  ;;  %v18575_v27 = vpop.eup %12705  ;;  %v18583_v18 = vmax.f32 %v21800_v37, %v5350_v32   ;;  %10557 = vmatprep.mubr.bf16.mxu1 %v6181_v63 }
 0x746   : >> { %21799 = vst [vmem:[#allocation319_spill] sm:$0xff] %v18580_v23  ;;  %5979 = vadd.xlane.f32.xlu0 %v18575_v27  ;;  %v5817_v53 = vmul.f32 1.442695, %v5704_v30  ;;  %v5693_v28 = vsub.f32 %v21803_v58, %v18580_v23  ;;  %10558 = vmatmul.mubr.bf16.gmra.mrb[44].mxu1 %v6182_v54  ;;  %v21808_v58 = vld [vmem:[#allocation277_spill] sm:$0xff] }
 0x747   : >> { %21801 = vst [vmem:[#allocation191_spill] sm:$0xff] %v18583_v18  ;;  %v21802_v52 = vmov %v18583_v18  ;;  %v12708_v16 = vpop.eup %12707  ;;  %v5380_v47 = vpop.xlane.xlu0 %5379  ;;  %12717 = vpow2.f32 %v5815_v57  ;;  %5969 = vadd.xlane.f32.xlu1 %v12704_v15  ;;  %v21805_v18 = vld [vmem:[#allocation176_spill] sm:$0xff] }
 0x748   : >> { %v5694_v32 = vsub.f32 %v21804_v40, %v21802_v52  ;;  %v18595_v31 = vmax.f32 %v21805_v18, %v5380_v47   ;;  %v5795_v30 = vmul.f32 1.442695, %v5693_v28  ;;  %v5382_v7 = vpop.xlane.xlu1 %5381  ;;  %v6184_v2 = vpack.c.bf16 %v12708_v16, %v18575_v27  ;;  %v18598_v61 = vpop.eup %12709  ;;  %v21809_v40 = vld [vmem:[#allocation175_spill] sm:$0xff]  ;;  %v21812_v27 = vld [vmem:[#allocation194_spill] sm:$0xff] }
 0x749   : >> { %12719 = vpow2.f32 %v5817_v53  ;;  %v18605_v54 = vmax.f32 %v21809_v40, %v5382_v7  }
 0x74a   : >> { %21806 = vst [vmem:[#allocation176_spill] sm:$0xff] %v18595_v31  ;;  %v21807_v38 = vmov %v18595_v31  ;;  %v5797_v63 = vmul.f32 1.442695, %v5694_v32  ;;  %6011 = vadd.xlane.f32.xlu0 %v18598_v61  ;;  %v12712_v28 = vpop.eup %12711  ;;  %12721 = vpow2.f32 %v5795_v30 }
 0x74b   : >> { %v5709_v3 = vsub.f32 %v21808_v58, %v21807_v38  ;;  %21810 = vst [vmem:[#allocation320_spill] sm:$0xff] %v18605_v54  ;;  %v21811_v52 = vmov %v18605_v54  ;;  %v5344_v15 = vpop.xlane.xlu0 %5343  ;;  %5981 = vadd.xlane.f32.xlu1 %v12708_v16  ;;  %v21815_v16 = vld [vmem:[#allocation193_spill] sm:$0xff] }
 0x74c   : >> { %v18609_v47 = vmax.f32 %v21812_v27, %v5344_v15   ;;  %v5710_v31 = vsub.f32 %v18154_v41, %v21811_v52  ;;  %v5346_v58 = vpop.xlane.xlu1 %5345  ;;  %12723 = vpow2.f32 %v5797_v63  ;;  %v21818_v27 = vld [vmem:[#allocation178_spill] sm:$0xff]  ;;  %v21821_v52 = vld [vmem:[#allocation177_spill] sm:$0xff] }
 0x74d   : >> { %v5827_v53 = vmul.f32 1.442695, %v5709_v3  ;;  %v12714_v57 = vpop.eup %12713  ;;  %v18620_v54 = vmax.f32 %v21815_v16, %v5346_v58  }
 0x74e   : >> { %21813 = vst [vmem:[#allocation321_spill] sm:$0xff] %v18609_v47  ;;  %v21814_v23 = vmov %v18609_v47  ;;  %v5829_v15 = vmul.f32 1.442695, %v5710_v31  ;;  %5975 = vadd.xlane.f32.xlu0 %v12714_v57  ;;  %v6192_v47 = vpack.c.bf16 %v12712_v28, %v18598_v61  ;;  %v12716_v32 = vpop.eup %12715 }
 0x74f   : >> { %v5691_v30 = vsub.f32 %v18148_v51, %v21814_v23  ;;  %21816 = vst [vmem:[#allocation193_spill] sm:$0xff] %v18620_v54  ;;  %v21817_v38 = vmov %v18620_v54  ;;  %v5376_v3 = vpop.xlane.xlu0 %5375  ;;  %12725 = vpow2.f32 %v5827_v53  ;;  %6013 = vadd.xlane.f32.xlu1 %v12712_v28  ;;  %v6183_v54 = vpack.c.bf16 %v12716_v32, %v12714_v57  ;;  %v21825_v53 = vld [vmem:[#allocation187_spill] sm:$0xff] }
 0x750   : >> { %v5692_v7 = vsub.f32 %v18157_v46, %v21817_v38  ;;  %v18628_v51 = vmax.f32 %v21818_v27, %v5376_v3   ;;  %v5378_v58 = vpop.xlane.xlu1 %5377  ;;  %12727 = vpow2.f32 %v5829_v15 }
 0x751   : >> { %v5791_v41 = vmul.f32 1.442695, %v5691_v30  ;;  %v12718_v31 = vpop.eup %12717  ;;  %v18631_v40 = vmax.f32 %v21821_v52, %v5378_v58   ;;  %10577 = vmatprep.mubr.bf16.mxu0 %v6183_v54 }
 0x752   : >> { %21819 = vst [vmem:[#allocation178_spill] sm:$0xff] %v18628_v51  ;;  %v21820_v23 = vmov %v18628_v51  ;;  %v5793_v61 = vmul.f32 1.442695, %v5692_v7  ;;  %6007 = vadd.xlane.f32.xlu0 %v12718_v31  ;;  %10578 = vmatmul.mubr.bf16.vlgmr.msra.gmra.mrb[48].mxu0 %v6184_v2  ;;  %v21823_v7 = vld [vmem:[#allocation188_spill] sm:$0xff] }
 0x753   : >> { %21822 = vst [vmem:[#allocation177_spill] sm:$0xff] %v18631_v40  ;;  %v5707_v28 = vsub.f32 %v18150_v50, %v21820_v23  ;;  %v5356_v46 = vpop.xlane.xlu0 %5355  ;;  %v12720_v30 = vpop.eup %12719  ;;  %12729 = vpow2.f32 %v5791_v41  ;;  %v5708_v15 = vsub.f32 %v18159_v14, %v18631_v40  ;;  %5977 = vadd.xlane.f32.xlu1 %v12716_v32 }
 0x754   : >> { %v18642_v32 = vmax.f32 %v21823_v7, %v5356_v46   ;;  %v5358_v51 = vpop.xlane.xlu1 %5357  ;;  %v6191_v58 = vpack.c.bf16 %v12720_v30, %v12718_v31  ;;  %v18644_v50 = vpop.eup %12721  ;;  %12731 = vpow2.f32 %v5793_v61  ;;  %v21828_v31 = vld [vmem:[#allocation172_spill] sm:$0xff] }
 0x755   : >> { %v5823_v3 = vmul.f32 1.442695, %v5707_v28  ;;  %v5825_v54 = vmul.f32 1.442695, %v5708_v15  ;;  %v18651_v14 = vmax.f32 %v21825_v53, %v5358_v51  }
 0x756   : >> { %21824 = vst [vmem:[#allocation188_spill] sm:$0xff] %v18642_v32  ;;  %v5697_v57 = vsub.f32 %v18163_v29, %v18642_v32  ;;  %10609 = vmatprep.mubr.bf16.mxu1 %v6191_v58  ;;  %5987 = vadd.xlane.f32.xlu0 %v18644_v50  ;;  %v12724_v28 = vpop.eup %12723  ;;  %v21834_v58 = vld [vmem:[#allocation190_spill] sm:$0xff] }
 0x757   : >> { %21826 = vst [vmem:[#allocation322_spill] sm:$0xff] %v18651_v14  ;;  %v21827_v63 = vmov %v18651_v14  ;;  %v5388_v2 = vpop.xlane.xlu0 %5387  ;;  %12733 = vpow2.f32 %v5823_v3  ;;  %6009 = vadd.xlane.f32.xlu1 %v12720_v30  ;;  %10610 = vmatmul.mubr.bf16.vlgmr.msra.gmra.mrb[48].mxu1 %v6192_v47  ;;  %v21831_v30 = vld [vmem:[#allocation171_spill] sm:$0xff] }
 0x758   : >> { %v18655_v61 = vmax.f32 %v21828_v31, %v5388_v2   ;;  %v5803_v46 = vmul.f32 1.442695, %v5697_v57  ;;  %v5698_v29 = vsub.f32 %v18175_v45, %v21827_v63  ;;  %v5390_v51 = vpop.xlane.xlu1 %5389  ;;  %12735 = vpow2.f32 %v5825_v54 }
 0x759   : >> { %v18661_v14 = vpop.eup %12725  ;;  %v18668_v3 = vmax.f32 %v21831_v30, %v5390_v51  }
 0x75a   : >> { %21829 = vst [vmem:[#allocation323_spill] sm:$0xff] %v18655_v61  ;;  %v21830_v40 = vmov %v18655_v61  ;;  %v5805_v57 = vmul.f32 1.442695, %v5698_v29  ;;  %6019 = vadd.xlane.f32.xlu0 %v18661_v14  ;;  %v6186_v61 = vpack.c.bf16 %v12724_v28, %v18644_v50  ;;  %v18672_v45 = vpop.eup %12727  ;;  %12737 = vpow2.f32 %v5803_v46  ;;  %v21837_v50 = vld [vmem:[#allocation189_spill] sm:$0xff] }
 0x75b   : >> { %v5713_v47 = vsub.f32 %v18165_v10, %v21830_v40  ;;  %21832 = vst [vmem:[#allocation324_spill] sm:$0xff] %v18668_v3  ;;  %v21833_v41 = vmov %v18668_v3  ;;  %v5352_v2 = vpop.xlane.xlu0 %5351  ;;  %5989 = vadd.xlane.f32.xlu1 %v12724_v28  ;;  %v6194_v3 = vpack.c.bf16 %v18672_v45, %v18661_v14  ;;  %v21839_v14 = vld [vmem:[#allocation280_spill] sm:$0xff] }
 0x75c   : >> { %v5714_v10 = vsub.f32 %v18177_v26, %v21833_v41  ;;  %v18679_v51 = vmax.f32 %v21834_v58, %v5352_v2   ;;  %v5354_v29 = vpop.xlane.xlu1 %5353  ;;  %12739 = vpow2.f32 %v5805_v57 }
 0x75d   : >> { %v5835_v15 = vmul.f32 1.442695, %v5713_v47  ;;  %v12730_v31 = vpop.eup %12729  ;;  %v18684_v63 = vmax.f32 %v21837_v50, %v5354_v29   ;;  %v21840_v29 = vld [vmem:[#allocation174_spill] sm:$0xff]  ;;  %v21844_v50 = vld [vmem:[#allocation173_spill] sm:$0xff] }
 0x75e   : >> { %21835 = vst [vmem:[#allocation325_spill] sm:$0xff] %v18679_v51  ;;  %v21836_v40 = vmov %v18679_v51  ;;  %v5837_v46 = vmul.f32 1.442695, %v5714_v10  ;;  %5983 = vadd.xlane.f32.xlu0 %v12730_v31  ;;  %v12732_v2 = vpop.eup %12731 }
 0x75f   : >> { %21838 = vst [vmem:[#allocation326_spill] sm:$0xff] %v18684_v63  ;;  %v5695_v28 = vsub.f32 %v18168_v12, %v21836_v40  ;;  %v5384_v26 = vpop.xlane.xlu0 %5383  ;;  %12741 = vpow2.f32 %v5835_v15  ;;  %v5696_v57 = vsub.f32 %v21839_v14, %v18684_v63  ;;  %6021 = vadd.xlane.f32.xlu1 %v18672_v45  ;;  %v6185_v58 = vpack.c.bf16 %v12732_v2, %v12730_v31  ;;  %v21843_v40 = vld [vmem:[#allocation279_spill] sm:$0xff] }
 0x760   : >> { %v18696_v10 = vmax.f32 %v21840_v29, %v5384_v26   ;;  %v5386_v47 = vpop.xlane.xlu1 %5385  ;;  %12743 = vpow2.f32 %v5837_v46  ;;  %v21846_v31 = vld [vmem:[#allocation184_spill] sm:$0xff] }
 0x761   : >> { %v5799_v41 = vmul.f32 1.442695, %v5695_v28  ;;  %v12734_v30 = vpop.eup %12733  ;;  %v5801_v12 = vmul.f32 1.442695, %v5696_v57  ;;  %v18703_v53 = vmax.f32 %v21844_v50, %v5386_v47   ;;  %10581 = vmatprep.mubr.bf16.mxu0 %v6185_v58  ;;  %v21849_v57 = vld [vmem:[#allocation281_spill] sm:$0xff] }
 0x762   : >> { %21841 = vst [vmem:[#allocation174_spill] sm:$0xff] %v18696_v10  ;;  %v21842_v54 = vmov %v18696_v10  ;;  %6015 = vadd.xlane.f32.xlu0 %v12734_v30  ;;  %v12736_v26 = vpop.eup %12735  ;;  %10582 = vmatmul.mubr.bf16.gmra.mrb[52].mxu0 %v6186_v61 }
 0x763   : >> { %v5711_v51 = vsub.f32 %v21843_v40, %v21842_v54  ;;  %21845 = vst [vmem:[#allocation327_spill] sm:$0xff] %v18703_v53  ;;  %v5364_v45 = vpop.xlane.xlu0 %5363  ;;  %12745 = vpow2.f32 %v5799_v41  ;;  %5985 = vadd.xlane.f32.xlu1 %v12732_v2  ;;  %v5712_v40 = vsub.f32 %v21849_v57, %v18703_v53  ;;  %v21850_v41 = vld [vmem:[#allocation282_spill] sm:$0xff] }
 0x764   : >> { %v18706_v28 = vmax.f32 %v21846_v31, %v5364_v45   ;;  %v5366_v10 = vpop.xlane.xlu1 %5365  ;;  %v18712_v47 = vpop.eup %12737  ;;  %12747 = vpow2.f32 %v5801_v12  ;;  %v21851_v2 = vld [vmem:[#allocation183_spill] sm:$0xff]  ;;  %v21860_v12 = vld [vmem:[#allocation284_spill] sm:$0xff] }
 0x765   : >> { %v5831_v46 = vmul.f32 1.442695, %v5711_v51  ;;  %v18719_v45 = vmax.f32 %v21851_v2, %v5366_v10   ;;  %v5833_v51 = vmul.f32 1.442695, %v5712_v40 }
 0x766   : >> { %21847 = vst [vmem:[#allocation184_spill] sm:$0xff] %v18706_v28  ;;  %v21848_v63 = vmov %v18706_v28  ;;  %v6193_v28 = vpack.c.bf16 %v12736_v26, %v12734_v30  ;;  %5995 = vadd.xlane.f32.xlu0 %v18712_v47  ;;  %v12740_v50 = vpop.eup %12739 }
 0x767   : >> { %v5701_v61 = vsub.f32 %v21850_v41, %v21848_v63  ;;  %21852 = vst [vmem:[#allocation328_spill] sm:$0xff] %v18719_v45  ;;  %v21853_v15 = vmov %v18719_v45  ;;  %v5360_v14 = vpop.xlane.xlu0 %5359  ;;  %12749 = vpow2.f32 %v5831_v46  ;;  %6017 = vadd.xlane.f32.xlu1 %v12736_v26  ;;  %v21854_v41 = vld [vmem:[#allocation186_spill] sm:$0xff]  ;;  %v6188_v30 = vpack.c.bf16 %v12740_v50, %v18712_v47  ;;  %v21857_v45 = vld [vmem:[#allocation185_spill] sm:$0xff] }
 0x768   : >> { %v5702_v58 = vsub.f32 %v18200_v24, %v21853_v15  ;;  %10613 = vmatprep.mubr.bf16.mxu1 %v6193_v28  ;;  %v18727_v28 = vmax.f32 %v21854_v41, %v5360_v14   ;;  %v5362_v10 = vpop.xlane.xlu1 %5361  ;;  %12751 = vpow2.f32 %v5833_v51  ;;  %v21861_v51 = vld [vmem:[#allocation287_spill] sm:$0xff]  ;;  %v21866_v47 = vld [vmem:[#allocation169_spill] sm:$0xff] }
 0x769   : >> { %v5811_v57 = vmul.f32 1.442695, %v5701_v61  ;;  %v12742_v40 = vpop.eup %12741  ;;  %10614 = vmatmul.mubr.bf16.gmra.mrb[52].mxu1 %v6194_v3  ;;  %v18731_v46 = vmax.f32 %v21857_v45, %v5362_v10  }
 0x76a   : >> { %21855 = vst [vmem:[#allocation329_spill] sm:$0xff] %v18727_v28  ;;  %v21856_v63 = vmov %v18727_v28  ;;  %v5813_v61 = vmul.f32 1.442695, %v5702_v58  ;;  %6027 = vadd.xlane.f32.xlu0 %v12742_v40  ;;  %v12744_v14 = vpop.eup %12743  ;;  %v21862_v28 = vld [vmem:[#allocation170_spill] sm:$0xff] }
 0x76b   : >> { %21858 = vst [vmem:[#allocation330_spill] sm:$0xff] %v18731_v46  ;;  %v21859_v53 = vmov %v18731_v46  ;;  %v5699_v24 = vsub.f32 %v21860_v12, %v21856_v63  ;;  %v5392_v15 = vpop.xlane.xlu0 %5391  ;;  %12753 = vpow2.f32 %v5811_v57  ;;  %5997 = vadd.xlane.f32.xlu1 %v12740_v50  ;;  %v6196_v26 = vpack.c.bf16 %v12744_v14, %v12742_v40  ;;  %v21865_v57 = vld [vmem:[#allocation285_spill] sm:$0xff] }
 0x76c   : >> { %v5700_v3 = vsub.f32 %v21861_v51, %v21859_v53  ;;  %v18742_v10 = vmax.f32 %v21862_v28, %v5392_v15   ;;  %v5394_v46 = vpop.xlane.xlu1 %5393  ;;  %12755 = vpow2.f32 %v5813_v61  ;;  %v21869_v15 = vld [vmem:[#allocation168_spill] sm:$0xff] }
 0x76d   : >> { %v5807_v58 = vmul.f32 1.442695, %v5699_v24  ;;  %v12746_v41 = vpop.eup %12745  ;;  %v18749_v45 = vmax.f32 %v21866_v47, %v5394_v46   ;;  %v21873_v46 = vld [vmem:[#allocation283_spill] sm:$0xff] }
 0x76e   : >> { %21863 = vst [vmem:[#allocation331_spill] sm:$0xff] %v18742_v10  ;;  %v21864_v54 = vmov %v18742_v10  ;;  %v5809_v12 = vmul.f32 1.442695, %v5700_v3  ;;  %5991 = vadd.xlane.f32.xlu0 %v12746_v41  ;;  %v12748_v51 = vpop.eup %12747  ;;  %v21872_v3 = vld [vmem:[#allocation288_spill] sm:$0xff] }
 0x76f   : >> { %v5715_v2 = vsub.f32 %v21865_v57, %v21864_v54  ;;  %21867 = vst [vmem:[#allocation169_spill] sm:$0xff] %v18749_v45  ;;  %v21868_v32 = vmov %v18749_v45  ;;  %v5396_v50 = vpop.xlane.xlu0 %5395  ;;  %12757 = vpow2.f32 %v5807_v58  ;;  %6029 = vadd.xlane.f32.xlu1 %v12744_v14  ;;  %v21874_v14 = vld [vmem:[#allocation167_spill] sm:$0xff] }
 0x770   : >> { %v18752_v24 = vmax.f32 %v21869_v15, %v5396_v50   ;;  %v5716_v63 = vsub.f32 %v21872_v3, %v21868_v32  ;;  %v5398_v28 = vpop.xlane.xlu1 %5397  ;;  %12759 = vpow2.f32 %v5809_v12  ;;  %v21876_v12 = vld [vmem:[#allocation286_spill] sm:$0xff]  ;;  %v22030_v3 = vld [vmem:[#allocation320_spill] sm:$0xff] }
 0x771   : >> { %v5839_v10 = vmul.f32 1.442695, %v5715_v2  ;;  %v12750_v57 = vpop.eup %12749  ;;  %v18763_v54 = vmax.f32 %v21874_v14, %v5398_v28   ;;  %v6187_v2 = vpack.c.bf16 %v12748_v51, %v12746_v41 }
 0x772   : >> { %21870 = vst [vmem:[#allocation332_spill] sm:$0xff] %v18752_v24  ;;  %v21871_v40 = vmov %v18752_v24  ;;  %v5841_v50 = vmul.f32 1.442695, %v5716_v63  ;;  %6023 = vadd.xlane.f32.xlu0 %v12750_v57  ;;  %v12752_v24 = vpop.eup %12751 }
 0x773   : >> { %v5717_v58 = vsub.f32 %v21873_v46, %v21871_v40  ;;  %21875 = vst [vmem:[#allocation167_spill] sm:$0xff] %v18763_v54  ;;  %12761 = vpow2.f32 %v5839_v10  ;;  %5993 = vadd.xlane.f32.xlu1 %v12748_v51  ;;  %v5718_v32 = vsub.f32 %v21876_v12, %v18763_v54  ;;  %10585 = vmatprep.mubr.bf16.mxu0 %v6187_v2  ;;  %v21880_v12 = vld [vmem:[#allocation292_spill] sm:$0xff] }
 0x774   : >> { %v6195_v45 = vpack.c.bf16 %v12752_v24, %v12750_v57  ;;  %12763 = vpow2.f32 %v5841_v50  ;;  %10586 = vmatmul.mubr.bf16.gmra.mrb[56].mxu0 %v6188_v30 }
 0x775   : >> { %v5843_v61 = vmul.f32 1.442695, %v5717_v58  ;;  %v12754_v15 = vpop.eup %12753  ;;  %v5845_v28 = vmul.f32 1.442695, %v5718_v32  ;;  %v21877_v32 = vld [vmem:[#allocation289_spill] sm:$0xff] }
 0x776   : >> { %10617 = vmatprep.mubr.bf16.mxu1 %v6195_v45  ;;  %6003 = vadd.xlane.f32.xlu0 %v12754_v15  ;;  %v12756_v63 = vpop.eup %12755  ;;  %v21878_v30 = vsub.f32 %v14789_v36, %v21877_v32  ;;  %v21882_v36 = vld [vmem:[#allocation217_spill] sm:$0xff]  ;;  %v22018_v32 = vld [vmem:[#allocation319_spill] sm:$0xff] }
 0x777   : >> { %12765 = vpow2.f32 %v5843_v61  ;;  %6025 = vadd.xlane.f32.xlu1 %v12752_v24  ;;  %10618 = vmatmul.mubr.bf16.gmra.mrb[56].mxu1 %v6196_v26  ;;  %v6190_v41 = vpack.c.bf16 %v12756_v63, %v12754_v15  ;;  %v21879_v15 = vsub.f32 %v21592_v56, %v21682_v33 }
 0x778   : >> { %12767 = vpow2.f32 %v5845_v28  ;;  %v5531_v45 = vmul.f32 1.442695, %v21878_v30  ;;  %v21881_v28 = vsub.f32 %v14785_v11, %v21880_v12  ;;  %v21888_v11 = vsub.f32 %v21690_v49, %v21692_v62 }
 0x779   : >> { %v12758_v10 = vpop.eup %12757  ;;  %v5563_v2 = vmul.f32 1.442695, %v21879_v15 }
 0x77a   : >> { %5999 = vadd.xlane.f32.xlu0 %v12758_v10  ;;  %v12760_v51 = vpop.eup %12759  ;;  %12769 = vpow2.f32 %v5531_v45 }
 0x77b   : >> { %6005 = vadd.xlane.f32.xlu1 %v12756_v63  ;;  %v6189_v46 = vpack.c.bf16 %v12760_v51, %v12758_v10  ;;  %12771 = vpow2.f32 %v5563_v2  ;;  %v21883_v10 = vsub.f32 %v21882_v36, %v21687_v19 }
 0x77d   : >> { %v12762_v58 = vpop.eup %12761  ;;  %10589 = vmatprep.mubr.bf16.mxu0 %v6189_v46  ;;  %v21884_v46 = vsub.f32 %v21591_v21, %v21689_v8  ;;  %v21890_v21 = vld [vmem:[#allocation164_spill] sm:$0xff] }
 0x77e   : >> { %6031 = vadd.xlane.f32.xlu0 %v12762_v58  ;;  %v12764_v57 = vpop.eup %12763  ;;  %10590 = vmatmul.mubr.bf16.gmra.mrb[60].mxu0 %v6190_v41  ;;  %v5533_v41 = vmul.f32 1.442695, %v21881_v28 }
 0x77f   : >> { %6001 = vadd.xlane.f32.xlu1 %v12760_v51  ;;  %v6197_v61 = vpack.c.bf16 %v12764_v57, %v12762_v58  ;;  %v5527_v51 = vmul.f32 1.442695, %v21883_v10  ;;  %v5565_v58 = vmul.f32 1.442695, %v21884_v46  ;;  %v21894_v10 = vld [vmem:[#allocation148_spill] sm:$0xff] }
 0x780   : >> { %12773 = vpow2.f32 %v5533_v41 }
 0x781   : >> { %v12766_v50 = vpop.eup %12765  ;;  %10621 = vmatprep.mubr.bf16.mxu1 %v6197_v61  ;;  %v21886_v61 = vld [vmem:[#allocation290_spill] sm:$0xff]  ;;  %12775 = vpow2.f32 %v5527_v51 }
 0x782   : >> { %6035 = vadd.xlane.f32.xlu0 %v12766_v50  ;;  %v12768_v26 = vpop.eup %12767  ;;  %12777 = vpow2.f32 %v5565_v58  ;;  %v21895_v58 = vld [vmem:[#allocation297_spill] sm:$0xff] }
 0x783   : >> { %6033 = vadd.xlane.f32.xlu1 %v12764_v57  ;;  %v6198_v24 = vpack.c.bf16 %v12768_v26, %v12766_v50  ;;  %v21885_v57 = vld [vmem:[#allocation208_spill] sm:$0xff]  ;;  %v5529_v50 = vmul.f32 1.442695, %v21888_v11 }
 0x784   : >> { %v21887_v56 = vsub.f32 %v21885_v57, %v21886_v61  ;;  %v18787_v45 = vpop.eup %12769  ;;  %v21891_v61 = vsub.f32 %v21593_v25, %v21694_v42  ;;  %v21896_v25 = vsub.f32 %v14769_v17, %v21895_v58 }
 0x785   : >> { %10622 = vmatmul.mubr.bf16.gmra.mrb[60].mxu1 %v6198_v24  ;;  %v5849_v2 = vmul.f32 %v21890_v21, %v18787_v45  ;;  %v18797_v24 = vpop.eup %12771 }
 0x786   : >> { %v5559_v30 = vmul.f32 1.442695, %v21887_v56  ;;  %v5561_v12 = vmul.f32 1.442695, %v21891_v61  ;;  %v5865_v51 = vmul.f32 %v21894_v10, %v18797_v24  ;;  %v5541_v57 = vmul.f32 1.442695, %v21896_v25 }
 0x787   : >> { %6037 = vadd.xlane.f32.xlu1 %v12768_v26  ;;  %v21889_v26 = vsub.f32 %v14773_v5, %v21696_v4  ;;  %v21893_v5 = vsub.f32 %v21588_v60, %v21700_v1  ;;  %v21899_v60 = vld [vmem:[#allocation300_spill] sm:$0xff]  ;;  %v21903_v10 = vld [vmem:[#allocation206_spill] sm:$0xff] }
 0x788   : >> { %12779 = vpow2.f32 %v5559_v30  ;;  %v21900_v21 = vsub.f32 %v14781_v34, %v21899_v60 }
 0x789   : >> { %v5539_v15 = vmul.f32 1.442695, %v21889_v26  ;;  %12781 = vpow2.f32 %v5529_v50  ;;  %v5571_v36 = vmul.f32 1.442695, %v21893_v5  ;;  %v21898_v50 = vld [vmem:[#allocation163_spill] sm:$0xff] }
 0x78a   : >> { %v18804_v49 = vpop.eup %12773 }
 0x78b   : >> { %12783 = vpow2.f32 %v5539_v15  ;;  %v18811_v46 = vpop.eup %12775  ;;  %v5850_v26 = vmul.f32 %v21898_v50, %v18804_v49 }
 0x78c   : >> { %12785 = vpow2.f32 %v5561_v12  ;;  %v18820_v15 = vpop.eup %12777  ;;  %v21902_v12 = vld [vmem:[#allocation166_spill] sm:$0xff] }
 0x78d   : >> { %12787 = vpow2.f32 %v5571_v36  ;;  %v5847_v17 = vmul.f32 %v21902_v12, %v18811_v46  ;;  %v21907_v36 = vld [vmem:[#allocation147_spill] sm:$0xff] }
 0x78e   : >> { %12789 = vpow2.f32 %v5541_v57  ;;  %v5866_v34 = vmul.f32 %v21907_v36, %v18820_v15 }
 0x792   : >> { %v5916_v28 = vpop.xlane.xlu0 %5915  ;;  %v18829_v5 = vpop.eup %12779 }
 0x793   : >> { %v18802_v41 = vadd.f32 %v5916_v28, %v5849_v2   ;;  %v5535_v2 = vmul.f32 1.442695, %v21900_v21  ;;  %v18838_v50 = vpop.eup %12781 }
 0x795   : >> { %21892 = vst [vmem:[#allocation333_spill] sm:$0xff] %v18802_v41  ;;  %12791 = vpow2.f32 %v5535_v2  ;;  %v18847_v12 = vpop.eup %12783  ;;  %v21915_v2 = vld [vmem:[#allocation165_spill] sm:$0xff] }
 0x796   : >> { %v5948_v56 = vpop.xlane.xlu0 %5947 }
 0x797   : >> { %v18816_v30 = vadd.f32 %v5948_v56, %v5865_v51   ;;  %v21904_v51 = vld [vmem:[#allocation299_spill] sm:$0xff] }
 0x798   : >> { %v5918_v61 = vpop.xlane.xlu1 %5917  ;;  %v21905_v58 = vsub.f32 %v21903_v10, %v21904_v51  ;;  %v21912_v10 = vld [vmem:[#allocation301_spill] sm:$0xff] }
 0x799   : >> { %21897 = vst [vmem:[#allocation334_spill] sm:$0xff] %v18816_v30  ;;  %v18825_v28 = vadd.f32 %v5918_v61, %v5850_v26   ;;  %v21908_v26 = vsub.f32 %v21590_v13, %v21708_v48  ;;  %v21910_v61 = vld [vmem:[#allocation150_spill] sm:$0xff]  ;;  %v5848_v13 = vmul.f32 %v21915_v2, %v18838_v50 }
 0x79a   : >> { %v5573_v25 = vmul.f32 1.442695, %v21905_v58  ;;  %v5912_v56 = vpop.xlane.xlu0 %5911 }
 0x79b   : >> { %21901 = vst [vmem:[#allocation335_spill] sm:$0xff] %v18825_v28  ;;  %v18834_v30 = vadd.f32 %v5912_v56, %v5847_v17   ;;  %v5567_v60 = vmul.f32 1.442695, %v21908_v26  ;;  %v5863_v28 = vmul.f32 %v21910_v61, %v18829_v5  ;;  %v21911_v17 = vld [vmem:[#allocation216_spill] sm:$0xff] }
 0x79c   : >> { %v5950_v21 = vpop.xlane.xlu1 %5949  ;;  %12793 = vpow2.f32 %v5573_v25  ;;  %v21913_v51 = vsub.f32 %v21911_v17, %v21912_v10  ;;  %v21918_v26 = vld [vmem:[#allocation160_spill] sm:$0xff] }
 0x79d   : >> { %21906 = vst [vmem:[#allocation336_spill] sm:$0xff] %v18834_v30  ;;  %v18843_v57 = vadd.f32 %v5950_v21, %v5866_v34   ;;  %v18856_v30 = vpop.eup %12785  ;;  %12795 = vpow2.f32 %v5567_v60  ;;  %v5853_v21 = vmul.f32 %v21918_v26, %v18847_v12  ;;  %v21922_v60 = vld [vmem:[#allocation149_spill] sm:$0xff] }
 0x79e   : >> { %v5537_v58 = vmul.f32 1.442695, %v21913_v51  ;;  %v5944_v56 = vpop.xlane.xlu0 %5943  ;;  %v18865_v17 = vpop.eup %12787 }
 0x79f   : >> { %21909 = vst [vmem:[#allocation337_spill] sm:$0xff] %v18843_v57  ;;  %v18852_v61 = vadd.f32 %v5944_v56, %v5863_v28   ;;  %v21916_v57 = vsub.f32 %v21711_v43, %v21713_v39  ;;  %v5864_v43 = vmul.f32 %v21922_v60, %v18856_v30  ;;  %v18874_v2 = vpop.eup %12789 }
 0x7a0   : >> { %v5914_v34 = vpop.xlane.xlu1 %5913  ;;  %12797 = vpow2.f32 %v5537_v58  ;;  %v21926_v58 = vld [vmem:[#allocation144_spill] sm:$0xff] }
 0x7a1   : >> { %21914 = vst [vmem:[#allocation338_spill] sm:$0xff] %v18852_v61  ;;  %v5547_v36 = vmul.f32 1.442695, %v21916_v57  ;;  %v18861_v25 = vadd.f32 %v5914_v34, %v5848_v13   ;;  %v21919_v61 = vld [vmem:[#allocation303_spill] sm:$0xff] }
 0x7a2   : >> { %v21920_v28 = vsub.f32 %v21589_v22, %v21919_v61  ;;  %v5924_v51 = vpop.xlane.xlu0 %5923  ;;  %v5869_v22 = vmul.f32 %v21926_v58, %v18865_v17  ;;  %v18883_v61 = vpop.eup %12791 }
 0x7a3   : >> { %21917 = vst [vmem:[#allocation339_spill] sm:$0xff] %v18861_v25  ;;  %v18870_v56 = vadd.f32 %v5924_v51, %v5853_v21   ;;  %12799 = vpow2.f32 %v5547_v36  ;;  %v21923_v25 = vld [vmem:[#allocation212_spill] sm:$0xff]  ;;  %v21930_v36 = vld [vmem:[#allocation159_spill] sm:$0xff] }
 0x7a4   : >> { %v5569_v10 = vmul.f32 1.442695, %v21920_v28  ;;  %v21924_v13 = vsub.f32 %v21581_v9, %v21923_v25  ;;  %v5946_v26 = vpop.xlane.xlu1 %5945  ;;  %v5854_v9 = vmul.f32 %v21930_v36, %v18874_v2 }
 0x7a5   : >> { %21921 = vst [vmem:[#allocation340_spill] sm:$0xff] %v18870_v56  ;;  %v18879_v21 = vadd.f32 %v5946_v26, %v5864_v43   ;;  %v21927_v56 = vld [vmem:[#allocation305_spill] sm:$0xff]  ;;  %v21932_v43 = vld [vmem:[#allocation307_spill] sm:$0xff] }
 0x7a6   : >> { %v5579_v57 = vmul.f32 1.442695, %v21924_v13  ;;  %12801 = vpow2.f32 %v5569_v10  ;;  %v21928_v28 = vsub.f32 %v21604_v0, %v21927_v56  ;;  %v5956_v60 = vpop.xlane.xlu0 %5955  ;;  %v18892_v25 = vpop.eup %12793  ;;  %v21935_v10 = vld [vmem:[#allocation162_spill] sm:$0xff] }
 0x7a7   : >> { %21925 = vst [vmem:[#allocation341_spill] sm:$0xff] %v18879_v21  ;;  %v18888_v13 = vadd.f32 %v5956_v60, %v5869_v22   ;;  %v21931_v21 = vld [vmem:[#allocation214_spill] sm:$0xff]  ;;  %v5851_v0 = vmul.f32 %v21935_v10, %v18883_v61  ;;  %v18901_v56 = vpop.eup %12795 }
 0x7a8   : >> { %v5549_v51 = vmul.f32 1.442695, %v21928_v28  ;;  %12803 = vpow2.f32 %v5579_v57  ;;  %v21933_v26 = vsub.f32 %v21931_v21, %v21932_v43  ;;  %v5926_v33 = vpop.xlane.xlu1 %5925  ;;  %v21937_v28 = vld [vmem:[#allocation306_spill] sm:$0xff]  ;;  %v21940_v57 = vld [vmem:[#allocation143_spill] sm:$0xff] }
 0x7a9   : >> { %21929 = vst [vmem:[#allocation342_spill] sm:$0xff] %v18888_v13  ;;  %v18897_v22 = vadd.f32 %v5926_v33, %v5854_v9   ;;  %v21936_v13 = vld [vmem:[#allocation203_spill] sm:$0xff]  ;;  %v5870_v21 = vmul.f32 %v21940_v57, %v18892_v25  ;;  %v21941_v33 = vld [vmem:[#allocation205_spill] sm:$0xff] }
 0x7aa   : >> { %v5543_v58 = vmul.f32 1.442695, %v21933_v26  ;;  %12805 = vpow2.f32 %v5549_v51  ;;  %v21938_v60 = vsub.f32 %v21936_v13, %v21937_v28  ;;  %v5920_v62 = vpop.xlane.xlu0 %5919  ;;  %v18910_v43 = vpop.eup %12797  ;;  %v21945_v51 = vld [vmem:[#allocation146_spill] sm:$0xff] }
 0x7ab   : >> { %21934 = vst [vmem:[#allocation343_spill] sm:$0xff] %v18897_v22  ;;  %v21942_v22 = vld [vmem:[#allocation218_spill] sm:$0xff]  ;;  %v5867_v13 = vmul.f32 %v21945_v51, %v18901_v56 }
 0x7ac   : >> { %v5581_v36 = vmul.f32 1.442695, %v21938_v60  ;;  %v18906_v60 = vadd.f32 %v5920_v62, %v5851_v0   ;;  %12807 = vpow2.f32 %v5543_v58  ;;  %v21943_v9 = vsub.f32 %v21941_v33, %v21942_v22  ;;  %v5958_v10 = vpop.xlane.xlu1 %5957  ;;  %v21946_v62 = vld [vmem:[#allocation213_spill] sm:$0xff] }
 0x7ad   : >> { %v18915_v1 = vadd.f32 %v5958_v10, %v5870_v21   ;;  %v18919_v28 = vpop.eup %12799  ;;  %v21950_v58 = vld [vmem:[#allocation161_spill] sm:$0xff]  ;;  %v21951_v21 = vld [vmem:[#allocation219_spill] sm:$0xff] }
 0x7ae   : >> { %21939 = vst [vmem:[#allocation344_spill] sm:$0xff] %v18906_v60  ;;  %v5575_v26 = vmul.f32 1.442695, %v21943_v9  ;;  %12809 = vpow2.f32 %v5581_v36  ;;  %v5952_v57 = vpop.xlane.xlu0 %5951  ;;  %v5852_v33 = vmul.f32 %v21950_v58, %v18910_v43  ;;  %v21952_v9 = vsub.f32 %v21734_v44, %v21951_v21  ;;  %v21954_v36 = vld [vmem:[#allocation156_spill] sm:$0xff]  ;;  %v21961_v44 = vld [vmem:[#allocation145_spill] sm:$0xff] }
 0x7af   : >> { %21944 = vst [vmem:[#allocation345_spill] sm:$0xff] %v18915_v1  ;;  %v21947_v1 = vld [vmem:[#allocation308_spill] sm:$0xff]  ;;  %v18924_v34 = vadd.f32 %v5952_v57, %v5867_v13  }
 0x7b0   : >> { %v21948_v0 = vsub.f32 %v21946_v62, %v21947_v1  ;;  %v18928_v22 = vpop.eup %12801  ;;  %12811 = vpow2.f32 %v5575_v26  ;;  %v5555_v10 = vmul.f32 1.442695, %v21952_v9  ;;  %v5922_v51 = vpop.xlane.xlu1 %5921  ;;  %v5857_v62 = vmul.f32 %v21954_v36, %v18919_v28  ;;  %v21958_v26 = vld [vmem:[#allocation215_spill] sm:$0xff]  ;;  %v21963_v36 = vld [vmem:[#allocation209_spill] sm:$0xff] }
 0x7b1   : >> { %21949 = vst [vmem:[#allocation346_spill] sm:$0xff] %v18924_v34  ;;  %v18933_v58 = vadd.f32 %v5922_v51, %v5852_v33   ;;  %v21955_v34 = vld [vmem:[#allocation204_spill] sm:$0xff]  ;;  %v21959_v8 = vsub.f32 %v21738_v35, %v21958_v26  ;;  %v5868_v33 = vmul.f32 %v21961_v44, %v18928_v22 }
 0x7b2   : >> { %v5545_v60 = vmul.f32 1.442695, %v21948_v0  ;;  %v18937_v0 = vpop.eup %12803  ;;  %v21962_v51 = vld [vmem:[#allocation200_spill] sm:$0xff] }
 0x7b3   : >> { %21953 = vst [vmem:[#allocation347_spill] sm:$0xff] %v18933_v58  ;;  %v21956_v58 = vld [vmem:[#allocation207_spill] sm:$0xff]  ;;  %v5932_v11 = vpop.xlane.xlu0 %5931  ;;  %v5557_v42 = vmul.f32 1.442695, %v21959_v8  ;;  %v21969_v8 = vld [vmem:[#allocation140_spill] sm:$0xff] }
 0x7b4   : >> { %12813 = vpow2.f32 %v5545_v60  ;;  %v21957_v13 = vsub.f32 %v21955_v34, %v21956_v58  ;;  %v18945_v9 = vadd.f32 %v5932_v11, %v5857_v62   ;;  %v18949_v21 = vpop.eup %12805  ;;  %v21964_v60 = vsub.f32 %v21962_v51, %v21963_v36  ;;  %v5954_v1 = vpop.xlane.xlu1 %5953  ;;  %v21965_v58 = vld [vmem:[#allocation199_spill] sm:$0xff]  ;;  %v21966_v34 = vld [vmem:[#allocation309_spill] sm:$0xff]  ;;  %v21972_v62 = vld [vmem:[#allocation310_spill] sm:$0xff] }
 0x7b5   : >> { %12815 = vpow2.f32 %v5555_v10  ;;  %v18957_v48 = vadd.f32 %v5954_v1, %v5868_v33   ;;  %v5873_v35 = vmul.f32 %v21969_v8, %v18937_v0  ;;  %v21974_v51 = vld [vmem:[#allocation311_spill] sm:$0xff]  ;;  %v21978_v8 = vld [vmem:[#allocation202_spill] sm:$0xff] }
 0x7b6   : >> { %v5577_v57 = vmul.f32 1.442695, %v21957_v13  ;;  %21960 = vst [vmem:[#allocation348_spill] sm:$0xff] %v18945_v9  ;;  %v5587_v63 = vmul.f32 1.442695, %v21964_v60  ;;  %v21967_v13 = vsub.f32 %v21965_v58, %v21966_v34  ;;  %v18961_v11 = vpop.eup %12807  ;;  %v21971_v9 = vld [vmem:[#allocation211_spill] sm:$0xff]  ;;  %v21975_v60 = vsub.f32 %v21754_v6, %v21974_v51 }
 0x7b7   : >> { %21968 = vst [vmem:[#allocation349_spill] sm:$0xff] %v18957_v48  ;;  %21970 = vst [vmem:[#allocation208_spill] sm:$0xff] %v18961_v11  ;;  %v21973_v10 = vsub.f32 %v21971_v9, %v21972_v62  ;;  %v5964_v44 = vpop.xlane.xlu0 %5963  ;;  %v21977_v1 = vld [vmem:[#allocation155_spill] sm:$0xff] }
 0x7b8   : >> { %v5589_v19 = vmul.f32 1.442695, %v21967_v13  ;;  %12817 = vpow2.f32 %v5577_v57  ;;  %v5553_v39 = vmul.f32 1.442695, %v21975_v60  ;;  %v18969_v58 = vadd.f32 %v5964_v44, %v5873_v35   ;;  %v18973_v13 = vpop.eup %12809  ;;  %v21979_v57 = vld [vmem:[#allocation210_spill] sm:$0xff]  ;;  %v5934_v9 = vpop.xlane.xlu1 %5933 }
 0x7b9   : >> { %v5551_v26 = vmul.f32 1.442695, %v21973_v10  ;;  %12819 = vpow2.f32 %v5557_v42  ;;  %v5858_v33 = vmul.f32 %v21977_v1, %v18949_v21  ;;  %v21980_v41 = vsub.f32 %v21978_v8, %v21979_v57  ;;  %v21981_v42 = vld [vmem:[#allocation201_spill] sm:$0xff]  ;;  %v21984_v35 = vld [vmem:[#allocation158_spill] sm:$0xff] }
 0x7ba   : >> { %21976 = vst [vmem:[#allocation350_spill] sm:$0xff] %v18969_v58  ;;  %12821 = vpow2.f32 %v5587_v63  ;;  %v21982_v10 = vsub.f32 %v21762_v55, %v21981_v42  ;;  %v5855_v44 = vmul.f32 %v21984_v35, %v18961_v11  ;;  %v18985_v51 = vpop.eup %12811  ;;  %v21985_v63 = vld [vmem:[#allocation196_spill] sm:$0xff] }
 0x7bb   : >> { %v5583_v48 = vmul.f32 1.442695, %v21980_v41  ;;  %12823 = vpow2.f32 %v5589_v19  ;;  %v18981_v6 = vadd.f32 %v5934_v9, %v5858_v33   ;;  %v21986_v60 = vsub.f32 %v21767_v59, %v21985_v63  ;;  %v5928_v1 = vpop.xlane.xlu0 %5927  ;;  %v21987_v41 = vld [vmem:[#allocation195_spill] sm:$0xff]  ;;  %v21988_v19 = vld [vmem:[#allocation312_spill] sm:$0xff] }
 0x7bc   : >> { %v5585_v62 = vmul.f32 1.442695, %v21982_v10  ;;  %12825 = vpow2.f32 %v5551_v26  ;;  %v21989_v8 = vsub.f32 %v21987_v41, %v21988_v19  ;;  %v18993_v55 = vadd.f32 %v5928_v1, %v5855_v44   ;;  %v21991_v33 = vld [vmem:[#allocation139_spill] sm:$0xff]  ;;  %v21993_v41 = vld [vmem:[#allocation313_spill] sm:$0xff]  ;;  %v5966_v59 = vpop.xlane.xlu1 %5965  ;;  %v21999_v44 = vld [vmem:[#allocation142_spill] sm:$0xff] }
 0x7bd   : >> { %21983 = vst [vmem:[#allocation351_spill] sm:$0xff] %v18981_v6  ;;  %v5595_v58 = vmul.f32 1.442695, %v21986_v60  ;;  %12827 = vpow2.f32 %v5553_v39  ;;  %v5874_v9 = vmul.f32 %v21991_v33, %v18973_v13  ;;  %v21992_v6 = vld [vmem:[#allocation180_spill] sm:$0xff]  ;;  %v21995_v60 = vld [vmem:[#allocation179_spill] sm:$0xff]  ;;  %v21996_v39 = vld [vmem:[#allocation314_spill] sm:$0xff]  ;;  %v5871_v1 = vmul.f32 %v21999_v44, %v18985_v51 }
 0x7be   : >> { %v5597_v57 = vmul.f32 1.442695, %v21989_v8  ;;  %21990 = vst [vmem:[#allocation352_spill] sm:$0xff] %v18993_v55  ;;  %v18997_v10 = vpop.eup %12813  ;;  %12829 = vpow2.f32 %v5583_v48  ;;  %v21994_v26 = vsub.f32 %v21992_v6, %v21993_v41  ;;  %v21997_v36 = vsub.f32 %v21995_v60, %v21996_v39  ;;  %v22000_v33 = vld [vmem:[#allocation198_spill] sm:$0xff]  ;;  %v22001_v48 = vld [vmem:[#allocation315_spill] sm:$0xff]  ;;  %v22091_v11 = vld [vmem:[#allocation328_spill] sm:$0xff] }
 0x7bf   : >> { %12831 = vpow2.f32 %v5585_v62  ;;  %v19005_v42 = vadd.f32 %v5966_v59, %v5874_v9   ;;  %v19009_v55 = vpop.eup %12815  ;;  %v22002_v63 = vsub.f32 %v22000_v33, %v22001_v48  ;;  %v5960_v6 = vpop.xlane.xlu0 %5959  ;;  %v22007_v59 = vld [vmem:[#allocation182_spill] sm:$0xff] }
 0x7c0   : >> { %v5627_v35 = vmul.f32 1.442695, %v21994_v26  ;;  %v5629_v34 = vmul.f32 1.442695, %v21997_v36  ;;  %12833 = vpow2.f32 %v5595_v58  ;;  %v22003_v26 = vld [vmem:[#allocation197_spill] sm:$0xff]  ;;  %v19017_v60 = vadd.f32 %v5960_v6, %v5871_v1   ;;  %v5930_v33 = vpop.xlane.xlu1 %5929  ;;  %v22012_v48 = vld [vmem:[#allocation318_spill] sm:$0xff] }
 0x7c1   : >> { %21998 = vst [vmem:[#allocation353_spill] sm:$0xff] %v19005_v42  ;;  %v5591_v19 = vmul.f32 1.442695, %v22002_v63  ;;  %12835 = vpow2.f32 %v5597_v57  ;;  %v22004_v62 = vsub.f32 %v22003_v26, %v21788_v20  ;;  %v22006_v36 = vld [vmem:[#allocation157_spill] sm:$0xff]  ;;  %v22015_v6 = vld [vmem:[#allocation152_spill] sm:$0xff] }
 0x7c2   : >> { %22005 = vst [vmem:[#allocation354_spill] sm:$0xff] %v19017_v60  ;;  %v5856_v42 = vmul.f32 %v22006_v36, %v18997_v10  ;;  %v19021_v9 = vpop.eup %12817  ;;  %12837 = vpow2.f32 %v5627_v35  ;;  %v22008_v26 = vld [vmem:[#allocation317_spill] sm:$0xff]  ;;  %v5861_v60 = vmul.f32 %v22015_v6, %v19009_v55  ;;  %v22017_v35 = vld [vmem:[#allocation192_spill] sm:$0xff] }
 0x7c3   : >> { %v5593_v41 = vmul.f32 1.442695, %v22004_v62  ;;  %v22009_v58 = vsub.f32 %v22007_v59, %v22008_v26  ;;  %v19026_v63 = vpop.eup %12819  ;;  %12839 = vpow2.f32 %v5629_v34  ;;  %v22011_v57 = vld [vmem:[#allocation181_spill] sm:$0xff]  ;;  %v22019_v26 = vsub.f32 %v22017_v35, %v22018_v32  ;;  %v22021_v34 = vld [vmem:[#allocation191_spill] sm:$0xff] }
 0x7c4   : >> { %22010 = vst [vmem:[#allocation211_spill] sm:$0xff] %v19026_v63  ;;  %v22013_v20 = vsub.f32 %v22011_v57, %v22012_v48  ;;  %v19031_v1 = vadd.f32 %v5930_v33, %v5856_v42   ;;  %v19035_v36 = vpop.eup %12821  ;;  %12841 = vpow2.f32 %v5591_v19  ;;  %v22022_v57 = vsub.f32 %v21800_v37, %v22021_v34  ;;  %v22024_v33 = vld [vmem:[#allocation141_spill] sm:$0xff]  ;;  %v22026_v19 = vld [vmem:[#allocation176_spill] sm:$0xff]  ;;  %v5962_v32 = vpop.xlane.xlu1 %5961  ;;  %v22054_v48 = vld [vmem:[#allocation322_spill] sm:$0xff] }
 0x7c5   : >> { %v5623_v44 = vmul.f32 1.442695, %v22009_v58  ;;  %22016 = vst [vmem:[#allocation213_spill] sm:$0xff] %v19035_v36  ;;  %v5603_v59 = vmul.f32 1.442695, %v22019_v26  ;;  %v5940_v58 = vpop.xlane.xlu0 %5939  ;;  %v19040_v39 = vpop.eup %12823  ;;  %12843 = vpow2.f32 %v5593_v41  ;;  %v22027_v35 = vsub.f32 %v21805_v18, %v22026_v19  ;;  %v22029_v41 = vld [vmem:[#allocation175_spill] sm:$0xff] }
 0x7c6   : >> { %v5625_v62 = vmul.f32 1.442695, %v22013_v20  ;;  %22014 = vst [vmem:[#allocation355_spill] sm:$0xff] %v19031_v1  ;;  %22020 = vst [vmem:[#allocation214_spill] sm:$0xff] %v19040_v39  ;;  %v5605_v20 = vmul.f32 1.442695, %v22022_v57  ;;  %v19045_v42 = vadd.f32 %v5940_v58, %v5861_v60   ;;  %v5872_v1 = vmul.f32 %v22024_v33, %v19021_v9  ;;  %v19049_v6 = vpop.eup %12825 }
 0x7c7   : >> { %22025 = vst [vmem:[#allocation216_spill] sm:$0xff] %v19049_v6  ;;  %12845 = vpow2.f32 %v5623_v44  ;;  %v5635_v26 = vmul.f32 1.442695, %v22027_v35  ;;  %v19054_v4 = vpop.eup %12827  ;;  %v22031_v37 = vsub.f32 %v22029_v41, %v22030_v3  ;;  %v22033_v58 = vld [vmem:[#allocation136_spill] sm:$0xff]  ;;  %v22035_v44 = vld [vmem:[#allocation194_spill] sm:$0xff]  ;;  %v22036_v34 = vld [vmem:[#allocation321_spill] sm:$0xff] }
 0x7c8   : >> { %22023 = vst [vmem:[#allocation356_spill] sm:$0xff] %v19045_v42  ;;  %22028 = vst [vmem:[#allocation217_spill] sm:$0xff] %v19054_v4  ;;  %12847 = vpow2.f32 %v5625_v62  ;;  %v19059_v60 = vadd.f32 %v5962_v32, %v5872_v1   ;;  %v5877_v42 = vmul.f32 %v22033_v58, %v19035_v36  ;;  %v19063_v33 = vpop.eup %12829  ;;  %v22037_v18 = vsub.f32 %v22035_v44, %v22036_v34  ;;  %v22041_v1 = vld [vmem:[#allocation151_spill] sm:$0xff]  ;;  %v5942_v44 = vpop.xlane.xlu1 %5941  ;;  %v22064_v36 = vld [vmem:[#allocation324_spill] sm:$0xff] }
 0x7c9   : >> { %v5637_v57 = vmul.f32 1.442695, %v22031_v37  ;;  %22034 = vst [vmem:[#allocation204_spill] sm:$0xff] %v19063_v33  ;;  %12849 = vpow2.f32 %v5603_v59  ;;  %v5972_v19 = vpop.xlane.xlu0 %5971  ;;  %v19068_v8 = vpop.eup %12831  ;;  %v22039_v62 = vsub.f32 %v21815_v16, %v21817_v38  ;;  %v5862_v37 = vmul.f32 %v22041_v1, %v19026_v63  ;;  %v22060_v38 = vld [vmem:[#allocation323_spill] sm:$0xff] }
 0x7ca   : >> { %22032 = vst [vmem:[#allocation357_spill] sm:$0xff] %v19059_v60  ;;  %v5599_v35 = vmul.f32 1.442695, %v22037_v18  ;;  %22038 = vst [vmem:[#allocation205_spill] sm:$0xff] %v19068_v8  ;;  %12851 = vpow2.f32 %v5605_v20  ;;  %v19073_v32 = vadd.f32 %v5972_v19, %v5877_v42   ;;  %v19077_v60 = vpop.eup %12833  ;;  %v22043_v59 = vsub.f32 %v21818_v27, %v21820_v23  ;;  %v22045_v20 = vld [vmem:[#allocation177_spill] sm:$0xff]  ;;  %v22048_v42 = vld [vmem:[#allocation154_spill] sm:$0xff] }
 0x7cb   : >> { %v5601_v41 = vmul.f32 1.442695, %v22039_v62  ;;  %22042 = vst [vmem:[#allocation206_spill] sm:$0xff] %v19077_v60  ;;  %12853 = vpow2.f32 %v5635_v26  ;;  %v19082_v18 = vpop.eup %12835  ;;  %v22046_v16 = vsub.f32 %v21821_v52, %v22045_v20  ;;  %v19087_v19 = vadd.f32 %v5942_v44, %v5862_v37   ;;  %v22050_v26 = vld [vmem:[#allocation188_spill] sm:$0xff]  ;;  %v22057_v44 = vld [vmem:[#allocation135_spill] sm:$0xff] }
 0x7cc   : >> { %22040 = vst [vmem:[#allocation358_spill] sm:$0xff] %v19073_v32  ;;  %v5631_v58 = vmul.f32 1.442695, %v22043_v59  ;;  %22044 = vst [vmem:[#allocation136_spill] sm:$0xff] %v19082_v18  ;;  %12855 = vpow2.f32 %v5637_v57  ;;  %v5859_v1 = vmul.f32 %v22048_v42, %v19049_v6  ;;  %v19091_v34 = vpop.eup %12837  ;;  %v22051_v27 = vsub.f32 %v21823_v7, %v22050_v26  ;;  %v22053_v57 = vld [vmem:[#allocation187_spill] sm:$0xff] }
 0x7cd   : >> { %v5633_v62 = vmul.f32 1.442695, %v22046_v16  ;;  %22047 = vst [vmem:[#allocation359_spill] sm:$0xff] %v19087_v19  ;;  %22049 = vst [vmem:[#allocation139_spill] sm:$0xff] %v19091_v34  ;;  %12857 = vpow2.f32 %v5599_v35  ;;  %v5936_v23 = vpop.xlane.xlu0 %5935  ;;  %v19096_v3 = vpop.eup %12839  ;;  %v22055_v52 = vsub.f32 %v22053_v57, %v22054_v48  ;;  %v5878_v42 = vmul.f32 %v22057_v44, %v19040_v39  ;;  %v22059_v35 = vld [vmem:[#allocation172_spill] sm:$0xff]  ;;  %v22070_v48 = vld [vmem:[#allocation325_spill] sm:$0xff] }
 0x7ce   : >> { %v5611_v59 = vmul.f32 1.442695, %v22051_v27  ;;  %22052 = vst [vmem:[#allocation140_spill] sm:$0xff] %v19096_v3  ;;  %12859 = vpow2.f32 %v5601_v41  ;;  %v19101_v37 = vadd.f32 %v5936_v23, %v5859_v1   ;;  %v19105_v19 = vpop.eup %12841  ;;  %v22061_v7 = vsub.f32 %v22059_v35, %v22060_v38  ;;  %v5974_v27 = vpop.xlane.xlu1 %5973  ;;  %v22063_v41 = vld [vmem:[#allocation171_spill] sm:$0xff]  ;;  %v22067_v1 = vld [vmem:[#allocation138_spill] sm:$0xff] }
 0x7cf   : >> { %v5613_v16 = vmul.f32 1.442695, %v22055_v52  ;;  %22058 = vst [vmem:[#allocation135_spill] sm:$0xff] %v19105_v19  ;;  %12861 = vpow2.f32 %v5631_v58  ;;  %v19110_v32 = vpop.eup %12843  ;;  %v22065_v57 = vsub.f32 %v22063_v41, %v22064_v36  ;;  %v19115_v23 = vadd.f32 %v5974_v27, %v5878_v42   ;;  %v22069_v58 = vld [vmem:[#allocation190_spill] sm:$0xff]  ;;  %v22077_v27 = vld [vmem:[#allocation153_spill] sm:$0xff]  ;;  %v22083_v6 = vld [vmem:[#allocation327_spill] sm:$0xff] }
 0x7d0   : >> { %22056 = vst [vmem:[#allocation360_spill] sm:$0xff] %v19101_v37  ;;  %v5643_v26 = vmul.f32 1.442695, %v22061_v7  ;;  %22062 = vst [vmem:[#allocation141_spill] sm:$0xff] %v19110_v32  ;;  %12863 = vpow2.f32 %v5633_v62  ;;  %v5875_v37 = vmul.f32 %v22067_v1, %v19063_v33  ;;  %v22071_v35 = vsub.f32 %v22069_v58, %v22070_v48  ;;  %v22073_v62 = vld [vmem:[#allocation189_spill] sm:$0xff]  ;;  %v22074_v39 = vld [vmem:[#allocation326_spill] sm:$0xff] }
 0x7d1   : >> { %v5645_v52 = vmul.f32 1.442695, %v22065_v57  ;;  %22066 = vst [vmem:[#allocation361_spill] sm:$0xff] %v19115_v23  ;;  %v19119_v44 = vpop.eup %12845  ;;  %12865 = vpow2.f32 %v5611_v59  ;;  %v5968_v38 = vpop.xlane.xlu0 %5967  ;;  %v22075_v41 = vsub.f32 %v22073_v62, %v22074_v39  ;;  %v5860_v1 = vmul.f32 %v22077_v27, %v19054_v4  ;;  %v22079_v59 = vld [vmem:[#allocation174_spill] sm:$0xff]  ;;  %v22096_v39 = vld [vmem:[#allocation329_spill] sm:$0xff] }
 0x7d2   : >> { %22068 = vst [vmem:[#allocation138_spill] sm:$0xff] %v19119_v44  ;;  %v5607_v7 = vmul.f32 1.442695, %v22071_v35  ;;  %v19124_v20 = vpop.eup %12847  ;;  %12867 = vpow2.f32 %v5613_v16  ;;  %v19129_v42 = vadd.f32 %v5968_v38, %v5875_v37   ;;  %v22080_v58 = vsub.f32 %v21840_v29, %v22079_v59  ;;  %v5938_v48 = vpop.xlane.xlu1 %5937  ;;  %v22082_v16 = vld [vmem:[#allocation173_spill] sm:$0xff]  ;;  %v22086_v37 = vld [vmem:[#allocation132_spill] sm:$0xff]  ;;  %v22117_v23 = vld [vmem:[#allocation118_spill] sm:$0xff] }
 0x7d3   : >> { %22072 = vst [vmem:[#allocation142_spill] sm:$0xff] %v19124_v20  ;;  %v5609_v57 = vmul.f32 1.442695, %v22075_v41  ;;  %v19133_v36 = vpop.eup %12849  ;;  %12869 = vpow2.f32 %v5643_v26  ;;  %v22084_v62 = vsub.f32 %v22082_v16, %v22083_v6  ;;  %v19143_v38 = vadd.f32 %v5938_v48, %v5860_v1   ;;  %v22088_v26 = vld [vmem:[#allocation184_spill] sm:$0xff]  ;;  %v22094_v1 = vld [vmem:[#allocation137_spill] sm:$0xff] }
 0x7d4   : >> { %22076 = vst [vmem:[#allocation362_spill] sm:$0xff] %v19129_v42  ;;  %22078 = vst [vmem:[#allocation143_spill] sm:$0xff] %v19133_v36  ;;  %v5639_v35 = vmul.f32 1.442695, %v22080_v58  ;;  %v19138_v63 = vpop.eup %12851  ;;  %12871 = vpow2.f32 %v5645_v52  ;;  %v5881_v42 = vmul.f32 %v22086_v37, %v19077_v60  ;;  %v22089_v29 = vsub.f32 %v21846_v31, %v22088_v26  ;;  %v22090_v52 = vld [vmem:[#allocation183_spill] sm:$0xff] }
 0x7d5   : >> { %22081 = vst [vmem:[#allocation144_spill] sm:$0xff] %v19138_v63  ;;  %v5641_v41 = vmul.f32 1.442695, %v22084_v62  ;;  %22085 = vst [vmem:[#allocation363_spill] sm:$0xff] %v19143_v38  ;;  %v19147_v27 = vpop.eup %12853  ;;  %12873 = vpow2.f32 %v5607_v7  ;;  %v5980_v58 = vpop.xlane.xlu0 %5979  ;;  %v22092_v6 = vsub.f32 %v22090_v52, %v22091_v11  ;;  %v5876_v62 = vmul.f32 %v22094_v1, %v19068_v8  ;;  %v22095_v7 = vld [vmem:[#allocation186_spill] sm:$0xff]  ;;  %v22102_v11 = vld [vmem:[#allocation331_spill] sm:$0xff] }
 0x7d6   : >> { %22087 = vst [vmem:[#allocation132_spill] sm:$0xff] %v19147_v27  ;;  %v5619_v59 = vmul.f32 1.442695, %v22089_v29  ;;  %v19152_v33 = vpop.eup %12855  ;;  %12875 = vpow2.f32 %v5609_v57  ;;  %v19157_v48 = vadd.f32 %v5980_v58, %v5881_v42   ;;  %v22097_v31 = vsub.f32 %v22095_v7, %v22096_v39  ;;  %v5970_v29 = vpop.xlane.xlu1 %5969  ;;  %v22098_v57 = vld [vmem:[#allocation185_spill] sm:$0xff]  ;;  %v22101_v1 = vld [vmem:[#allocation170_spill] sm:$0xff]  ;;  %v22104_v7 = vld [vmem:[#allocation116_spill] sm:$0xff] }
 0x7d7   : >> { %v5621_v16 = vmul.f32 1.442695, %v22092_v6  ;;  %v19161_v37 = vpop.eup %12857  ;;  %12877 = vpow2.f32 %v5639_v35  ;;  %v22099_v52 = vsub.f32 %v22098_v57, %v21859_v53  ;;  %v19171_v42 = vadd.f32 %v5970_v29, %v5876_v62   ;;  %v22105_v60 = vld [vmem:[#allocation131_spill] sm:$0xff] }
 0x7d8   : >> { %22093 = vst [vmem:[#allocation364_spill] sm:$0xff] %v19157_v48  ;;  %v5615_v26 = vmul.f32 1.442695, %v22097_v31  ;;  %v19166_v38 = vpop.eup %12859  ;;  %12879 = vpow2.f32 %v5641_v41  ;;  %v22103_v35 = vsub.f32 %v22101_v1, %v22102_v11  ;;  %v5897_v31 = vmul.f32 %v22104_v7, %v19091_v34 }
 0x7d9   : >> { %v5617_v6 = vmul.f32 1.442695, %v22099_v52  ;;  %22100 = vst [vmem:[#allocation365_spill] sm:$0xff] %v19171_v42  ;;  %v19173_v58 = vpop.eup %12861  ;;  %12881 = vpow2.f32 %v5619_v59  ;;  %v6012_v41 = vpop.xlane.xlu0 %6011  ;;  %v5882_v57 = vmul.f32 %v22105_v60, %v19082_v18  ;;  %v22107_v42 = vld [vmem:[#allocation169_spill] sm:$0xff]  ;;  %v22110_v60 = vld [vmem:[#allocation134_spill] sm:$0xff] }
 0x7da   : >> { %v5647_v48 = vmul.f32 1.442695, %v22103_v35  ;;  %v19180_v39 = vpop.eup %12863  ;;  %12883 = vpow2.f32 %v5621_v16  ;;  %v19186_v62 = vadd.f32 %v6012_v41, %v5897_v31   ;;  %v5982_v59 = vpop.xlane.xlu1 %5981  ;;  %v22108_v1 = vsub.f32 %v21866_v47, %v22107_v42  ;;  %v22111_v31 = vld [vmem:[#allocation115_spill] sm:$0xff] }
 0x7db   : >> { %v19184_v52 = vpop.eup %12865  ;;  %12885 = vpow2.f32 %v5615_v26  ;;  %v19193_v7 = vadd.f32 %v5982_v59, %v5882_v57   ;;  %v5879_v53 = vmul.f32 %v22110_v60, %v19105_v19  ;;  %v5898_v41 = vmul.f32 %v22111_v31, %v19096_v3 }
 0x7dc   : >> { %22106 = vst [vmem:[#allocation366_spill] sm:$0xff] %v19186_v62  ;;  %v19188_v29 = vpop.eup %12867  ;;  %12887 = vpow2.f32 %v5617_v6  ;;  %v5649_v35 = vmul.f32 1.442695, %v22108_v1  ;;  %v22112_v6 = vld [vmem:[#allocation168_spill] sm:$0xff]  ;;  %v22116_v42 = vsub.f32 %v21874_v14, %v18763_v54  ;;  %v5895_v3 = vmul.f32 %v22117_v23, %v19119_v44  ;;  %v22123_v44 = vld [vmem:[#allocation117_spill] sm:$0xff] }
 0x7dd   : >> { %22109 = vst [vmem:[#allocation367_spill] sm:$0xff] %v19193_v7  ;;  %v19195_v16 = vpop.eup %12869  ;;  %12889 = vpow2.f32 %v5647_v48  ;;  %v5976_v26 = vpop.xlane.xlu0 %5975  ;;  %v22113_v47 = vsub.f32 %v22112_v6, %v21871_v40  ;;  %v22118_v6 = vld [vmem:[#allocation133_spill] sm:$0xff]  ;;  %v22122_v23 = vld [vmem:[#allocation100_spill] sm:$0xff]  ;;  %v5896_v34 = vmul.f32 %v22123_v44, %v19124_v20  ;;  %v22129_v44 = vld [vmem:[#allocation87_spill] sm:$0xff] }
 0x7de   : >> { %v19199_v11 = vpop.eup %12871  ;;  %v19208_v57 = vadd.f32 %v5976_v26, %v5879_v53   ;;  %v6014_v59 = vpop.xlane.xlu1 %6013  ;;  %12891 = vpow2.f32 %v5649_v35  ;;  %v19219_v31 = vmul.f32 1.442695, %v22116_v42  ;;  %v5880_v53 = vmul.f32 %v22118_v6, %v19110_v32  ;;  %v22121_v42 = vld [vmem:[#allocation128_spill] sm:$0xff] }
 0x7df   : >> { %v19203_v62 = vpop.eup %12873  ;;  %v5651_v1 = vmul.f32 1.442695, %v22113_v47  ;;  %v19212_v35 = vadd.f32 %v6014_v59, %v5898_v41   ;;  %v5885_v8 = vmul.f32 %v22121_v42, %v19133_v36  ;;  %v6105_v48 = vmul.f32 %v22122_v23, %v18787_v45  ;;  %v22127_v45 = vld [vmem:[#allocation127_spill] sm:$0xff]  ;;  %v22128_v23 = vld [vmem:[#allocation102_spill] sm:$0xff] }
 0x7e0   : >> { %22114 = vst [vmem:[#allocation368_spill] sm:$0xff] %v19208_v57  ;;  %v19210_v7 = vpop.eup %12875  ;;  %v5886_v42 = vmul.f32 %v22127_v45, %v19138_v63  ;;  %v6103_v36 = vmul.f32 %v22128_v23, %v18811_v46  ;;  %v6121_v20 = vmul.f32 %v22129_v44, %v18797_v24 }
 0x7e1   : >> { %22115 = vst [vmem:[#allocation369_spill] sm:$0xff] %v19212_v35  ;;  %v19214_v60 = vpop.eup %12877  ;;  %v6008_v47 = vpop.xlane.xlu0 %6007  ;;  %12893 = vpow2.f32 %v5651_v1  ;;  %v22124_v1 = vld [vmem:[#allocation112_spill] sm:$0xff] }
 0x7e2   : >> { %v19225_v26 = vpop.eup %12879  ;;  %v19229_v35 = vadd.f32 %v6008_v47, %v5895_v3   ;;  %v5978_v59 = vpop.xlane.xlu1 %5977  ;;  %v5901_v3 = vmul.f32 %v22124_v1, %v19147_v27  ;;  %v22130_v1 = vld [vmem:[#allocation99_spill] sm:$0xff]  ;;  %12895 = vpow2.f32 %v19219_v31 }
 0x7e3   : >> { %v19227_v57 = vpop.eup %12881  ;;  %v19233_v14 = vadd.f32 %v5978_v59, %v5880_v53   ;;  %v6106_v27 = vmul.f32 %v22130_v1, %v18804_v49  ;;  %v22136_v49 = vld [vmem:[#allocation101_spill] sm:$0xff]  ;;  %v22137_v1 = vld [vmem:[#allocation86_spill] sm:$0xff] }
 0x7e4   : >> { %22119 = vst [vmem:[#allocation370_spill] sm:$0xff] %v19229_v35  ;;  %v19231_v40 = vpop.eup %12883  ;;  %v6104_v45 = vmul.f32 %v22136_v49, %v18838_v50  ;;  %v6122_v63 = vmul.f32 %v22137_v1, %v18820_v15  ;;  %v22142_v50 = vld [vmem:[#allocation111_spill] sm:$0xff] }
 0x7e5   : >> { %22120 = vst [vmem:[#allocation371_spill] sm:$0xff] %v19233_v14  ;;  %v19239_v6 = vpop.eup %12885  ;;  %v5988_v35 = vpop.xlane.xlu0 %5987 }
 0x7e6   : >> { %v19245_v47 = vpop.eup %12887  ;;  %v19249_v53 = vadd.f32 %v5988_v35, %v5885_v8   ;;  %v6010_v59 = vpop.xlane.xlu1 %6009  ;;  %v22131_v35 = vld [vmem:[#allocation88_spill] sm:$0xff] }
 0x7e7   : >> { %v19247_v41 = vpop.eup %12889  ;;  %v19251_v14 = vadd.f32 %v6010_v59, %v5896_v34   ;;  %v10515_v8 = vpop.f32.mrb[32].mxu0  ;;  %v6119_v34 = vmul.f32 %v22131_v35, %v18829_v5 }
 0x7e8   : >> { %22125 = vst [vmem:[#allocation372_spill] sm:$0xff] %v19249_v53  ;;  %v19261_v18 = vpop.eup %12891  ;;  %v19267_v53 = vadd.f32 %v10515_v8, %v6105_v48  }
 0x7e9   : >> { %22126 = vst [vmem:[#allocation373_spill] sm:$0xff] %v19251_v14  ;;  %v6020_v19 = vpop.xlane.xlu0 %6019  ;;  %v6233_v14 = vpop.f32.mrb[33].mxu0 }
 0x7ea   : >> { %v19265_v44 = vadd.f32 %v6020_v19, %v5901_v3   ;;  %22133 = vst [vmem:[#allocation375_spill] sm:$0xff] %v19267_v53  ;;  %v5990_v59 = vpop.xlane.xlu1 %5989  ;;  %v19271_v8 = vadd.f32 %v6233_v14, %v6103_v36   ;;  %v10516_v24 = vpop.f32.mrb[34].mxu0  ;;  %v22139_v19 = vld [vmem:[#allocation130_spill] sm:$0xff] }
 0x7eb   : >> { %v19269_v46 = vadd.f32 %v5990_v59, %v5886_v42   ;;  %v19277_v4 = vpop.eup %12893  ;;  %v19279_v48 = vadd.f32 %v10516_v24, %v6106_v27   ;;  %v6236_v5 = vpop.f32.mrb[35].mxu0  ;;  %v5883_v3 = vmul.f32 %v22139_v19, %v19161_v37  ;;  %v22140_v42 = vld [vmem:[#allocation256_spill] sm:$0xff]  ;;  %v5902_v59 = vmul.f32 %v22142_v50, %v19152_v33 }
 0x7ec   : >> { %22132 = vst [vmem:[#allocation374_spill] sm:$0xff] %v19265_v44  ;;  %22135 = vst [vmem:[#allocation377_spill] sm:$0xff] %v19271_v8  ;;  %v6120_v44 = vmul.f32 %v22140_v42, %v18856_v30  ;;  %v10547_v36 = vpop.f32.mrb[32].mxu1  ;;  %v19285_v35 = vadd.f32 %v6236_v5, %v6104_v45   ;;  %v22147_v30 = vld [vmem:[#allocation114_spill] sm:$0xff] }
 0x7ed   : >> { %22134 = vst [vmem:[#allocation376_spill] sm:$0xff] %v19269_v46  ;;  %22138 = vst [vmem:[#allocation378_spill] sm:$0xff] %v19279_v48  ;;  %v5984_v53 = vpop.xlane.xlu0 %5983  ;;  %v19289_v14 = vadd.f32 %v10547_v36, %v6121_v20   ;;  %v6330_v46 = vpop.f32.mrb[33].mxu1  ;;  %v5899_v42 = vmul.f32 %v22147_v30, %v19173_v58 }
 0x7ee   : >> { %22141 = vst [vmem:[#allocation379_spill] sm:$0xff] %v19285_v35  ;;  %v19291_v49 = vadd.f32 %v5984_v53, %v5883_v3   ;;  %v6022_v27 = vpop.xlane.xlu1 %6021  ;;  %v19293_v24 = vadd.f32 %v6330_v46, %v6119_v34   ;;  %v10548_v1 = vpop.f32.mrb[34].mxu1  ;;  %v22149_v35 = vld [vmem:[#allocation129_spill] sm:$0xff] }
 0x7ef   : >> { %22143 = vst [vmem:[#allocation380_spill] sm:$0xff] %v19289_v14  ;;  %v19295_v19 = vadd.f32 %v6022_v27, %v5902_v59   ;;  %v19299_v45 = vadd.f32 %v10548_v1, %v6122_v63   ;;  %v6333_v5 = vpop.f32.mrb[35].mxu1  ;;  %v5884_v50 = vmul.f32 %v22149_v35, %v19166_v38  ;;  %v22153_v59 = vld [vmem:[#allocation124_spill] sm:$0xff]  ;;  %v22154_v46 = vld [vmem:[#allocation113_spill] sm:$0xff]  ;;  %v22156_v1 = vld [vmem:[#allocation98_spill] sm:$0xff] }
 0x7f0   : >> { %22144 = vst [vmem:[#allocation381_spill] sm:$0xff] %v19291_v49  ;;  %22145 = vst [vmem:[#allocation382_spill] sm:$0xff] %v19293_v24  ;;  %v19303_v20 = vadd.f32 %v6333_v5, %v6120_v44   ;;  %v5889_v14 = vmul.f32 %v22153_v59, %v19184_v52  ;;  %v5900_v49 = vmul.f32 %v22154_v46, %v19180_v39  ;;  %v22155_v63 = vld [vmem:[#allocation96_spill] sm:$0xff] }
 0x7f1   : >> { %22146 = vst [vmem:[#allocation383_spill] sm:$0xff] %v19295_v19  ;;  %22148 = vst [vmem:[#allocation384_spill] sm:$0xff] %v19299_v45  ;;  %v6016_v36 = vpop.xlane.xlu0 %6015  ;;  %v6109_v27 = vmul.f32 %v22155_v63, %v18847_v12  ;;  %v6107_v44 = vmul.f32 %v22156_v1, %v18883_v61  ;;  %v22162_v12 = vld [vmem:[#allocation123_spill] sm:$0xff]  ;;  %v22163_v61 = vld [vmem:[#allocation253_spill] sm:$0xff] }
 0x7f2   : >> { %22150 = vst [vmem:[#allocation385_spill] sm:$0xff] %v19303_v20  ;;  %v19305_v45 = vadd.f32 %v6016_v36, %v5899_v42   ;;  %v5986_v53 = vpop.xlane.xlu1 %5985  ;;  %v5890_v59 = vmul.f32 %v22162_v12, %v19188_v29 }
 0x7f3   : >> { %v19307_v34 = vadd.f32 %v5986_v53, %v5884_v50   ;;  %v22160_v50 = vld [vmem:[#allocation108_spill] sm:$0xff]  ;;  %v22161_v53 = vld [vmem:[#allocation97_spill] sm:$0xff] }
 0x7f4   : >> { %22151 = vst [vmem:[#allocation386_spill] sm:$0xff] %v19305_v45  ;;  %v22158_v45 = vld [vmem:[#allocation95_spill] sm:$0xff]  ;;  %v5905_v36 = vmul.f32 %v22160_v50, %v19195_v16  ;;  %v22169_v50 = vld [vmem:[#allocation126_spill] sm:$0xff] }
 0x7f5   : >> { %22152 = vst [vmem:[#allocation387_spill] sm:$0xff] %v19307_v34  ;;  %v5996_v24 = vpop.xlane.xlu0 %5995  ;;  %v6110_v5 = vmul.f32 %v22158_v45, %v18874_v2  ;;  %v6108_v34 = vmul.f32 %v22161_v53, %v18910_v43  ;;  %v5887_v53 = vmul.f32 %v22169_v50, %v19203_v62 }
 0x7f6   : >> { %v19317_v30 = vadd.f32 %v5996_v24, %v5889_v14   ;;  %v6018_v42 = vpop.xlane.xlu1 %6017  ;;  %v10519_v46 = vpop.f32.mrb[36].mxu0  ;;  %v6125_v14 = vmul.f32 %v22163_v61, %v18865_v17 }
 0x7f7   : >> { %v19321_v35 = vadd.f32 %v6018_v42, %v5900_v49   ;;  %v19331_v24 = vadd.f32 %v10519_v46, %v6109_v27   ;;  %v6249_v1 = vpop.f32.mrb[37].mxu0  ;;  %v22171_v27 = vld [vmem:[#allocation107_spill] sm:$0xff] }
 0x7f8   : >> { %22157 = vst [vmem:[#allocation388_spill] sm:$0xff] %v19317_v30  ;;  %v22166_v30 = vld [vmem:[#allocation255_spill] sm:$0xff]  ;;  %v19337_v45 = vadd.f32 %v6249_v1, %v6107_v44   ;;  %v10520_v43 = vpop.f32.mrb[38].mxu0  ;;  %v5906_v12 = vmul.f32 %v22171_v27, %v19199_v11  ;;  %v22174_v1 = vld [vmem:[#allocation252_spill] sm:$0xff] }
 0x7f9   : >> { %22159 = vst [vmem:[#allocation389_spill] sm:$0xff] %v19321_v35  ;;  %v6028_v63 = vpop.xlane.xlu0 %6027  ;;  %22164 = vst [vmem:[#allocation390_spill] sm:$0xff] %v19331_v24  ;;  %v6123_v42 = vmul.f32 %v22166_v30, %v18901_v56  ;;  %v19343_v56 = vadd.f32 %v10520_v43, %v6110_v5   ;;  %v6252_v17 = vpop.f32.mrb[39].mxu0 }
 0x7fa   : >> { %v19333_v2 = vadd.f32 %v6028_v63, %v5905_v36   ;;  %v5998_v49 = vpop.xlane.xlu1 %5997  ;;  %22167 = vst [vmem:[#allocation392_spill] sm:$0xff] %v19337_v45  ;;  %v19347_v36 = vadd.f32 %v6252_v17, %v6108_v34   ;;  %v22179_v34 = vld [vmem:[#allocation110_spill] sm:$0xff]  ;;  %v22186_v17 = vld [vmem:[#allocation109_spill] sm:$0xff] }
 0x7fb   : >> { %v19339_v35 = vadd.f32 %v5998_v49, %v5890_v59   ;;  %22170 = vst [vmem:[#allocation394_spill] sm:$0xff] %v19343_v56  ;;  %v10551_v46 = vpop.f32.mrb[36].mxu1  ;;  %v6126_v59 = vmul.f32 %v22174_v1, %v18892_v25  ;;  %v22176_v49 = vld [vmem:[#allocation254_spill] sm:$0xff]  ;;  %v5903_v45 = vmul.f32 %v22179_v34, %v19214_v60  ;;  %v5904_v27 = vmul.f32 %v22186_v17, %v19225_v26 }
 0x7fc   : >> { %22165 = vst [vmem:[#allocation391_spill] sm:$0xff] %v19333_v2  ;;  %22172 = vst [vmem:[#allocation395_spill] sm:$0xff] %v19347_v36  ;;  %v19349_v24 = vadd.f32 %v10551_v46, %v6125_v14   ;;  %v6346_v44 = vpop.f32.mrb[37].mxu1  ;;  %v6124_v5 = vmul.f32 %v22176_v49, %v18928_v22  ;;  %v22180_v14 = vld [vmem:[#allocation125_spill] sm:$0xff] }
 0x7fd   : >> { %22168 = vst [vmem:[#allocation393_spill] sm:$0xff] %v19339_v35  ;;  %v5992_v61 = vpop.xlane.xlu0 %5991  ;;  %v19357_v50 = vadd.f32 %v6346_v44, %v6123_v42   ;;  %v10552_v30 = vpop.f32.mrb[38].mxu1  ;;  %v5888_v35 = vmul.f32 %v22180_v14, %v19210_v7 }
 0x7fe   : >> { %22173 = vst [vmem:[#allocation396_spill] sm:$0xff] %v19349_v24  ;;  %v19353_v2 = vadd.f32 %v5992_v61, %v5887_v53   ;;  %v6030_v56 = vpop.xlane.xlu1 %6029  ;;  %v19365_v46 = vadd.f32 %v10552_v30, %v6126_v59   ;;  %v6349_v25 = vpop.f32.mrb[39].mxu1  ;;  %v22191_v59 = vld [vmem:[#allocation94_spill] sm:$0xff]  ;;  %v22194_v30 = vld [vmem:[#allocation93_spill] sm:$0xff] }
 0x7ff   : >> { %22177 = vst [vmem:[#allocation398_spill] sm:$0xff] %v19357_v50  ;;  %v19359_v43 = vadd.f32 %v6030_v56, %v5906_v12   ;;  %v19367_v14 = vadd.f32 %v6349_v25, %v6124_v5   ;;  %v22187_v12 = vld [vmem:[#allocation92_spill] sm:$0xff]  ;;  %v22193_v5 = vld [vmem:[#allocation122_spill] sm:$0xff]  ;;  %v6112_v34 = vmul.f32 %v22194_v30, %v18997_v10 }
 0x800   : >> { %22175 = vst [vmem:[#allocation397_spill] sm:$0xff] %v19353_v2  ;;  %22181 = vst [vmem:[#allocation400_spill] sm:$0xff] %v19365_v46  ;;  %v6113_v36 = vmul.f32 %v22187_v12, %v18919_v28  ;;  %v22192_v2 = vld [vmem:[#allocation258_spill] sm:$0xff]  ;;  %v5891_v56 = vmul.f32 %v22193_v5, %v19239_v6  ;;  %v22196_v25 = vld [vmem:[#allocation249_spill] sm:$0xff] }
 0x801   : >> { %22178 = vst [vmem:[#allocation399_spill] sm:$0xff] %v19359_v43  ;;  %22182 = vst [vmem:[#allocation401_spill] sm:$0xff] %v19367_v14  ;;  %v6024_v53 = vpop.xlane.xlu0 %6023  ;;  %v22185_v43 = vld [vmem:[#allocation120_spill] sm:$0xff]  ;;  %v6114_v49 = vmul.f32 %v22192_v2, %v18949_v21  ;;  %v22195_v28 = vld [vmem:[#allocation119_spill] sm:$0xff] }
 0x802   : >> { %v19369_v61 = vadd.f32 %v6024_v53, %v5903_v45   ;;  %v5994_v22 = vpop.xlane.xlu1 %5993  ;;  %v5893_v50 = vmul.f32 %v22185_v43, %v19227_v57  ;;  %v5894_v45 = vmul.f32 %v22195_v28, %v19231_v40  ;;  %v6129_v53 = vmul.f32 %v22196_v25, %v18937_v0  ;;  %v22202_v12 = vld [vmem:[#allocation251_spill] sm:$0xff]  ;;  %v22203_v0 = vld [vmem:[#allocation248_spill] sm:$0xff] }
 0x803   : >> { %v19372_v42 = vadd.f32 %v5994_v22, %v5888_v35  }
 0x804   : >> { %22183 = vst [vmem:[#allocation402_spill] sm:$0xff] %v19369_v61  ;;  %v22190_v61 = vld [vmem:[#allocation208_spill] sm:$0xff] }
 0x805   : >> { %22184 = vst [vmem:[#allocation403_spill] sm:$0xff] %v19372_v42  ;;  %v6004_v46 = vpop.xlane.xlu0 %6003  ;;  %v6111_v31 = vmul.f32 %v22191_v59, %v22190_v61 }
 0x806   : >> { %v19380_v24 = vadd.f32 %v6004_v46, %v5893_v50   ;;  %v6026_v44 = vpop.xlane.xlu1 %6025  ;;  %v6127_v46 = vmul.f32 %v22202_v12, %v18985_v51 }
 0x807   : >> { %v19382_v1 = vadd.f32 %v6026_v44, %v5904_v27   ;;  %v10523_v14 = vpop.f32.mrb[40].mxu0 }
 0x808   : >> { %22188 = vst [vmem:[#allocation404_spill] sm:$0xff] %v19380_v24  ;;  %v19396_v59 = vadd.f32 %v10523_v14, %v6113_v36   ;;  %v6265_v22 = vpop.f32.mrb[41].mxu0  ;;  %v6130_v36 = vmul.f32 %v22203_v0, %v18973_v13  ;;  %v22204_v24 = vld [vmem:[#allocation106_spill] sm:$0xff]  ;;  %v22210_v13 = vld [vmem:[#allocation250_spill] sm:$0xff]  ;;  %v22214_v14 = vld [vmem:[#allocation104_spill] sm:$0xff] }
 0x809   : >> { %22189 = vst [vmem:[#allocation405_spill] sm:$0xff] %v19382_v1  ;;  %v6000_v35 = vpop.xlane.xlu0 %5999  ;;  %v19400_v43 = vadd.f32 %v6265_v22, %v6111_v31   ;;  %v10524_v50 = vpop.f32.mrb[42].mxu0  ;;  %v5907_v44 = vmul.f32 %v22204_v24, %v19247_v41  ;;  %v6128_v28 = vmul.f32 %v22210_v13, %v19021_v9  ;;  %v22218_v9 = vld [vmem:[#allocation103_spill] sm:$0xff] }
 0x80a   : >> { %22197 = vst [vmem:[#allocation406_spill] sm:$0xff] %v19396_v59  ;;  %v19398_v42 = vadd.f32 %v6000_v35, %v5891_v56   ;;  %v6006_v21 = vpop.xlane.xlu1 %6005  ;;  %v19404_v10 = vadd.f32 %v10524_v50, %v6114_v49   ;;  %v6268_v17 = vpop.f32.mrb[43].mxu0  ;;  %v5909_v35 = vmul.f32 %v22214_v14, %v19277_v4  ;;  %v22222_v0 = vld [vmem:[#allocation91_spill] sm:$0xff]  ;;  %v22233_v14 = vld [vmem:[#allocation204_spill] sm:$0xff] }
 0x80b   : >> { %22199 = vst [vmem:[#allocation408_spill] sm:$0xff] %v19400_v43  ;;  %v19402_v2 = vadd.f32 %v6006_v21, %v5894_v45   ;;  %v10555_v27 = vpop.f32.mrb[40].mxu1  ;;  %v19412_v1 = vpop.eup %12895  ;;  %v19414_v61 = vadd.f32 %v6268_v17, %v6112_v34   ;;  %v22220_v17 = vld [vmem:[#allocation89_spill] sm:$0xff] }
 0x80c   : >> { %22198 = vst [vmem:[#allocation407_spill] sm:$0xff] %v19398_v42  ;;  %22201 = vst [vmem:[#allocation410_spill] sm:$0xff] %v19404_v10  ;;  %v19416_v30 = vadd.f32 %v10555_v27, %v6129_v53   ;;  %v6362_v59 = vpop.f32.mrb[41].mxu1  ;;  %v22215_v53 = vld [vmem:[#allocation105_spill] sm:$0xff]  ;;  %v5910_v43 = vmul.f32 %v22218_v9, %v19412_v1 }
 0x80d   : >> { %22200 = vst [vmem:[#allocation409_spill] sm:$0xff] %v19402_v2  ;;  %22205 = vst [vmem:[#allocation411_spill] sm:$0xff] %v19414_v61  ;;  %v6032_v31 = vpop.xlane.xlu0 %6031  ;;  %v22207_v2 = vld [vmem:[#allocation121_spill] sm:$0xff]  ;;  %v19420_v5 = vadd.f32 %v6362_v59, %v6127_v46   ;;  %v10556_v51 = vpop.f32.mrb[42].mxu1  ;;  %v5908_v22 = vmul.f32 %v22215_v53, %v19261_v18  ;;  %v22221_v46 = vld [vmem:[#allocation216_spill] sm:$0xff] }
 0x80e   : >> { %22206 = vst [vmem:[#allocation412_spill] sm:$0xff] %v19416_v30  ;;  %v5892_v49 = vmul.f32 %v22207_v2, %v19245_v47  ;;  %v19422_v56 = vadd.f32 %v6032_v31, %v5907_v44   ;;  %v6002_v45 = vpop.xlane.xlu1 %6001  ;;  %v19426_v31 = vadd.f32 %v10556_v51, %v6130_v36   ;;  %v6365_v34 = vpop.f32.mrb[43].mxu1  ;;  %v6115_v36 = vmul.f32 %v22222_v0, %v22221_v46  ;;  %v22224_v59 = vld [vmem:[#allocation211_spill] sm:$0xff]  ;;  %v22228_v51 = vld [vmem:[#allocation90_spill] sm:$0xff]  ;;  %v22244_v46 = vld [vmem:[#allocation243_spill] sm:$0xff] }
 0x80f   : >> { %22208 = vst [vmem:[#allocation413_spill] sm:$0xff] %v19420_v5  ;;  %v19430_v30 = vadd.f32 %v6365_v34, %v6128_v28   ;;  %v22227_v5 = vld [vmem:[#allocation217_spill] sm:$0xff]  ;;  %v22231_v28 = vld [vmem:[#allocation246_spill] sm:$0xff] }
 0x810   : >> { %22209 = vst [vmem:[#allocation414_spill] sm:$0xff] %v19422_v56  ;;  %22211 = vst [vmem:[#allocation415_spill] sm:$0xff] %v19426_v31  ;;  %v19428_v27 = vadd.f32 %v6002_v45, %v5892_v49   ;;  %v22225_v31 = vld [vmem:[#allocation257_spill] sm:$0xff]  ;;  %v6116_v56 = vmul.f32 %v22228_v51, %v22227_v5 }
 0x811   : >> { %22213 = vst [vmem:[#allocation417_spill] sm:$0xff] %v19430_v30  ;;  %v6036_v25 = vpop.xlane.xlu0 %6035  ;;  %v6118_v2 = vmul.f32 %v22225_v31, %v22224_v59  ;;  %v22246_v59 = vld [vmem:[#allocation84_spill] sm:$0xff] }
 0x812   : >> { %22212 = vst [vmem:[#allocation416_spill] sm:$0xff] %v19428_v27  ;;  %v19436_v42 = vadd.f32 %v6036_v25, %v5909_v35   ;;  %v6034_v21 = vpop.xlane.xlu1 %6033  ;;  %v6117_v27 = vmul.f32 %v22220_v17, %v19009_v55  ;;  %v22230_v55 = vld [vmem:[#allocation213_spill] sm:$0xff] }
 0x813   : >> { %v19438_v24 = vadd.f32 %v6034_v21, %v5908_v22   ;;  %v6133_v45 = vmul.f32 %v22231_v28, %v22230_v55  ;;  %v22234_v35 = vld [vmem:[#allocation85_spill] sm:$0xff]  ;;  %v22237_v21 = vld [vmem:[#allocation245_spill] sm:$0xff] }
 0x814   : >> { %22216 = vst [vmem:[#allocation418_spill] sm:$0xff] %v19436_v42  ;;  %v6131_v53 = vmul.f32 %v22234_v35, %v22233_v14  ;;  %v22236_v42 = vld [vmem:[#allocation214_spill] sm:$0xff]  ;;  %v22252_v55 = vld [vmem:[#allocation244_spill] sm:$0xff] }
 0x815   : >> { %22217 = vst [vmem:[#allocation419_spill] sm:$0xff] %v19438_v24  ;;  %v10527_v12 = vpop.f32.mrb[44].mxu0  ;;  %v6134_v9 = vmul.f32 %v22237_v21, %v22236_v42 }
 0x816   : >> { %v6038_v50 = vpop.xlane.xlu1 %6037  ;;  %v19448_v44 = vadd.f32 %v10527_v12, %v6117_v27   ;;  %v6281_v61 = vpop.f32.mrb[45].mxu0  ;;  %v22243_v12 = vld [vmem:[#allocation206_spill] sm:$0xff] }
 0x817   : >> { %v19442_v10 = vadd.f32 %v6038_v50, %v5910_v43   ;;  %v19452_v24 = vadd.f32 %v6281_v61, %v6115_v36   ;;  %v10528_v49 = vpop.f32.mrb[46].mxu0  ;;  %v6137_v36 = vmul.f32 %v22244_v46, %v22243_v12  ;;  %v22245_v61 = vld [vmem:[#allocation135_spill] sm:$0xff] }
 0x818   : >> { %22223 = vst [vmem:[#allocation421_spill] sm:$0xff] %v19448_v44  ;;  %v19456_v25 = vadd.f32 %v10528_v49, %v6118_v2   ;;  %v6284_v13 = vpop.f32.mrb[47].mxu0  ;;  %v6135_v31 = vmul.f32 %v22246_v59, %v22245_v61  ;;  %v22249_v49 = vld [vmem:[#allocation242_spill] sm:$0xff]  ;;  %v22268_v61 = vld [vmem:[#allocation239_spill] sm:$0xff] }
 0x819   : >> { %22219 = vst [vmem:[#allocation420_spill] sm:$0xff] %v19442_v10  ;;  %22226 = vst [vmem:[#allocation422_spill] sm:$0xff] %v19452_v24  ;;  %v19460_v34 = vadd.f32 %v6284_v13, %v6116_v56   ;;  %v10559_v30 = vpop.f32.mrb[44].mxu1  ;;  %v22240_v10 = vld [vmem:[#allocation247_spill] sm:$0xff]  ;;  %v22251_v13 = vmov %v19110_v32 }
 0x81a   : >> { %22229 = vst [vmem:[#allocation423_spill] sm:$0xff] %v19456_v25  ;;  %v19464_v51 = vadd.f32 %v10559_v30, %v6133_v45   ;;  %v6378_v22 = vpop.f32.mrb[45].mxu1  ;;  %v22239_v25 = vld [vmem:[#allocation205_spill] sm:$0xff]  ;;  %v22248_v24 = vld [vmem:[#allocation136_spill] sm:$0xff]  ;;  %v6136_v28 = vmul.f32 %v22252_v55, %v22251_v13  ;;  %v22254_v45 = vld [vmem:[#allocation139_spill] sm:$0xff] }
 0x81b   : >> { %22232 = vst [vmem:[#allocation424_spill] sm:$0xff] %v19460_v34  ;;  %v19468_v43 = vadd.f32 %v6378_v22, %v6131_v53   ;;  %v10560_v50 = vpop.f32.mrb[46].mxu1  ;;  %v6132_v17 = vmul.f32 %v22240_v10, %v22239_v25  ;;  %v6138_v5 = vmul.f32 %v22249_v49, %v22248_v24  ;;  %v22255_v34 = vld [vmem:[#allocation230_spill] sm:$0xff]  ;;  %v22257_v53 = vld [vmem:[#allocation138_spill] sm:$0xff]  ;;  %v22258_v22 = vld [vmem:[#allocation232_spill] sm:$0xff] }
 0x81c   : >> { %22235 = vst [vmem:[#allocation425_spill] sm:$0xff] %v19464_v51  ;;  %v19472_v21 = vadd.f32 %v10560_v50, %v6134_v9   ;;  %v6381_v27 = vpop.f32.mrb[47].mxu1  ;;  %v6153_v30 = vmul.f32 %v22255_v34, %v22254_v45  ;;  %v6151_v42 = vmul.f32 %v22258_v22, %v22257_v53  ;;  %v22260_v9 = vld [vmem:[#allocation140_spill] sm:$0xff]  ;;  %v22274_v55 = vld [vmem:[#allocation240_spill] sm:$0xff] }
 0x81d   : >> { %22238 = vst [vmem:[#allocation426_spill] sm:$0xff] %v19468_v43  ;;  %v19474_v0 = vadd.f32 %v6381_v27, %v6132_v17   ;;  %v22261_v43 = vld [vmem:[#allocation229_spill] sm:$0xff] }
 0x81e   : >> { %22241 = vst [vmem:[#allocation427_spill] sm:$0xff] %v19472_v21  ;;  %v6154_v50 = vmul.f32 %v22261_v43, %v22260_v9  ;;  %v22263_v17 = vld [vmem:[#allocation142_spill] sm:$0xff] }
 0x81f   : >> { %22242 = vst [vmem:[#allocation428_spill] sm:$0xff] %v19474_v0 }
 0x825   : >> { %v10579_v44 = vpop.f32.mrb[48].mxu0 }
 0x826   : >> { %v19480_v10 = vadd.f32 %v10579_v44, %v6137_v36   ;;  %v6427_v2 = vpop.f32.mrb[49].mxu0  ;;  %v22267_v44 = vld [vmem:[#allocation143_spill] sm:$0xff] }
 0x827   : >> { %v19484_v51 = vadd.f32 %v6427_v2, %v6135_v31   ;;  %v10580_v56 = vpop.f32.mrb[50].mxu0  ;;  %v6141_v59 = vmul.f32 %v22268_v61, %v22267_v44 }
 0x828   : >> { %22247 = vst [vmem:[#allocation429_spill] sm:$0xff] %v19480_v10  ;;  %v19488_v27 = vadd.f32 %v10580_v56, %v6138_v5   ;;  %v6430_v0 = vpop.f32.mrb[51].mxu0  ;;  %v22271_v5 = vld [vmem:[#allocation144_spill] sm:$0xff] }
 0x829   : >> { %22250 = vst [vmem:[#allocation430_spill] sm:$0xff] %v19484_v51  ;;  %v19492_v14 = vadd.f32 %v6430_v0, %v6136_v28   ;;  %v22272_v51 = vld [vmem:[#allocation238_spill] sm:$0xff]  ;;  %v6140_v0 = vmul.f32 %v22274_v55, %v19166_v38 }
 0x82a   : >> { %22253 = vst [vmem:[#allocation431_spill] sm:$0xff] %v19488_v27  ;;  %v10611_v35 = vpop.f32.mrb[48].mxu1  ;;  %v22264_v27 = vld [vmem:[#allocation231_spill] sm:$0xff]  ;;  %v6142_v56 = vmul.f32 %v22272_v51, %v22271_v5 }
 0x82b   : >> { %22256 = vst [vmem:[#allocation432_spill] sm:$0xff] %v19492_v14  ;;  %v19496_v2 = vadd.f32 %v10611_v35, %v6153_v30   ;;  %v6524_v21 = vpop.f32.mrb[49].mxu1  ;;  %v6152_v12 = vmul.f32 %v22264_v27, %v22263_v17  ;;  %v22277_v30 = vld [vmem:[#allocation132_spill] sm:$0xff]  ;;  %v22278_v14 = vld [vmem:[#allocation226_spill] sm:$0xff]  ;;  %v22286_v27 = vld [vmem:[#allocation237_spill] sm:$0xff] }
 0x82c   : >> { %v19500_v25 = vadd.f32 %v6524_v21, %v6151_v42   ;;  %v10612_v10 = vpop.f32.mrb[50].mxu1  ;;  %v22293_v5 = vld [vmem:[#allocation80_spill] sm:$0xff] }
 0x82d   : >> { %22259 = vst [vmem:[#allocation433_spill] sm:$0xff] %v19496_v2  ;;  %v19504_v46 = vadd.f32 %v10612_v10, %v6154_v50   ;;  %v6527_v36 = vpop.f32.mrb[51].mxu1  ;;  %v22269_v2 = vld [vmem:[#allocation241_spill] sm:$0xff]  ;;  %v22283_v50 = vld [vmem:[#allocation227_spill] sm:$0xff]  ;;  %v6159_v51 = vmul.f32 %v22293_v5, %v19214_v60 }
 0x82e   : >> { %22262 = vst [vmem:[#allocation434_spill] sm:$0xff] %v19500_v25  ;;  %v19506_v28 = vadd.f32 %v6527_v36, %v6152_v12   ;;  %v6139_v24 = vmul.f32 %v22269_v2, %v19161_v37  ;;  %v6157_v37 = vmul.f32 %v22278_v14, %v22277_v30  ;;  %v6156_v25 = vmul.f32 %v22283_v50, %v19180_v39  ;;  %v22290_v39 = vld [vmem:[#allocation79_spill] sm:$0xff]  ;;  %v22306_v14 = vld [vmem:[#allocation81_spill] sm:$0xff]  ;;  %v22374_v5 = vld [vmem:[#allocation384_spill] sm:$0xff] }
 0x82f   : >> { %v22265_v54 = vmov %v19504_v46  ;;  %v22287_v46 = vld [vmem:[#allocation83_spill] sm:$0xff]  ;;  %22375 = vst [vmem:[#allocation86_spill] sm:$0xff] %v22374_v5  ;;  %v22403_v5 = vld [vmem:[#allocation378_spill] sm:$0xff] }
 0x830   : >> { %22266 = vst [vmem:[#allocation435_spill] sm:$0xff] %v19506_v28  ;;  %v6143_v36 = vmul.f32 %v22287_v46, %v19203_v62  ;;  %22404 = vst [vmem:[#allocation99_spill] sm:$0xff] %v22403_v5  ;;  %v22425_v5 = vld [vmem:[#allocation402_spill] sm:$0xff] }
 0x831   : >> { %22426 = vst [vmem:[#allocation110_spill] sm:$0xff] %v22425_v5  ;;  %v22447_v5 = vld [vmem:[#allocation416_spill] sm:$0xff] }
 0x832   : >> { %22448 = vst [vmem:[#allocation121_spill] sm:$0xff] %v22447_v5  ;;  %v22469_v5 = vld [vmem:[#allocation364_spill] sm:$0xff] }
 0x833   : >> { %22470 = vst [vmem:[#allocation132_spill] sm:$0xff] %v22469_v5  ;;  %v22491_v5 = vld [vmem:[#allocation345_spill] sm:$0xff] }
 0x834   : >> { %22492 = vst [vmem:[#allocation143_spill] sm:$0xff] %v22491_v5  ;;  %v22513_v5 = vld [vmem:[#allocation360_spill] sm:$0xff] }
 0x835   : >> { %v10583_v31 = vpop.f32.mrb[52].mxu0  ;;  %22514 = vst [vmem:[#allocation154_spill] sm:$0xff] %v22513_v5  ;;  %v22535_v5 = vld [vmem:[#allocation339_spill] sm:$0xff] }
 0x836   : >> { %v19512_v35 = vadd.f32 %v10583_v31, %v6141_v59   ;;  %v6443_v49 = vpop.f32.mrb[53].mxu0  ;;  %v6161_v59 = vmul.f32 %v22290_v39, %v19195_v16  ;;  %22536 = vst [vmem:[#allocation165_spill] sm:$0xff] %v22535_v5  ;;  %v22557_v5 = vld [vmem:[#allocation176_spill] sm:$0xff] }
 0x837   : >> { %v19516_v45 = vadd.f32 %v6443_v49, %v6139_v24   ;;  %v10584_v13 = vpop.f32.mrb[54].mxu0  ;;  %v22292_v24 = vld [vmem:[#allocation82_spill] sm:$0xff]  ;;  %22558 = vst [vmem:[#allocation176_spill] sm:$0xff] %v22557_v5 }
 0x838   : >> { %22270 = vst [vmem:[#allocation436_spill] sm:$0xff] %v19512_v35  ;;  %v19520_v28 = vadd.f32 %v10584_v13, %v6142_v56   ;;  %v6446_v34 = vpop.f32.mrb[55].mxu0  ;;  %v22279_v35 = vld [vmem:[#allocation228_spill] sm:$0xff]  ;;  %v6144_v49 = vmul.f32 %v22292_v24, %v19210_v7  ;;  %v22579_v5 = vld [vmem:[#allocation322_spill] sm:$0xff] }
 0x839   : >> { %22273 = vst [vmem:[#allocation437_spill] sm:$0xff] %v19516_v45  ;;  %v19522_v44 = vadd.f32 %v6446_v34, %v6140_v0   ;;  %v6155_v22 = vmul.f32 %v22279_v35, %v19173_v58  ;;  %v22281_v45 = vld [vmem:[#allocation225_spill] sm:$0xff]  ;;  %v6145_v58 = vmul.f32 %v22286_v27, %v19184_v52  ;;  %v22301_v7 = vld [vmem:[#allocation224_spill] sm:$0xff]  ;;  %v22307_v35 = vld [vmem:[#allocation235_spill] sm:$0xff] }
 0x83a   : >> { %22275 = vst [vmem:[#allocation438_spill] sm:$0xff] %v19520_v28  ;;  %v6158_v9 = vmul.f32 %v22281_v45, %v19152_v33  ;;  %v6160_v34 = vmul.f32 %v22301_v7, %v19225_v26  ;;  %22580 = vst [vmem:[#allocation187_spill] sm:$0xff] %v22579_v5  ;;  %v22601_v5 = vld [vmem:[#allocation315_spill] sm:$0xff] }
 0x83b   : >> { %22276 = vst [vmem:[#allocation439_spill] sm:$0xff] %v19522_v44  ;;  %v22289_v44 = vld [vmem:[#allocation236_spill] sm:$0xff]  ;;  %22602 = vst [vmem:[#allocation198_spill] sm:$0xff] %v22601_v5  ;;  %v22623_v5 = vld [vmem:[#allocation303_spill] sm:$0xff] }
 0x83c   : >> { %v10615_v53 = vpop.f32.mrb[52].mxu1 }
 0x83d   : >> { %v19528_v42 = vadd.f32 %v10615_v53, %v6157_v37   ;;  %v6540_v21 = vpop.f32.mrb[53].mxu1  ;;  %v6149_v37 = vmul.f32 %v22306_v14, %v19227_v57  ;;  %v22314_v57 = vld [vmem:[#allocation222_spill] sm:$0xff]  ;;  %v22372_v14 = vld [vmem:[#allocation401_spill] sm:$0xff] }
 0x83e   : >> { %v19532_v61 = vadd.f32 %v6540_v21, %v6155_v22   ;;  %v10616_v43 = vpop.f32.mrb[54].mxu1  ;;  %v22309_v21 = vld [vmem:[#allocation233_spill] sm:$0xff] }
 0x83f   : >> { %v22280_v3 = vmov %v19528_v42  ;;  %v19536_v10 = vadd.f32 %v10616_v43, %v6158_v9   ;;  %v6543_v17 = vpop.f32.mrb[55].mxu1  ;;  %v6150_v45 = vmul.f32 %v22309_v21, %v19231_v40  ;;  %v22311_v9 = vld [vmem:[#allocation234_spill] sm:$0xff] }
 0x840   : >> { %v22282_v38 = vmov %v19532_v61  ;;  %v19538_v22 = vadd.f32 %v6543_v17, %v6156_v25   ;;  %v6146_v61 = vmul.f32 %v22289_v44, %v19188_v29  ;;  %v22297_v29 = vld [vmem:[#allocation78_spill] sm:$0xff]  ;;  %v22361_v21 = vld [vmem:[#allocation427_spill] sm:$0xff] }
 0x841   : >> { %v22284_v20 = vmov %v19536_v10  ;;  %v6162_v55 = vmul.f32 %v22297_v29, %v19199_v11  ;;  %v6147_v11 = vmul.f32 %v22307_v35, %v19239_v6  ;;  %v6165_v6 = vmul.f32 %v22314_v57, %v19277_v4  ;;  %v22315_v10 = vld [vmem:[#allocation77_spill] sm:$0xff]  ;;  %v22352_v29 = vld [vmem:[#allocation438_spill] sm:$0xff]  ;;  %v22353_v35 = vld [vmem:[#allocation436_spill] sm:$0xff] }
 0x842   : >> { %v22285_v8 = vmov %v19538_v22  ;;  %v6163_v17 = vmul.f32 %v22315_v10, %v19247_v41  ;;  %v22336_v57 = vmov %v22284_v20  ;;  %v22357_v10 = vld [vmem:[#allocation429_spill] sm:$0xff]  ;;  %v22669_v21 = vld [vmem:[#allocation347_spill] sm:$0xff] (%p19607_p11) }
 0x843   : > { %v12914_v29 = vld [vmem:[#allocation8 + $0xa0] ss:$8 sps:$4 sm:$0xff] (%p19607_p11)   ;;  %v22673_v10 = vld [vmem:[#allocation387_spill] sm:$0xff] (%p19607_p11) }
 0x847   : >> { %v10587_v12 = vpop.f32.mrb[56].mxu0 }
 0x848   : >> { %v19544_v43 = vadd.f32 %v10587_v12, %v6145_v58   ;;  %v6459_v33 = vpop.f32.mrb[57].mxu0 }
 0x849   : >> { %v19550_v31 = vadd.f32 %v6459_v33, %v6143_v36   ;;  %v10588_v2 = vpop.f32.mrb[58].mxu0  ;;  %v22321_v36 = vld [vmem:[#allocation223_spill] sm:$0xff] }
 0x84a   : >> { %22288 = vst [vmem:[#allocation440_spill] sm:$0xff] %v19544_v43  ;;  %v10619_v52 = vpop.f32.mrb[56].mxu1  ;;  %v19556_v24 = vadd.f32 %v10588_v2, %v6146_v61   ;;  %v6462_v62 = vpop.f32.mrb[59].mxu0  ;;  %v6148_v43 = vmul.f32 %v22311_v9, %v19245_v47  ;;  %v6164_v33 = vmul.f32 %v22321_v36, %v19261_v18  ;;  %v22339_v61 = vmov %v22282_v38  ;;  %v22341_v2 = vld [vmem:[#allocation433_spill] sm:$0xff]  ;;  %v22371_v9 = vld [vmem:[#allocation396_spill] sm:$0xff]  ;;  %v22395_v36 = vld [vmem:[#allocation394_spill] sm:$0xff] }
 0x84b   : >> { %22291 = vst [vmem:[#allocation441_spill] sm:$0xff] %v19550_v31  ;;  %v19558_v56 = vadd.f32 %v10619_v52, %v6161_v59   ;;  %v6556_v13 = vpop.f32.mrb[57].mxu1  ;;  %v19562_v16 = vadd.f32 %v6462_v62, %v6144_v49   ;;  %v22350_v41 = vmov %v19550_v31  ;;  %v22364_v31 = vld [vmem:[#allocation426_spill] sm:$0xff]  ;;  %v22369_v49 = vld [vmem:[#allocation413_spill] sm:$0xff]  ;;  %v22376_v62 = vld [vmem:[#allocation380_spill] sm:$0xff] }
 0x84c   : >> { %22294 = vst [vmem:[#allocation442_spill] sm:$0xff] %v19556_v24  ;;  %v19564_v0 = vadd.f32 %v6556_v13, %v6159_v51   ;;  %v10620_v28 = vpop.f32.mrb[58].mxu1  ;;  %22351 = vst [vmem:[#allocation83_spill] sm:$0xff] %v22350_v41  ;;  %v22362_v51 = vld [vmem:[#allocation425_spill] sm:$0xff]  ;;  %v22379_v13 = vld [vmem:[#allocation382_spill] sm:$0xff] }
 0x84d   : >> { %22295 = vst [vmem:[#allocation443_spill] sm:$0xff] %v19558_v56  ;;  %v22296_v23 = vmov %v19558_v56  ;;  %22298 = vst [vmem:[#allocation444_spill] sm:$0xff] %v19562_v16  ;;  %v19568_v30 = vadd.f32 %v10620_v28, %v6162_v55   ;;  %v6559_v60 = vpop.f32.mrb[59].mxu1  ;;  %v22337_v16 = vmov %v22280_v3  ;;  %v22342_v28 = vld [vmem:[#allocation435_spill] sm:$0xff]  ;;  %v22384_v41 = vld [vmem:[#allocation424_spill] sm:$0xff] }
 0x84e   : >> { %22299 = vst [vmem:[#allocation445_spill] sm:$0xff] %v19564_v0  ;;  %v19570_v12 = vadd.f32 %v6559_v60, %v6160_v34   ;;  %22332 = vst [vmem:[#allocation79_spill] sm:$0xff] %v22296_v23  ;;  %v22334_v32 = vmov %v19564_v0  ;;  %v22363_v0 = vld [vmem:[#allocation428_spill] sm:$0xff]  ;;  %v22382_v34 = vld [vmem:[#allocation421_spill] sm:$0xff] }
 0x84f   : >> { %22302 = vst [vmem:[#allocation446_spill] sm:$0xff] %v19568_v30  ;;  %v22303_v15 = vmov %v19568_v30  ;;  %22335 = vst [vmem:[#allocation80_spill] sm:$0xff] %v22334_v32  ;;  %v22367_v30 = vld [vmem:[#allocation412_spill] sm:$0xff]  ;;  %v12902_v23 = vld [vmem:[#allocation8 + $0x80] ss:$8 sps:$4 sm:$0xff] (%p19607_p11)  }
 0x850   : >> { %22304 = vst [vmem:[#allocation447_spill] sm:$0xff] %v19570_v12  ;;  %v22305_v63 = vmov %v19570_v12  ;;  %22331 = vst [vmem:[#allocation78_spill] sm:$0xff] %v22303_v15  ;;  %v22659_v15 = vld [vmem:[#allocation339_spill] sm:$0xff] (%p19607_p11)  ;;  %v22662_v2 = vld [vmem:[#allocation333_spill] sm:$0xff] (%p19607_p11) }
 0x851   : >> { %v10591_v53 = vpop.f32.mrb[60].mxu0  ;;  %22365 = vst [vmem:[#allocation85_spill] sm:$0xff] %v22364_v31  ;;  %v22366_v31 = vld [vmem:[#allocation415_spill] sm:$0xff]  ;;  %22377 = vst [vmem:[#allocation87_spill] sm:$0xff] %v22376_v62  ;;  %v12911_v51 = vld [vmem:[#allocation8 + $0xa4] ss:$8 sps:$4 sm:$0xff] (%p19607_p11)  }
 0x852   : >> { %v19576_v22 = vadd.f32 %v10591_v53, %v6149_v37   ;;  %v6475_v42 = vpop.f32.mrb[61].mxu0  ;;  %v22378_v37 = vld [vmem:[#allocation385_spill] sm:$0xff]  ;;  %22380 = vst [vmem:[#allocation88_spill] sm:$0xff] %v22379_v13  ;;  %22383 = vst [vmem:[#allocation89_spill] sm:$0xff] %v22382_v34  ;;  %v22386_v53 = vld [vmem:[#allocation422_spill] sm:$0xff] }
 0x853   : >> { %v19580_v58 = vadd.f32 %v6475_v42, %v6147_v11   ;;  %v10592_v26 = vpop.f32.mrb[62].mxu0  ;;  %22385 = vst [vmem:[#allocation90_spill] sm:$0xff] %v22384_v41  ;;  %22387 = vst [vmem:[#allocation91_spill] sm:$0xff] %v22386_v53  ;;  %v22388_v13 = vld [vmem:[#allocation410_spill] sm:$0xff]  ;;  %v22391_v42 = vld [vmem:[#allocation411_spill] sm:$0xff] }
 0x854   : >> { %v22308_v52 = vmov %v19576_v22  ;;  %v19584_v7 = vadd.f32 %v10592_v26, %v6150_v45   ;;  %v6478_v50 = vpop.f32.mrb[63].mxu0  ;;  %v22338_v22 = vmov %v22285_v8  ;;  %v22343_v26 = vld [vmem:[#allocation434_spill] sm:$0xff]  ;;  %v22348_v18 = vld [vmem:[#allocation444_spill] sm:$0xff]  ;;  %v22355_v45 = vld [vmem:[#allocation437_spill] sm:$0xff]  ;;  %22392 = vst [vmem:[#allocation93_spill] sm:$0xff] %v22391_v42 }
 0x855   : >> { %22310 = vst [vmem:[#allocation448_spill] sm:$0xff] %v19580_v58  ;;  %v19586_v60 = vadd.f32 %v6478_v50, %v6148_v43   ;;  %v22318_v58 = vld [vmem:[#allocation221_spill] sm:$0xff]  ;;  %22345 = vst [vmem:[#allocation81_spill] sm:$0xff] %v22308_v52  ;;  %v22347_v43 = vld [vmem:[#allocation440_spill] sm:$0xff] }
 0x856   : >> { %v22312_v19 = vmov %v19584_v7  ;;  %v6166_v12 = vmul.f32 %v22318_v58, %v19412_v1  ;;  %22349 = vst [vmem:[#allocation82_spill] sm:$0xff] %v22348_v18  ;;  %v22359_v1 = vld [vmem:[#allocation430_spill] sm:$0xff]  ;;  %v22368_v18 = vld [vmem:[#allocation417_spill] sm:$0xff]  ;;  %22396 = vst [vmem:[#allocation95_spill] sm:$0xff] %v22395_v36 }
 0x857   : >> { %22313 = vst [vmem:[#allocation449_spill] sm:$0xff] %v19586_v60  ;;  %v22344_v7 = vmov %v22312_v19  ;;  %22360 = vst [vmem:[#allocation84_spill] sm:$0xff] %v22359_v1  ;;  %v22373_v50 = vld [vmem:[#allocation398_spill] sm:$0xff]  ;;  %v22399_v41 = vld [vmem:[#allocation395_spill] sm:$0xff] }
 0x858   : >> { %v10623_v25 = vpop.f32.mrb[60].mxu1  ;;  %v22389_v11 = vld [vmem:[#allocation406_spill] sm:$0xff]  ;;  %22400 = vst [vmem:[#allocation97_spill] sm:$0xff] %v22399_v41  ;;  %v22401_v1 = vld [vmem:[#allocation392_spill] sm:$0xff]  ;;  %v22405_v62 = vld [vmem:[#allocation375_spill] sm:$0xff] }
 0x859   : >> { %v19592_v56 = vadd.f32 %v10623_v25, %v6165_v6   ;;  %v6572_v27 = vpop.f32.mrb[61].mxu1  ;;  %v22340_v6 = vmov %v22265_v54  ;;  %v22381_v25 = vld [vmem:[#allocation423_spill] sm:$0xff]  ;;  %22390 = vst [vmem:[#allocation92_spill] sm:$0xff] %v22389_v11  ;;  %22402 = vst [vmem:[#allocation98_spill] sm:$0xff] %v22401_v1  ;;  %v22409_v53 = vld [vmem:[#allocation377_spill] sm:$0xff] }
 0x85a   : >> { %v19596_v46 = vadd.f32 %v6572_v27, %v6163_v17   ;;  %v10624_v47 = vpop.f32.mrb[62].mxu1  ;;  %v22356_v27 = vld [vmem:[#allocation431_spill] sm:$0xff]  ;;  %v22393_v17 = vld [vmem:[#allocation408_spill] sm:$0xff]  ;;  %22406 = vst [vmem:[#allocation100_spill] sm:$0xff] %v22405_v62  ;;  %22410 = vst [vmem:[#allocation102_spill] sm:$0xff] %v22409_v53 }
 0x85b   : >> { %22316 = vst [vmem:[#allocation450_spill] sm:$0xff] %v19592_v56  ;;  %v22317_v40 = vmov %v19592_v56  ;;  %v19600_v55 = vadd.f32 %v10624_v47, %v6166_v12   ;;  %v6575_v44 = vpop.f32.mrb[63].mxu1  ;;  %v22333_v12 = vmov %v22305_v63  ;;  %v22358_v47 = vld [vmem:[#allocation432_spill] sm:$0xff]  ;;  %22394 = vst [vmem:[#allocation94_spill] sm:$0xff] %v22393_v17  ;;  %v22407_v34 = vld [vmem:[#allocation379_spill] sm:$0xff] }
 0x85c   : >> { %22319 = vst [vmem:[#allocation451_spill] sm:$0xff] %v19596_v46  ;;  %v22320_v39 = vmov %v19596_v46  ;;  %v19602_v59 = vadd.f32 %v6575_v44, %v6164_v33   ;;  %v22328_v56 = vmov %v22317_v40  ;;  %v22346_v58 = vld [vmem:[#allocation448_spill] sm:$0xff]  ;;  %v22354_v44 = vld [vmem:[#allocation439_spill] sm:$0xff]  ;;  %v22397_v33 = vld [vmem:[#allocation390_spill] sm:$0xff] }
 0x85d   : >> { %22322 = vst [vmem:[#allocation452_spill] sm:$0xff] %v19600_v55  ;;  %v22323_v48 = vmov %v19600_v55  ;;  %22330 = vst [vmem:[#allocation77_spill] sm:$0xff] %v22320_v39  ;;  %v22370_v46 = vld [vmem:[#allocation400_spill] sm:$0xff]  ;;  %v22413_v42 = vld [vmem:[#allocation418_spill] sm:$0xff]  ;;  %v14809_v39 = vmov (%p19607_p11), 0  }
 0x85e   : >> { %22324 = vst [vmem:[#allocation453_spill] sm:$0xff] %v19602_v59  ;;  %v22325_v4 = vmov %v19602_v59  ;;  %v22327_v55 = vmov %v22323_v48  ;;  %22398 = vst [vmem:[#allocation96_spill] sm:$0xff] %v22397_v33  ;;  %v22411_v11 = vld [vmem:[#allocation420_spill] sm:$0xff]  ;;  %v22415_v17 = vld [vmem:[#allocation419_spill] sm:$0xff]  ;;  %6903 = vmatprep.mubr.bf16.mxu1 (%p19607_p11), %v14809_v39  ;;  %7355 = vmatprep.mubr.bf16.mxu0 (%p19607_p11), %v14809_v39 }
 0x85f   : >> { %v22329_v59 = vmov %v22325_v4  ;;  %22408 = vst [vmem:[#allocation101_spill] sm:$0xff] %v22407_v34  ;;  %22412 = vst [vmem:[#allocation103_spill] sm:$0xff] %v22411_v11  ;;  %v22417_v36 = vld [vmem:[#allocation414_spill] sm:$0xff]  ;;  %v22419_v33 = vld [vmem:[#allocation399_spill] sm:$0xff] }
 0x860   : >> { %22414 = vst [vmem:[#allocation104_spill] sm:$0xff] %v22413_v42  ;;  %22416 = vst [vmem:[#allocation105_spill] sm:$0xff] %v22415_v17  ;;  %v22421_v41 = vld [vmem:[#allocation391_spill] sm:$0xff]  ;;  %v22423_v1 = vld [vmem:[#allocation405_spill] sm:$0xff] }
 0x861   : >> { %22418 = vst [vmem:[#allocation106_spill] sm:$0xff] %v22417_v36  ;;  %22420 = vst [vmem:[#allocation107_spill] sm:$0xff] %v22419_v33  ;;  %v22427_v62 = vld [vmem:[#allocation383_spill] sm:$0xff]  ;;  %v22429_v34 = vld [vmem:[#allocation374_spill] sm:$0xff] }
 0x862   : >> { %22422 = vst [vmem:[#allocation108_spill] sm:$0xff] %v22421_v41  ;;  %22424 = vst [vmem:[#allocation109_spill] sm:$0xff] %v22423_v1  ;;  %v22431_v53 = vld [vmem:[#allocation389_spill] sm:$0xff]  ;;  %v22433_v11 = vld [vmem:[#allocation386_spill] sm:$0xff] }
 0x863   : >> { %22428 = vst [vmem:[#allocation111_spill] sm:$0xff] %v22427_v62  ;;  %22430 = vst [vmem:[#allocation112_spill] sm:$0xff] %v22429_v34  ;;  %v22435_v42 = vld [vmem:[#allocation369_spill] sm:$0xff]  ;;  %v22437_v17 = vld [vmem:[#allocation366_spill] sm:$0xff] }
 0x864   : >> { %22432 = vst [vmem:[#allocation113_spill] sm:$0xff] %v22431_v53  ;;  %22434 = vst [vmem:[#allocation114_spill] sm:$0xff] %v22433_v11  ;;  %v22439_v36 = vld [vmem:[#allocation373_spill] sm:$0xff]  ;;  %v22441_v33 = vld [vmem:[#allocation370_spill] sm:$0xff] }
 0x865   : >> { %22436 = vst [vmem:[#allocation115_spill] sm:$0xff] %v22435_v42  ;;  %22438 = vst [vmem:[#allocation116_spill] sm:$0xff] %v22437_v17  ;;  %v22443_v41 = vld [vmem:[#allocation409_spill] sm:$0xff]  ;;  %v22445_v1 = vld [vmem:[#allocation404_spill] sm:$0xff] }
 0x866   : >> { %22440 = vst [vmem:[#allocation117_spill] sm:$0xff] %v22439_v36  ;;  %22442 = vst [vmem:[#allocation118_spill] sm:$0xff] %v22441_v33  ;;  %v22449_v62 = vld [vmem:[#allocation407_spill] sm:$0xff]  ;;  %v22451_v34 = vld [vmem:[#allocation393_spill] sm:$0xff] }
 0x867   : >> { %22444 = vst [vmem:[#allocation119_spill] sm:$0xff] %v22443_v41  ;;  %22446 = vst [vmem:[#allocation120_spill] sm:$0xff] %v22445_v1  ;;  %v22453_v53 = vld [vmem:[#allocation388_spill] sm:$0xff]  ;;  %v22455_v11 = vld [vmem:[#allocation403_spill] sm:$0xff] }
 0x868   : >> { %22450 = vst [vmem:[#allocation122_spill] sm:$0xff] %v22449_v62  ;;  %22452 = vst [vmem:[#allocation123_spill] sm:$0xff] %v22451_v34  ;;  %v22457_v42 = vld [vmem:[#allocation397_spill] sm:$0xff]  ;;  %v22459_v17 = vld [vmem:[#allocation376_spill] sm:$0xff] }
 0x869   : >> { %22454 = vst [vmem:[#allocation124_spill] sm:$0xff] %v22453_v53  ;;  %22456 = vst [vmem:[#allocation125_spill] sm:$0xff] %v22455_v11  ;;  %v22461_v41 = vld [vmem:[#allocation372_spill] sm:$0xff]  ;;  %v22463_v36 = vld [vmem:[#allocation387_spill] sm:$0xff] }
 0x86a   : >> { %22458 = vst [vmem:[#allocation126_spill] sm:$0xff] %v22457_v42  ;;  %22460 = vst [vmem:[#allocation127_spill] sm:$0xff] %v22459_v17  ;;  %v22465_v33 = vld [vmem:[#allocation381_spill] sm:$0xff]  ;;  %v22467_v1 = vld [vmem:[#allocation367_spill] sm:$0xff] }
 0x86b   : >> { %22462 = vst [vmem:[#allocation128_spill] sm:$0xff] %v22461_v41  ;;  %22464 = vst [vmem:[#allocation129_spill] sm:$0xff] %v22463_v36  ;;  %v22471_v62 = vld [vmem:[#allocation371_spill] sm:$0xff]  ;;  %v22473_v34 = vld [vmem:[#allocation368_spill] sm:$0xff] }
 0x86c   : >> { %22466 = vst [vmem:[#allocation130_spill] sm:$0xff] %v22465_v33  ;;  %22468 = vst [vmem:[#allocation131_spill] sm:$0xff] %v22467_v1  ;;  %v22475_v53 = vld [vmem:[#allocation361_spill] sm:$0xff]  ;;  %v22477_v41 = vld [vmem:[#allocation358_spill] sm:$0xff] }
 0x86d   : >> { %22472 = vst [vmem:[#allocation133_spill] sm:$0xff] %v22471_v62  ;;  %22474 = vst [vmem:[#allocation134_spill] sm:$0xff] %v22473_v34  ;;  %v22479_v11 = vld [vmem:[#allocation365_spill] sm:$0xff]  ;;  %v22481_v42 = vld [vmem:[#allocation362_spill] sm:$0xff] }
 0x86e   : >> { %22476 = vst [vmem:[#allocation135_spill] sm:$0xff] %v22475_v53  ;;  %22478 = vst [vmem:[#allocation136_spill] sm:$0xff] %v22477_v41  ;;  %v22483_v17 = vld [vmem:[#allocation353_spill] sm:$0xff]  ;;  %v22485_v36 = vld [vmem:[#allocation350_spill] sm:$0xff] }
 0x86f   : >> { %22480 = vst [vmem:[#allocation137_spill] sm:$0xff] %v22479_v11  ;;  %22482 = vst [vmem:[#allocation138_spill] sm:$0xff] %v22481_v42  ;;  %v22487_v33 = vld [vmem:[#allocation357_spill] sm:$0xff]  ;;  %v22489_v1 = vld [vmem:[#allocation354_spill] sm:$0xff] }
 0x870   : >> { %22484 = vst [vmem:[#allocation139_spill] sm:$0xff] %v22483_v17  ;;  %22486 = vst [vmem:[#allocation140_spill] sm:$0xff] %v22485_v36  ;;  %v22493_v62 = vld [vmem:[#allocation342_spill] sm:$0xff]  ;;  %v22495_v34 = vld [vmem:[#allocation349_spill] sm:$0xff] }
 0x871   : >> { %22488 = vst [vmem:[#allocation141_spill] sm:$0xff] %v22487_v33  ;;  %22490 = vst [vmem:[#allocation142_spill] sm:$0xff] %v22489_v1  ;;  %v22497_v53 = vld [vmem:[#allocation346_spill] sm:$0xff]  ;;  %v22499_v41 = vld [vmem:[#allocation337_spill] sm:$0xff] }
 0x872   : >> { %22494 = vst [vmem:[#allocation144_spill] sm:$0xff] %v22493_v62  ;;  %22496 = vst [vmem:[#allocation145_spill] sm:$0xff] %v22495_v34  ;;  %v22501_v11 = vld [vmem:[#allocation334_spill] sm:$0xff]  ;;  %v22503_v42 = vld [vmem:[#allocation341_spill] sm:$0xff] }
 0x873   : >> { %22498 = vst [vmem:[#allocation146_spill] sm:$0xff] %v22497_v53  ;;  %22500 = vst [vmem:[#allocation147_spill] sm:$0xff] %v22499_v41  ;;  %v22505_v17 = vld [vmem:[#allocation338_spill] sm:$0xff]  ;;  %v22507_v36 = vld [vmem:[#allocation359_spill] sm:$0xff] }
 0x874   : >> { %22502 = vst [vmem:[#allocation148_spill] sm:$0xff] %v22501_v11  ;;  %22504 = vst [vmem:[#allocation149_spill] sm:$0xff] %v22503_v42  ;;  %v22509_v33 = vld [vmem:[#allocation356_spill] sm:$0xff]  ;;  %v22511_v1 = vld [vmem:[#allocation363_spill] sm:$0xff] }
 0x875   : >> { %22506 = vst [vmem:[#allocation150_spill] sm:$0xff] %v22505_v17  ;;  %22508 = vst [vmem:[#allocation151_spill] sm:$0xff] %v22507_v36  ;;  %v22515_v62 = vld [vmem:[#allocation351_spill] sm:$0xff]  ;;  %v22517_v34 = vld [vmem:[#allocation348_spill] sm:$0xff] }
 0x876   : >> { %22510 = vst [vmem:[#allocation152_spill] sm:$0xff] %v22509_v33  ;;  %22512 = vst [vmem:[#allocation153_spill] sm:$0xff] %v22511_v1  ;;  %v22519_v53 = vld [vmem:[#allocation355_spill] sm:$0xff]  ;;  %v22521_v41 = vld [vmem:[#allocation352_spill] sm:$0xff] }
 0x877   : >> { %22516 = vst [vmem:[#allocation155_spill] sm:$0xff] %v22515_v62  ;;  %22518 = vst [vmem:[#allocation156_spill] sm:$0xff] %v22517_v34  ;;  %v22523_v11 = vld [vmem:[#allocation343_spill] sm:$0xff]  ;;  %v22525_v42 = vld [vmem:[#allocation340_spill] sm:$0xff] }
 0x878   : >> { %22520 = vst [vmem:[#allocation157_spill] sm:$0xff] %v22519_v53  ;;  %22522 = vst [vmem:[#allocation158_spill] sm:$0xff] %v22521_v41  ;;  %v22527_v17 = vld [vmem:[#allocation347_spill] sm:$0xff]  ;;  %v22529_v36 = vld [vmem:[#allocation344_spill] sm:$0xff] }
 0x879   : >> { %22524 = vst [vmem:[#allocation159_spill] sm:$0xff] %v22523_v11  ;;  %22526 = vst [vmem:[#allocation160_spill] sm:$0xff] %v22525_v42  ;;  %v22531_v33 = vld [vmem:[#allocation335_spill] sm:$0xff]  ;;  %v22533_v1 = vld [vmem:[#allocation333_spill] sm:$0xff] }
 0x87a   : >> { %22528 = vst [vmem:[#allocation161_spill] sm:$0xff] %v22527_v17  ;;  %22530 = vst [vmem:[#allocation162_spill] sm:$0xff] %v22529_v36  ;;  %v22537_v62 = vld [vmem:[#allocation336_spill] sm:$0xff]  ;;  %v22539_v34 = vld [vmem:[#allocation167_spill] sm:$0xff] }
 0x87b   : >> { %22532 = vst [vmem:[#allocation163_spill] sm:$0xff] %v22531_v33  ;;  %22534 = vst [vmem:[#allocation164_spill] sm:$0xff] %v22533_v1  ;;  %v22541_v53 = vld [vmem:[#allocation332_spill] sm:$0xff]  ;;  %v22543_v41 = vld [vmem:[#allocation169_spill] sm:$0xff] }
 0x87c   : >> { %22538 = vst [vmem:[#allocation166_spill] sm:$0xff] %v22537_v62  ;;  %22540 = vst [vmem:[#allocation167_spill] sm:$0xff] %v22539_v34  ;;  %v22545_v11 = vld [vmem:[#allocation331_spill] sm:$0xff]  ;;  %v22547_v42 = vld [vmem:[#allocation324_spill] sm:$0xff] }
 0x87d   : >> { %22542 = vst [vmem:[#allocation168_spill] sm:$0xff] %v22541_v53  ;;  %22544 = vst [vmem:[#allocation169_spill] sm:$0xff] %v22543_v41  ;;  %v22549_v17 = vld [vmem:[#allocation323_spill] sm:$0xff]  ;;  %v22553_v33 = vld [vmem:[#allocation174_spill] sm:$0xff] }
 0x87e   : >> { %22546 = vst [vmem:[#allocation170_spill] sm:$0xff] %v22545_v11  ;;  %22548 = vst [vmem:[#allocation171_spill] sm:$0xff] %v22547_v42  ;;  %v22551_v36 = vld [vmem:[#allocation327_spill] sm:$0xff]  ;;  %v22555_v1 = vld [vmem:[#allocation320_spill] sm:$0xff] }
 0x87f   : >> { %22550 = vst [vmem:[#allocation172_spill] sm:$0xff] %v22549_v17  ;;  %22552 = vst [vmem:[#allocation173_spill] sm:$0xff] %v22551_v36  ;;  %v22559_v62 = vld [vmem:[#allocation177_spill] sm:$0xff]  ;;  %v22561_v34 = vld [vmem:[#allocation178_spill] sm:$0xff] }
 0x880   : >> { %22554 = vst [vmem:[#allocation174_spill] sm:$0xff] %v22553_v33  ;;  %22556 = vst [vmem:[#allocation175_spill] sm:$0xff] %v22555_v1  ;;  %v22563_v53 = vld [vmem:[#allocation314_spill] sm:$0xff]  ;;  %v22565_v41 = vld [vmem:[#allocation313_spill] sm:$0xff] }
 0x881   : >> { %22560 = vst [vmem:[#allocation177_spill] sm:$0xff] %v22559_v62  ;;  %22562 = vst [vmem:[#allocation178_spill] sm:$0xff] %v22561_v34  ;;  %v22567_v11 = vld [vmem:[#allocation318_spill] sm:$0xff]  ;;  %v22569_v42 = vld [vmem:[#allocation317_spill] sm:$0xff] }
 0x882   : >> { %22564 = vst [vmem:[#allocation179_spill] sm:$0xff] %v22563_v53  ;;  %22566 = vst [vmem:[#allocation180_spill] sm:$0xff] %v22565_v41  ;;  %v22571_v17 = vld [vmem:[#allocation328_spill] sm:$0xff]  ;;  %v22575_v33 = vld [vmem:[#allocation330_spill] sm:$0xff] }
 0x883   : >> { %22568 = vst [vmem:[#allocation181_spill] sm:$0xff] %v22567_v11  ;;  %22570 = vst [vmem:[#allocation182_spill] sm:$0xff] %v22569_v42  ;;  %v22573_v36 = vld [vmem:[#allocation184_spill] sm:$0xff]  ;;  %v22577_v1 = vld [vmem:[#allocation329_spill] sm:$0xff] }
 0x884   : >> { %22572 = vst [vmem:[#allocation183_spill] sm:$0xff] %v22571_v17  ;;  %22574 = vst [vmem:[#allocation184_spill] sm:$0xff] %v22573_v36  ;;  %v22581_v41 = vld [vmem:[#allocation188_spill] sm:$0xff]  ;;  %v22583_v62 = vld [vmem:[#allocation326_spill] sm:$0xff] }
 0x885   : >> { %22576 = vst [vmem:[#allocation185_spill] sm:$0xff] %v22575_v33  ;;  %22578 = vst [vmem:[#allocation186_spill] sm:$0xff] %v22577_v1  ;;  %v22585_v34 = vld [vmem:[#allocation325_spill] sm:$0xff]  ;;  %v22587_v53 = vld [vmem:[#allocation191_spill] sm:$0xff] }
 0x886   : >> { %22582 = vst [vmem:[#allocation188_spill] sm:$0xff] %v22581_v41  ;;  %22584 = vst [vmem:[#allocation189_spill] sm:$0xff] %v22583_v62  ;;  %v22589_v11 = vld [vmem:[#allocation319_spill] sm:$0xff]  ;;  %v22591_v42 = vld [vmem:[#allocation193_spill] sm:$0xff] }
 0x887   : >> { %22586 = vst [vmem:[#allocation190_spill] sm:$0xff] %v22585_v34  ;;  %22588 = vst [vmem:[#allocation191_spill] sm:$0xff] %v22587_v53  ;;  %v22593_v17 = vld [vmem:[#allocation321_spill] sm:$0xff]  ;;  %v22595_v36 = vld [vmem:[#allocation312_spill] sm:$0xff] }
 0x888   : >> { %22590 = vst [vmem:[#allocation192_spill] sm:$0xff] %v22589_v11  ;;  %22592 = vst [vmem:[#allocation193_spill] sm:$0xff] %v22591_v42  ;;  %v22597_v33 = vld [vmem:[#allocation196_spill] sm:$0xff]  ;;  %v22603_v41 = vld [vmem:[#allocation309_spill] sm:$0xff] }
 0x889   : >> { %22594 = vst [vmem:[#allocation194_spill] sm:$0xff] %v22593_v17  ;;  %22596 = vst [vmem:[#allocation195_spill] sm:$0xff] %v22595_v36  ;;  %v22599_v1 = vld [vmem:[#allocation316_spill] sm:$0xff]  ;;  %v22605_v62 = vld [vmem:[#allocation209_spill] sm:$0xff] }
 0x88a   : >> { %22598 = vst [vmem:[#allocation196_spill] sm:$0xff] %v22597_v33  ;;  %22600 = vst [vmem:[#allocation197_spill] sm:$0xff] %v22599_v1  ;;  %v22607_v34 = vld [vmem:[#allocation201_spill] sm:$0xff]  ;;  %v22609_v53 = vld [vmem:[#allocation210_spill] sm:$0xff] }
 0x88b   : >> { %22604 = vst [vmem:[#allocation199_spill] sm:$0xff] %v22603_v41  ;;  %22606 = vst [vmem:[#allocation200_spill] sm:$0xff] %v22605_v62  ;;  %v22611_v11 = vld [vmem:[#allocation306_spill] sm:$0xff]  ;;  %v22613_v42 = vld [vmem:[#allocation212_spill] sm:$0xff] }
 0x88c   : >> { %22608 = vst [vmem:[#allocation201_spill] sm:$0xff] %v22607_v34  ;;  %22610 = vst [vmem:[#allocation202_spill] sm:$0xff] %v22609_v53  ;;  %v22615_v17 = vld [vmem:[#allocation207_spill] sm:$0xff]  ;;  %v22617_v36 = vld [vmem:[#allocation218_spill] sm:$0xff] }
 0x88d   : >> { %22612 = vst [vmem:[#allocation203_spill] sm:$0xff] %v22611_v11  ;;  %22614 = vst [vmem:[#allocation204_spill] sm:$0xff] %v22613_v42  ;;  %v22619_v33 = vld [vmem:[#allocation299_spill] sm:$0xff]  ;;  %v22621_v1 = vld [vmem:[#allocation298_spill] sm:$0xff] }
 0x88e   : >> { %22616 = vst [vmem:[#allocation205_spill] sm:$0xff] %v22615_v17  ;;  %22618 = vst [vmem:[#allocation206_spill] sm:$0xff] %v22617_v36  ;;  %v22625_v41 = vld [vmem:[#allocation302_spill] sm:$0xff]  ;;  %v22629_v34 = vld [vmem:[#allocation291_spill] sm:$0xff] }
 0x88f   : >> { %22620 = vst [vmem:[#allocation207_spill] sm:$0xff] %v22619_v33  ;;  %22622 = vst [vmem:[#allocation208_spill] sm:$0xff] %v22621_v1  ;;  %v22627_v62 = vld [vmem:[#allocation294_spill] sm:$0xff]  ;;  %v22631_v53 = vld [vmem:[#allocation295_spill] sm:$0xff] }
 0x890   : >> { %22624 = vst [vmem:[#allocation209_spill] sm:$0xff] %v22623_v5  ;;  %22626 = vst [vmem:[#allocation210_spill] sm:$0xff] %v22625_v41  ;;  %v22633_v11 = vld [vmem:[#allocation290_spill] sm:$0xff]  ;;  %v22635_v42 = vld [vmem:[#allocation215_spill] sm:$0xff] }
 0x891   : >> { %22628 = vst [vmem:[#allocation211_spill] sm:$0xff] %v22627_v62  ;;  %22630 = vst [vmem:[#allocation212_spill] sm:$0xff] %v22629_v34  ;;  %v22637_v17 = vld [vmem:[#allocation219_spill] sm:$0xff]  ;;  %v22641_v33 = vld [vmem:[#allocation310_spill] sm:$0xff] }
 0x892   : >> { %22632 = vst [vmem:[#allocation213_spill] sm:$0xff] %v22631_v53  ;;  %22634 = vst [vmem:[#allocation214_spill] sm:$0xff] %v22633_v11  ;;  %v22639_v36 = vld [vmem:[#allocation311_spill] sm:$0xff]  ;;  %v22643_v1 = vld [vmem:[#allocation305_spill] sm:$0xff] }
 0x893   : >> { %22636 = vst [vmem:[#allocation215_spill] sm:$0xff] %v22635_v42  ;;  %22638 = vst [vmem:[#allocation216_spill] sm:$0xff] %v22637_v17  ;;  %v22647_v42 = vld [vmem:[#allocation307_spill] sm:$0xff]  ;;  %v22648_v17 = vld [vmem:[#allocation297_spill] sm:$0xff] }
 0x894   : >> { %22640 = vst [vmem:[#allocation217_spill] sm:$0xff] %v22639_v36  ;;  %22642 = vst [vmem:[#allocation218_spill] sm:$0xff] %v22641_v33  ;;  %v22645_v33 = vld [vmem:[#allocation304_spill] sm:$0xff]  ;;  %v22650_v53 = vld [vmem:[#allocation301_spill] sm:$0xff]  ;;  %4428 = sbr.rel (!%p19607_p11) target bundleno = 1287 (0x507), region = 170 }
 0x895   : >> { %22644 = vst [vmem:[#allocation219_spill] sm:$0xff] %v22643_v1  ;;  %v22646_v1 = vld [vmem:[#allocation308_spill] sm:$0xff]  ;;  %v22653_v36 = vld [vmem:[#allocation289_spill] sm:$0xff]  ;;  %v22661_v32 = vld [vmem:[#allocation371_spill] sm:$0xff] (%p19607_p11) }
 0x896   : >> { %v22649_v5 = vld [vmem:[#allocation296_spill] sm:$0xff]  ;;  %v22656_v62 = vld [vmem:[#allocation293_spill] sm:$0xff]  ;;  %v22663_v49 = vld [vmem:[#allocation335_spill] sm:$0xff] (%p19607_p11) }
 0x897   : >> { %v22651_v34 = vld [vmem:[#allocation300_spill] sm:$0xff]  ;;  %v12897_v48 = vld [vmem:[#allocation8 + $0x4] ss:$8 sps:$4 sm:$0xff] (%p19607_p11)   ;;  %v12913_v56 = vld [vmem:[#allocation8 + $0x20] ss:$8 sps:$4 sm:$0xff] (%p19607_p11)  }
 0x898   : >> { %v22652_v11 = vld [vmem:[#allocation292_spill] sm:$0xff]  ;;  %v12899_v4 = vld [vmem:[#allocation8 + $0x84] ss:$8 sps:$4 sm:$0xff] (%p19607_p11)   ;;  %6871 = vmatprep.subr.bf16.mxu1 (%p19607_p11), %v12897_v48  ;;  %v22665_v55 = vld [vmem:[#allocation367_spill] sm:$0xff] (%p19607_p11) }
 0x899   : >> { %v22654_v41 = vld [vmem:[#allocation220_spill] sm:$0xff]  ;;  %7323 = vmatprep.subr.bf16.mxu0 (%p19607_p11), %v12899_v4  ;;  %v12909_v48 = vld [vmem:[#allocation8 + $0x24] ss:$8 sps:$4 sm:$0xff] (%p19607_p11)   ;;  %v22668_v37 = vld [vmem:[#allocation379_spill] sm:$0xff] (%p19607_p11) }
 0x89a   : >> { %22655 = vst [vmem:[#allocation220_spill] sm:$0xff] %v22654_v41  ;;  %v22658_v40 = vld [vmem:[#allocation336_spill] sm:$0xff] (%p19607_p11)  ;;  %v12901_v41 = vld [vmem:[#allocation8] ss:$8 sps:$4 sm:$0xff] (%p19607_p11)   ;;  %7324 = vmatpush1.bf16.msra.mxu0 (%p19607_p11), %v12902_v23  ;;  %v12923_v22 = vld [vmem:[#allocation8 + $0x44] ss:$8 sps:$4 sm:$0xff] (%p19607_p11)  }
 0x89b   : > { %12945 = vrcp.f32 %v22658_v40  ;;  %v22660_v62 = vld [vmem:[#allocation368_spill] sm:$0xff]  ;;  %6872 = vmatpush1.bf16.msra.mxu1 %v12901_v41  ;;  %v22666_v7 = vld [vmem:[#allocation377_spill] sm:$0xff]  ;;  %v22670_v26 = vld [vmem:[#allocation430_spill] sm:$0xff] }
 0x89c   : > { %12947 = vrcp.f32 %v22659_v15  ;;  %v12903_v63 = vld [vmem:[#allocation8 + $0x14] ss:$8 sps:$4 sm:$0xff]   ;;  %v12907_v59 = vld [vmem:[#allocation8 + $0x10] ss:$8 sps:$4 sm:$0xff]   ;;  %v12926_v43 = vld [vmem:[#allocation8 + $0xc4] ss:$8 sps:$4 sm:$0xff]  }
 0x89d   : > { %12949 = vrcp.f32 %v22660_v62  ;;  %v12905_v61 = vld [vmem:[#allocation8 + $0x94] ss:$8 sps:$4 sm:$0xff]   ;;  %6873 = vmatprep.subr.bf16.mxu1 %v12903_v63  ;;  %v12908_v24 = vld [vmem:[#allocation8 + $0x90] ss:$8 sps:$4 sm:$0xff]   ;;  %v22671_v50 = vld [vmem:[#allocation381_spill] sm:$0xff] }
 0x89e   : > { %12951 = vrcp.f32 %v22661_v32  ;;  %7325 = vmatprep.subr.bf16.mxu0 %v12905_v61  ;;  %v22664_v15 = vld [vmem:[#allocation364_spill] sm:$0xff]  ;;  %v12921_v58 = vld [vmem:[#allocation8 + $0x40] ss:$8 sps:$4 sm:$0xff]   ;;  %v22674_v4 = vld [vmem:[#allocation375_spill] sm:$0xff] }
 0x89f   : > { %12953 = vrcp.f32 %v22662_v2  ;;  %6874 = vmatpush1.bf16.msra.mxu1 %v12907_v59  ;;  %7326 = vmatpush1.bf16.msra.mxu0 %v12908_v24  ;;  %v12915_v32 = vld [vmem:[#allocation8 + $0x34] ss:$8 sps:$4 sm:$0xff]   ;;  %v12919_v0 = vld [vmem:[#allocation8 + $0x30] ss:$8 sps:$4 sm:$0xff]   ;;  %v12924_v47 = vld [vmem:[#allocation8 + $0xc0] ss:$8 sps:$4 sm:$0xff]  }
 0x8a0   : > { %12955 = vrcp.f32 %v22663_v49  ;;  %6875 = vmatprep.subr.bf16.mxu1 %v12909_v48  ;;  %7327 = vmatprep.subr.bf16.mxu0 %v12911_v51  ;;  %v12917_v23 = vld [vmem:[#allocation8 + $0xb4] ss:$8 sps:$4 sm:$0xff]   ;;  %v12920_v28 = vld [vmem:[#allocation8 + $0xb0] ss:$8 sps:$4 sm:$0xff]   ;;  %v22675_v5 = vld [vmem:[#allocation378_spill] sm:$0xff] }
 0x8a1   : > { %12957 = vrcp.f32 %v22664_v15  ;;  %v22667_v60 = vld [vmem:[#allocation344_spill] sm:$0xff]  ;;  %v22676_v53 = vld [vmem:[#allocation429_spill] sm:$0xff]  ;;  %v22677_v42 = vld [vmem:[#allocation431_spill] sm:$0xff] }
 0x8a2   : > { %12959 = vrcp.f32 %v22665_v55  ;;  %v22672_v6 = vld [vmem:[#allocation432_spill] sm:$0xff]  ;;  %v22679_v41 = vld [vmem:[#allocation343_spill] sm:$0xff]  ;;  %v12935_v59 = vld [vmem:[#allocation8 + $0x64] ss:$8 sps:$4 sm:$0xff]  }
 0x8a3   : > { %12961 = vrcp.f32 %v22667_v60  ;;  %6876 = vmatpush1.bf16.msra.mxu1 %v12913_v56  ;;  %7328 = vmatpush1.bf16.msra.mxu0 %v12914_v29  ;;  %v12929_v31 = vld [vmem:[#allocation8 + $0x54] ss:$8 sps:$4 sm:$0xff]   ;;  %v12927_v36 = vld [vmem:[#allocation8 + $0x50] ss:$8 sps:$4 sm:$0xff]   ;;  %v12938_v2 = vld [vmem:[#allocation8 + $0xe4] ss:$8 sps:$4 sm:$0xff]  }
 0x8a4   : > { %12963 = vrcp.f32 %v22669_v21  ;;  %6877 = vmatprep.subr.bf16.mxu1 %v12915_v32  ;;  %7329 = vmatprep.subr.bf16.mxu0 %v12917_v23  ;;  %v12932_v13 = vld [vmem:[#allocation8 + $0xd4] ss:$8 sps:$4 sm:$0xff]   ;;  %v12930_v1 = vld [vmem:[#allocation8 + $0xd0] ss:$8 sps:$4 sm:$0xff]   ;;  %v12933_v29 = vld [vmem:[#allocation8 + $0x60] ss:$8 sps:$4 sm:$0xff]  }
 0x8a5   : > { %v12946_v16 = vpop.eup %12945  ;;  %12965 = vrcp.f32 %v22671_v50  ;;  %v22678_v33 = vld [vmem:[#allocation340_spill] sm:$0xff]  ;;  %v12936_v55 = vld [vmem:[#allocation8 + $0xe0] ss:$8 sps:$4 sm:$0xff]   ;;  %v22685_v60 = vld [vmem:[#allocation439_spill] sm:$0xff] }
 0x8a6   : > { %v12948_v63 = vpop.eup %12947  ;;  %v6715_v30 = vmul.f32 %v12946_v16, %v22666_v7  ;;  %12967 = vrcp.f32 %v22673_v10  ;;  %v22680_v61 = vld [vmem:[#allocation372_spill] sm:$0xff]  ;;  %v22684_v7 = vld [vmem:[#allocation437_spill] sm:$0xff]  ;;  %v22690_v10 = vld [vmem:[#allocation390_spill] sm:$0xff] }
 0x8a7   : > { %v12950_v14 = vpop.eup %12949  ;;  %v6716_v35 = vmul.f32 %v12948_v63, %v22668_v37  ;;  %6878 = vmatpush1.bf16.msra.mxu1 %v12919_v0  ;;  %7330 = vmatpush1.bf16.msra.mxu0 %v12920_v28  ;;  %12969 = vrcp.f32 %v22678_v33  ;;  %v22681_v49 = vld [vmem:[#allocation376_spill] sm:$0xff]  ;;  %v22683_v0 = vld [vmem:[#allocation395_spill] sm:$0xff]  ;;  %v22688_v21 = vld [vmem:[#allocation397_spill] sm:$0xff] }
 0x8a8   : > { %v12952_v45 = vpop.eup %12951  ;;  %v6747_v9 = vmul.f32 %v12950_v14, %v22670_v26  ;;  %7097 = vmatprep.subr.bf16.mxu1 %v12923_v22  ;;  %7549 = vmatprep.subr.bf16.mxu0 %v12926_v43  ;;  %12971 = vrcp.f32 %v22679_v41  ;;  %v22682_v32 = vld [vmem:[#allocation392_spill] sm:$0xff]  ;;  %v22689_v43 = vld [vmem:[#allocation403_spill] sm:$0xff] }
 0x8a9   : > { %v12954_v57 = vpop.eup %12953  ;;  %v6748_v25 = vmul.f32 %v12952_v45, %v22672_v6  ;;  %v6791_v27 = vpack.c.bf16 %v6716_v35, %v6715_v30  ;;  %12973 = vrcp.f32 %v22680_v61  ;;  %v12941_v16 = vld [vmem:[#allocation8 + $0x74] ss:$8 sps:$4 sm:$0xff]   ;;  %v12939_v45 = vld [vmem:[#allocation8 + $0x70] ss:$8 sps:$4 sm:$0xff]  }
 0x8aa   : > { %v12956_v40 = vpop.eup %12955  ;;  %v6717_v18 = vmul.f32 %v12954_v57, %v22674_v4  ;;  %12975 = vrcp.f32 %v22681_v49  ;;  %v12944_v63 = vld [vmem:[#allocation8 + $0xf4] ss:$8 sps:$4 sm:$0xff]   ;;  %v12942_v26 = vld [vmem:[#allocation8 + $0xf0] ss:$8 sps:$4 sm:$0xff]  }
 0x8ab   : > { %v12958_v12 = vpop.eup %12957  ;;  %v7242_v46 = vpack.c.bf16 %v6748_v25, %v6747_v9  ;;  %9021 = vmatmul.mubr.msk.bf16.vlgmr.msra.gmra.mrb[0].mxu1 %vm3630_vm1, %v6791_v27  ;;  %v6718_v34 = vmul.f32 %v12956_v40, %v22675_v5  ;;  %v22686_v37 = vld [vmem:[#allocation352_spill] sm:$0xff]  ;;  %v22687_v35 = vld [vmem:[#allocation355_spill] sm:$0xff]  ;;  %v22691_v27 = vld [vmem:[#allocation394_spill] sm:$0xff] }
 0x8ac   : > { %v12960_v44 = vpop.eup %12959  ;;  %v6749_v11 = vmul.f32 %v12958_v12, %v22676_v53  ;;  %7098 = vmatpush1.bf16.msra.mxu1 %v12921_v58  ;;  %6913 = vmatprep.mubr.bf16.mxu1 %v14809_v39  ;;  %12977 = vrcp.f32 %v22686_v37  ;;  %v22692_v12 = vld [vmem:[#allocation436_spill] sm:$0xff]  ;;  %v22703_v49 = vld [vmem:[#allocation363_spill] sm:$0xff] }
 0x8ad   : > { %9053 = vmatmul.mubr.msk.bf16.vlgmr.msra.gmra.mrb[0].mxu0 %vm3630_vm1, %v7242_v46  ;;  %v6750_v17 = vmul.f32 %v12960_v44, %v22677_v42  ;;  %v12962_v62 = vpop.eup %12961  ;;  %7099 = vmatprep.subr.bf16.mxu1 %v12929_v31  ;;  %v6792_v15 = vpack.c.bf16 %v6718_v34, %v6717_v18  ;;  %12979 = vrcp.f32 %v22687_v35  ;;  %v22694_v4 = vld [vmem:[#allocation348_spill] sm:$0xff]  ;;  %v22695_v18 = vld [vmem:[#allocation351_spill] sm:$0xff]  ;;  %v22697_v34 = vld [vmem:[#allocation393_spill] sm:$0xff] }
 0x8ae   : > { %7550 = vmatpush1.bf16.msra.mxu0 %v12924_v47  ;;  %7365 = vmatprep.mubr.bf16.mxu0 %v14809_v39  ;;  %v12964_v24 = vpop.eup %12963  ;;  %v6719_v23 = vmul.f32 %v12962_v62, %v22682_v32  ;;  %12981 = vrcp.f32 %v22688_v21  ;;  %v22693_v47 = vld [vmem:[#allocation438_spill] sm:$0xff]  ;;  %v22700_v62 = vld [vmem:[#allocation441_spill] sm:$0xff]  ;;  %v22710_v37 = vld [vmem:[#allocation356_spill] sm:$0xff] }
 0x8af   : > { %7551 = vmatprep.subr.bf16.mxu0 %v12932_v13  ;;  %v12966_v48 = vpop.eup %12965  ;;  %v7243_v51 = vpack.c.bf16 %v6750_v17, %v6749_v11  ;;  %v6720_v28 = vmul.f32 %v12964_v24, %v22683_v0  ;;  %12983 = vrcp.f32 %v22689_v43  ;;  %v22696_v13 = vld [vmem:[#allocation388_spill] sm:$0xff]  ;;  %v22707_v0 = vld [vmem:[#allocation410_spill] sm:$0xff]  ;;  %v22711_v35 = vld [vmem:[#allocation359_spill] sm:$0xff] }
 0x8b0   : > { %v12968_v56 = vpop.eup %12967  ;;  %7100 = vmatpush1.bf16.msra.mxu1 %v12927_v36  ;;  %v6751_v30 = vmul.f32 %v12966_v48, %v22684_v7  ;;  %12985 = vrcp.f32 %v22694_v4  ;;  %v22698_v36 = vld [vmem:[#allocation408_spill] sm:$0xff] }
 0x8b1   : > { %7101 = vmatprep.subr.bf16.mxu1 %v12935_v59  ;;  %v6752_v14 = vmul.f32 %v12968_v56, %v22685_v60  ;;  %v12970_v22 = vpop.eup %12969  ;;  %v6793_v57 = vpack.c.bf16 %v6720_v28, %v6719_v23  ;;  %12987 = vrcp.f32 %v22695_v18  ;;  %v22701_v59 = vld [vmem:[#allocation444_spill] sm:$0xff]  ;;  %v22709_v60 = vld [vmem:[#allocation442_spill] sm:$0xff] }
 0x8b2   : > { %7552 = vmatpush1.bf16.msra.mxu0 %v12930_v1  ;;  %v12972_v9 = vpop.eup %12971  ;;  %v6721_v40 = vmul.f32 %v12970_v22, %v22690_v10  ;;  %12989 = vrcp.f32 %v22696_v13  ;;  %v22699_v1 = vld [vmem:[#allocation411_spill] sm:$0xff]  ;;  %v22702_v24 = vld [vmem:[#allocation360_spill] sm:$0xff]  ;;  %v22720_v18 = vld [vmem:[#allocation370_spill] sm:$0xff] }
 0x8b3   : > { %7553 = vmatprep.subr.bf16.mxu0 %v12938_v2  ;;  %9022 = vmatmul.mubr.msk.bf16.gmra.mrb[4].mxu1 %vm3630_vm1, %v6792_v15  ;;  %v12974_v50 = vpop.eup %12973  ;;  %v7244_v6 = vpack.c.bf16 %v6752_v14, %v6751_v30  ;;  %v6722_v58 = vmul.f32 %v12972_v9, %v22691_v27  ;;  %12991 = vrcp.f32 %v22697_v34  ;;  %v22704_v15 = vld [vmem:[#allocation407_spill] sm:$0xff]  ;;  %v22705_v56 = vld [vmem:[#allocation416_spill] sm:$0xff]  ;;  %v22721_v13 = vld [vmem:[#allocation373_spill] sm:$0xff] }
 0x8b4   : > { %6923 = vmatprep.mubr.bf16.mxu1 %v14809_v39  ;;  %7102 = vmatpush1.bf16.msra.mxu1 %v12933_v29  ;;  %v12976_v25 = vpop.eup %12975  ;;  %v6753_v46 = vmul.f32 %v12974_v50, %v22692_v12  ;;  %12993 = vrcp.f32 %v22702_v24  ;;  %v22708_v7 = vld [vmem:[#allocation440_spill] sm:$0xff]  ;;  %v22717_v12 = vld [vmem:[#allocation449_spill] sm:$0xff] }
 0x8b5   : > { %9054 = vmatmul.mubr.msk.bf16.gmra.mrb[4].mxu0 %vm3630_vm1, %v7243_v51  ;;  %7103 = vmatprep.subr.bf16.mxu1 %v12941_v16  ;;  %v6754_v44 = vmul.f32 %v12976_v25, %v22693_v47  ;;  %v6794_v11 = vpack.c.bf16 %v6722_v58, %v6721_v40  ;;  %12995 = vrcp.f32 %v22703_v49  ;;  %v22706_v16 = vld [vmem:[#allocation406_spill] sm:$0xff]  ;;  %v22712_v21 = vld [vmem:[#allocation404_spill] sm:$0xff]  ;;  %v22727_v49 = vld [vmem:[#allocation369_spill] sm:$0xff] }
 0x8b6   : > { %7375 = vmatprep.mubr.bf16.mxu0 %v14809_v39  ;;  %7554 = vmatpush1.bf16.msra.mxu0 %v12936_v55  ;;  %v12978_v31 = vpop.eup %12977  ;;  %12997 = vrcp.f32 %v22704_v15  ;;  %v22715_v10 = vld [vmem:[#allocation424_spill] sm:$0xff]  ;;  %v22718_v47 = vld [vmem:[#allocation338_spill] sm:$0xff] }
 0x8b7   : > { %7555 = vmatprep.subr.bf16.mxu0 %v12944_v63  ;;  %v12980_v5 = vpop.eup %12979  ;;  %v7245_v42 = vpack.c.bf16 %v6754_v44, %v6753_v46  ;;  %v6723_v33 = vmul.f32 %v12978_v31, %v22698_v36  ;;  %12999 = vrcp.f32 %v22705_v56  ;;  %v22716_v27 = vld [vmem:[#allocation448_spill] sm:$0xff]  ;;  %v22719_v44 = vld [vmem:[#allocation341_spill] sm:$0xff]  ;;  %v22723_v36 = vld [vmem:[#allocation423_spill] sm:$0xff] }
 0x8b8   : > { %7104 = vmatpush1.bf16.msra.mxu1 %v12939_v45  ;;  %v12982_v53 = vpop.eup %12981  ;;  %v6724_v41 = vmul.f32 %v12980_v5, %v22699_v1  ;;  %13001 = vrcp.f32 %v22710_v37  ;;  %v22728_v56 = vld [vmem:[#allocation382_spill] sm:$0xff] }
 0x8b9   : > { %v12984_v17 = vpop.eup %12983  ;;  %v6755_v61 = vmul.f32 %v12982_v53, %v22700_v62  ;;  %13003 = vrcp.f32 %v22711_v35  ;;  %v22724_v62 = vld [vmem:[#allocation334_spill] sm:$0xff] }
 0x8ba   : > { %7556 = vmatpush1.bf16.msra.mxu0 %v12942_v26  ;;  %v6756_v2 = vmul.f32 %v12984_v17, %v22701_v59  ;;  %v12986_v48 = vpop.eup %12985  ;;  %v6795_v55 = vpack.c.bf16 %v6724_v41, %v6723_v33  ;;  %13005 = vrcp.f32 %v22712_v21  ;;  %v22713_v26 = vld [vmem:[#allocation409_spill] sm:$0xff] }
 0x8bb   : > { %9023 = vmatmul.mubr.msk.bf16.gmra.mrb[8].mxu1 %vm3630_vm1, %v6793_v57  ;;  %v12988_v51 = vpop.eup %12987  ;;  %v6725_v63 = vmul.f32 %v12986_v48, %v22706_v16  ;;  %13007 = vrcp.f32 %v22713_v26  ;;  %v22731_v16 = vld [vmem:[#allocation435_spill] sm:$0xff] }
 0x8bc   : > { %6933 = vmatprep.mubr.bf16.mxu1 %v14809_v39  ;;  %v12990_v29 = vpop.eup %12989  ;;  %v7246_v32 = vpack.c.bf16 %v6756_v2, %v6755_v61  ;;  %v6726_v28 = vmul.f32 %v12988_v51, %v22707_v0  ;;  %13009 = vrcp.f32 %v22718_v47  ;;  %v22725_v61 = vld [vmem:[#allocation337_spill] sm:$0xff]  ;;  %v22726_v2 = vld [vmem:[#allocation366_spill] sm:$0xff] }
 0x8bd   : > { %9055 = vmatmul.mubr.msk.bf16.gmra.mrb[8].mxu0 %vm3630_vm1, %v7244_v6  ;;  %v12992_v23 = vpop.eup %12991  ;;  %v6757_v30 = vmul.f32 %v12990_v29, %v22708_v7  ;;  %v22714_v6 = vld [vmem:[#allocation422_spill] sm:$0xff]  ;;  %13011 = vrcp.f32 %v22719_v44  ;;  %v22729_v29 = vld [vmem:[#allocation385_spill] sm:$0xff] }
 0x8be   : > { %7385 = vmatprep.mubr.bf16.mxu0 %v14809_v39  ;;  %v6758_v14 = vmul.f32 %v12992_v23, %v22709_v60  ;;  %v12994_v22 = vpop.eup %12993  ;;  %v6796_v43 = vpack.c.bf16 %v6726_v28, %v6725_v63  ;;  %13013 = vrcp.f32 %v22720_v18  ;;  %v22732_v0 = vld [vmem:[#allocation346_spill] sm:$0xff]  ;;  %v22733_v28 = vld [vmem:[#allocation349_spill] sm:$0xff] }
 0x8bf   : > { %v12996_v45 = vpop.eup %12995  ;;  %v6727_v25 = vmul.f32 %v12994_v22, %v22714_v6  ;;  %13015 = vrcp.f32 %v22721_v13  ;;  %v22743_v18 = vld [vmem:[#allocation398_spill] sm:$0xff] }
 0x8c0   : > { %v12998_v9 = vpop.eup %12997  ;;  %v7247_v50 = vpack.c.bf16 %v6758_v14, %v6757_v30  ;;  %v6728_v40 = vmul.f32 %v12996_v45, %v22715_v10  ;;  %13017 = vrcp.f32 %v22724_v62  ;;  %v22734_v30 = vld [vmem:[#allocation386_spill] sm:$0xff]  ;;  %v22735_v14 = vld [vmem:[#allocation389_spill] sm:$0xff]  ;;  %v22736_v45 = vld [vmem:[#allocation380_spill] sm:$0xff] }
 0x8c1   : > { %v13000_v57 = vpop.eup %12999  ;;  %v6759_v58 = vmul.f32 %v12998_v9, %v22716_v27  ;;  %13019 = vrcp.f32 %v22725_v61  ;;  %v22737_v9 = vld [vmem:[#allocation384_spill] sm:$0xff]  ;;  %v22740_v10 = vld [vmem:[#allocation345_spill] sm:$0xff]  ;;  %v22741_v27 = vld [vmem:[#allocation374_spill] sm:$0xff] }
 0x8c2   : > { %v6760_v46 = vmul.f32 %v13000_v57, %v22717_v12  ;;  %v13002_v4 = vpop.eup %13001  ;;  %v6797_v34 = vpack.c.bf16 %v6728_v40, %v6727_v25  ;;  %13021 = vrcp.f32 %v22726_v2  ;;  %v22739_v25 = vld [vmem:[#allocation342_spill] sm:$0xff]  ;;  %v22742_v12 = vld [vmem:[#allocation383_spill] sm:$0xff]  ;;  %v22749_v61 = vld [vmem:[#allocation396_spill] sm:$0xff] }
 0x8c3   : > { %9024 = vmatmul.mubr.msk.bf16.gmra.mrb[12].mxu1 %vm3630_vm1, %v6794_v11  ;;  %v13004_v31 = vpop.eup %13003  ;;  %13023 = vrcp.f32 %v22727_v49 }
 0x8c4   : > { %6943 = vmatprep.mubr.bf16.mxu1 %v14809_v39  ;;  %v13006_v5 = vpop.eup %13005  ;;  %v7248_v53 = vpack.c.bf16 %v6760_v46, %v6759_v58  ;;  %v6730_v33 = vmul.f32 %v13004_v31, %v22723_v36  ;;  %13025 = vrcp.f32 %v22732_v0  ;;  %v22744_v31 = vld [vmem:[#allocation401_spill] sm:$0xff] }
 0x8c5   : > { %9056 = vmatmul.mubr.msk.bf16.gmra.mrb[12].mxu0 %vm3630_vm1, %v7245_v42  ;;  %v13008_v11 = vpop.eup %13007  ;;  %v22722_v42 = vld [vmem:[#allocation421_spill] sm:$0xff]  ;;  %v6761_v1 = vmul.f32 %v13006_v5, %v22308_v52  ;;  %13027 = vrcp.f32 %v22733_v28 }
 0x8c6   : > { %7395 = vmatprep.mubr.bf16.mxu0 %v14809_v39  ;;  %v6729_v17 = vmul.f32 %v13002_v4, %v22722_v42  ;;  %v6762_v41 = vmul.f32 %v13008_v11, %v22312_v19  ;;  %v13010_v59 = vpop.eup %13009  ;;  %13029 = vrcp.f32 %v22734_v30  ;;  %v22746_v11 = vld [vmem:[#allocation357_spill] sm:$0xff] }
 0x8c7   : > { %v13012_v24 = vpop.eup %13011  ;;  %v6731_v19 = vmul.f32 %v13010_v59, %v22728_v56  ;;  %13031 = vrcp.f32 %v22735_v14  ;;  %v22750_v59 = vld [vmem:[#allocation400_spill] sm:$0xff]  ;;  %v22757_v0 = vld [vmem:[#allocation445_spill] sm:$0xff] }
 0x8c8   : > { %v13014_v48 = vpop.eup %13013  ;;  %v6798_v15 = vpack.c.bf16 %v6730_v33, %v6729_v17  ;;  %v7249_v51 = vpack.c.bf16 %v6762_v41, %v6761_v1  ;;  %13033 = vrcp.f32 %v22739_v25  ;;  %v22747_v17 = vld [vmem:[#allocation402_spill] sm:$0xff]  ;;  %v22748_v33 = vld [vmem:[#allocation405_spill] sm:$0xff] }
 0x8c9   : > { %v13016_v52 = vpop.eup %13015  ;;  %13035 = vrcp.f32 %v22740_v10  ;;  %v22760_v14 = vld [vmem:[#allocation365_spill] sm:$0xff]  ;;  %v22765_v10 = vld [vmem:[#allocation443_spill] sm:$0xff] }
 0x8ca   : > { %v6764_v63 = vmul.f32 %v13016_v52, %v22731_v16  ;;  %v13018_v7 = vpop.eup %13017  ;;  %13037 = vrcp.f32 %v22741_v27  ;;  %v22753_v52 = vld [vmem:[#allocation391_spill] sm:$0xff]  ;;  %v22756_v16 = vld [vmem:[#allocation417_spill] sm:$0xff]  ;;  %v22766_v27 = vld [vmem:[#allocation446_spill] sm:$0xff] }
 0x8cb   : > { %9025 = vmatmul.mubr.msk.bf16.gmra.mrb[16].mxu1 %vm3630_vm1, %v6795_v55  ;;  %v6732_v55 = vmul.f32 %v13012_v24, %v22729_v29  ;;  %v13020_v60 = vpop.eup %13019  ;;  %v6733_v26 = vmul.f32 %v13018_v7, %v22736_v45  ;;  %13039 = vrcp.f32 %v22742_v12  ;;  %v22758_v7 = vld [vmem:[#allocation447_spill] sm:$0xff]  ;;  %v22767_v12 = vld [vmem:[#allocation358_spill] sm:$0xff] }
 0x8cc   : > { %6953 = vmatprep.mubr.bf16.mxu1 %v14809_v39  ;;  %v13022_v37 = vpop.eup %13021 }
 0x8cd   : > { %9057 = vmatmul.mubr.msk.bf16.gmra.mrb[16].mxu0 %vm3630_vm1, %v7246_v32  ;;  %v22730_v32 = vld [vmem:[#allocation434_spill] sm:$0xff]  ;;  %v7016_v35 = vpack.c.bf16 %v6732_v55, %v6731_v19  ;;  %v13024_v21 = vpop.eup %13023  ;;  %v22754_v19 = vld [vmem:[#allocation399_spill] sm:$0xff] }
 0x8ce   : > { %7405 = vmatprep.mubr.bf16.mxu0 %v14809_v39  ;;  %v6763_v23 = vmul.f32 %v13014_v48, %v22730_v32  ;;  %v6766_v6 = vmul.f32 %v13024_v21, %v22265_v54  ;;  %v13026_v40 = vpop.eup %13025  ;;  %v22751_v48 = vld [vmem:[#allocation350_spill] sm:$0xff]  ;;  %v22762_v21 = vld [vmem:[#allocation419_spill] sm:$0xff] }
 0x8cf   : > { %v13028_v58 = vpop.eup %13027  ;;  %v6735_v54 = vmul.f32 %v13026_v40, %v22743_v18  ;;  %v22770_v18 = vld [vmem:[#allocation420_spill] sm:$0xff] }
 0x8d0   : > { %v7468_v22 = vpack.c.bf16 %v6764_v63, %v6763_v23  ;;  %v13030_v46 = vpop.eup %13029  ;;  %v6736_v13 = vmul.f32 %v13028_v58, %v22744_v31  ;;  %v22755_v23 = vld [vmem:[#allocation413_spill] sm:$0xff] }
 0x8d1   : > { %v13032_v4 = vpop.eup %13031  ;;  %v6767_v5 = vmul.f32 %v13030_v46, %v22282_v38  ;;  %v22768_v46 = vld [vmem:[#allocation361_spill] sm:$0xff] }
 0x8d2   : > { %v13034_v42 = vpop.eup %13033  ;;  %v7018_v41 = vpack.c.bf16 %v6736_v13, %v6735_v54 }
 0x8d3   : > { %9026 = vmatmul.mubr.msk.bf16.gmra.mrb[20].mxu1 %vm3630_vm1, %v6796_v43  ;;  %v6734_v43 = vmul.f32 %v13020_v60, %v22737_v9  ;;  %v13036_v36 = vpop.eup %13035  ;;  %v22759_v60 = vld [vmem:[#allocation362_spill] sm:$0xff] }
 0x8d4   : > { %6963 = vmatprep.mubr.bf16.mxu1 %v14809_v39  ;;  %v13038_v1 = vpop.eup %13037  ;;  %v6738_v2 = vmul.f32 %v13036_v36, %v22750_v59 }
 0x8d5   : > { %9058 = vmatmul.mubr.msk.bf16.gmra.mrb[20].mxu0 %vm3630_vm1, %v7247_v50  ;;  %v22738_v50 = vld [vmem:[#allocation433_spill] sm:$0xff]  ;;  %v7017_v47 = vpack.c.bf16 %v6734_v43, %v6733_v26  ;;  %v13040_v38 = vpop.eup %13039  ;;  %v6769_v24 = vmul.f32 %v13038_v1, %v22280_v3 }
 0x8d6   : > { %7415 = vmatprep.mubr.bf16.mxu0 %v14809_v39  ;;  %v6765_v57 = vmul.f32 %v13022_v37, %v22738_v50  ;;  %v6770_v49 = vmul.f32 %v13040_v38, %v22284_v20  ;;  %v22763_v50 = vld [vmem:[#allocation412_spill] sm:$0xff] }
 0x8d8   : > { %v7469_v44 = vpack.c.bf16 %v6766_v6, %v6765_v57  ;;  %v7471_v32 = vpack.c.bf16 %v6770_v49, %v6769_v24  ;;  %v22764_v6 = vld [vmem:[#allocation415_spill] sm:$0xff] }
 0x8d9   : > { %v22776_v49 = vld [vmem:[#allocation427_spill] sm:$0xff] }
 0x8db   : > { %9027 = vmatmul.mubr.msk.bf16.gmra.mrb[24].mxu1 %vm3630_vm1, %v6797_v34  ;;  %v6768_v34 = vmul.f32 %v13032_v4, %v22285_v8  ;;  %v6737_v8 = vmul.f32 %v13034_v42, %v22749_v61 }
 0x8dc   : > { %6973 = vmatprep.mubr.bf16.mxu1 %v14809_v39 }
 0x8dd   : > { %9059 = vmatmul.mubr.msk.bf16.gmra.mrb[24].mxu0 %vm3630_vm1, %v7248_v53  ;;  %v22745_v53 = vld [vmem:[#allocation354_spill] sm:$0xff]  ;;  %v7470_v62 = vpack.c.bf16 %v6768_v34, %v6767_v5  ;;  %v7019_v55 = vpack.c.bf16 %v6738_v2, %v6737_v8  ;;  %v22775_v2 = vld [vmem:[#allocation425_spill] sm:$0xff] }
 0x8de   : > { %7425 = vmatprep.mubr.bf16.mxu0 %v14809_v39  ;;  %13041 = vrcp.f32 %v22745_v53  ;;  %v22771_v34 = vld [vmem:[#allocation426_spill] sm:$0xff] }
 0x8df   : > { %13043 = vrcp.f32 %v22746_v11  ;;  %v22772_v11 = vld [vmem:[#allocation428_spill] sm:$0xff] }
 0x8e0   : > { %13045 = vrcp.f32 %v22747_v17  ;;  %v22773_v17 = vld [vmem:[#allocation451_spill] sm:$0xff] }
 0x8e1   : > { %13047 = vrcp.f32 %v22748_v33  ;;  %v22774_v33 = vld [vmem:[#allocation453_spill] sm:$0xff] }
 0x8e2   : > { %13049 = vrcp.f32 %v22751_v48 }
 0x8e3   : > { %9028 = vmatmul.mubr.msk.bf16.gmra.mrb[28].mxu1 %vm3630_vm1, %v6798_v15  ;;  %v22752_v15 = vld [vmem:[#allocation353_spill] sm:$0xff] }
 0x8e4   : > { %7129 = vmatprep.mubr.bf16.mxu1 %v14809_v39  ;;  %13051 = vrcp.f32 %v22752_v15  ;;  %v22777_v15 = vld [vmem:[#allocation450_spill] sm:$0xff] }
 0x8e5   : > { %9060 = vmatmul.mubr.msk.bf16.gmra.mrb[28].mxu0 %vm3630_vm1, %v7249_v51  ;;  %13053 = vrcp.f32 %v22753_v52  ;;  %v22778_v52 = vld [vmem:[#allocation452_spill] sm:$0xff] }
 0x8e6   : > { %7581 = vmatprep.mubr.bf16.mxu0 %v14809_v39  ;;  %13055 = vrcp.f32 %v22754_v19 }
 0x8e7   : > { %13057 = vrcp.f32 %v22759_v60 }
 0x8e8   : > { %v13042_v51 = vpop.eup %13041  ;;  %13059 = vrcp.f32 %v22760_v14 }
 0x8e9   : > { %v13044_v56 = vpop.eup %13043  ;;  %v6739_v20 = vmul.f32 %v13042_v51, %v22755_v23  ;;  %v6779_v23 = vld [vmem:[%s22779_s11] sm:$0x3]  ;;  %s20468_s11 = scalar_lea.sflag [#allocation7], %s22783_s30 }
 0x8ea   : > { %v13046_v29 = vpop.eup %13045  ;;  %v6740_v63 = vmul.f32 %v13044_v56, %v22756_v16 }
 0x8eb   : > { %9037 = vmatmul.mubr.msk.bf16.vlgmr.msra.gmra.mrb[0].mxu1 %vm3630_vm1, %v7016_v35  ;;  %v13048_v3 = vpop.eup %13047  ;;  %v6771_v28 = vmul.f32 %v13046_v29, %v22757_v0  ;;  %v22761_v35 = vld [vmem:[#allocation414_spill] sm:$0xff] }
 0x8ec   : > { %7139 = vmatprep.mubr.bf16.mxu1 %v14809_v39  ;;  %v6772_v30 = vmul.f32 %v13048_v3, %v22758_v7  ;;  %v13050_v37 = vpop.eup %13049  ;;  %13061 = vrcp.f32 %v22761_v35  ;;  %v7020_v26 = vpack.c.bf16 %v6740_v63, %v6739_v20 }
 0x8ed   : > { %9069 = vmatmul.mubr.msk.bf16.vlgmr.msra.gmra.mrb[0].mxu0 %vm3630_vm1, %v7468_v22  ;;  %13063 = vrcp.f32 %v22762_v21  ;;  %v6741_v57 = vmul.f32 %v13050_v37, %v22763_v50 }
 0x8ee   : > { %7591 = vmatprep.mubr.bf16.mxu0 %v14809_v39  ;;  %v13052_v22 = vpop.eup %13051  ;;  %v7472_v9 = vpack.c.bf16 %v6772_v30, %v6771_v28  ;;  %13065 = vrcp.f32 %v22767_v12 }
 0x8ef   : > { %v13054_v45 = vpop.eup %13053  ;;  %v6742_v25 = vmul.f32 %v13052_v22, %v22764_v6  ;;  %13067 = vrcp.f32 %v22768_v46 }
 0x8f0   : > { %v13056_v43 = vpop.eup %13055  ;;  %v6773_v40 = vmul.f32 %v13054_v45, %v22765_v10 }
 0x8f1   : > { %v6774_v58 = vmul.f32 %v13056_v43, %v22766_v27  ;;  %v7021_v31 = vpack.c.bf16 %v6742_v25, %v6741_v57 }
 0x8f3   : > { %9038 = vmatmul.mubr.msk.bf16.gmra.mrb[4].mxu1 %vm3630_vm1, %v7017_v47  ;;  %v13058_v47 = vpop.eup %13057  ;;  %v7473_v13 = vpack.c.bf16 %v6774_v58, %v6773_v40 }
 0x8f4   : > { %7149 = vmatprep.mubr.bf16.mxu1 %v14809_v39  ;;  %v13060_v4 = vpop.eup %13059  ;;  %v6743_v53 = vmul.f32 %v13058_v47, %v22771_v34 }
 0x8f5   : > { %9070 = vmatmul.mubr.msk.bf16.gmra.mrb[4].mxu0 %vm3630_vm1, %v7469_v44  ;;  %v22769_v44 = vld [vmem:[#allocation418_spill] sm:$0xff]  ;;  %v6744_v42 = vmul.f32 %v13060_v4, %v22772_v11 }
 0x8f6   : > { %7601 = vmatprep.mubr.bf16.mxu0 %v14809_v39  ;;  %13069 = vrcp.f32 %v22769_v44  ;;  %v13062_v54 = vpop.eup %13061 }
 0x8f7   : > { %13071 = vrcp.f32 %v22770_v18  ;;  %v13064_v5 = vpop.eup %13063  ;;  %v6775_v36 = vmul.f32 %v13062_v54, %v22773_v17  ;;  %v7022_v61 = vpack.c.bf16 %v6744_v42, %v6743_v53 }
 0x8f8   : > { %v6776_v1 = vmul.f32 %v13064_v5, %v22774_v33 }
 0x8fa   : > { %v7474_v8 = vpack.c.bf16 %v6776_v1, %v6775_v36 }
 0x8fb   : > { %9039 = vmatmul.mubr.msk.bf16.gmra.mrb[8].mxu1 %vm3630_vm1, %v7018_v41  ;;  %v13066_v41 = vpop.eup %13065 }
 0x8fc   : > { %7159 = vmatprep.mubr.bf16.mxu1 %v14809_v39  ;;  %v6745_v24 = vmul.f32 %v13066_v41, %v22775_v2 }
 0x8fd   : > { %9071 = vmatmul.mubr.msk.bf16.gmra.mrb[8].mxu0 %vm3630_vm1, %v7470_v62  ;;  %v13068_v62 = vpop.eup %13067 }
 0x8fe   : > { %7611 = vmatprep.mubr.bf16.mxu0 %v14809_v39  ;;  %v6746_v48 = vmul.f32 %v13068_v62, %v22776_v49 }
 0x900   : > { %v13070_v38 = vpop.eup %13069  ;;  %v7023_v19 = vpack.c.bf16 %v6746_v48, %v6745_v24 }
 0x901   : > { %v13072_v59 = vpop.eup %13071  ;;  %v6777_v51 = vmul.f32 %v13070_v38, %v22777_v15 }
 0x902   : > { %v6778_v56 = vmul.f32 %v13072_v59, %v22778_v52 }
 0x903   : > { %9040 = vmatmul.mubr.msk.bf16.gmra.mrb[12].mxu1 %vm3630_vm1, %v7019_v55  ;;  %v6781_v55 = vlaneseq }
 0x904   : > { %7169 = vmatprep.mubr.bf16.mxu1 %v14809_v39  ;;  %v7475_v29 = vpack.c.bf16 %v6778_v56, %v6777_v51 }
 0x905   : > { %9072 = vmatmul.mubr.msk.bf16.gmra.mrb[12].mxu0 %vm3630_vm1, %v7471_v32  ;;  %v6782_v32 = vshrl.u32 %v6781_v55, 7 }
 0x906   : > { %7621 = vmatprep.mubr.bf16.mxu0 %v14809_v39 }
 0x907   : > { %v6783_v3 = vsub.s32 0, %v6782_v32  ;;  %v6787_v20 = vsub.s32 1, %v6782_v32 }
 0x909   : > { %v20388_v16 = vrot.slane %v6779_v23, %v6783_v3  ;;  %v20390_v63 = vrot.slane %v6779_v23, %v6787_v20 }
 0x90b   : > { %9041 = vmatmul.mubr.msk.bf16.gmra.mrb[16].mxu1 %vm3630_vm1, %v7020_v26 }
 0x90c   : > { %7179 = vmatprep.mubr.bf16.mxu1 %v14809_v39 }
 0x90d   : > { %9073 = vmatmul.mubr.msk.bf16.gmra.mrb[16].mxu0 %vm3630_vm1, %v7472_v9 }
 0x90e   : > { %7631 = vmatprep.mubr.bf16.mxu0 %v14809_v39 }
 0x913   : > { %9042 = vmatmul.mubr.msk.bf16.gmra.mrb[20].mxu1 %vm3630_vm1, %v7021_v31 }
 0x914   : > { %7189 = vmatprep.mubr.bf16.mxu1 %v14809_v39 }
 0x915   : > { %9074 = vmatmul.mubr.msk.bf16.gmra.mrb[20].mxu0 %vm3630_vm1, %v7473_v13 }
 0x916   : > { %7641 = vmatprep.mubr.bf16.mxu0 %v14809_v39 }
 0x91b   : > { %9043 = vmatmul.mubr.msk.bf16.gmra.mrb[24].mxu1 %vm3630_vm1, %v7022_v61 }
 0x91c   : > { %7199 = vmatprep.mubr.bf16.mxu1 %v14809_v39 }
 0x91d   : > { %9075 = vmatmul.mubr.msk.bf16.gmra.mrb[24].mxu0 %vm3630_vm1, %v7474_v8 }
 0x91e   : > { %7651 = vmatprep.mubr.bf16.mxu0 %v14809_v39 }
 0x923   : > { %9044 = vmatmul.mubr.msk.bf16.gmra.mrb[28].mxu1 %vm3630_vm1, %v7023_v19 }
 0x925   : > { %9076 = vmatmul.mubr.msk.bf16.gmra.mrb[28].mxu0 %vm3630_vm1, %v7475_v29 }
 0x9be   : > { %v7131_v39 = vpop.f32.mrb[0].mxu1 }
 0x9bf   : > { %v10625_v28 = vadd.f32 %v7131_v39, %v20388_v16  ;;  %v7133_v7 = vpop.f32.mrb[1].mxu1 }
 0x9c0   : > { %v7583_v0 = vpop.f32.mrb[0].mxu0  ;;  %v10627_v60 = vadd.f32 %v7133_v7, %v20390_v63  ;;  %v7135_v14 = vpop.f32.mrb[2].mxu1 }
 0x9c1   : > { %v7585_v30 = vpop.f32.mrb[1].mxu0  ;;  %v10626_v35 = vadd.f32 %v10625_v28, %v7583_v0  ;;  %v10629_v22 = vadd.f32 %v7135_v14, %v20388_v16  ;;  %v7137_v21 = vpop.f32.mrb[3].mxu1 }
 0x9c2   : > { %v7587_v37 = vpop.f32.mrb[2].mxu0  ;;  %v10628_v26 = vadd.f32 %v10627_v60, %v7585_v30  ;;  %v10631_v9 = vadd.f32 %v7137_v21, %v20390_v63 }
 0x9c3   : > { %v7589_v45 = vpop.f32.mrb[3].mxu0  ;;  %7694 = vst [vmem:[%s15084_s12] sm:$0xff] %v10626_v35  ;;  %v10630_v43 = vadd.f32 %v10629_v22, %v7587_v37 }
 0x9c4   : > { %7695 = vst [vmem:[%s15084_s12 + $0x8] sm:$0xff] %v10628_v26  ;;  %v10632_v50 = vadd.f32 %v10631_v9, %v7589_v45 }
 0x9c5   : > { %7696 = vst [vmem:[%s15084_s12 + $0x10] sm:$0xff] %v10630_v43 }
 0x9c6   : > { %7697 = vst [vmem:[%s15084_s12 + $0x18] sm:$0xff] %v10632_v50  ;;  %v7141_v57 = vpop.f32.mrb[4].mxu1 }
 0x9c7   : > { %v10633_v25 = vadd.f32 %v7141_v57, %v20388_v16  ;;  %v7143_v10 = vpop.f32.mrb[5].mxu1 }
 0x9c8   : > { %v7593_v6 = vpop.f32.mrb[4].mxu0  ;;  %v10635_v27 = vadd.f32 %v7143_v10, %v20390_v63  ;;  %v7145_v58 = vpop.f32.mrb[6].mxu1 }
 0x9c9   : > { %v7595_v40 = vpop.f32.mrb[5].mxu0  ;;  %v10634_v46 = vadd.f32 %v10633_v25, %v7593_v6  ;;  %v10637_v47 = vadd.f32 %v7145_v58, %v20388_v16  ;;  %v7147_v44 = vpop.f32.mrb[7].mxu1 }
 0x9ca   : > { %v7597_v12 = vpop.f32.mrb[6].mxu0  ;;  %v10636_v18 = vadd.f32 %v10635_v27, %v7595_v40  ;;  %v10639_v54 = vadd.f32 %v7147_v44, %v20390_v63 }
 0x9cb   : > { %v7599_v4 = vpop.f32.mrb[7].mxu0  ;;  %7698 = vst [vmem:[%s15084_s12 + $0x20] sm:$0xff] %v10634_v46  ;;  %v10638_v31 = vadd.f32 %v10637_v47, %v7597_v12 }
 0x9cc   : > { %7699 = vst [vmem:[%s15084_s12 + $0x28] sm:$0xff] %v10636_v18  ;;  %v10640_v13 = vadd.f32 %v10639_v54, %v7599_v4 }
 0x9cd   : > { %7700 = vst [vmem:[%s15084_s12 + $0x30] sm:$0xff] %v10638_v31 }
 0x9ce   : > { %7701 = vst [vmem:[%s15084_s12 + $0x38] sm:$0xff] %v10640_v13  ;;  %v7151_v5 = vpop.f32.mrb[8].mxu1 }
 0x9cf   : > { %v10641_v53 = vadd.f32 %v7151_v5, %v20388_v16  ;;  %v7153_v11 = vpop.f32.mrb[9].mxu1 }
 0x9d0   : > { %v7603_v34 = vpop.f32.mrb[8].mxu0  ;;  %v10643_v17 = vadd.f32 %v7153_v11, %v20390_v63  ;;  %v7155_v36 = vpop.f32.mrb[10].mxu1 }
 0x9d1   : > { %v7605_v42 = vpop.f32.mrb[9].mxu0  ;;  %v10642_v1 = vadd.f32 %v10641_v53, %v7603_v34  ;;  %v10645_v41 = vadd.f32 %v7155_v36, %v20388_v16  ;;  %v7157_v62 = vpop.f32.mrb[11].mxu1 }
 0x9d2   : > { %v7607_v33 = vpop.f32.mrb[10].mxu0  ;;  %v10644_v61 = vadd.f32 %v10643_v17, %v7605_v42  ;;  %v10647_v8 = vadd.f32 %v7157_v62, %v20390_v63 }
 0x9d3   : > { %v7609_v38 = vpop.f32.mrb[11].mxu0  ;;  %7702 = vst [vmem:[%s15084_s12 + $0x40] sm:$0xff] %v10642_v1  ;;  %v10646_v59 = vadd.f32 %v10645_v41, %v7607_v33 }
 0x9d4   : > { %7703 = vst [vmem:[%s15084_s12 + $0x48] sm:$0xff] %v10644_v61  ;;  %v10648_v2 = vadd.f32 %v10647_v8, %v7609_v38 }
 0x9d5   : > { %7704 = vst [vmem:[%s15084_s12 + $0x50] sm:$0xff] %v10646_v59 }
 0x9d6   : > { %7705 = vst [vmem:[%s15084_s12 + $0x58] sm:$0xff] %v10648_v2  ;;  %v7161_v24 = vpop.f32.mrb[12].mxu1 }
 0x9d7   : > { %v10649_v48 = vadd.f32 %v7161_v24, %v20388_v16  ;;  %v7163_v15 = vpop.f32.mrb[13].mxu1 }
 0x9d8   : > { %v7613_v49 = vpop.f32.mrb[12].mxu0  ;;  %v10651_v52 = vadd.f32 %v7163_v15, %v20390_v63  ;;  %v7165_v56 = vpop.f32.mrb[14].mxu1 }
 0x9d9   : > { %v7615_v51 = vpop.f32.mrb[13].mxu0  ;;  %v10650_v29 = vadd.f32 %v10649_v48, %v7613_v49  ;;  %v10653_v55 = vadd.f32 %v7165_v56, %v20388_v16  ;;  %v7167_v32 = vpop.f32.mrb[15].mxu1 }
 0x9da   : > { %v7617_v19 = vpop.f32.mrb[14].mxu0  ;;  %v10652_v23 = vadd.f32 %v10651_v52, %v7615_v51  ;;  %v10655_v20 = vadd.f32 %v7167_v32, %v20390_v63 }
 0x9db   : > { %v7619_v3 = vpop.f32.mrb[15].mxu0  ;;  %7706 = vst [vmem:[%s15084_s12 + $0x60] sm:$0xff] %v10650_v29  ;;  %v10654_v39 = vadd.f32 %v10653_v55, %v7617_v19 }
 0x9dc   : > { %7707 = vst [vmem:[%s15084_s12 + $0x68] sm:$0xff] %v10652_v23  ;;  %v10656_v0 = vadd.f32 %v10655_v20, %v7619_v3 }
 0x9dd   : > { %7708 = vst [vmem:[%s15084_s12 + $0x70] sm:$0xff] %v10654_v39 }
 0x9de   : > { %7709 = vst [vmem:[%s15084_s12 + $0x78] sm:$0xff] %v10656_v0  ;;  %v7171_v28 = vpop.f32.mrb[16].mxu1 }
 0x9df   : > { %v10657_v30 = vadd.f32 %v7171_v28, %v20388_v16  ;;  %v7173_v60 = vpop.f32.mrb[17].mxu1 }
 0x9e0   : > { %v7623_v7 = vpop.f32.mrb[16].mxu0  ;;  %v10659_v37 = vadd.f32 %v7173_v60, %v20390_v63  ;;  %v7175_v35 = vpop.f32.mrb[18].mxu1 }
 0x9e1   : > { %v7625_v14 = vpop.f32.mrb[17].mxu0  ;;  %v10658_v21 = vadd.f32 %v10657_v30, %v7623_v7  ;;  %v10661_v45 = vadd.f32 %v7175_v35, %v20388_v16  ;;  %v7177_v26 = vpop.f32.mrb[19].mxu1 }
 0x9e2   : > { %v7627_v22 = vpop.f32.mrb[18].mxu0  ;;  %v10660_v43 = vadd.f32 %v10659_v37, %v7625_v14  ;;  %v10663_v50 = vadd.f32 %v7177_v26, %v20390_v63 }
 0x9e3   : > { %v7629_v9 = vpop.f32.mrb[19].mxu0  ;;  %7710 = vst [vmem:[%s15084_s12 + $0x80] sm:$0xff] %v10658_v21  ;;  %v10662_v57 = vadd.f32 %v10661_v45, %v7627_v22 }
 0x9e4   : > { %7711 = vst [vmem:[%s15084_s12 + $0x88] sm:$0xff] %v10660_v43  ;;  %v10664_v6 = vadd.f32 %v10663_v50, %v7629_v9 }
 0x9e5   : > { %7712 = vst [vmem:[%s15084_s12 + $0x90] sm:$0xff] %v10662_v57 }
 0x9e6   : > { %7713 = vst [vmem:[%s15084_s12 + $0x98] sm:$0xff] %v10664_v6  ;;  %v7181_v25 = vpop.f32.mrb[20].mxu1 }
 0x9e7   : > { %v10665_v40 = vadd.f32 %v7181_v25, %v20388_v16  ;;  %v7183_v27 = vpop.f32.mrb[21].mxu1 }
 0x9e8   : > { %v7633_v10 = vpop.f32.mrb[20].mxu0  ;;  %v10667_v12 = vadd.f32 %v7183_v27, %v20390_v63  ;;  %v7185_v46 = vpop.f32.mrb[22].mxu1 }
 0x9e9   : > { %v7635_v58 = vpop.f32.mrb[21].mxu0  ;;  %v10666_v44 = vadd.f32 %v10665_v40, %v7633_v10  ;;  %v10669_v4 = vadd.f32 %v7185_v46, %v20388_v16  ;;  %v7187_v18 = vpop.f32.mrb[23].mxu1 }
 0x9ea   : > { %v7637_v47 = vpop.f32.mrb[22].mxu0  ;;  %v10668_v31 = vadd.f32 %v10667_v12, %v7635_v58  ;;  %v10671_v13 = vadd.f32 %v7187_v18, %v20390_v63 }
 0x9eb   : > { %v7639_v54 = vpop.f32.mrb[23].mxu0  ;;  %7714 = vst [vmem:[%s15084_s12 + $0xa0] sm:$0xff] %v10666_v44  ;;  %v10670_v5 = vadd.f32 %v10669_v4, %v7637_v47 }
 0x9ec   : > { %7715 = vst [vmem:[%s15084_s12 + $0xa8] sm:$0xff] %v10668_v31  ;;  %v10672_v34 = vadd.f32 %v10671_v13, %v7639_v54 }
 0x9ed   : > { %7716 = vst [vmem:[%s15084_s12 + $0xb0] sm:$0xff] %v10670_v5 }
 0x9ee   : > { %7717 = vst [vmem:[%s15084_s12 + $0xb8] sm:$0xff] %v10672_v34  ;;  %v7191_v53 = vpop.f32.mrb[24].mxu1 }
 0x9ef   : > { %v10673_v42 = vadd.f32 %v7191_v53, %v20388_v16  ;;  %v7193_v17 = vpop.f32.mrb[25].mxu1 }
 0x9f0   : > { %v7643_v11 = vpop.f32.mrb[24].mxu0  ;;  %v10675_v33 = vadd.f32 %v7193_v17, %v20390_v63  ;;  %v7195_v1 = vpop.f32.mrb[26].mxu1 }
 0x9f1   : > { %v7645_v36 = vpop.f32.mrb[25].mxu0  ;;  %v10674_v62 = vadd.f32 %v10673_v42, %v7643_v11  ;;  %v10677_v38 = vadd.f32 %v7195_v1, %v20388_v16  ;;  %v7197_v61 = vpop.f32.mrb[27].mxu1 }
 0x9f2   : > { %v7647_v41 = vpop.f32.mrb[26].mxu0  ;;  %v10676_v59 = vadd.f32 %v10675_v33, %v7645_v36  ;;  %v10679_v2 = vadd.f32 %v7197_v61, %v20390_v63 }
 0x9f3   : > { %v7649_v8 = vpop.f32.mrb[27].mxu0  ;;  %7718 = vst [vmem:[%s15084_s12 + $0xc0] sm:$0xff] %v10674_v62  ;;  %v10678_v24 = vadd.f32 %v10677_v38, %v7647_v41 }
 0x9f4   : > { %7719 = vst [vmem:[%s15084_s12 + $0xc8] sm:$0xff] %v10676_v59  ;;  %v10680_v49 = vadd.f32 %v10679_v2, %v7649_v8 }
 0x9f5   : > { %7720 = vst [vmem:[%s15084_s12 + $0xd0] sm:$0xff] %v10678_v24 }
 0x9f6   : > { %7721 = vst [vmem:[%s15084_s12 + $0xd8] sm:$0xff] %v10680_v49  ;;  %v7201_v48 = vpop.f32.mrb[28].mxu1 }
 0x9f7   : > { %v10681_v51 = vadd.f32 %v7201_v48, %v20388_v16  ;;  %v7203_v52 = vpop.f32.mrb[29].mxu1 }
 0x9f8   : > { %v7653_v15 = vpop.f32.mrb[28].mxu0  ;;  %v10683_v19 = vadd.f32 %v7203_v52, %v20390_v63  ;;  %v7205_v29 = vpop.f32.mrb[30].mxu1 }
 0x9f9   : > { %v7655_v56 = vpop.f32.mrb[29].mxu0  ;;  %v10682_v32 = vadd.f32 %v10681_v51, %v7653_v15  ;;  %v10685_v3 = vadd.f32 %v7205_v29, %v20388_v16  ;;  %v7207_v23 = vpop.f32.mrb[31].mxu1 }
 0x9fa   : > { %v7657_v55 = vpop.f32.mrb[30].mxu0  ;;  %v10684_v39 = vadd.f32 %v10683_v19, %v7655_v56  ;;  %v10687_v0 = vadd.f32 %v7207_v23, %v20390_v63 }
 0x9fb   : > { %v7659_v20 = vpop.f32.mrb[31].mxu0  ;;  %7722 = vst [vmem:[%s15084_s12 + $0xe0] sm:$0xff] %v10682_v32  ;;  %v10686_v28 = vadd.f32 %v10685_v3, %v7657_v55 }
 0x9fc   : > { %7723 = vst [vmem:[%s15084_s12 + $0xe8] sm:$0xff] %v10684_v39  ;;  %v10688_v16 = vadd.f32 %v10687_v0, %v7659_v20 }
 0x9fd   : > { %7724 = vst [vmem:[%s15084_s12 + $0xf0] sm:$0xff] %v10686_v28 }
 0x9fe   : > { %7725 = vst [vmem:[%s15084_s12 + $0xf8] sm:$0xff] %v10688_v16 }
 0x9ff   : > { %13144 = shalt.err (!%p13141_p6)
}
 0xa00   : > { %s13145_s12 = scalar_lea.hbm %s20459_s6, 4096  ;;  %s13149_s17 = scalar_lea.hbm %s22782_s3, 16384 }
 0xa01   : > { %p13146_p10 = scmp.ne.s32.totalorder %s20459_s6, %s13145_s12  ;;  %p13150_p7 = scmp.lt.u32.totalorder %s20459_s6, %s22782_s3 }
 0xa02   : > { %p13151_p9 = scmp.lt.u32.totalorder %s13149_s17, %s13145_s12  ;;  %p13153_p13 = scmp.lt.u32.totalorder %s13145_s12, %s20459_s6 }
 0xa03   : > { %p13147_p3 = pnand %p13146_p10, %p22784_p0 }
 0xa04   : > { %p13152_p11 = por %p13151_p9, %p13150_p7 }
 0xa05   : > { %p13148_p4 = pneg %p13147_p3 }
 0xa06   : > { %p13154_p2 = por %p13153_p13, %p13152_p11 }
 0xa08   : > { %p13155_p5 = pnand %p13154_p2, %p13148_p4 }
 0xa0a   : > { %13158 = shalt.err (!%p13155_p5)
}
 0xa0b   : > { %s14811_s29 = smov 256   ;;  %s14812_s10 = smov 16  }
 0xa0c   : > { %10791 = dma.vmem_to_hbm [thread:$0]  (%p22784_p0), %s20461_s24, 4096, %s20459_s6, %s20468_s11, %s14811_s29, %s14811_s29, %s14812_s10  }
 0xa0d PF: > { %s22785_s23 = sld [smem:[#allocation14_spill]]  ;;  %s22786_s20 = sld [smem:[#allocation17_spill]] }
 0xa0e   : > { %p10808_p8 = scmp.ge.s32.totalorder %s14029_s27, 2 }
 0xa13   : > { %s7758_s28 = sand.u32 1, %s22785_s23   ;;  %p22787_p12 = scmp.ne.s32.totalorder %s22786_s20, 0 }
 0xa14   : > { %s7759_s12 = scalar_lea.sflag [#allocation7], %s7758_s28 }
 0xa15   : > { %p10802_p1 = pnand %p10808_p8, %p22787_p12 }
 0xa17   : > { %13984 = dma.done.wait (!%p10802_p1), %s7759_s12, 4096  }
 0xa18   : > { %13986 = vsyncadd (!%p10802_p1), %s7759_s12, 4294963200  ;;  %s28_s27 = sadd.s32 1, %s14029_s27   ;;  %s22788_s23 = sld [smem:[#allocation15_spill]] }
 0xa19   : > { %p25_p6 = scmp.ge.s32.totalorder %s28_s27, 6   ;;  %s22789_s13 = sld [smem:[#allocation18_spill]] }
 0xa1a   : > { %s22790_s6 = sld [smem:[#allocation19_spill]]  ;;  %s22791_s17 = smov %s13993_s18 }
 0xa1b   : > { %s22792_s18 = smov %s13997_s19  ;;  %s22793_s19 = smov %s15010_s25 }
 0xa1c   : > { %s22794_s20 = smov %s14005_s21  ;;  %s22795_s21 = smov %s14009_s22 }
 0xa1d   : > { %s22796_s22 = smov %s15005_s9  ;;  %s22797_s24 = smov %s14025_s26 }
 0xa1e   :  { %27 = sbr.rel (!%p25_p6) target bundleno = 19 (0x13), region = 181 }
 0xa1f   : > { %s22798_s25 = smov %s22789_s13 }
 0xa20   : > { %s22799_s26 = smov %s22790_s6 }
 0xa25   :  { %7764 = vsyncpa [#allocation6], 1 }
 0xa26   :  { %7766 = vsyncpa [#allocation6 + $0x1], 1 }
 0xa27   :  { %7767 = vsyncpa [#allocation9], 1 }
 0xa28   :  { %7768 = vsyncpa [#allocation7], 1 }
 0xa29   :  { %7770 = vsyncpa [#allocation7 + $0x1], 1 }

</bundles_post_ra>
